<compile_context>
chip_gen: v5e
topology: v5e:2x2
jax: 0.10.0
libtpu: 0.0.40
codegen_flags: <defaults>
</compile_context>

<pallas_src>
import jax
import jax.numpy as jnp
from jax import lax
from jax.experimental import pallas as pl
from jax.experimental.pallas import tpu as pltpu

# ----------------------------- model config (scaled-down ViT) -----------------
BATCH = 2
IN_CH = 3
IMG = 16
PATCH = 4
GRIDP = IMG // PATCH                  # 4
NUM_PATCHES = GRIDP * GRIDP           # 16
DIM = 64                              # embed dim (384 in DeiT-Small)
HEADS = 4                             # (6 in DeiT-Small)
HEAD_DIM = DIM // HEADS               # 16
MLP_DIM = 4 * DIM                     # 256
DEPTH = 2                             # (12 in DeiT-Small)
SEQ = NUM_PATCHES + 1                 # 17 tokens (cls + patches)
SEQ_PAD = ((SEQ + 7) // 8) * 8        # 24 (sublane-aligned per-batch stride)
ROWS = BATCH * SEQ_PAD                # 48 rows in the resident activation slab
PATCH_DIM = IN_CH * PATCH * PATCH     # 48
LN_EPS = 1e-6                         # timm ViT uses LayerNorm(eps=1e-6)
DTYPE = jnp.float32
WDT = jnp.bfloat16                    # MXU-operand dtype (accumulate in f32)
SCALE = HEAD_DIM ** -0.5
NEG = -1e9                            # additive mask value (exp underflows to 0)


# ----------------------------- in-kernel helpers -------------------------------
def _layernorm(x, g, b, eps=LN_EPS):
    """Row-wise LayerNorm in f32.  g/b are (1, D)."""
    mean = jnp.mean(x, axis=-1, keepdims=True)
    c = x - mean
    var = jnp.mean(c * c, axis=-1, keepdims=True)
    return c * lax.rsqrt(var + eps) * g + b


def _gelu_tanh(x):
    # TODO(synk): torch.nn.GELU default is erf-based; tanh approximation used here
    # for a guaranteed Mosaic lowering (tanh -> EUP); difference is ~1e-3.
    c = 0.7978845608028654  # sqrt(2/pi)
    return 0.5 * x * (1.0 + jnp.tanh(c * (x + 0.044715 * x * x * x)))


# ----------------------------- the fused kernel ---------------------------------
def _vit_kernel(patches_ref, pw_ref, pb_ref, clspos_ref, posp_ref,
                ln1g_ref, ln1b_ref,
                qw_ref, qb_ref, kw_ref, kb_ref, vw_ref, vb_ref,
                projw_ref, projb_ref,
                ln2g_ref, ln2b_ref, fc1w_ref, fc1b_ref, fc2w_ref, fc2b_ref,
                ng_ref, nb_ref,
                o_ref, h_ref):
    f32 = jnp.float32

    # ---- attention additive mask, built once and reused every block -------------
    # valid(i, j) <=> key j is a real token in the SAME batch element as query i.
    ridx = lax.broadcasted_iota(jnp.int32, (ROWS, ROWS), 0)
    cidx = lax.broadcasted_iota(jnp.int32, (ROWS, ROWS), 1)
    attn_bias = jnp.full((ROWS, ROWS), NEG, f32)
    for b in range(BATCH):
        lo = b * SEQ_PAD
        in_q = (ridx >= lo) & (ridx < lo + SEQ_PAD)   # queries of batch b (incl pad)
        in_k = (cidx >= lo) & (cidx < lo + SEQ)       # only REAL keys of batch b
        attn_bias = jnp.where(in_q & in_k, 0.0, attn_bias)

    # ---- patch embedding: (B*NP, PD)bf16 @ (PD, DIM)bf16 + b -> f32 tokens ------
    tok = jnp.dot(patches_ref[...], pw_ref[...],
                  preferred_element_type=f32) + pb_ref[...]

    # ---- token slab assembly: one aligned full-slab store -----------------------
    cls_row = clspos_ref[...]                          # (1, DIM) = cls + pos[0]
    posp = posp_ref[...]                               # (NP, DIM) = pos[1:SEQ]
    pad = jnp.zeros((SEQ_PAD - SEQ, DIM), f32)
    pieces = []
    for b in range(BATCH):
        pieces += [cls_row,
                   tok[b * NUM_PATCHES:(b + 1) * NUM_PATCHES, :] + posp,
                   pad]
    h_ref[...] = jnp.concatenate(pieces, axis=0)       # (ROWS, DIM), aligned store

    # ---- transformer blocks (DEPTH statically unrolled) -------------------------
    for d in range(DEPTH):
        # --- MHSA: batched over the whole 48-row slab, loop only over heads ------
        x = h_ref[...]                                 # (ROWS, DIM) f32
        y = _layernorm(x, ln1g_ref[d], ln1b_ref[d]).astype(WDT)
        attn = jnp.zeros((ROWS, DIM), f32)
        for hh in range(HEADS):
            dh = d * HEADS + hh
            # per-head q/k/v via static weight-ref blocks (scale folded into q_w/q_b)
            q = jnp.dot(y, qw_ref[dh], preferred_element_type=f32) + qb_ref[dh]
            k = jnp.dot(y, kw_ref[dh], preferred_element_type=f32) + kb_ref[dh]
            v = jnp.dot(y, vw_ref[dh], preferred_element_type=f32) + vb_ref[dh]
            # scores on the full slab; mask pad keys + cross-batch positions
            s = lax.dot_general(q.astype(WDT), k.astype(WDT),
                                (((1,), (1,)), ((), ())),
                                preferred_element_type=f32) + attn_bias
            s = s - jnp.max(s, axis=-1, keepdims=True)
            p = jnp.exp(s)
            p = p * pl.reciprocal(jnp.sum(p, axis=-1, keepdims=True), approx=True)
            ho = jnp.dot(p.astype(WDT), v.astype(WDT), preferred_element_type=f32)
            # accumulate this head straight into the output projection
            attn = attn + jnp.dot(ho.astype(WDT), projw_ref[dh],
                                  preferred_element_type=f32)
        h_ref[...] = x + attn + projb_ref[d]           # residual (full aligned store)

        # --- MLP sub-block --------------------------------------------------------
        x = h_ref[...]
        y = _layernorm(x, ln2g_ref[d], ln2b_ref[d])
        y = jnp.dot(y.astype(WDT), fc1w_ref[d],
                    preferred_element_type=f32) + fc1b_ref[d]       # (ROWS, MLP)
        y = _gelu_tanh(y)
        y = jnp.dot(y.astype(WDT), fc2w_ref[d],
                    preferred_element_type=f32) + fc2b_ref[d]       # (ROWS, DIM)
        h_ref[...] = x + y                                          # residual

    # ---- final LN on the cls rows only + single output store --------------------
    cls_all = jnp.concatenate(
        [h_ref[b * SEQ_PAD:b * SEQ_PAD + 1, :] for b in range(BATCH)], axis=0)
    o_ref[...] = _layernorm(cls_all, ng_ref[...], nb_ref[...])


# ----------------------------- JAX glue -----------------------------------------
def extract_patches(x, p):
    """NCHW image -> (B, num_patches, C*p*p), row-major patch order (matches
    timm PatchEmbed's conv(stride=p).flatten(2).transpose(1,2))."""
    B, C, H, W = x.shape
    gh, gw = H // p, W // p
    x = x.reshape(B, C, gh, p, gw, p)
    x = x.transpose(0, 2, 4, 1, 3, 5)                  # (B, gh, gw, C, p, p)
    return x.reshape(B, gh * gw, C * p * p)


def _full_spec(shape):
    nd = len(shape)
    return pl.BlockSpec(shape, lambda i, _nd=nd: (0,) * _nd)


def forward_features(x, kp):
    """Mirrors FeaturesDeitSmall.forward: forward_features + .view(B, -1)."""
    patches = extract_patches(x, PATCH).reshape(BATCH * NUM_PATCHES, PATCH_DIM)
    patches = patches.astype(WDT)          # bf16 MXU operand (halves input DMA)

    args = (
        patches,
        kp["patch_w"], kp["patch_b"],
        kp["cls_pos"], kp["pos_patch"],
        kp["ln1_g"], kp["ln1_b"],
        kp["q_w"], kp["q_b"], kp["k_w"], kp["k_b"], kp["v_w"], kp["v_b"],
        kp["proj_w"], kp["proj_b"],
        kp["ln2_g"], kp["ln2_b"],
        kp["fc1_w"], kp["fc1_b"], kp["fc2_w"], kp["fc2_b"],
        kp["norm_g"], kp["norm_b"],
    )
    in_specs = [_full_spec(a.shape) for a in args]

    return pl.pallas_call(
        _vit_kernel,
        out_shape=jax.ShapeDtypeStruct((BATCH, DIM), DTYPE),
        grid=(1,),
        in_specs=in_specs,
        out_specs=_full_spec((BATCH, DIM)),
        scratch_shapes=[pltpu.VMEM((ROWS, DIM), jnp.float32)],
        compiler_params=pltpu.CompilerParams(
            dimension_semantics=("arbitrary",)),
    )(*args)


# ----------------------------- deterministic params -----------------------------
def init_params(key):
    """PyTorch-layout parameters (synthesized deterministically)."""
    def nrm(k, shape, std=0.02):
        return (std * jax.random.normal(k, shape)).astype(jnp.float32)

    keys = jax.random.split(key, 8)
    return {
        "patch_w": nrm(keys[0], (PATCH_DIM, DIM)),
        "patch_b": jnp.zeros((1, DIM), jnp.float32),
        "cls_token": nrm(keys[1], (1, DIM)),
        "pos_embed": nrm(keys[2], (SEQ, DIM)),
        "norm_g": jnp.ones((1, DIM), jnp.float32),
        "norm_b": jnp.zeros((1, DIM), jnp.float32),
        "ln1_g": jnp.ones((DEPTH, 1, DIM), jnp.float32),
        "ln1_b": jnp.zeros((DEPTH, 1, DIM), jnp.float32),
        "qkv_w": nrm(keys[3], (DEPTH, DIM, 3 * DIM)),
        "qkv_b": jnp.zeros((DEPTH, 1, 3 * DIM), jnp.float32),
        "proj_w": nrm(keys[4], (DEPTH, DIM, DIM)),
        "proj_b": jnp.zeros((DEPTH, 1, DIM), jnp.float32),
        "ln2_g": jnp.ones((DEPTH, 1, DIM), jnp.float32),
        "ln2_b": jnp.zeros((DEPTH, 1, DIM), jnp.float32),
        "fc1_w": nrm(keys[5], (DEPTH, DIM, MLP_DIM)),
        "fc1_b": jnp.zeros((DEPTH, 1, MLP_DIM), jnp.float32),
        "fc2_w": nrm(keys[6], (DEPTH, MLP_DIM, DIM)),
        "fc2_b": jnp.zeros((DEPTH, 1, DIM), jnp.float32),
    }


def prepare_params(p):
    """ONE-TIME host-side re-layout into the kernel's layout:
      * q/k/v/proj split into per-head blocks with a (DEPTH*HEADS) leading axis
        so the kernel only does static leading-axis ref indexing,
      * attention scale folded into the Q weights/bias,
      * cls token pre-combined with its positional embedding,
      * MXU-operand weights cast to bf16 (everything else stays f32)."""
    f32 = jnp.float32
    qkv_w = p["qkv_w"].astype(f32)          # (DEPTH, DIM, 3*DIM)
    qkv_b = p["qkv_b"].astype(f32)          # (DEPTH, 1, 3*DIM)

    def heads_w(w):   # (DEPTH, DIM, DIM) -> (DEPTH*HEADS, DIM, HEAD_DIM)
        return (w.reshape(DEPTH, DIM, HEADS, HEAD_DIM)
                 .transpose(0, 2, 1, 3)
                 .reshape(DEPTH * HEADS, DIM, HEAD_DIM))

    def heads_b(b):   # (DEPTH, 1, DIM) -> (DEPTH*HEADS, 1, HEAD_DIM)
        return (b.reshape(DEPTH, 1, HEADS, HEAD_DIM)
                 .transpose(0, 2, 1, 3)
                 .reshape(DEPTH * HEADS, 1, HEAD_DIM))

    q_w = heads_w(qkv_w[:, :, 0:DIM]) * SCALE          # scale folded into Q
    k_w = heads_w(qkv_w[:, :, DIM:2 * DIM])
    v_w = heads_w(qkv_w[:, :, 2 * DIM:3 * DIM])
    q_b = heads_b(qkv_b[:, :, 0:DIM]) * SCALE
    k_b = heads_b(qkv_b[:, :, DIM:2 * DIM])
    v_b = heads_b(qkv_b[:, :, 2 * DIM:3 * DIM])

    # proj rows are grouped by head: head h contributes rows [h*HD, (h+1)*HD).
    proj_w = (p["proj_w"].astype(f32)
              .reshape(DEPTH, HEADS, HEAD_DIM, DIM)
              .reshape(DEPTH * HEADS, HEAD_DIM, DIM))

    return {
        "patch_w": p["patch_w"].astype(WDT),
        "patch_b": p["patch_b"].astype(f32),
        "cls_pos": (p["cls_token"] + p["pos_embed"][0:1, :]).astype(f32),
        "pos_patch": p["pos_embed"][1:SEQ, :].astype(f32),
        "ln1_g": p["ln1_g"], "ln1_b": p["ln1_b"],
        "q_w": q_w.astype(WDT), "q_b": q_b,
        "k_w": k_w.astype(WDT), "k_b": k_b,
        "v_w": v_w.astype(WDT), "v_b": v_b,
        "proj_w": proj_w.astype(WDT), "proj_b": p["proj_b"].astype(f32),
        "ln2_g": p["ln2_g"], "ln2_b": p["ln2_b"],
        "fc1_w": p["fc1_w"].astype(WDT), "fc1_b": p["fc1_b"].astype(f32),
        "fc2_w": p["fc2_w"].astype(WDT), "fc2_b": p["fc2_b"].astype(f32),
        "norm_g": p["norm_g"], "norm_b": p["norm_b"],
    }


# TODO(synk): real DeiT-Small loads pretrained weights via torch.hub; here params
# are synthesized deterministically and depth/dim are scaled down for a small test.

if __name__ == "__main__":
    key = jax.random.PRNGKey(0)
    pkey, xkey = jax.random.split(key)
    params = init_params(pkey)
    kparams = prepare_params(params)          # one-time host-side re-layout
    x = jax.random.normal(xkey, (BATCH, IN_CH, IMG, IMG), dtype=DTYPE)  # NCHW

    fwd = jax.jit(forward_features)
    out = jax.block_until_ready(fwd(x, kparams))

    assert out.shape == (BATCH, DIM), out.shape
    assert bool(jnp.all(jnp.isfinite(out)))
    print("KERNEL_OK")
</pallas_src>

<mosaic_0001>
module attributes {stable_mosaic.version = 11 : i64} {
  func.func @_vit_kernel(%arg0: i32, %arg1: memref<32x48xbf16, #tpu.memory_space<vmem>>, %arg2: memref<48x64xbf16, #tpu.memory_space<vmem>>, %arg3: memref<1x64xf32, #tpu.memory_space<vmem>>, %arg4: memref<1x64xf32, #tpu.memory_space<vmem>>, %arg5: memref<16x64xf32, #tpu.memory_space<vmem>>, %arg6: memref<2x1x64xf32, #tpu.memory_space<vmem>>, %arg7: memref<2x1x64xf32, #tpu.memory_space<vmem>>, %arg8: memref<8x64x16xbf16, #tpu.memory_space<vmem>>, %arg9: memref<8x1x16xf32, #tpu.memory_space<vmem>>, %arg10: memref<8x64x16xbf16, #tpu.memory_space<vmem>>, %arg11: memref<8x1x16xf32, #tpu.memory_space<vmem>>, %arg12: memref<8x64x16xbf16, #tpu.memory_space<vmem>>, %arg13: memref<8x1x16xf32, #tpu.memory_space<vmem>>, %arg14: memref<8x16x64xbf16, #tpu.memory_space<vmem>>, %arg15: memref<2x1x64xf32, #tpu.memory_space<vmem>>, %arg16: memref<2x1x64xf32, #tpu.memory_space<vmem>>, %arg17: memref<2x1x64xf32, #tpu.memory_space<vmem>>, %arg18: memref<2x64x256xbf16, #tpu.memory_space<vmem>>, %arg19: memref<2x1x256xf32, #tpu.memory_space<vmem>>, %arg20: memref<2x256x64xbf16, #tpu.memory_space<vmem>>, %arg21: memref<2x1x64xf32, #tpu.memory_space<vmem>>, %arg22: memref<1x64xf32, #tpu.memory_space<vmem>>, %arg23: memref<1x64xf32, #tpu.memory_space<vmem>>, %arg24: memref<2x64xf32, #tpu.memory_space<vmem>>, %arg25: memref<48x64xf32, #tpu.memory_space<vmem>>) attributes {dimension_semantics = [#tpu.dimension_semantics<arbitrary>], iteration_bounds = array<i64: 1>, scalar_prefetch = 0 : i64, scratch_operands = 1 : i64, tpu.core_type = #tpu.core_type<tc>, window_params = [{pipeline_mode = #tpu.pipeline_mode<synchronous>, transform_indices = @transform_0, window_bounds = array<i64: 32, 48>}, {pipeline_mode = #tpu.pipeline_mode<synchronous>, transform_indices = @transform_1, window_bounds = array<i64: 48, 64>}, {pipeline_mode = #tpu.pipeline_mode<synchronous>, transform_indices = @transform_2, window_bounds = array<i64: 1, 64>}, {pipeline_mode = #tpu.pipeline_mode<synchronous>, transform_indices = @transform_3, window_bounds = array<i64: 1, 64>}, {pipeline_mode = #tpu.pipeline_mode<synchronous>, transform_indices = @transform_4, window_bounds = array<i64: 16, 64>}, {pipeline_mode = #tpu.pipeline_mode<synchronous>, transform_indices = @transform_5, window_bounds = array<i64: 2, 1, 64>}, {pipeline_mode = #tpu.pipeline_mode<synchronous>, transform_indices = @transform_6, window_bounds = array<i64: 2, 1, 64>}, {pipeline_mode = #tpu.pipeline_mode<synchronous>, transform_indices = @transform_7, window_bounds = array<i64: 8, 64, 16>}, {pipeline_mode = #tpu.pipeline_mode<synchronous>, transform_indices = @transform_8, window_bounds = array<i64: 8, 1, 16>}, {pipeline_mode = #tpu.pipeline_mode<synchronous>, transform_indices = @transform_9, window_bounds = array<i64: 8, 64, 16>}, {pipeline_mode = #tpu.pipeline_mode<synchronous>, transform_indices = @transform_10, window_bounds = array<i64: 8, 1, 16>}, {pipeline_mode = #tpu.pipeline_mode<synchronous>, transform_indices = @transform_11, window_bounds = array<i64: 8, 64, 16>}, {pipeline_mode = #tpu.pipeline_mode<synchronous>, transform_indices = @transform_12, window_bounds = array<i64: 8, 1, 16>}, {pipeline_mode = #tpu.pipeline_mode<synchronous>, transform_indices = @transform_13, window_bounds = array<i64: 8, 16, 64>}, {pipeline_mode = #tpu.pipeline_mode<synchronous>, transform_indices = @transform_14, window_bounds = array<i64: 2, 1, 64>}, {pipeline_mode = #tpu.pipeline_mode<synchronous>, transform_indices = @transform_15, window_bounds = array<i64: 2, 1, 64>}, {pipeline_mode = #tpu.pipeline_mode<synchronous>, transform_indices = @transform_16, window_bounds = array<i64: 2, 1, 64>}, {pipeline_mode = #tpu.pipeline_mode<synchronous>, transform_indices = @transform_17, window_bounds = array<i64: 2, 64, 256>}, {pipeline_mode = #tpu.pipeline_mode<synchronous>, transform_indices = @transform_18, window_bounds = array<i64: 2, 1, 256>}, {pipeline_mode = #tpu.pipeline_mode<synchronous>, transform_indices = @transform_19, window_bounds = array<i64: 2, 256, 64>}, {pipeline_mode = #tpu.pipeline_mode<synchronous>, transform_indices = @transform_20, window_bounds = array<i64: 2, 1, 64>}, {pipeline_mode = #tpu.pipeline_mode<synchronous>, transform_indices = @transform_21, window_bounds = array<i64: 1, 64>}, {pipeline_mode = #tpu.pipeline_mode<synchronous>, transform_indices = @transform_22, window_bounds = array<i64: 1, 64>}, {pipeline_mode = #tpu.pipeline_mode<synchronous>, transform_indices = @transform_23, window_bounds = array<i64: 2, 64>}]} {
    %0 = tpu.iota {dimensions = array<i32: 0>} : vector<48x48xi32>
    %1 = tpu.iota {dimensions = array<i32: 1>} : vector<48x48xi32>
    %cst = arith.constant -1.000000e+09 : f32
    %2 = vector.broadcast %cst : f32 to vector<48x48xf32>
    %c0_i32 = arith.constant 0 : i32
    %3 = vector.broadcast %c0_i32 : i32 to vector<48x48xi32>
    %4 = arith.cmpi sge, %0, %3 : vector<48x48xi32>
    %c24_i32 = arith.constant 24 : i32
    %5 = vector.broadcast %c24_i32 : i32 to vector<48x48xi32>
    %6 = arith.cmpi slt, %0, %5 : vector<48x48xi32>
    %7 = arith.andi %4, %6 : vector<48x48xi1>
    %c0_i32_0 = arith.constant 0 : i32
    %8 = vector.broadcast %c0_i32_0 : i32 to vector<48x48xi32>
    %9 = arith.cmpi sge, %1, %8 : vector<48x48xi32>
    %c17_i32 = arith.constant 17 : i32
    %10 = vector.broadcast %c17_i32 : i32 to vector<48x48xi32>
    %11 = arith.cmpi slt, %1, %10 : vector<48x48xi32>
    %12 = arith.andi %9, %11 : vector<48x48xi1>
    %13 = arith.andi %7, %12 : vector<48x48xi1>
    %cst_1 = arith.constant 0.000000e+00 : f32
    %14 = vector.broadcast %cst_1 : f32 to vector<48x48xf32>
    %15 = arith.select %13, %14, %2 : vector<48x48xi1>, vector<48x48xf32>
    %c24_i32_2 = arith.constant 24 : i32
    %16 = vector.broadcast %c24_i32_2 : i32 to vector<48x48xi32>
    %17 = arith.cmpi sge, %0, %16 : vector<48x48xi32>
    %c48_i32 = arith.constant 48 : i32
    %18 = vector.broadcast %c48_i32 : i32 to vector<48x48xi32>
    %19 = arith.cmpi slt, %0, %18 : vector<48x48xi32>
    %20 = arith.andi %17, %19 : vector<48x48xi1>
    %c24_i32_3 = arith.constant 24 : i32
    %21 = vector.broadcast %c24_i32_3 : i32 to vector<48x48xi32>
    %22 = arith.cmpi sge, %1, %21 : vector<48x48xi32>
    %c41_i32 = arith.constant 41 : i32
    %23 = vector.broadcast %c41_i32 : i32 to vector<48x48xi32>
    %24 = arith.cmpi slt, %1, %23 : vector<48x48xi32>
    %25 = arith.andi %22, %24 : vector<48x48xi1>
    %26 = arith.andi %20, %25 : vector<48x48xi1>
    %cst_4 = arith.constant 0.000000e+00 : f32
    %27 = vector.broadcast %cst_4 : f32 to vector<48x48xf32>
    %28 = arith.select %26, %27, %15 : vector<48x48xi1>, vector<48x48xf32>
    %c0 = arith.constant 0 : index
    %c0_5 = arith.constant 0 : index
    %29 = vector.load %arg1[%c0, %c0_5] : memref<32x48xbf16, #tpu.memory_space<vmem>>, vector<32x48xbf16>
    %c0_6 = arith.constant 0 : index
    %c0_7 = arith.constant 0 : index
    %30 = vector.load %arg2[%c0_6, %c0_7] : memref<48x64xbf16, #tpu.memory_space<vmem>>, vector<48x64xbf16>
    %cst_8 = arith.constant dense<0.000000e+00> : vector<32x64xf32>
    %31 = tpu.matmul %29, %30, %cst_8 {dimension_numbers = #tpu.dot_dimension_numbers<[1], [0], [0], [1], [0, 0, 1, 1], [], []>} : vector<32x48xbf16>, vector<48x64xbf16>, vector<32x64xf32> -> vector<32x64xf32>
    %c0_9 = arith.constant 0 : index
    %c0_10 = arith.constant 0 : index
    %32 = vector.load %arg3[%c0_9, %c0_10] : memref<1x64xf32, #tpu.memory_space<vmem>>, vector<1x64xf32>
    %33 = vector.broadcast %32 : vector<1x64xf32> to vector<32x64xf32>
    %34 = arith.addf %31, %33 : vector<32x64xf32>
    %c0_11 = arith.constant 0 : index
    %c0_12 = arith.constant 0 : index
    %35 = vector.load %arg4[%c0_11, %c0_12] : memref<1x64xf32, #tpu.memory_space<vmem>>, vector<1x64xf32>
    %c0_13 = arith.constant 0 : index
    %c0_14 = arith.constant 0 : index
    %36 = vector.load %arg5[%c0_13, %c0_14] : memref<16x64xf32, #tpu.memory_space<vmem>>, vector<16x64xf32>
    %cst_15 = arith.constant 0.000000e+00 : f32
    %37 = vector.broadcast %cst_15 : f32 to vector<7x64xf32>
    %38 = vector.extract_strided_slice %34 {offsets = [0, 0], sizes = [16, 64], strides = [1, 1]} : vector<32x64xf32> to vector<16x64xf32>
    %39 = arith.addf %38, %36 : vector<16x64xf32>
    %40 = vector.extract_strided_slice %34 {offsets = [16, 0], sizes = [16, 64], strides = [1, 1]} : vector<32x64xf32> to vector<16x64xf32>
    %41 = arith.addf %40, %36 : vector<16x64xf32>
    %42 = tpu.concatenate %35, %39, %37, %35, %41, %37 in 0 : vector<1x64xf32>, vector<16x64xf32>, vector<7x64xf32>, vector<1x64xf32>, vector<16x64xf32>, vector<7x64xf32> -> vector<48x64xf32>
    %c0_16 = arith.constant 0 : index
    %c0_17 = arith.constant 0 : index
    %43 = vector.load %arg25[%c0_16, %c0_17] : memref<48x64xf32, #tpu.memory_space<vmem>>, vector<48x64xf32>
    tpu.vector_store %arg25[%c0_16, %c0_17], %42 {strides = array<i32>} : memref<48x64xf32, #tpu.memory_space<vmem>>, vector<48x64xf32>,
    %c0_18 = arith.constant 0 : index
    %c0_19 = arith.constant 0 : index
    %44 = vector.load %arg25[%c0_18, %c0_19] : memref<48x64xf32, #tpu.memory_space<vmem>>, vector<48x64xf32>
    %c0_20 = arith.constant 0 : index
    %c0_21 = arith.constant 0 : index
    %c0_22 = arith.constant 0 : index
    %45 = vector.load %arg6[%c0_20, %c0_21, %c0_22] : memref<2x1x64xf32, #tpu.memory_space<vmem>>, vector<1x1x64xf32>
    %46 = vector.shape_cast %45 : vector<1x1x64xf32> to vector<1x64xf32>
    %c0_23 = arith.constant 0 : index
    %c0_24 = arith.constant 0 : index
    %c0_25 = arith.constant 0 : index
    %47 = vector.load %arg7[%c0_23, %c0_24, %c0_25] : memref<2x1x64xf32, #tpu.memory_space<vmem>>, vector<1x1x64xf32>
    %48 = vector.shape_cast %47 : vector<1x1x64xf32> to vector<1x64xf32>
    %cst_26 = arith.constant dense<0.000000e+00> : vector<48xf32>
    %49 = vector.multi_reduction <add>, %44, %cst_26 [1] : vector<48x64xf32> to vector<48xf32>
    %50 = vector.shape_cast %49 : vector<48xf32> to vector<48x1xf32>
    %cst_27 = arith.constant 6.400000e+01 : f32
    %51 = vector.broadcast %cst_27 : f32 to vector<48x1xf32>
    %52 = arith.divf %50, %51 : vector<48x1xf32>
    %53 = vector.broadcast %52 : vector<48x1xf32> to vector<48x64xf32>
    %54 = arith.subf %44, %53 : vector<48x64xf32>
    %55 = arith.mulf %54, %54 : vector<48x64xf32>
    %cst_28 = arith.constant dense<0.000000e+00> : vector<48xf32>
    %56 = vector.multi_reduction <add>, %55, %cst_28 [1] : vector<48x64xf32> to vector<48xf32>
    %57 = vector.shape_cast %56 : vector<48xf32> to vector<48x1xf32>
    %cst_29 = arith.constant 6.400000e+01 : f32
    %58 = vector.broadcast %cst_29 : f32 to vector<48x1xf32>
    %59 = arith.divf %57, %58 : vector<48x1xf32>
    %cst_30 = arith.constant 9.99999997E-7 : f32
    %60 = vector.broadcast %cst_30 : f32 to vector<48x1xf32>
    %61 = arith.addf %59, %60 : vector<48x1xf32>
    %62 = math.rsqrt %61 : vector<48x1xf32>
    %63 = vector.broadcast %62 : vector<48x1xf32> to vector<48x64xf32>
    %64 = arith.mulf %54, %63 : vector<48x64xf32>
    %65 = vector.broadcast %46 : vector<1x64xf32> to vector<48x64xf32>
    %66 = arith.mulf %64, %65 : vector<48x64xf32>
    %67 = vector.broadcast %48 : vector<1x64xf32> to vector<48x64xf32>
    %68 = arith.addf %66, %67 : vector<48x64xf32>
    %69 = arith.truncf %68 : vector<48x64xf32> to vector<48x64xbf16>
    %cst_31 = arith.constant 0.000000e+00 : f32
    %70 = vector.broadcast %cst_31 : f32 to vector<48x64xf32>
    %c0_32 = arith.constant 0 : index
    %c0_33 = arith.constant 0 : index
    %c0_34 = arith.constant 0 : index
    %71 = vector.load %arg8[%c0_32, %c0_33, %c0_34] : memref<8x64x16xbf16, #tpu.memory_space<vmem>>, vector<1x64x16xbf16>
    %72 = vector.shape_cast %71 : vector<1x64x16xbf16> to vector<64x16xbf16>
    %cst_35 = arith.constant dense<0.000000e+00> : vector<48x16xf32>
    %73 = tpu.matmul %69, %72, %cst_35 {dimension_numbers = #tpu.dot_dimension_numbers<[1], [0], [0], [1], [0, 0, 1, 1], [], []>} : vector<48x64xbf16>, vector<64x16xbf16>, vector<48x16xf32> -> vector<48x16xf32>
    %c0_36 = arith.constant 0 : index
    %c0_37 = arith.constant 0 : index
    %c0_38 = arith.constant 0 : index
    %74 = vector.load %arg9[%c0_36, %c0_37, %c0_38] : memref<8x1x16xf32, #tpu.memory_space<vmem>>, vector<1x1x16xf32>
    %75 = vector.shape_cast %74 : vector<1x1x16xf32> to vector<1x16xf32>
    %76 = vector.broadcast %75 : vector<1x16xf32> to vector<48x16xf32>
    %77 = arith.addf %73, %76 : vector<48x16xf32>
    %c0_39 = arith.constant 0 : index
    %c0_40 = arith.constant 0 : index
    %c0_41 = arith.constant 0 : index
    %78 = vector.load %arg10[%c0_39, %c0_40, %c0_41] : memref<8x64x16xbf16, #tpu.memory_space<vmem>>, vector<1x64x16xbf16>
    %79 = vector.shape_cast %78 : vector<1x64x16xbf16> to vector<64x16xbf16>
    %cst_42 = arith.constant dense<0.000000e+00> : vector<48x16xf32>
    %80 = tpu.matmul %69, %79, %cst_42 {dimension_numbers = #tpu.dot_dimension_numbers<[1], [0], [0], [1], [0, 0, 1, 1], [], []>} : vector<48x64xbf16>, vector<64x16xbf16>, vector<48x16xf32> -> vector<48x16xf32>
    %c0_43 = arith.constant 0 : index
    %c0_44 = arith.constant 0 : index
    %c0_45 = arith.constant 0 : index
    %81 = vector.load %arg11[%c0_43, %c0_44, %c0_45] : memref<8x1x16xf32, #tpu.memory_space<vmem>>, vector<1x1x16xf32>
    %82 = vector.shape_cast %81 : vector<1x1x16xf32> to vector<1x16xf32>
    %83 = vector.broadcast %82 : vector<1x16xf32> to vector<48x16xf32>
    %84 = arith.addf %80, %83 : vector<48x16xf32>
    %c0_46 = arith.constant 0 : index
    %c0_47 = arith.constant 0 : index
    %c0_48 = arith.constant 0 : index
    %85 = vector.load %arg12[%c0_46, %c0_47, %c0_48] : memref<8x64x16xbf16, #tpu.memory_space<vmem>>, vector<1x64x16xbf16>
    %86 = vector.shape_cast %85 : vector<1x64x16xbf16> to vector<64x16xbf16>
    %cst_49 = arith.constant dense<0.000000e+00> : vector<48x16xf32>
    %87 = tpu.matmul %69, %86, %cst_49 {dimension_numbers = #tpu.dot_dimension_numbers<[1], [0], [0], [1], [0, 0, 1, 1], [], []>} : vector<48x64xbf16>, vector<64x16xbf16>, vector<48x16xf32> -> vector<48x16xf32>
    %c0_50 = arith.constant 0 : index
    %c0_51 = arith.constant 0 : index
    %c0_52 = arith.constant 0 : index
    %88 = vector.load %arg13[%c0_50, %c0_51, %c0_52] : memref<8x1x16xf32, #tpu.memory_space<vmem>>, vector<1x1x16xf32>
    %89 = vector.shape_cast %88 : vector<1x1x16xf32> to vector<1x16xf32>
    %90 = vector.broadcast %89 : vector<1x16xf32> to vector<48x16xf32>
    %91 = arith.addf %87, %90 : vector<48x16xf32>
    %92 = arith.truncf %77 : vector<48x16xf32> to vector<48x16xbf16>
    %93 = arith.truncf %84 : vector<48x16xf32> to vector<48x16xbf16>
    %cst_53 = arith.constant dense<0.000000e+00> : vector<48x48xf32>
    %94 = tpu.matmul %92, %93, %cst_53 {dimension_numbers = #tpu.dot_dimension_numbers<[1], [1], [0], [0], [0, 0, 1, 0], [], []>} : vector<48x16xbf16>, vector<48x16xbf16>, vector<48x48xf32> -> vector<48x48xf32>
    %95 = arith.addf %94, %28 : vector<48x48xf32>
    %cst_54 = arith.constant dense<0xFF800000> : vector<48xf32>
    %96 = vector.multi_reduction <maximumf>, %95, %cst_54 [1] : vector<48x48xf32> to vector<48xf32>
    %97 = vector.shape_cast %96 : vector<48xf32> to vector<48x1xf32>
    %98 = vector.broadcast %97 : vector<48x1xf32> to vector<48x48xf32>
    %99 = arith.subf %95, %98 : vector<48x48xf32>
    %100 = math.exp %99 : vector<48x48xf32>
    %cst_55 = arith.constant dense<0.000000e+00> : vector<48xf32>
    %101 = vector.multi_reduction <add>, %100, %cst_55 [1] : vector<48x48xf32> to vector<48xf32>
    %102 = vector.shape_cast %101 : vector<48xf32> to vector<48x1xf32>
    %103 = tpu.reciprocal %102 {approx = true} : vector<48x1xf32> -> vector<48x1xf32>
    %104 = vector.broadcast %103 : vector<48x1xf32> to vector<48x48xf32>
    %105 = arith.mulf %100, %104 : vector<48x48xf32>
    %106 = arith.truncf %105 : vector<48x48xf32> to vector<48x48xbf16>
    %107 = arith.truncf %91 : vector<48x16xf32> to vector<48x16xbf16>
    %cst_56 = arith.constant dense<0.000000e+00> : vector<48x16xf32>
    %108 = tpu.matmul %106, %107, %cst_56 {dimension_numbers = #tpu.dot_dimension_numbers<[1], [0], [0], [1], [0, 0, 1, 1], [], []>} : vector<48x48xbf16>, vector<48x16xbf16>, vector<48x16xf32> -> vector<48x16xf32>
    %109 = arith.truncf %108 : vector<48x16xf32> to vector<48x16xbf16>
    %c0_57 = arith.constant 0 : index
    %c0_58 = arith.constant 0 : index
    %c0_59 = arith.constant 0 : index
    %110 = vector.load %arg14[%c0_57, %c0_58, %c0_59] : memref<8x16x64xbf16, #tpu.memory_space<vmem>>, vector<1x16x64xbf16>
    %111 = vector.shape_cast %110 : vector<1x16x64xbf16> to vector<16x64xbf16>
    %cst_60 = arith.constant dense<0.000000e+00> : vector<48x64xf32>
    %112 = tpu.matmul %109, %111, %cst_60 {dimension_numbers = #tpu.dot_dimension_numbers<[1], [0], [0], [1], [0, 0, 1, 1], [], []>} : vector<48x16xbf16>, vector<16x64xbf16>, vector<48x64xf32> -> vector<48x64xf32>
    %113 = arith.addf %70, %112 : vector<48x64xf32>
    %c1 = arith.constant 1 : index
    %c0_61 = arith.constant 0 : index
    %c0_62 = arith.constant 0 : index
    %114 = vector.load %arg8[%c1, %c0_61, %c0_62] : memref<8x64x16xbf16, #tpu.memory_space<vmem>>, vector<1x64x16xbf16>
    %115 = vector.shape_cast %114 : vector<1x64x16xbf16> to vector<64x16xbf16>
    %cst_63 = arith.constant dense<0.000000e+00> : vector<48x16xf32>
    %116 = tpu.matmul %69, %115, %cst_63 {dimension_numbers = #tpu.dot_dimension_numbers<[1], [0], [0], [1], [0, 0, 1, 1], [], []>} : vector<48x64xbf16>, vector<64x16xbf16>, vector<48x16xf32> -> vector<48x16xf32>
    %c1_64 = arith.constant 1 : index
    %c0_65 = arith.constant 0 : index
    %c0_66 = arith.constant 0 : index
    %117 = vector.load %arg9[%c1_64, %c0_65, %c0_66] : memref<8x1x16xf32, #tpu.memory_space<vmem>>, vector<1x1x16xf32>
    %118 = vector.shape_cast %117 : vector<1x1x16xf32> to vector<1x16xf32>
    %119 = vector.broadcast %118 : vector<1x16xf32> to vector<48x16xf32>
    %120 = arith.addf %116, %119 : vector<48x16xf32>
    %c1_67 = arith.constant 1 : index
    %c0_68 = arith.constant 0 : index
    %c0_69 = arith.constant 0 : index
    %121 = vector.load %arg10[%c1_67, %c0_68, %c0_69] : memref<8x64x16xbf16, #tpu.memory_space<vmem>>, vector<1x64x16xbf16>
    %122 = vector.shape_cast %121 : vector<1x64x16xbf16> to vector<64x16xbf16>
    %cst_70 = arith.constant dense<0.000000e+00> : vector<48x16xf32>
    %123 = tpu.matmul %69, %122, %cst_70 {dimension_numbers = #tpu.dot_dimension_numbers<[1], [0], [0], [1], [0, 0, 1, 1], [], []>} : vector<48x64xbf16>, vector<64x16xbf16>, vector<48x16xf32> -> vector<48x16xf32>
    %c1_71 = arith.constant 1 : index
    %c0_72 = arith.constant 0 : index
    %c0_73 = arith.constant 0 : index
    %124 = vector.load %arg11[%c1_71, %c0_72, %c0_73] : memref<8x1x16xf32, #tpu.memory_space<vmem>>, vector<1x1x16xf32>
    %125 = vector.shape_cast %124 : vector<1x1x16xf32> to vector<1x16xf32>
    %126 = vector.broadcast %125 : vector<1x16xf32> to vector<48x16xf32>
    %127 = arith.addf %123, %126 : vector<48x16xf32>
    %c1_74 = arith.constant 1 : index
    %c0_75 = arith.constant 0 : index
    %c0_76 = arith.constant 0 : index
    %128 = vector.load %arg12[%c1_74, %c0_75, %c0_76] : memref<8x64x16xbf16, #tpu.memory_space<vmem>>, vector<1x64x16xbf16>
    %129 = vector.shape_cast %128 : vector<1x64x16xbf16> to vector<64x16xbf16>
    %cst_77 = arith.constant dense<0.000000e+00> : vector<48x16xf32>
    %130 = tpu.matmul %69, %129, %cst_77 {dimension_numbers = #tpu.dot_dimension_numbers<[1], [0], [0], [1], [0, 0, 1, 1], [], []>} : vector<48x64xbf16>, vector<64x16xbf16>, vector<48x16xf32> -> vector<48x16xf32>
    %c1_78 = arith.constant 1 : index
    %c0_79 = arith.constant 0 : index
    %c0_80 = arith.constant 0 : index
    %131 = vector.load %arg13[%c1_78, %c0_79, %c0_80] : memref<8x1x16xf32, #tpu.memory_space<vmem>>, vector<1x1x16xf32>
    %132 = vector.shape_cast %131 : vector<1x1x16xf32> to vector<1x16xf32>
    %133 = vector.broadcast %132 : vector<1x16xf32> to vector<48x16xf32>
    %134 = arith.addf %130, %133 : vector<48x16xf32>
    %135 = arith.truncf %120 : vector<48x16xf32> to vector<48x16xbf16>
    %136 = arith.truncf %127 : vector<48x16xf32> to vector<48x16xbf16>
    %cst_81 = arith.constant dense<0.000000e+00> : vector<48x48xf32>
    %137 = tpu.matmul %135, %136, %cst_81 {dimension_numbers = #tpu.dot_dimension_numbers<[1], [1], [0], [0], [0, 0, 1, 0], [], []>} : vector<48x16xbf16>, vector<48x16xbf16>, vector<48x48xf32> -> vector<48x48xf32>
    %138 = arith.addf %137, %28 : vector<48x48xf32>
    %cst_82 = arith.constant dense<0xFF800000> : vector<48xf32>
    %139 = vector.multi_reduction <maximumf>, %138, %cst_82 [1] : vector<48x48xf32> to vector<48xf32>
    %140 = vector.shape_cast %139 : vector<48xf32> to vector<48x1xf32>
    %141 = vector.broadcast %140 : vector<48x1xf32> to vector<48x48xf32>
    %142 = arith.subf %138, %141 : vector<48x48xf32>
    %143 = math.exp %142 : vector<48x48xf32>
    %cst_83 = arith.constant dense<0.000000e+00> : vector<48xf32>
    %144 = vector.multi_reduction <add>, %143, %cst_83 [1] : vector<48x48xf32> to vector<48xf32>
    %145 = vector.shape_cast %144 : vector<48xf32> to vector<48x1xf32>
    %146 = tpu.reciprocal %145 {approx = true} : vector<48x1xf32> -> vector<48x1xf32>
    %147 = vector.broadcast %146 : vector<48x1xf32> to vector<48x48xf32>
    %148 = arith.mulf %143, %147 : vector<48x48xf32>
    %149 = arith.truncf %148 : vector<48x48xf32> to vector<48x48xbf16>
    %150 = arith.truncf %134 : vector<48x16xf32> to vector<48x16xbf16>
    %cst_84 = arith.constant dense<0.000000e+00> : vector<48x16xf32>
    %151 = tpu.matmul %149, %150, %cst_84 {dimension_numbers = #tpu.dot_dimension_numbers<[1], [0], [0], [1], [0, 0, 1, 1], [], []>} : vector<48x48xbf16>, vector<48x16xbf16>, vector<48x16xf32> -> vector<48x16xf32>
    %152 = arith.truncf %151 : vector<48x16xf32> to vector<48x16xbf16>
    %c1_85 = arith.constant 1 : index
    %c0_86 = arith.constant 0 : index
    %c0_87 = arith.constant 0 : index
    %153 = vector.load %arg14[%c1_85, %c0_86, %c0_87] : memref<8x16x64xbf16, #tpu.memory_space<vmem>>, vector<1x16x64xbf16>
    %154 = vector.shape_cast %153 : vector<1x16x64xbf16> to vector<16x64xbf16>
    %cst_88 = arith.constant dense<0.000000e+00> : vector<48x64xf32>
    %155 = tpu.matmul %152, %154, %cst_88 {dimension_numbers = #tpu.dot_dimension_numbers<[1], [0], [0], [1], [0, 0, 1, 1], [], []>} : vector<48x16xbf16>, vector<16x64xbf16>, vector<48x64xf32> -> vector<48x64xf32>
    %156 = arith.addf %113, %155 : vector<48x64xf32>
    %c2 = arith.constant 2 : index
    %c0_89 = arith.constant 0 : index
    %c0_90 = arith.constant 0 : index
    %157 = vector.load %arg8[%c2, %c0_89, %c0_90] : memref<8x64x16xbf16, #tpu.memory_space<vmem>>, vector<1x64x16xbf16>
    %158 = vector.shape_cast %157 : vector<1x64x16xbf16> to vector<64x16xbf16>
    %cst_91 = arith.constant dense<0.000000e+00> : vector<48x16xf32>
    %159 = tpu.matmul %69, %158, %cst_91 {dimension_numbers = #tpu.dot_dimension_numbers<[1], [0], [0], [1], [0, 0, 1, 1], [], []>} : vector<48x64xbf16>, vector<64x16xbf16>, vector<48x16xf32> -> vector<48x16xf32>
    %c2_92 = arith.constant 2 : index
    %c0_93 = arith.constant 0 : index
    %c0_94 = arith.constant 0 : index
    %160 = vector.load %arg9[%c2_92, %c0_93, %c0_94] : memref<8x1x16xf32, #tpu.memory_space<vmem>>, vector<1x1x16xf32>
    %161 = vector.shape_cast %160 : vector<1x1x16xf32> to vector<1x16xf32>
    %162 = vector.broadcast %161 : vector<1x16xf32> to vector<48x16xf32>
    %163 = arith.addf %159, %162 : vector<48x16xf32>
    %c2_95 = arith.constant 2 : index
    %c0_96 = arith.constant 0 : index
    %c0_97 = arith.constant 0 : index
    %164 = vector.load %arg10[%c2_95, %c0_96, %c0_97] : memref<8x64x16xbf16, #tpu.memory_space<vmem>>, vector<1x64x16xbf16>
    %165 = vector.shape_cast %164 : vector<1x64x16xbf16> to vector<64x16xbf16>
    %cst_98 = arith.constant dense<0.000000e+00> : vector<48x16xf32>
    %166 = tpu.matmul %69, %165, %cst_98 {dimension_numbers = #tpu.dot_dimension_numbers<[1], [0], [0], [1], [0, 0, 1, 1], [], []>} : vector<48x64xbf16>, vector<64x16xbf16>, vector<48x16xf32> -> vector<48x16xf32>
    %c2_99 = arith.constant 2 : index
    %c0_100 = arith.constant 0 : index
    %c0_101 = arith.constant 0 : index
    %167 = vector.load %arg11[%c2_99, %c0_100, %c0_101] : memref<8x1x16xf32, #tpu.memory_space<vmem>>, vector<1x1x16xf32>
    %168 = vector.shape_cast %167 : vector<1x1x16xf32> to vector<1x16xf32>
    %169 = vector.broadcast %168 : vector<1x16xf32> to vector<48x16xf32>
    %170 = arith.addf %166, %169 : vector<48x16xf32>
    %c2_102 = arith.constant 2 : index
    %c0_103 = arith.constant 0 : index
    %c0_104 = arith.constant 0 : index
    %171 = vector.load %arg12[%c2_102, %c0_103, %c0_104] : memref<8x64x16xbf16, #tpu.memory_space<vmem>>, vector<1x64x16xbf16>
    %172 = vector.shape_cast %171 : vector<1x64x16xbf16> to vector<64x16xbf16>
    %cst_105 = arith.constant dense<0.000000e+00> : vector<48x16xf32>
    %173 = tpu.matmul %69, %172, %cst_105 {dimension_numbers = #tpu.dot_dimension_numbers<[1], [0], [0], [1], [0, 0, 1, 1], [], []>} : vector<48x64xbf16>, vector<64x16xbf16>, vector<48x16xf32> -> vector<48x16xf32>
    %c2_106 = arith.constant 2 : index
    %c0_107 = arith.constant 0 : index
    %c0_108 = arith.constant 0 : index
    %174 = vector.load %arg13[%c2_106, %c0_107, %c0_108] : memref<8x1x16xf32, #tpu.memory_space<vmem>>, vector<1x1x16xf32>
    %175 = vector.shape_cast %174 : vector<1x1x16xf32> to vector<1x16xf32>
    %176 = vector.broadcast %175 : vector<1x16xf32> to vector<48x16xf32>
    %177 = arith.addf %173, %176 : vector<48x16xf32>
    %178 = arith.truncf %163 : vector<48x16xf32> to vector<48x16xbf16>
    %179 = arith.truncf %170 : vector<48x16xf32> to vector<48x16xbf16>
    %cst_109 = arith.constant dense<0.000000e+00> : vector<48x48xf32>
    %180 = tpu.matmul %178, %179, %cst_109 {dimension_numbers = #tpu.dot_dimension_numbers<[1], [1], [0], [0], [0, 0, 1, 0], [], []>} : vector<48x16xbf16>, vector<48x16xbf16>, vector<48x48xf32> -> vector<48x48xf32>
    %181 = arith.addf %180, %28 : vector<48x48xf32>
    %cst_110 = arith.constant dense<0xFF800000> : vector<48xf32>
    %182 = vector.multi_reduction <maximumf>, %181, %cst_110 [1] : vector<48x48xf32> to vector<48xf32>
    %183 = vector.shape_cast %182 : vector<48xf32> to vector<48x1xf32>
    %184 = vector.broadcast %183 : vector<48x1xf32> to vector<48x48xf32>
    %185 = arith.subf %181, %184 : vector<48x48xf32>
    %186 = math.exp %185 : vector<48x48xf32>
    %cst_111 = arith.constant dense<0.000000e+00> : vector<48xf32>
    %187 = vector.multi_reduction <add>, %186, %cst_111 [1] : vector<48x48xf32> to vector<48xf32>
    %188 = vector.shape_cast %187 : vector<48xf32> to vector<48x1xf32>
    %189 = tpu.reciprocal %188 {approx = true} : vector<48x1xf32> -> vector<48x1xf32>
    %190 = vector.broadcast %189 : vector<48x1xf32> to vector<48x48xf32>
    %191 = arith.mulf %186, %190 : vector<48x48xf32>
    %192 = arith.truncf %191 : vector<48x48xf32> to vector<48x48xbf16>
    %193 = arith.truncf %177 : vector<48x16xf32> to vector<48x16xbf16>
    %cst_112 = arith.constant dense<0.000000e+00> : vector<48x16xf32>
    %194 = tpu.matmul %192, %193, %cst_112 {dimension_numbers = #tpu.dot_dimension_numbers<[1], [0], [0], [1], [0, 0, 1, 1], [], []>} : vector<48x48xbf16>, vector<48x16xbf16>, vector<48x16xf32> -> vector<48x16xf32>
    %195 = arith.truncf %194 : vector<48x16xf32> to vector<48x16xbf16>
    %c2_113 = arith.constant 2 : index
    %c0_114 = arith.constant 0 : index
    %c0_115 = arith.constant 0 : index
    %196 = vector.load %arg14[%c2_113, %c0_114, %c0_115] : memref<8x16x64xbf16, #tpu.memory_space<vmem>>, vector<1x16x64xbf16>
    %197 = vector.shape_cast %196 : vector<1x16x64xbf16> to vector<16x64xbf16>
    %cst_116 = arith.constant dense<0.000000e+00> : vector<48x64xf32>
    %198 = tpu.matmul %195, %197, %cst_116 {dimension_numbers = #tpu.dot_dimension_numbers<[1], [0], [0], [1], [0, 0, 1, 1], [], []>} : vector<48x16xbf16>, vector<16x64xbf16>, vector<48x64xf32> -> vector<48x64xf32>
    %199 = arith.addf %156, %198 : vector<48x64xf32>
    %c3 = arith.constant 3 : index
    %c0_117 = arith.constant 0 : index
    %c0_118 = arith.constant 0 : index
    %200 = vector.load %arg8[%c3, %c0_117, %c0_118] : memref<8x64x16xbf16, #tpu.memory_space<vmem>>, vector<1x64x16xbf16>
    %201 = vector.shape_cast %200 : vector<1x64x16xbf16> to vector<64x16xbf16>
    %cst_119 = arith.constant dense<0.000000e+00> : vector<48x16xf32>
    %202 = tpu.matmul %69, %201, %cst_119 {dimension_numbers = #tpu.dot_dimension_numbers<[1], [0], [0], [1], [0, 0, 1, 1], [], []>} : vector<48x64xbf16>, vector<64x16xbf16>, vector<48x16xf32> -> vector<48x16xf32>
    %c3_120 = arith.constant 3 : index
    %c0_121 = arith.constant 0 : index
    %c0_122 = arith.constant 0 : index
    %203 = vector.load %arg9[%c3_120, %c0_121, %c0_122] : memref<8x1x16xf32, #tpu.memory_space<vmem>>, vector<1x1x16xf32>
    %204 = vector.shape_cast %203 : vector<1x1x16xf32> to vector<1x16xf32>
    %205 = vector.broadcast %204 : vector<1x16xf32> to vector<48x16xf32>
    %206 = arith.addf %202, %205 : vector<48x16xf32>
    %c3_123 = arith.constant 3 : index
    %c0_124 = arith.constant 0 : index
    %c0_125 = arith.constant 0 : index
    %207 = vector.load %arg10[%c3_123, %c0_124, %c0_125] : memref<8x64x16xbf16, #tpu.memory_space<vmem>>, vector<1x64x16xbf16>
    %208 = vector.shape_cast %207 : vector<1x64x16xbf16> to vector<64x16xbf16>
    %cst_126 = arith.constant dense<0.000000e+00> : vector<48x16xf32>
    %209 = tpu.matmul %69, %208, %cst_126 {dimension_numbers = #tpu.dot_dimension_numbers<[1], [0], [0], [1], [0, 0, 1, 1], [], []>} : vector<48x64xbf16>, vector<64x16xbf16>, vector<48x16xf32> -> vector<48x16xf32>
    %c3_127 = arith.constant 3 : index
    %c0_128 = arith.constant 0 : index
    %c0_129 = arith.constant 0 : index
    %210 = vector.load %arg11[%c3_127, %c0_128, %c0_129] : memref<8x1x16xf32, #tpu.memory_space<vmem>>, vector<1x1x16xf32>
    %211 = vector.shape_cast %210 : vector<1x1x16xf32> to vector<1x16xf32>
    %212 = vector.broadcast %211 : vector<1x16xf32> to vector<48x16xf32>
    %213 = arith.addf %209, %212 : vector<48x16xf32>
    %c3_130 = arith.constant 3 : index
    %c0_131 = arith.constant 0 : index
    %c0_132 = arith.constant 0 : index
    %214 = vector.load %arg12[%c3_130, %c0_131, %c0_132] : memref<8x64x16xbf16, #tpu.memory_space<vmem>>, vector<1x64x16xbf16>
    %215 = vector.shape_cast %214 : vector<1x64x16xbf16> to vector<64x16xbf16>
    %cst_133 = arith.constant dense<0.000000e+00> : vector<48x16xf32>
    %216 = tpu.matmul %69, %215, %cst_133 {dimension_numbers = #tpu.dot_dimension_numbers<[1], [0], [0], [1], [0, 0, 1, 1], [], []>} : vector<48x64xbf16>, vector<64x16xbf16>, vector<48x16xf32> -> vector<48x16xf32>
    %c3_134 = arith.constant 3 : index
    %c0_135 = arith.constant 0 : index
    %c0_136 = arith.constant 0 : index
    %217 = vector.load %arg13[%c3_134, %c0_135, %c0_136] : memref<8x1x16xf32, #tpu.memory_space<vmem>>, vector<1x1x16xf32>
    %218 = vector.shape_cast %217 : vector<1x1x16xf32> to vector<1x16xf32>
    %219 = vector.broadcast %218 : vector<1x16xf32> to vector<48x16xf32>
    %220 = arith.addf %216, %219 : vector<48x16xf32>
    %221 = arith.truncf %206 : vector<48x16xf32> to vector<48x16xbf16>
    %222 = arith.truncf %213 : vector<48x16xf32> to vector<48x16xbf16>
    %cst_137 = arith.constant dense<0.000000e+00> : vector<48x48xf32>
    %223 = tpu.matmul %221, %222, %cst_137 {dimension_numbers = #tpu.dot_dimension_numbers<[1], [1], [0], [0], [0, 0, 1, 0], [], []>} : vector<48x16xbf16>, vector<48x16xbf16>, vector<48x48xf32> -> vector<48x48xf32>
    %224 = arith.addf %223, %28 : vector<48x48xf32>
    %cst_138 = arith.constant dense<0xFF800000> : vector<48xf32>
    %225 = vector.multi_reduction <maximumf>, %224, %cst_138 [1] : vector<48x48xf32> to vector<48xf32>
    %226 = vector.shape_cast %225 : vector<48xf32> to vector<48x1xf32>
    %227 = vector.broadcast %226 : vector<48x1xf32> to vector<48x48xf32>
    %228 = arith.subf %224, %227 : vector<48x48xf32>
    %229 = math.exp %228 : vector<48x48xf32>
    %cst_139 = arith.constant dense<0.000000e+00> : vector<48xf32>
    %230 = vector.multi_reduction <add>, %229, %cst_139 [1] : vector<48x48xf32> to vector<48xf32>
    %231 = vector.shape_cast %230 : vector<48xf32> to vector<48x1xf32>
    %232 = tpu.reciprocal %231 {approx = true} : vector<48x1xf32> -> vector<48x1xf32>
    %233 = vector.broadcast %232 : vector<48x1xf32> to vector<48x48xf32>
    %234 = arith.mulf %229, %233 : vector<48x48xf32>
    %235 = arith.truncf %234 : vector<48x48xf32> to vector<48x48xbf16>
    %236 = arith.truncf %220 : vector<48x16xf32> to vector<48x16xbf16>
    %cst_140 = arith.constant dense<0.000000e+00> : vector<48x16xf32>
    %237 = tpu.matmul %235, %236, %cst_140 {dimension_numbers = #tpu.dot_dimension_numbers<[1], [0], [0], [1], [0, 0, 1, 1], [], []>} : vector<48x48xbf16>, vector<48x16xbf16>, vector<48x16xf32> -> vector<48x16xf32>
    %238 = arith.truncf %237 : vector<48x16xf32> to vector<48x16xbf16>
    %c3_141 = arith.constant 3 : index
    %c0_142 = arith.constant 0 : index
    %c0_143 = arith.constant 0 : index
    %239 = vector.load %arg14[%c3_141, %c0_142, %c0_143] : memref<8x16x64xbf16, #tpu.memory_space<vmem>>, vector<1x16x64xbf16>
    %240 = vector.shape_cast %239 : vector<1x16x64xbf16> to vector<16x64xbf16>
    %cst_144 = arith.constant dense<0.000000e+00> : vector<48x64xf32>
    %241 = tpu.matmul %238, %240, %cst_144 {dimension_numbers = #tpu.dot_dimension_numbers<[1], [0], [0], [1], [0, 0, 1, 1], [], []>} : vector<48x16xbf16>, vector<16x64xbf16>, vector<48x64xf32> -> vector<48x64xf32>
    %242 = arith.addf %199, %241 : vector<48x64xf32>
    %243 = arith.addf %44, %242 : vector<48x64xf32>
    %c0_145 = arith.constant 0 : index
    %c0_146 = arith.constant 0 : index
    %c0_147 = arith.constant 0 : index
    %244 = vector.load %arg15[%c0_145, %c0_146, %c0_147] : memref<2x1x64xf32, #tpu.memory_space<vmem>>, vector<1x1x64xf32>
    %245 = vector.shape_cast %244 : vector<1x1x64xf32> to vector<1x64xf32>
    %246 = vector.broadcast %245 : vector<1x64xf32> to vector<48x64xf32>
    %247 = arith.addf %243, %246 : vector<48x64xf32>
    %c0_148 = arith.constant 0 : index
    %c0_149 = arith.constant 0 : index
    %248 = vector.load %arg25[%c0_148, %c0_149] : memref<48x64xf32, #tpu.memory_space<vmem>>, vector<48x64xf32>
    tpu.vector_store %arg25[%c0_148, %c0_149], %247 {strides = array<i32>} : memref<48x64xf32, #tpu.memory_space<vmem>>, vector<48x64xf32>,
    %c0_150 = arith.constant 0 : index
    %c0_151 = arith.constant 0 : index
    %249 = vector.load %arg25[%c0_150, %c0_151] : memref<48x64xf32, #tpu.memory_space<vmem>>, vector<48x64xf32>
    %c0_152 = arith.constant 0 : index
    %c0_153 = arith.constant 0 : index
    %c0_154 = arith.constant 0 : index
    %250 = vector.load %arg16[%c0_152, %c0_153, %c0_154] : memref<2x1x64xf32, #tpu.memory_space<vmem>>, vector<1x1x64xf32>
    %251 = vector.shape_cast %250 : vector<1x1x64xf32> to vector<1x64xf32>
    %c0_155 = arith.constant 0 : index
    %c0_156 = arith.constant 0 : index
    %c0_157 = arith.constant 0 : index
    %252 = vector.load %arg17[%c0_155, %c0_156, %c0_157] : memref<2x1x64xf32, #tpu.memory_space<vmem>>, vector<1x1x64xf32>
    %253 = vector.shape_cast %252 : vector<1x1x64xf32> to vector<1x64xf32>
    %cst_158 = arith.constant dense<0.000000e+00> : vector<48xf32>
    %254 = vector.multi_reduction <add>, %249, %cst_158 [1] : vector<48x64xf32> to vector<48xf32>
    %255 = vector.shape_cast %254 : vector<48xf32> to vector<48x1xf32>
    %cst_159 = arith.constant 6.400000e+01 : f32
    %256 = vector.broadcast %cst_159 : f32 to vector<48x1xf32>
    %257 = arith.divf %255, %256 : vector<48x1xf32>
    %258 = vector.broadcast %257 : vector<48x1xf32> to vector<48x64xf32>
    %259 = arith.subf %249, %258 : vector<48x64xf32>
    %260 = arith.mulf %259, %259 : vector<48x64xf32>
    %cst_160 = arith.constant dense<0.000000e+00> : vector<48xf32>
    %261 = vector.multi_reduction <add>, %260, %cst_160 [1] : vector<48x64xf32> to vector<48xf32>
    %262 = vector.shape_cast %261 : vector<48xf32> to vector<48x1xf32>
    %cst_161 = arith.constant 6.400000e+01 : f32
    %263 = vector.broadcast %cst_161 : f32 to vector<48x1xf32>
    %264 = arith.divf %262, %263 : vector<48x1xf32>
    %cst_162 = arith.constant 9.99999997E-7 : f32
    %265 = vector.broadcast %cst_162 : f32 to vector<48x1xf32>
    %266 = arith.addf %264, %265 : vector<48x1xf32>
    %267 = math.rsqrt %266 : vector<48x1xf32>
    %268 = vector.broadcast %267 : vector<48x1xf32> to vector<48x64xf32>
    %269 = arith.mulf %259, %268 : vector<48x64xf32>
    %270 = vector.broadcast %251 : vector<1x64xf32> to vector<48x64xf32>
    %271 = arith.mulf %269, %270 : vector<48x64xf32>
    %272 = vector.broadcast %253 : vector<1x64xf32> to vector<48x64xf32>
    %273 = arith.addf %271, %272 : vector<48x64xf32>
    %274 = arith.truncf %273 : vector<48x64xf32> to vector<48x64xbf16>
    %c0_163 = arith.constant 0 : index
    %c0_164 = arith.constant 0 : index
    %c0_165 = arith.constant 0 : index
    %275 = vector.load %arg18[%c0_163, %c0_164, %c0_165] : memref<2x64x256xbf16, #tpu.memory_space<vmem>>, vector<1x64x256xbf16>
    %276 = vector.shape_cast %275 : vector<1x64x256xbf16> to vector<64x256xbf16>
    %cst_166 = arith.constant dense<0.000000e+00> : vector<48x256xf32>
    %277 = tpu.matmul %274, %276, %cst_166 {dimension_numbers = #tpu.dot_dimension_numbers<[1], [0], [0], [1], [0, 0, 1, 1], [], []>} : vector<48x64xbf16>, vector<64x256xbf16>, vector<48x256xf32> -> vector<48x256xf32>
    %c0_167 = arith.constant 0 : index
    %c0_168 = arith.constant 0 : index
    %c0_169 = arith.constant 0 : index
    %278 = vector.load %arg19[%c0_167, %c0_168, %c0_169] : memref<2x1x256xf32, #tpu.memory_space<vmem>>, vector<1x1x256xf32>
    %279 = vector.shape_cast %278 : vector<1x1x256xf32> to vector<1x256xf32>
    %280 = vector.broadcast %279 : vector<1x256xf32> to vector<48x256xf32>
    %281 = arith.addf %277, %280 : vector<48x256xf32>
    %cst_170 = arith.constant 5.000000e-01 : f32
    %282 = vector.broadcast %cst_170 : f32 to vector<48x256xf32>
    %283 = arith.mulf %282, %281 : vector<48x256xf32>
    %cst_171 = arith.constant 4.471500e-02 : f32
    %284 = vector.broadcast %cst_171 : f32 to vector<48x256xf32>
    %285 = arith.mulf %284, %281 : vector<48x256xf32>
    %286 = arith.mulf %285, %281 : vector<48x256xf32>
    %287 = arith.mulf %286, %281 : vector<48x256xf32>
    %288 = arith.addf %281, %287 : vector<48x256xf32>
    %cst_172 = arith.constant 0.797884583 : f32
    %289 = vector.broadcast %cst_172 : f32 to vector<48x256xf32>
    %290 = arith.mulf %289, %288 : vector<48x256xf32>
    %291 = math.tanh %290 : vector<48x256xf32>
    %cst_173 = arith.constant 1.000000e+00 : f32
    %292 = vector.broadcast %cst_173 : f32 to vector<48x256xf32>
    %293 = arith.addf %292, %291 : vector<48x256xf32>
    %294 = arith.mulf %283, %293 : vector<48x256xf32>
    %295 = arith.truncf %294 : vector<48x256xf32> to vector<48x256xbf16>
    %c0_174 = arith.constant 0 : index
    %c0_175 = arith.constant 0 : index
    %c0_176 = arith.constant 0 : index
    %296 = vector.load %arg20[%c0_174, %c0_175, %c0_176] : memref<2x256x64xbf16, #tpu.memory_space<vmem>>, vector<1x256x64xbf16>
    %297 = vector.shape_cast %296 : vector<1x256x64xbf16> to vector<256x64xbf16>
    %cst_177 = arith.constant dense<0.000000e+00> : vector<48x64xf32>
    %298 = tpu.matmul %295, %297, %cst_177 {dimension_numbers = #tpu.dot_dimension_numbers<[1], [0], [0], [1], [0, 0, 1, 1], [], []>} : vector<48x256xbf16>, vector<256x64xbf16>, vector<48x64xf32> -> vector<48x64xf32>
    %c0_178 = arith.constant 0 : index
    %c0_179 = arith.constant 0 : index
    %c0_180 = arith.constant 0 : index
    %299 = vector.load %arg21[%c0_178, %c0_179, %c0_180] : memref<2x1x64xf32, #tpu.memory_space<vmem>>, vector<1x1x64xf32>
    %300 = vector.shape_cast %299 : vector<1x1x64xf32> to vector<1x64xf32>
    %301 = vector.broadcast %300 : vector<1x64xf32> to vector<48x64xf32>
    %302 = arith.addf %298, %301 : vector<48x64xf32>
    %303 = arith.addf %249, %302 : vector<48x64xf32>
    %c0_181 = arith.constant 0 : index
    %c0_182 = arith.constant 0 : index
    %304 = vector.load %arg25[%c0_181, %c0_182] : memref<48x64xf32, #tpu.memory_space<vmem>>, vector<48x64xf32>
    tpu.vector_store %arg25[%c0_181, %c0_182], %303 {strides = array<i32>} : memref<48x64xf32, #tpu.memory_space<vmem>>, vector<48x64xf32>,
    %c0_183 = arith.constant 0 : index
    %c0_184 = arith.constant 0 : index
    %305 = vector.load %arg25[%c0_183, %c0_184] : memref<48x64xf32, #tpu.memory_space<vmem>>, vector<48x64xf32>
    %c1_185 = arith.constant 1 : index
    %c0_186 = arith.constant 0 : index
    %c0_187 = arith.constant 0 : index
    %306 = vector.load %arg6[%c1_185, %c0_186, %c0_187] : memref<2x1x64xf32, #tpu.memory_space<vmem>>, vector<1x1x64xf32>
    %307 = vector.shape_cast %306 : vector<1x1x64xf32> to vector<1x64xf32>
    %c1_188 = arith.constant 1 : index
    %c0_189 = arith.constant 0 : index
    %c0_190 = arith.constant 0 : index
    %308 = vector.load %arg7[%c1_188, %c0_189, %c0_190] : memref<2x1x64xf32, #tpu.memory_space<vmem>>, vector<1x1x64xf32>
    %309 = vector.shape_cast %308 : vector<1x1x64xf32> to vector<1x64xf32>
    %cst_191 = arith.constant dense<0.000000e+00> : vector<48xf32>
    %310 = vector.multi_reduction <add>, %305, %cst_191 [1] : vector<48x64xf32> to vector<48xf32>
    %311 = vector.shape_cast %310 : vector<48xf32> to vector<48x1xf32>
    %cst_192 = arith.constant 6.400000e+01 : f32
    %312 = vector.broadcast %cst_192 : f32 to vector<48x1xf32>
    %313 = arith.divf %311, %312 : vector<48x1xf32>
    %314 = vector.broadcast %313 : vector<48x1xf32> to vector<48x64xf32>
    %315 = arith.subf %305, %314 : vector<48x64xf32>
    %316 = arith.mulf %315, %315 : vector<48x64xf32>
    %cst_193 = arith.constant dense<0.000000e+00> : vector<48xf32>
    %317 = vector.multi_reduction <add>, %316, %cst_193 [1] : vector<48x64xf32> to vector<48xf32>
    %318 = vector.shape_cast %317 : vector<48xf32> to vector<48x1xf32>
    %cst_194 = arith.constant 6.400000e+01 : f32
    %319 = vector.broadcast %cst_194 : f32 to vector<48x1xf32>
    %320 = arith.divf %318, %319 : vector<48x1xf32>
    %cst_195 = arith.constant 9.99999997E-7 : f32
    %321 = vector.broadcast %cst_195 : f32 to vector<48x1xf32>
    %322 = arith.addf %320, %321 : vector<48x1xf32>
    %323 = math.rsqrt %322 : vector<48x1xf32>
    %324 = vector.broadcast %323 : vector<48x1xf32> to vector<48x64xf32>
    %325 = arith.mulf %315, %324 : vector<48x64xf32>
    %326 = vector.broadcast %307 : vector<1x64xf32> to vector<48x64xf32>
    %327 = arith.mulf %325, %326 : vector<48x64xf32>
    %328 = vector.broadcast %309 : vector<1x64xf32> to vector<48x64xf32>
    %329 = arith.addf %327, %328 : vector<48x64xf32>
    %330 = arith.truncf %329 : vector<48x64xf32> to vector<48x64xbf16>
    %cst_196 = arith.constant 0.000000e+00 : f32
    %331 = vector.broadcast %cst_196 : f32 to vector<48x64xf32>
    %c4 = arith.constant 4 : index
    %c0_197 = arith.constant 0 : index
    %c0_198 = arith.constant 0 : index
    %332 = vector.load %arg8[%c4, %c0_197, %c0_198] : memref<8x64x16xbf16, #tpu.memory_space<vmem>>, vector<1x64x16xbf16>
    %333 = vector.shape_cast %332 : vector<1x64x16xbf16> to vector<64x16xbf16>
    %cst_199 = arith.constant dense<0.000000e+00> : vector<48x16xf32>
    %334 = tpu.matmul %330, %333, %cst_199 {dimension_numbers = #tpu.dot_dimension_numbers<[1], [0], [0], [1], [0, 0, 1, 1], [], []>} : vector<48x64xbf16>, vector<64x16xbf16>, vector<48x16xf32> -> vector<48x16xf32>
    %c4_200 = arith.constant 4 : index
    %c0_201 = arith.constant 0 : index
    %c0_202 = arith.constant 0 : index
    %335 = vector.load %arg9[%c4_200, %c0_201, %c0_202] : memref<8x1x16xf32, #tpu.memory_space<vmem>>, vector<1x1x16xf32>
    %336 = vector.shape_cast %335 : vector<1x1x16xf32> to vector<1x16xf32>
    %337 = vector.broadcast %336 : vector<1x16xf32> to vector<48x16xf32>
    %338 = arith.addf %334, %337 : vector<48x16xf32>
    %c4_203 = arith.constant 4 : index
    %c0_204 = arith.constant 0 : index
    %c0_205 = arith.constant 0 : index
    %339 = vector.load %arg10[%c4_203, %c0_204, %c0_205] : memref<8x64x16xbf16, #tpu.memory_space<vmem>>, vector<1x64x16xbf16>
    %340 = vector.shape_cast %339 : vector<1x64x16xbf16> to vector<64x16xbf16>
    %cst_206 = arith.constant dense<0.000000e+00> : vector<48x16xf32>
    %341 = tpu.matmul %330, %340, %cst_206 {dimension_numbers = #tpu.dot_dimension_numbers<[1], [0], [0], [1], [0, 0, 1, 1], [], []>} : vector<48x64xbf16>, vector<64x16xbf16>, vector<48x16xf32> -> vector<48x16xf32>
    %c4_207 = arith.constant 4 : index
    %c0_208 = arith.constant 0 : index
    %c0_209 = arith.constant 0 : index
    %342 = vector.load %arg11[%c4_207, %c0_208, %c0_209] : memref<8x1x16xf32, #tpu.memory_space<vmem>>, vector<1x1x16xf32>
    %343 = vector.shape_cast %342 : vector<1x1x16xf32> to vector<1x16xf32>
    %344 = vector.broadcast %343 : vector<1x16xf32> to vector<48x16xf32>
    %345 = arith.addf %341, %344 : vector<48x16xf32>
    %c4_210 = arith.constant 4 : index
    %c0_211 = arith.constant 0 : index
    %c0_212 = arith.constant 0 : index
    %346 = vector.load %arg12[%c4_210, %c0_211, %c0_212] : memref<8x64x16xbf16, #tpu.memory_space<vmem>>, vector<1x64x16xbf16>
    %347 = vector.shape_cast %346 : vector<1x64x16xbf16> to vector<64x16xbf16>
    %cst_213 = arith.constant dense<0.000000e+00> : vector<48x16xf32>
    %348 = tpu.matmul %330, %347, %cst_213 {dimension_numbers = #tpu.dot_dimension_numbers<[1], [0], [0], [1], [0, 0, 1, 1], [], []>} : vector<48x64xbf16>, vector<64x16xbf16>, vector<48x16xf32> -> vector<48x16xf32>
    %c4_214 = arith.constant 4 : index
    %c0_215 = arith.constant 0 : index
    %c0_216 = arith.constant 0 : index
    %349 = vector.load %arg13[%c4_214, %c0_215, %c0_216] : memref<8x1x16xf32, #tpu.memory_space<vmem>>, vector<1x1x16xf32>
    %350 = vector.shape_cast %349 : vector<1x1x16xf32> to vector<1x16xf32>
    %351 = vector.broadcast %350 : vector<1x16xf32> to vector<48x16xf32>
    %352 = arith.addf %348, %351 : vector<48x16xf32>
    %353 = arith.truncf %338 : vector<48x16xf32> to vector<48x16xbf16>
    %354 = arith.truncf %345 : vector<48x16xf32> to vector<48x16xbf16>
    %cst_217 = arith.constant dense<0.000000e+00> : vector<48x48xf32>
    %355 = tpu.matmul %353, %354, %cst_217 {dimension_numbers = #tpu.dot_dimension_numbers<[1], [1], [0], [0], [0, 0, 1, 0], [], []>} : vector<48x16xbf16>, vector<48x16xbf16>, vector<48x48xf32> -> vector<48x48xf32>
    %356 = arith.addf %355, %28 : vector<48x48xf32>
    %cst_218 = arith.constant dense<0xFF800000> : vector<48xf32>
    %357 = vector.multi_reduction <maximumf>, %356, %cst_218 [1] : vector<48x48xf32> to vector<48xf32>
    %358 = vector.shape_cast %357 : vector<48xf32> to vector<48x1xf32>
    %359 = vector.broadcast %358 : vector<48x1xf32> to vector<48x48xf32>
    %360 = arith.subf %356, %359 : vector<48x48xf32>
    %361 = math.exp %360 : vector<48x48xf32>
    %cst_219 = arith.constant dense<0.000000e+00> : vector<48xf32>
    %362 = vector.multi_reduction <add>, %361, %cst_219 [1] : vector<48x48xf32> to vector<48xf32>
    %363 = vector.shape_cast %362 : vector<48xf32> to vector<48x1xf32>
    %364 = tpu.reciprocal %363 {approx = true} : vector<48x1xf32> -> vector<48x1xf32>
    %365 = vector.broadcast %364 : vector<48x1xf32> to vector<48x48xf32>
    %366 = arith.mulf %361, %365 : vector<48x48xf32>
    %367 = arith.truncf %366 : vector<48x48xf32> to vector<48x48xbf16>
    %368 = arith.truncf %352 : vector<48x16xf32> to vector<48x16xbf16>
    %cst_220 = arith.constant dense<0.000000e+00> : vector<48x16xf32>
    %369 = tpu.matmul %367, %368, %cst_220 {dimension_numbers = #tpu.dot_dimension_numbers<[1], [0], [0], [1], [0, 0, 1, 1], [], []>} : vector<48x48xbf16>, vector<48x16xbf16>, vector<48x16xf32> -> vector<48x16xf32>
    %370 = arith.truncf %369 : vector<48x16xf32> to vector<48x16xbf16>
    %c4_221 = arith.constant 4 : index
    %c0_222 = arith.constant 0 : index
    %c0_223 = arith.constant 0 : index
    %371 = vector.load %arg14[%c4_221, %c0_222, %c0_223] : memref<8x16x64xbf16, #tpu.memory_space<vmem>>, vector<1x16x64xbf16>
    %372 = vector.shape_cast %371 : vector<1x16x64xbf16> to vector<16x64xbf16>
    %cst_224 = arith.constant dense<0.000000e+00> : vector<48x64xf32>
    %373 = tpu.matmul %370, %372, %cst_224 {dimension_numbers = #tpu.dot_dimension_numbers<[1], [0], [0], [1], [0, 0, 1, 1], [], []>} : vector<48x16xbf16>, vector<16x64xbf16>, vector<48x64xf32> -> vector<48x64xf32>
    %374 = arith.addf %331, %373 : vector<48x64xf32>
    %c5 = arith.constant 5 : index
    %c0_225 = arith.constant 0 : index
    %c0_226 = arith.constant 0 : index
    %375 = vector.load %arg8[%c5, %c0_225, %c0_226] : memref<8x64x16xbf16, #tpu.memory_space<vmem>>, vector<1x64x16xbf16>
    %376 = vector.shape_cast %375 : vector<1x64x16xbf16> to vector<64x16xbf16>
    %cst_227 = arith.constant dense<0.000000e+00> : vector<48x16xf32>
    %377 = tpu.matmul %330, %376, %cst_227 {dimension_numbers = #tpu.dot_dimension_numbers<[1], [0], [0], [1], [0, 0, 1, 1], [], []>} : vector<48x64xbf16>, vector<64x16xbf16>, vector<48x16xf32> -> vector<48x16xf32>
    %c5_228 = arith.constant 5 : index
    %c0_229 = arith.constant 0 : index
    %c0_230 = arith.constant 0 : index
    %378 = vector.load %arg9[%c5_228, %c0_229, %c0_230] : memref<8x1x16xf32, #tpu.memory_space<vmem>>, vector<1x1x16xf32>
    %379 = vector.shape_cast %378 : vector<1x1x16xf32> to vector<1x16xf32>
    %380 = vector.broadcast %379 : vector<1x16xf32> to vector<48x16xf32>
    %381 = arith.addf %377, %380 : vector<48x16xf32>
    %c5_231 = arith.constant 5 : index
    %c0_232 = arith.constant 0 : index
    %c0_233 = arith.constant 0 : index
    %382 = vector.load %arg10[%c5_231, %c0_232, %c0_233] : memref<8x64x16xbf16, #tpu.memory_space<vmem>>, vector<1x64x16xbf16>
    %383 = vector.shape_cast %382 : vector<1x64x16xbf16> to vector<64x16xbf16>
    %cst_234 = arith.constant dense<0.000000e+00> : vector<48x16xf32>
    %384 = tpu.matmul %330, %383, %cst_234 {dimension_numbers = #tpu.dot_dimension_numbers<[1], [0], [0], [1], [0, 0, 1, 1], [], []>} : vector<48x64xbf16>, vector<64x16xbf16>, vector<48x16xf32> -> vector<48x16xf32>
    %c5_235 = arith.constant 5 : index
    %c0_236 = arith.constant 0 : index
    %c0_237 = arith.constant 0 : index
    %385 = vector.load %arg11[%c5_235, %c0_236, %c0_237] : memref<8x1x16xf32, #tpu.memory_space<vmem>>, vector<1x1x16xf32>
    %386 = vector.shape_cast %385 : vector<1x1x16xf32> to vector<1x16xf32>
    %387 = vector.broadcast %386 : vector<1x16xf32> to vector<48x16xf32>
    %388 = arith.addf %384, %387 : vector<48x16xf32>
    %c5_238 = arith.constant 5 : index
    %c0_239 = arith.constant 0 : index
    %c0_240 = arith.constant 0 : index
    %389 = vector.load %arg12[%c5_238, %c0_239, %c0_240] : memref<8x64x16xbf16, #tpu.memory_space<vmem>>, vector<1x64x16xbf16>
    %390 = vector.shape_cast %389 : vector<1x64x16xbf16> to vector<64x16xbf16>
    %cst_241 = arith.constant dense<0.000000e+00> : vector<48x16xf32>
    %391 = tpu.matmul %330, %390, %cst_241 {dimension_numbers = #tpu.dot_dimension_numbers<[1], [0], [0], [1], [0, 0, 1, 1], [], []>} : vector<48x64xbf16>, vector<64x16xbf16>, vector<48x16xf32> -> vector<48x16xf32>
    %c5_242 = arith.constant 5 : index
    %c0_243 = arith.constant 0 : index
    %c0_244 = arith.constant 0 : index
    %392 = vector.load %arg13[%c5_242, %c0_243, %c0_244] : memref<8x1x16xf32, #tpu.memory_space<vmem>>, vector<1x1x16xf32>
    %393 = vector.shape_cast %392 : vector<1x1x16xf32> to vector<1x16xf32>
    %394 = vector.broadcast %393 : vector<1x16xf32> to vector<48x16xf32>
    %395 = arith.addf %391, %394 : vector<48x16xf32>
    %396 = arith.truncf %381 : vector<48x16xf32> to vector<48x16xbf16>
    %397 = arith.truncf %388 : vector<48x16xf32> to vector<48x16xbf16>
    %cst_245 = arith.constant dense<0.000000e+00> : vector<48x48xf32>
    %398 = tpu.matmul %396, %397, %cst_245 {dimension_numbers = #tpu.dot_dimension_numbers<[1], [1], [0], [0], [0, 0, 1, 0], [], []>} : vector<48x16xbf16>, vector<48x16xbf16>, vector<48x48xf32> -> vector<48x48xf32>
    %399 = arith.addf %398, %28 : vector<48x48xf32>
    %cst_246 = arith.constant dense<0xFF800000> : vector<48xf32>
    %400 = vector.multi_reduction <maximumf>, %399, %cst_246 [1] : vector<48x48xf32> to vector<48xf32>
    %401 = vector.shape_cast %400 : vector<48xf32> to vector<48x1xf32>
    %402 = vector.broadcast %401 : vector<48x1xf32> to vector<48x48xf32>
    %403 = arith.subf %399, %402 : vector<48x48xf32>
    %404 = math.exp %403 : vector<48x48xf32>
    %cst_247 = arith.constant dense<0.000000e+00> : vector<48xf32>
    %405 = vector.multi_reduction <add>, %404, %cst_247 [1] : vector<48x48xf32> to vector<48xf32>
    %406 = vector.shape_cast %405 : vector<48xf32> to vector<48x1xf32>
    %407 = tpu.reciprocal %406 {approx = true} : vector<48x1xf32> -> vector<48x1xf32>
    %408 = vector.broadcast %407 : vector<48x1xf32> to vector<48x48xf32>
    %409 = arith.mulf %404, %408 : vector<48x48xf32>
    %410 = arith.truncf %409 : vector<48x48xf32> to vector<48x48xbf16>
    %411 = arith.truncf %395 : vector<48x16xf32> to vector<48x16xbf16>
    %cst_248 = arith.constant dense<0.000000e+00> : vector<48x16xf32>
    %412 = tpu.matmul %410, %411, %cst_248 {dimension_numbers = #tpu.dot_dimension_numbers<[1], [0], [0], [1], [0, 0, 1, 1], [], []>} : vector<48x48xbf16>, vector<48x16xbf16>, vector<48x16xf32> -> vector<48x16xf32>
    %413 = arith.truncf %412 : vector<48x16xf32> to vector<48x16xbf16>
    %c5_249 = arith.constant 5 : index
    %c0_250 = arith.constant 0 : index
    %c0_251 = arith.constant 0 : index
    %414 = vector.load %arg14[%c5_249, %c0_250, %c0_251] : memref<8x16x64xbf16, #tpu.memory_space<vmem>>, vector<1x16x64xbf16>
    %415 = vector.shape_cast %414 : vector<1x16x64xbf16> to vector<16x64xbf16>
    %cst_252 = arith.constant dense<0.000000e+00> : vector<48x64xf32>
    %416 = tpu.matmul %413, %415, %cst_252 {dimension_numbers = #tpu.dot_dimension_numbers<[1], [0], [0], [1], [0, 0, 1, 1], [], []>} : vector<48x16xbf16>, vector<16x64xbf16>, vector<48x64xf32> -> vector<48x64xf32>
    %417 = arith.addf %374, %416 : vector<48x64xf32>
    %c6 = arith.constant 6 : index
    %c0_253 = arith.constant 0 : index
    %c0_254 = arith.constant 0 : index
    %418 = vector.load %arg8[%c6, %c0_253, %c0_254] : memref<8x64x16xbf16, #tpu.memory_space<vmem>>, vector<1x64x16xbf16>
    %419 = vector.shape_cast %418 : vector<1x64x16xbf16> to vector<64x16xbf16>
    %cst_255 = arith.constant dense<0.000000e+00> : vector<48x16xf32>
    %420 = tpu.matmul %330, %419, %cst_255 {dimension_numbers = #tpu.dot_dimension_numbers<[1], [0], [0], [1], [0, 0, 1, 1], [], []>} : vector<48x64xbf16>, vector<64x16xbf16>, vector<48x16xf32> -> vector<48x16xf32>
    %c6_256 = arith.constant 6 : index
    %c0_257 = arith.constant 0 : index
    %c0_258 = arith.constant 0 : index
    %421 = vector.load %arg9[%c6_256, %c0_257, %c0_258] : memref<8x1x16xf32, #tpu.memory_space<vmem>>, vector<1x1x16xf32>
    %422 = vector.shape_cast %421 : vector<1x1x16xf32> to vector<1x16xf32>
    %423 = vector.broadcast %422 : vector<1x16xf32> to vector<48x16xf32>
    %424 = arith.addf %420, %423 : vector<48x16xf32>
    %c6_259 = arith.constant 6 : index
    %c0_260 = arith.constant 0 : index
    %c0_261 = arith.constant 0 : index
    %425 = vector.load %arg10[%c6_259, %c0_260, %c0_261] : memref<8x64x16xbf16, #tpu.memory_space<vmem>>, vector<1x64x16xbf16>
    %426 = vector.shape_cast %425 : vector<1x64x16xbf16> to vector<64x16xbf16>
    %cst_262 = arith.constant dense<0.000000e+00> : vector<48x16xf32>
    %427 = tpu.matmul %330, %426, %cst_262 {dimension_numbers = #tpu.dot_dimension_numbers<[1], [0], [0], [1], [0, 0, 1, 1], [], []>} : vector<48x64xbf16>, vector<64x16xbf16>, vector<48x16xf32> -> vector<48x16xf32>
    %c6_263 = arith.constant 6 : index
    %c0_264 = arith.constant 0 : index
    %c0_265 = arith.constant 0 : index
    %428 = vector.load %arg11[%c6_263, %c0_264, %c0_265] : memref<8x1x16xf32, #tpu.memory_space<vmem>>, vector<1x1x16xf32>
    %429 = vector.shape_cast %428 : vector<1x1x16xf32> to vector<1x16xf32>
    %430 = vector.broadcast %429 : vector<1x16xf32> to vector<48x16xf32>
    %431 = arith.addf %427, %430 : vector<48x16xf32>
    %c6_266 = arith.constant 6 : index
    %c0_267 = arith.constant 0 : index
    %c0_268 = arith.constant 0 : index
    %432 = vector.load %arg12[%c6_266, %c0_267, %c0_268] : memref<8x64x16xbf16, #tpu.memory_space<vmem>>, vector<1x64x16xbf16>
    %433 = vector.shape_cast %432 : vector<1x64x16xbf16> to vector<64x16xbf16>
    %cst_269 = arith.constant dense<0.000000e+00> : vector<48x16xf32>
    %434 = tpu.matmul %330, %433, %cst_269 {dimension_numbers = #tpu.dot_dimension_numbers<[1], [0], [0], [1], [0, 0, 1, 1], [], []>} : vector<48x64xbf16>, vector<64x16xbf16>, vector<48x16xf32> -> vector<48x16xf32>
    %c6_270 = arith.constant 6 : index
    %c0_271 = arith.constant 0 : index
    %c0_272 = arith.constant 0 : index
    %435 = vector.load %arg13[%c6_270, %c0_271, %c0_272] : memref<8x1x16xf32, #tpu.memory_space<vmem>>, vector<1x1x16xf32>
    %436 = vector.shape_cast %435 : vector<1x1x16xf32> to vector<1x16xf32>
    %437 = vector.broadcast %436 : vector<1x16xf32> to vector<48x16xf32>
    %438 = arith.addf %434, %437 : vector<48x16xf32>
    %439 = arith.truncf %424 : vector<48x16xf32> to vector<48x16xbf16>
    %440 = arith.truncf %431 : vector<48x16xf32> to vector<48x16xbf16>
    %cst_273 = arith.constant dense<0.000000e+00> : vector<48x48xf32>
    %441 = tpu.matmul %439, %440, %cst_273 {dimension_numbers = #tpu.dot_dimension_numbers<[1], [1], [0], [0], [0, 0, 1, 0], [], []>} : vector<48x16xbf16>, vector<48x16xbf16>, vector<48x48xf32> -> vector<48x48xf32>
    %442 = arith.addf %441, %28 : vector<48x48xf32>
    %cst_274 = arith.constant dense<0xFF800000> : vector<48xf32>
    %443 = vector.multi_reduction <maximumf>, %442, %cst_274 [1] : vector<48x48xf32> to vector<48xf32>
    %444 = vector.shape_cast %443 : vector<48xf32> to vector<48x1xf32>
    %445 = vector.broadcast %444 : vector<48x1xf32> to vector<48x48xf32>
    %446 = arith.subf %442, %445 : vector<48x48xf32>
    %447 = math.exp %446 : vector<48x48xf32>
    %cst_275 = arith.constant dense<0.000000e+00> : vector<48xf32>
    %448 = vector.multi_reduction <add>, %447, %cst_275 [1] : vector<48x48xf32> to vector<48xf32>
    %449 = vector.shape_cast %448 : vector<48xf32> to vector<48x1xf32>
    %450 = tpu.reciprocal %449 {approx = true} : vector<48x1xf32> -> vector<48x1xf32>
    %451 = vector.broadcast %450 : vector<48x1xf32> to vector<48x48xf32>
    %452 = arith.mulf %447, %451 : vector<48x48xf32>
    %453 = arith.truncf %452 : vector<48x48xf32> to vector<48x48xbf16>
    %454 = arith.truncf %438 : vector<48x16xf32> to vector<48x16xbf16>
    %cst_276 = arith.constant dense<0.000000e+00> : vector<48x16xf32>
    %455 = tpu.matmul %453, %454, %cst_276 {dimension_numbers = #tpu.dot_dimension_numbers<[1], [0], [0], [1], [0, 0, 1, 1], [], []>} : vector<48x48xbf16>, vector<48x16xbf16>, vector<48x16xf32> -> vector<48x16xf32>
    %456 = arith.truncf %455 : vector<48x16xf32> to vector<48x16xbf16>
    %c6_277 = arith.constant 6 : index
    %c0_278 = arith.constant 0 : index
    %c0_279 = arith.constant 0 : index
    %457 = vector.load %arg14[%c6_277, %c0_278, %c0_279] : memref<8x16x64xbf16, #tpu.memory_space<vmem>>, vector<1x16x64xbf16>
    %458 = vector.shape_cast %457 : vector<1x16x64xbf16> to vector<16x64xbf16>
    %cst_280 = arith.constant dense<0.000000e+00> : vector<48x64xf32>
    %459 = tpu.matmul %456, %458, %cst_280 {dimension_numbers = #tpu.dot_dimension_numbers<[1], [0], [0], [1], [0, 0, 1, 1], [], []>} : vector<48x16xbf16>, vector<16x64xbf16>, vector<48x64xf32> -> vector<48x64xf32>
    %460 = arith.addf %417, %459 : vector<48x64xf32>
    %c7 = arith.constant 7 : index
    %c0_281 = arith.constant 0 : index
    %c0_282 = arith.constant 0 : index
    %461 = vector.load %arg8[%c7, %c0_281, %c0_282] : memref<8x64x16xbf16, #tpu.memory_space<vmem>>, vector<1x64x16xbf16>
    %462 = vector.shape_cast %461 : vector<1x64x16xbf16> to vector<64x16xbf16>
    %cst_283 = arith.constant dense<0.000000e+00> : vector<48x16xf32>
    %463 = tpu.matmul %330, %462, %cst_283 {dimension_numbers = #tpu.dot_dimension_numbers<[1], [0], [0], [1], [0, 0, 1, 1], [], []>} : vector<48x64xbf16>, vector<64x16xbf16>, vector<48x16xf32> -> vector<48x16xf32>
    %c7_284 = arith.constant 7 : index
    %c0_285 = arith.constant 0 : index
    %c0_286 = arith.constant 0 : index
    %464 = vector.load %arg9[%c7_284, %c0_285, %c0_286] : memref<8x1x16xf32, #tpu.memory_space<vmem>>, vector<1x1x16xf32>
    %465 = vector.shape_cast %464 : vector<1x1x16xf32> to vector<1x16xf32>
    %466 = vector.broadcast %465 : vector<1x16xf32> to vector<48x16xf32>
    %467 = arith.addf %463, %466 : vector<48x16xf32>
    %c7_287 = arith.constant 7 : index
    %c0_288 = arith.constant 0 : index
    %c0_289 = arith.constant 0 : index
    %468 = vector.load %arg10[%c7_287, %c0_288, %c0_289] : memref<8x64x16xbf16, #tpu.memory_space<vmem>>, vector<1x64x16xbf16>
    %469 = vector.shape_cast %468 : vector<1x64x16xbf16> to vector<64x16xbf16>
    %cst_290 = arith.constant dense<0.000000e+00> : vector<48x16xf32>
    %470 = tpu.matmul %330, %469, %cst_290 {dimension_numbers = #tpu.dot_dimension_numbers<[1], [0], [0], [1], [0, 0, 1, 1], [], []>} : vector<48x64xbf16>, vector<64x16xbf16>, vector<48x16xf32> -> vector<48x16xf32>
    %c7_291 = arith.constant 7 : index
    %c0_292 = arith.constant 0 : index
    %c0_293 = arith.constant 0 : index
    %471 = vector.load %arg11[%c7_291, %c0_292, %c0_293] : memref<8x1x16xf32, #tpu.memory_space<vmem>>, vector<1x1x16xf32>
    %472 = vector.shape_cast %471 : vector<1x1x16xf32> to vector<1x16xf32>
    %473 = vector.broadcast %472 : vector<1x16xf32> to vector<48x16xf32>
    %474 = arith.addf %470, %473 : vector<48x16xf32>
    %c7_294 = arith.constant 7 : index
    %c0_295 = arith.constant 0 : index
    %c0_296 = arith.constant 0 : index
    %475 = vector.load %arg12[%c7_294, %c0_295, %c0_296] : memref<8x64x16xbf16, #tpu.memory_space<vmem>>, vector<1x64x16xbf16>
    %476 = vector.shape_cast %475 : vector<1x64x16xbf16> to vector<64x16xbf16>
    %cst_297 = arith.constant dense<0.000000e+00> : vector<48x16xf32>
    %477 = tpu.matmul %330, %476, %cst_297 {dimension_numbers = #tpu.dot_dimension_numbers<[1], [0], [0], [1], [0, 0, 1, 1], [], []>} : vector<48x64xbf16>, vector<64x16xbf16>, vector<48x16xf32> -> vector<48x16xf32>
    %c7_298 = arith.constant 7 : index
    %c0_299 = arith.constant 0 : index
    %c0_300 = arith.constant 0 : index
    %478 = vector.load %arg13[%c7_298, %c0_299, %c0_300] : memref<8x1x16xf32, #tpu.memory_space<vmem>>, vector<1x1x16xf32>
    %479 = vector.shape_cast %478 : vector<1x1x16xf32> to vector<1x16xf32>
    %480 = vector.broadcast %479 : vector<1x16xf32> to vector<48x16xf32>
    %481 = arith.addf %477, %480 : vector<48x16xf32>
    %482 = arith.truncf %467 : vector<48x16xf32> to vector<48x16xbf16>
    %483 = arith.truncf %474 : vector<48x16xf32> to vector<48x16xbf16>
    %cst_301 = arith.constant dense<0.000000e+00> : vector<48x48xf32>
    %484 = tpu.matmul %482, %483, %cst_301 {dimension_numbers = #tpu.dot_dimension_numbers<[1], [1], [0], [0], [0, 0, 1, 0], [], []>} : vector<48x16xbf16>, vector<48x16xbf16>, vector<48x48xf32> -> vector<48x48xf32>
    %485 = arith.addf %484, %28 : vector<48x48xf32>
    %cst_302 = arith.constant dense<0xFF800000> : vector<48xf32>
    %486 = vector.multi_reduction <maximumf>, %485, %cst_302 [1] : vector<48x48xf32> to vector<48xf32>
    %487 = vector.shape_cast %486 : vector<48xf32> to vector<48x1xf32>
    %488 = vector.broadcast %487 : vector<48x1xf32> to vector<48x48xf32>
    %489 = arith.subf %485, %488 : vector<48x48xf32>
    %490 = math.exp %489 : vector<48x48xf32>
    %cst_303 = arith.constant dense<0.000000e+00> : vector<48xf32>
    %491 = vector.multi_reduction <add>, %490, %cst_303 [1] : vector<48x48xf32> to vector<48xf32>
    %492 = vector.shape_cast %491 : vector<48xf32> to vector<48x1xf32>
    %493 = tpu.reciprocal %492 {approx = true} : vector<48x1xf32> -> vector<48x1xf32>
    %494 = vector.broadcast %493 : vector<48x1xf32> to vector<48x48xf32>
    %495 = arith.mulf %490, %494 : vector<48x48xf32>
    %496 = arith.truncf %495 : vector<48x48xf32> to vector<48x48xbf16>
    %497 = arith.truncf %481 : vector<48x16xf32> to vector<48x16xbf16>
    %cst_304 = arith.constant dense<0.000000e+00> : vector<48x16xf32>
    %498 = tpu.matmul %496, %497, %cst_304 {dimension_numbers = #tpu.dot_dimension_numbers<[1], [0], [0], [1], [0, 0, 1, 1], [], []>} : vector<48x48xbf16>, vector<48x16xbf16>, vector<48x16xf32> -> vector<48x16xf32>
    %499 = arith.truncf %498 : vector<48x16xf32> to vector<48x16xbf16>
    %c7_305 = arith.constant 7 : index
    %c0_306 = arith.constant 0 : index
    %c0_307 = arith.constant 0 : index
    %500 = vector.load %arg14[%c7_305, %c0_306, %c0_307] : memref<8x16x64xbf16, #tpu.memory_space<vmem>>, vector<1x16x64xbf16>
    %501 = vector.shape_cast %500 : vector<1x16x64xbf16> to vector<16x64xbf16>
    %cst_308 = arith.constant dense<0.000000e+00> : vector<48x64xf32>
    %502 = tpu.matmul %499, %501, %cst_308 {dimension_numbers = #tpu.dot_dimension_numbers<[1], [0], [0], [1], [0, 0, 1, 1], [], []>} : vector<48x16xbf16>, vector<16x64xbf16>, vector<48x64xf32> -> vector<48x64xf32>
    %503 = arith.addf %460, %502 : vector<48x64xf32>
    %504 = arith.addf %305, %503 : vector<48x64xf32>
    %c1_309 = arith.constant 1 : index
    %c0_310 = arith.constant 0 : index
    %c0_311 = arith.constant 0 : index
    %505 = vector.load %arg15[%c1_309, %c0_310, %c0_311] : memref<2x1x64xf32, #tpu.memory_space<vmem>>, vector<1x1x64xf32>
    %506 = vector.shape_cast %505 : vector<1x1x64xf32> to vector<1x64xf32>
    %507 = vector.broadcast %506 : vector<1x64xf32> to vector<48x64xf32>
    %508 = arith.addf %504, %507 : vector<48x64xf32>
    %c0_312 = arith.constant 0 : index
    %c0_313 = arith.constant 0 : index
    %509 = vector.load %arg25[%c0_312, %c0_313] : memref<48x64xf32, #tpu.memory_space<vmem>>, vector<48x64xf32>
    tpu.vector_store %arg25[%c0_312, %c0_313], %508 {strides = array<i32>} : memref<48x64xf32, #tpu.memory_space<vmem>>, vector<48x64xf32>,
    %c0_314 = arith.constant 0 : index
    %c0_315 = arith.constant 0 : index
    %510 = vector.load %arg25[%c0_314, %c0_315] : memref<48x64xf32, #tpu.memory_space<vmem>>, vector<48x64xf32>
    %c1_316 = arith.constant 1 : index
    %c0_317 = arith.constant 0 : index
    %c0_318 = arith.constant 0 : index
    %511 = vector.load %arg16[%c1_316, %c0_317, %c0_318] : memref<2x1x64xf32, #tpu.memory_space<vmem>>, vector<1x1x64xf32>
    %512 = vector.shape_cast %511 : vector<1x1x64xf32> to vector<1x64xf32>
    %c1_319 = arith.constant 1 : index
    %c0_320 = arith.constant 0 : index
    %c0_321 = arith.constant 0 : index
    %513 = vector.load %arg17[%c1_319, %c0_320, %c0_321] : memref<2x1x64xf32, #tpu.memory_space<vmem>>, vector<1x1x64xf32>
    %514 = vector.shape_cast %513 : vector<1x1x64xf32> to vector<1x64xf32>
    %cst_322 = arith.constant dense<0.000000e+00> : vector<48xf32>
    %515 = vector.multi_reduction <add>, %510, %cst_322 [1] : vector<48x64xf32> to vector<48xf32>
    %516 = vector.shape_cast %515 : vector<48xf32> to vector<48x1xf32>
    %cst_323 = arith.constant 6.400000e+01 : f32
    %517 = vector.broadcast %cst_323 : f32 to vector<48x1xf32>
    %518 = arith.divf %516, %517 : vector<48x1xf32>
    %519 = vector.broadcast %518 : vector<48x1xf32> to vector<48x64xf32>
    %520 = arith.subf %510, %519 : vector<48x64xf32>
    %521 = arith.mulf %520, %520 : vector<48x64xf32>
    %cst_324 = arith.constant dense<0.000000e+00> : vector<48xf32>
    %522 = vector.multi_reduction <add>, %521, %cst_324 [1] : vector<48x64xf32> to vector<48xf32>
    %523 = vector.shape_cast %522 : vector<48xf32> to vector<48x1xf32>
    %cst_325 = arith.constant 6.400000e+01 : f32
    %524 = vector.broadcast %cst_325 : f32 to vector<48x1xf32>
    %525 = arith.divf %523, %524 : vector<48x1xf32>
    %cst_326 = arith.constant 9.99999997E-7 : f32
    %526 = vector.broadcast %cst_326 : f32 to vector<48x1xf32>
    %527 = arith.addf %525, %526 : vector<48x1xf32>
    %528 = math.rsqrt %527 : vector<48x1xf32>
    %529 = vector.broadcast %528 : vector<48x1xf32> to vector<48x64xf32>
    %530 = arith.mulf %520, %529 : vector<48x64xf32>
    %531 = vector.broadcast %512 : vector<1x64xf32> to vector<48x64xf32>
    %532 = arith.mulf %530, %531 : vector<48x64xf32>
    %533 = vector.broadcast %514 : vector<1x64xf32> to vector<48x64xf32>
    %534 = arith.addf %532, %533 : vector<48x64xf32>
    %535 = arith.truncf %534 : vector<48x64xf32> to vector<48x64xbf16>
    %c1_327 = arith.constant 1 : index
    %c0_328 = arith.constant 0 : index
    %c0_329 = arith.constant 0 : index
    %536 = vector.load %arg18[%c1_327, %c0_328, %c0_329] : memref<2x64x256xbf16, #tpu.memory_space<vmem>>, vector<1x64x256xbf16>
    %537 = vector.shape_cast %536 : vector<1x64x256xbf16> to vector<64x256xbf16>
    %cst_330 = arith.constant dense<0.000000e+00> : vector<48x256xf32>
    %538 = tpu.matmul %535, %537, %cst_330 {dimension_numbers = #tpu.dot_dimension_numbers<[1], [0], [0], [1], [0, 0, 1, 1], [], []>} : vector<48x64xbf16>, vector<64x256xbf16>, vector<48x256xf32> -> vector<48x256xf32>
    %c1_331 = arith.constant 1 : index
    %c0_332 = arith.constant 0 : index
    %c0_333 = arith.constant 0 : index
    %539 = vector.load %arg19[%c1_331, %c0_332, %c0_333] : memref<2x1x256xf32, #tpu.memory_space<vmem>>, vector<1x1x256xf32>
    %540 = vector.shape_cast %539 : vector<1x1x256xf32> to vector<1x256xf32>
    %541 = vector.broadcast %540 : vector<1x256xf32> to vector<48x256xf32>
    %542 = arith.addf %538, %541 : vector<48x256xf32>
    %cst_334 = arith.constant 5.000000e-01 : f32
    %543 = vector.broadcast %cst_334 : f32 to vector<48x256xf32>
    %544 = arith.mulf %543, %542 : vector<48x256xf32>
    %cst_335 = arith.constant 4.471500e-02 : f32
    %545 = vector.broadcast %cst_335 : f32 to vector<48x256xf32>
    %546 = arith.mulf %545, %542 : vector<48x256xf32>
    %547 = arith.mulf %546, %542 : vector<48x256xf32>
    %548 = arith.mulf %547, %542 : vector<48x256xf32>
    %549 = arith.addf %542, %548 : vector<48x256xf32>
    %cst_336 = arith.constant 0.797884583 : f32
    %550 = vector.broadcast %cst_336 : f32 to vector<48x256xf32>
    %551 = arith.mulf %550, %549 : vector<48x256xf32>
    %552 = math.tanh %551 : vector<48x256xf32>
    %cst_337 = arith.constant 1.000000e+00 : f32
    %553 = vector.broadcast %cst_337 : f32 to vector<48x256xf32>
    %554 = arith.addf %553, %552 : vector<48x256xf32>
    %555 = arith.mulf %544, %554 : vector<48x256xf32>
    %556 = arith.truncf %555 : vector<48x256xf32> to vector<48x256xbf16>
    %c1_338 = arith.constant 1 : index
    %c0_339 = arith.constant 0 : index
    %c0_340 = arith.constant 0 : index
    %557 = vector.load %arg20[%c1_338, %c0_339, %c0_340] : memref<2x256x64xbf16, #tpu.memory_space<vmem>>, vector<1x256x64xbf16>
    %558 = vector.shape_cast %557 : vector<1x256x64xbf16> to vector<256x64xbf16>
    %cst_341 = arith.constant dense<0.000000e+00> : vector<48x64xf32>
    %559 = tpu.matmul %556, %558, %cst_341 {dimension_numbers = #tpu.dot_dimension_numbers<[1], [0], [0], [1], [0, 0, 1, 1], [], []>} : vector<48x256xbf16>, vector<256x64xbf16>, vector<48x64xf32> -> vector<48x64xf32>
    %c1_342 = arith.constant 1 : index
    %c0_343 = arith.constant 0 : index
    %c0_344 = arith.constant 0 : index
    %560 = vector.load %arg21[%c1_342, %c0_343, %c0_344] : memref<2x1x64xf32, #tpu.memory_space<vmem>>, vector<1x1x64xf32>
    %561 = vector.shape_cast %560 : vector<1x1x64xf32> to vector<1x64xf32>
    %562 = vector.broadcast %561 : vector<1x64xf32> to vector<48x64xf32>
    %563 = arith.addf %559, %562 : vector<48x64xf32>
    %564 = arith.addf %510, %563 : vector<48x64xf32>
    %c0_345 = arith.constant 0 : index
    %c0_346 = arith.constant 0 : index
    %565 = vector.load %arg25[%c0_345, %c0_346] : memref<48x64xf32, #tpu.memory_space<vmem>>, vector<48x64xf32>
    tpu.vector_store %arg25[%c0_345, %c0_346], %564 {strides = array<i32>} : memref<48x64xf32, #tpu.memory_space<vmem>>, vector<48x64xf32>,
    %c0_347 = arith.constant 0 : index
    %c0_348 = arith.constant 0 : index
    %566 = vector.load %arg25[%c0_347, %c0_348] : memref<48x64xf32, #tpu.memory_space<vmem>>, vector<1x64xf32>
    %c24 = arith.constant 24 : index
    %c0_349 = arith.constant 0 : index
    %567 = vector.load %arg25[%c24, %c0_349] : memref<48x64xf32, #tpu.memory_space<vmem>>, vector<1x64xf32>
    %568 = tpu.concatenate %566, %567 in 0 : vector<1x64xf32>, vector<1x64xf32> -> vector<2x64xf32>
    %c0_350 = arith.constant 0 : index
    %c0_351 = arith.constant 0 : index
    %569 = vector.load %arg22[%c0_350, %c0_351] : memref<1x64xf32, #tpu.memory_space<vmem>>, vector<1x64xf32>
    %c0_352 = arith.constant 0 : index
    %c0_353 = arith.constant 0 : index
    %570 = vector.load %arg23[%c0_352, %c0_353] : memref<1x64xf32, #tpu.memory_space<vmem>>, vector<1x64xf32>
    %cst_354 = arith.constant dense<0.000000e+00> : vector<2xf32>
    %571 = vector.multi_reduction <add>, %568, %cst_354 [1] : vector<2x64xf32> to vector<2xf32>
    %572 = vector.shape_cast %571 : vector<2xf32> to vector<2x1xf32>
    %cst_355 = arith.constant 6.400000e+01 : f32
    %573 = vector.broadcast %cst_355 : f32 to vector<2x1xf32>
    %574 = arith.divf %572, %573 : vector<2x1xf32>
    %575 = vector.broadcast %574 : vector<2x1xf32> to vector<2x64xf32>
    %576 = arith.subf %568, %575 : vector<2x64xf32>
    %577 = arith.mulf %576, %576 : vector<2x64xf32>
    %cst_356 = arith.constant dense<0.000000e+00> : vector<2xf32>
    %578 = vector.multi_reduction <add>, %577, %cst_356 [1] : vector<2x64xf32> to vector<2xf32>
    %579 = vector.shape_cast %578 : vector<2xf32> to vector<2x1xf32>
    %cst_357 = arith.constant 6.400000e+01 : f32
    %580 = vector.broadcast %cst_357 : f32 to vector<2x1xf32>
    %581 = arith.divf %579, %580 : vector<2x1xf32>
    %cst_358 = arith.constant 9.99999997E-7 : f32
    %582 = vector.broadcast %cst_358 : f32 to vector<2x1xf32>
    %583 = arith.addf %581, %582 : vector<2x1xf32>
    %584 = math.rsqrt %583 : vector<2x1xf32>
    %585 = vector.broadcast %584 : vector<2x1xf32> to vector<2x64xf32>
    %586 = arith.mulf %576, %585 : vector<2x64xf32>
    %587 = vector.broadcast %569 : vector<1x64xf32> to vector<2x64xf32>
    %588 = arith.mulf %586, %587 : vector<2x64xf32>
    %589 = vector.broadcast %570 : vector<1x64xf32> to vector<2x64xf32>
    %590 = arith.addf %588, %589 : vector<2x64xf32>
    %c0_359 = arith.constant 0 : index
    %c0_360 = arith.constant 0 : index
    %591 = vector.load %arg24[%c0_359, %c0_360] : memref<2x64xf32, #tpu.memory_space<vmem>>, vector<2x64xf32>
    tpu.vector_store %arg24[%c0_359, %c0_360], %590 {strides = array<i32>} : memref<2x64xf32, #tpu.memory_space<vmem>>, vector<2x64xf32>,
    return
  }
  func.func @transform_0(%arg0: i32) -> (i32, i32) {
    %c0_i32 = arith.constant 0 : i32
    %c0_i32_0 = arith.constant 0 : i32
    %c0_i32_1 = arith.constant 0 : i32
    return %c0_i32, %c0_i32_0 : i32, i32
  }
  func.func @transform_1(%arg0: i32) -> (i32, i32) {
    %c0_i32 = arith.constant 0 : i32
    %c0_i32_0 = arith.constant 0 : i32
    %c0_i32_1 = arith.constant 0 : i32
    return %c0_i32, %c0_i32_0 : i32, i32
  }
  func.func @transform_2(%arg0: i32) -> (i32, i32) {
    %c0_i32 = arith.constant 0 : i32
    %c0_i32_0 = arith.constant 0 : i32
    %c0_i32_1 = arith.constant 0 : i32
    return %c0_i32, %c0_i32_0 : i32, i32
  }
  func.func @transform_3(%arg0: i32) -> (i32, i32) {
    %c0_i32 = arith.constant 0 : i32
    %c0_i32_0 = arith.constant 0 : i32
    %c0_i32_1 = arith.constant 0 : i32
    return %c0_i32, %c0_i32_0 : i32, i32
  }
  func.func @transform_4(%arg0: i32) -> (i32, i32) {
    %c0_i32 = arith.constant 0 : i32
    %c0_i32_0 = arith.constant 0 : i32
    %c0_i32_1 = arith.constant 0 : i32
    return %c0_i32, %c0_i32_0 : i32, i32
  }
  func.func @transform_5(%arg0: i32) -> (i32, i32, i32) {
    %c0_i32 = arith.constant 0 : i32
    %c0_i32_0 = arith.constant 0 : i32
    %c0_i32_1 = arith.constant 0 : i32
    %c0_i32_2 = arith.constant 0 : i32
    return %c0_i32, %c0_i32_0, %c0_i32_1 : i32, i32, i32
  }
  func.func @transform_6(%arg0: i32) -> (i32, i32, i32) {
    %c0_i32 = arith.constant 0 : i32
    %c0_i32_0 = arith.constant 0 : i32
    %c0_i32_1 = arith.constant 0 : i32
    %c0_i32_2 = arith.constant 0 : i32
    return %c0_i32, %c0_i32_0, %c0_i32_1 : i32, i32, i32
  }
  func.func @transform_7(%arg0: i32) -> (i32, i32, i32) {
    %c0_i32 = arith.constant 0 : i32
    %c0_i32_0 = arith.constant 0 : i32
    %c0_i32_1 = arith.constant 0 : i32
    %c0_i32_2 = arith.constant 0 : i32
    return %c0_i32, %c0_i32_0, %c0_i32_1 : i32, i32, i32
  }
  func.func @transform_8(%arg0: i32) -> (i32, i32, i32) {
    %c0_i32 = arith.constant 0 : i32
    %c0_i32_0 = arith.constant 0 : i32
    %c0_i32_1 = arith.constant 0 : i32
    %c0_i32_2 = arith.constant 0 : i32
    return %c0_i32, %c0_i32_0, %c0_i32_1 : i32, i32, i32
  }
  func.func @transform_9(%arg0: i32) -> (i32, i32, i32) {
    %c0_i32 = arith.constant 0 : i32
    %c0_i32_0 = arith.constant 0 : i32
    %c0_i32_1 = arith.constant 0 : i32
    %c0_i32_2 = arith.constant 0 : i32
    return %c0_i32, %c0_i32_0, %c0_i32_1 : i32, i32, i32
  }
  func.func @transform_10(%arg0: i32) -> (i32, i32, i32) {
    %c0_i32 = arith.constant 0 : i32
    %c0_i32_0 = arith.constant 0 : i32
    %c0_i32_1 = arith.constant 0 : i32
    %c0_i32_2 = arith.constant 0 : i32
    return %c0_i32, %c0_i32_0, %c0_i32_1 : i32, i32, i32
  }
  func.func @transform_11(%arg0: i32) -> (i32, i32, i32) {
    %c0_i32 = arith.constant 0 : i32
    %c0_i32_0 = arith.constant 0 : i32
    %c0_i32_1 = arith.constant 0 : i32
    %c0_i32_2 = arith.constant 0 : i32
    return %c0_i32, %c0_i32_0, %c0_i32_1 : i32, i32, i32
  }
  func.func @transform_12(%arg0: i32) -> (i32, i32, i32) {
    %c0_i32 = arith.constant 0 : i32
    %c0_i32_0 = arith.constant 0 : i32
    %c0_i32_1 = arith.constant 0 : i32
    %c0_i32_2 = arith.constant 0 : i32
    return %c0_i32, %c0_i32_0, %c0_i32_1 : i32, i32, i32
  }
  func.func @transform_13(%arg0: i32) -> (i32, i32, i32) {
    %c0_i32 = arith.constant 0 : i32
    %c0_i32_0 = arith.constant 0 : i32
    %c0_i32_1 = arith.constant 0 : i32
    %c0_i32_2 = arith.constant 0 : i32
    return %c0_i32, %c0_i32_0, %c0_i32_1 : i32, i32, i32
  }
  func.func @transform_14(%arg0: i32) -> (i32, i32, i32) {
    %c0_i32 = arith.constant 0 : i32
    %c0_i32_0 = arith.constant 0 : i32
    %c0_i32_1 = arith.constant 0 : i32
    %c0_i32_2 = arith.constant 0 : i32
    return %c0_i32, %c0_i32_0, %c0_i32_1 : i32, i32, i32
  }
  func.func @transform_15(%arg0: i32) -> (i32, i32, i32) {
    %c0_i32 = arith.constant 0 : i32
    %c0_i32_0 = arith.constant 0 : i32
    %c0_i32_1 = arith.constant 0 : i32
    %c0_i32_2 = arith.constant 0 : i32
    return %c0_i32, %c0_i32_0, %c0_i32_1 : i32, i32, i32
  }
  func.func @transform_16(%arg0: i32) -> (i32, i32, i32) {
    %c0_i32 = arith.constant 0 : i32
    %c0_i32_0 = arith.constant 0 : i32
    %c0_i32_1 = arith.constant 0 : i32
    %c0_i32_2 = arith.constant 0 : i32
    return %c0_i32, %c0_i32_0, %c0_i32_1 : i32, i32, i32
  }
  func.func @transform_17(%arg0: i32) -> (i32, i32, i32) {
    %c0_i32 = arith.constant 0 : i32
    %c0_i32_0 = arith.constant 0 : i32
    %c0_i32_1 = arith.constant 0 : i32
    %c0_i32_2 = arith.constant 0 : i32
    return %c0_i32, %c0_i32_0, %c0_i32_1 : i32, i32, i32
  }
  func.func @transform_18(%arg0: i32) -> (i32, i32, i32) {
    %c0_i32 = arith.constant 0 : i32
    %c0_i32_0 = arith.constant 0 : i32
    %c0_i32_1 = arith.constant 0 : i32
    %c0_i32_2 = arith.constant 0 : i32
    return %c0_i32, %c0_i32_0, %c0_i32_1 : i32, i32, i32
  }
  func.func @transform_19(%arg0: i32) -> (i32, i32, i32) {
    %c0_i32 = arith.constant 0 : i32
    %c0_i32_0 = arith.constant 0 : i32
    %c0_i32_1 = arith.constant 0 : i32
    %c0_i32_2 = arith.constant 0 : i32
    return %c0_i32, %c0_i32_0, %c0_i32_1 : i32, i32, i32
  }
  func.func @transform_20(%arg0: i32) -> (i32, i32, i32) {
    %c0_i32 = arith.constant 0 : i32
    %c0_i32_0 = arith.constant 0 : i32
    %c0_i32_1 = arith.constant 0 : i32
    %c0_i32_2 = arith.constant 0 : i32
    return %c0_i32, %c0_i32_0, %c0_i32_1 : i32, i32, i32
  }
  func.func @transform_21(%arg0: i32) -> (i32, i32) {
    %c0_i32 = arith.constant 0 : i32
    %c0_i32_0 = arith.constant 0 : i32
    %c0_i32_1 = arith.constant 0 : i32
    return %c0_i32, %c0_i32_0 : i32, i32
  }
  func.func @transform_22(%arg0: i32) -> (i32, i32) {
    %c0_i32 = arith.constant 0 : i32
    %c0_i32_0 = arith.constant 0 : i32
    %c0_i32_1 = arith.constant 0 : i32
    return %c0_i32, %c0_i32_0 : i32, i32
  }
  func.func @transform_23(%arg0: i32) -> (i32, i32) {
    %c0_i32 = arith.constant 0 : i32
    %c0_i32_0 = arith.constant 0 : i32
    %c0_i32_1 = arith.constant 0 : i32
    return %c0_i32, %c0_i32_0 : i32, i32
  }
}

</mosaic_0001>

<bundles_post_ra>
// kernel: forward_features.1
= control target key start
LH: loop header
LB: loop body
LE: loop exit
PB: predicated region body
PF: predicated region fallthrough
CT: control target
= control target key end

     0   :  { %s8335_s0 = inlined_call_operand.vmem [shape: bf16[32,48], index: 0, kind: input, shape index: {}]   ;;  %s8336_s1 = inlined_call_operand.vmem [shape: bf16[48,64], index: 1, kind: input, shape index: {}]   ;;  %s8337_s2 = inlined_call_operand.vmem [shape: f32[1,64], index: 2, kind: input, shape index: {}]   ;;  %s8338_s3 = inlined_call_operand.vmem [shape: f32[1,64], index: 3, kind: input, shape index: {}]   ;;  %s8339_s4 = inlined_call_operand.vmem [shape: f32[16,64], index: 4, kind: input, shape index: {}]   ;;  %s8340_s5 = inlined_call_operand.vmem [shape: f32[2,1,64], index: 5, kind: input, shape index: {}]   ;;  %s8341_s6 = inlined_call_operand.vmem [shape: f32[2,1,64], index: 6, kind: input, shape index: {}]   ;;  %s8342_s7 = inlined_call_operand.vmem [shape: bf16[8,64,16], index: 7, kind: input, shape index: {}]   ;;  %s8343_s8 = inlined_call_operand.vmem [shape: f32[8,1,16], index: 8, kind: input, shape index: {}]   ;;  %s8344_s9 = inlined_call_operand.vmem [shape: bf16[8,64,16], index: 9, kind: input, shape index: {}]   ;;  %s8345_s10 = inlined_call_operand.vmem [shape: f32[8,1,16], index: 10, kind: input, shape index: {}]   ;;  %s8346_s11 = inlined_call_operand.vmem [shape: bf16[8,64,16], index: 11, kind: input, shape index: {}]   ;;  %s8347_s12 = inlined_call_operand.vmem [shape: f32[8,1,16], index: 12, kind: input, shape index: {}]   ;;  %s8348_s13 = inlined_call_operand.vmem [shape: bf16[8,16,64], index: 13, kind: input, shape index: {}]   ;;  %s8349_s14 = inlined_call_operand.vmem [shape: f32[2,1,64], index: 14, kind: input, shape index: {}]   ;;  %s8350_s15 = inlined_call_operand.vmem [shape: f32[2,1,64], index: 15, kind: input, shape index: {}]   ;;  %s8351_s16 = inlined_call_operand.vmem [shape: f32[2,1,64], index: 16, kind: input, shape index: {}]   ;;  %s8352_s17 = inlined_call_operand.vmem [shape: bf16[2,64,256], index: 17, kind: input, shape index: {}]   ;;  %s8353_s18 = inlined_call_operand.vmem [shape: f32[2,1,256], index: 18, kind: input, shape index: {}]   ;;  %s8354_s19 = inlined_call_operand.vmem [shape: bf16[2,256,64], index: 19, kind: input, shape index: {}]   ;;  %s8355_s20 = inlined_call_operand.vmem [shape: f32[2,1,64], index: 20, kind: input, shape index: {}]   ;;  %s8356_s21 = inlined_call_operand.vmem [shape: f32[1,64], index: 21, kind: input, shape index: {}]   ;;  %s8357_s22 = inlined_call_operand.vmem [shape: f32[1,64], index: 22, kind: input, shape index: {}]   ;;  %s8358_s23 = inlined_call_operand.hbm [shape: f32[2,64], index: 23, kind: output, shape index: {}]  }
   0x1   :  { %8365 = sst [smem:[#allocation6_spill]] %s8335_s0 }
   0x2   :  { %8366 = sst [smem:[#allocation7_spill]] %s8336_s1 }
   0x3   :  { %8367 = sst [smem:[#allocation8_spill]] %s8337_s2 }
   0x4   :  { %8368 = sst [smem:[#allocation9_spill]] %s8338_s3 }
   0x5   :  { %8369 = sst [smem:[#allocation10_spill]] %s8339_s4 }
   0x6   :  { %8370 = sst [smem:[#allocation11_spill]] %s8340_s5 }
   0x7   :  { %8371 = sst [smem:[#allocation12_spill]] %s8341_s6 }
   0x8   :  { %8372 = sst [smem:[#allocation13_spill]] %s8342_s7 }
   0x9   :  { %s8373_s24 = sld [smem:[#allocation7_spill]]  ;;  %vm193_vm0 = vcmask 392192  }
   0xa   :  { %s8374_s27 = sld [smem:[#allocation6_spill]] }
   0xf   :  { %v5996_v0 = vld [vmem:[%s8373_s24 + $0x10] sm:$0xff]  ;;  %v5995_v1 = vld [vmem:[%s8373_s24 + $0x8] sm:$0xff]  ;;  %v5994_v2 = vld [vmem:[%s8373_s24] sm:$0xff] }
  0x10   :  { %205 = vmatpush.bf16.msra.mxu0 %v5996_v0  ;;  %v5992_v3 = vld [vmem:[%s8374_s27] sm:$0xff] }
  0x14   :  { %206 = vmatpush.bf16.msra.mxu0 %v5995_v1 }
  0x18   :  { %207 = vmatpush.bf16.msra.mxu0 %v5994_v2 }
  0x1b   :  { %4976 = vmatmul.msk.bf16.vlgmr.msra.gmra.mxu0 %vm193_vm0, %v5992_v3 }
  0x1c   :  { %28 = vsyncpa [#allocation4], 0  ;;  %v5993_v4 = vld [vmem:[%s8374_s27 + $0x8] sm:$0xff]  ;;  %s8375_s0 = sld [smem:[#allocation8_spill]]  ;;  %vm228_vm1 = vcmask 1040384   ;;  %vm247_vm2 = vcmask 523264  }
  0x1d   :  { %s8376_s24 = sld [smem:[#allocation10_spill]]  ;;  %v6524_v43 = vmov 64.0   ;;  %s6526_s29 = smov [#allocation3]  }
  0x1e   :  { %s8377_s1 = sld [smem:[#allocation9_spill]]  ;;  %6194 = vrcp.f32 %v6524_v43 }
  0x1f   :  { %s8378_s7 = sld [smem:[#allocation13_spill]] }
  0x20   :  { %s8379_s26 = sld [smem:[#allocation11_spill]] }
  0x21   :  { %s8380_s27 = sld [smem:[#allocation12_spill]] }
  0x22   :  { %v6155_v5 = vld [vmem:[%s8375_s0] ss:$0 sm:$0xff]  ;;  %s4947_s0 = sshll.u32 %s8358_s23, 4  ;;  %s4948_s0 = int_to_ptr.hbm [resolvable:$true] %s4947_s0 }
  0x23   :  { %v220_v7 = vld [vmem:[%s8376_s24] sm:$0xff]  ;;  %v221_v14 = vld [vmem:[%s8376_s24 + $0x8] sm:$0xff] }
  0x24   :  { %v219_v10 = vld [vmem:[%s8377_s1] sm:$0x1]  ;;  %v6195_v44 = vpop.eup %6194 }
  0x25   :  { %v281_v45 = vmul.f32 64.0, %v6195_v44  ;;  %vm285_vm3 = vweird.f32 %v6195_v44 }
  0x27   :  { %v282_v46 = vsub.f32 1.0, %v281_v45 }
  0x29   :  { %v283_v47 = vmul.f32 %v6195_v44, %v282_v46 }
  0x2b   :  { %4977 = vmatmul.msk.bf16.gmra.mxu0 %vm193_vm0, %v5993_v4  ;;  %v284_v48 = vadd.f32 %v6195_v44, %v283_v47 }
  0x2d   :  { %v6694_v49 = vsel %vm285_vm3, %v6195_v44, %v284_v48 }
  0x98   :  { %v209_v6 = vpop.f32.mrf.mxu0 }
  0x99   :  { %v210_v8 = vadd.f32 %v6155_v5, %v209_v6 }
  0x9b   :  { %v222_v9 = vadd.f32 %v220_v7, %v210_v8 }
  0x9d   :  { %v229_v11 = vrot.slane %v222_v9, 7 }
  0x9f   :  { %v243_v12 = vsel %vm228_vm1, %v219_v10, %v229_v11 }
  0xa0   :  { %248 = vst.msk [vmem:[#allocation2] sm:$0xff] %vm247_vm2, %v243_v12  ;;  %v211_v13 = vpop.f32.mrf.mxu0 }
  0xa1   :  { %v212_v15 = vadd.f32 %v6155_v5, %v211_v13 }
  0xa3   :  { %v223_v16 = vadd.f32 %v221_v14, %v212_v15 }
  0xa5   :  { %v230_v17 = vrot.slane %v223_v16, 7  ;;  %v6000_v16 = vld [vmem:[%s8378_s7 + $0x18] sm:$0xff] }
  0xa6   :  { %471 = vmatpush.bf16.msra.mxu1 %v6000_v16 }
  0xa7   :  { %v231_v18 = vsel %vm228_vm1, %v229_v11, %v230_v17  ;;  %v244_v19 = vsel %vm228_vm1, %v230_v17, 0.0  ;;  %v254_v20 = vld [vmem:[#allocation2] sm:$0xff]  ;;  %v6004_v17 = vld [vmem:[%s8344_s9 + $0x18] sm:$0xff] }
  0xa8   :  { %249 = vst.msk [vmem:[#allocation2 + $0x8] sm:$0xff] %vm247_vm2, %v231_v18  ;;  %v214_v21 = vpop.f32.mrf.mxu0  ;;  %v262_v22 = vsel %vm247_vm2, %v254_v20, 0.0  ;;  %v6008_v18 = vld [vmem:[%s8346_s11 + $0x18] sm:$0xff]  ;;  %531 = vmatpush.bf16.msra.mxu2 %v6004_v17 }
  0xa9   :  { %250 = vst.msk [vmem:[#allocation2 + $0x10] sm:$0xff] %vm247_vm2, %v244_v19  ;;  %v215_v23 = vadd.f32 %v6155_v5, %v214_v21  ;;  %263 = vadd.xlane.f32.xlu0 %v262_v22  ;;  %591 = vmatpush.bf16.msra.mxu3 %v6008_v18  ;;  %v5999_v19 = vld [vmem:[%s8378_s7 + $0x10] sm:$0xff]  ;;  %v5998_v22 = vld [vmem:[%s8378_s7 + $0x8] sm:$0xff] }
  0xaa   :  { %v6007_v21 = vld [vmem:[%s8346_s11 + $0x10] sm:$0xff]  ;;  %472 = vmatpush.bf16.msra.mxu1 %v5999_v19 }
  0xab   :  { %v224_v24 = vadd.f32 %v220_v7, %v215_v23  ;;  %v6002_v23 = vld [vmem:[%s8344_s9 + $0x8] sm:$0xff] }
  0xad   :  { %v237_v25 = vrot.slane %v224_v24, 7  ;;  %592 = vmatpush.bf16.msra.mxu3 %v6007_v21  ;;  %v6006_v24 = vld [vmem:[%s8346_s11 + $0x8] sm:$0xff] }
  0xae   :  { %473 = vmatpush.bf16.msra.mxu1 %v5998_v22 }
  0xaf   :  { %v245_v26 = vsel %vm228_vm1, %v219_v10, %v237_v25  ;;  %v255_v27 = vld [vmem:[#allocation2 + $0x8] sm:$0xff] }
  0xb0   :  { %251 = vst.msk [vmem:[#allocation2 + $0x18] sm:$0xff] %vm247_vm2, %v245_v26  ;;  %v216_v28 = vpop.f32.mrf.mxu0  ;;  %v256_v29 = vld [vmem:[#allocation2 + $0x10] sm:$0xff]  ;;  %v265_v30 = vsel %vm247_vm2, %v255_v27, 0.0 }
  0xb1   :  { %v217_v31 = vadd.f32 %v6155_v5, %v216_v28  ;;  %v268_v32 = vsel %vm247_vm2, %v256_v29, 0.0  ;;  %266 = vadd.xlane.f32.xlu0 %v265_v30  ;;  %593 = vmatpush.bf16.msra.mxu3 %v6006_v24  ;;  %v5997_v28 = vld [vmem:[%s8378_s7] sm:$0xff] }
  0xb2   :  { %269 = vadd.xlane.f32.xlu1 %v268_v32  ;;  %v6005_v30 = vld [vmem:[%s8346_s11] sm:$0xff]  ;;  %474 = vmatpush.bf16.msra.mxu1 %v5997_v28 }
  0xb3   :  { %v225_v33 = vadd.f32 %v221_v14, %v217_v31 }
  0xb5   :  { %v238_v34 = vrot.slane %v225_v33, 7  ;;  %594 = vmatpush.bf16.msra.mxu3 %v6005_v30  ;;  %v6012_v30 = vld [vmem:[%s8378_s7 + $0x30] sm:$0xff] }
  0xb7   :  { %v239_v35 = vsel %vm228_vm1, %v237_v25, %v238_v34  ;;  %v246_v36 = vsel %vm228_vm1, %v238_v34, 0.0  ;;  %v257_v37 = vld [vmem:[#allocation2 + $0x18] sm:$0xff] }
  0xb8   :  { %252 = vst.msk [vmem:[#allocation2 + $0x20] sm:$0xff] %vm247_vm2, %v239_v35  ;;  %v271_v38 = vsel %vm247_vm2, %v257_v37, 0.0 }
  0xb9   :  { %253 = vst.msk [vmem:[#allocation2 + $0x28] sm:$0xff] %vm247_vm2, %v246_v36 }
  0xba   :  { %272 = vadd.xlane.f32.xlu1 %v271_v38 }
  0xbf   :  { %v258_v39 = vld [vmem:[#allocation2 + $0x20] sm:$0xff] }
  0xc0   :  { %v274_v40 = vsel %vm247_vm2, %v258_v39, 0.0  ;;  %v259_v41 = vld [vmem:[#allocation2 + $0x28] sm:$0xff] }
  0xc1   :  { %275 = vadd.xlane.f32.xlu2 %v274_v40  ;;  %v277_v42 = vsel %vm247_vm2, %v259_v41, 0.0 }
  0xc9   :  { %278 = vadd.xlane.f32.xlu2 %v277_v42 }
 0x11c   :  { %v264_v50 = vpop.xlane.xlu0 %263 }
 0x11d   :  { %v287_v51 = vmul.f32 %v6694_v49, %v264_v50 }
 0x11f   :  { %v6697_v52 = vsub.f32 %v254_v20, %v287_v51  ;;  %v6003_v20 = vld [vmem:[%s8344_s9 + $0x10] sm:$0xff] }
 0x120   :  { %532 = vmatpush.bf16.msra.mxu2 %v6003_v20 }
 0x121   :  { %v299_v53 = vmul.f32 %v6697_v52, %v6697_v52 }
 0x123   :  { %v305_v54 = vsel %vm247_vm2, %v299_v53, 0.0 }
 0x124   :  { %306 = vadd.xlane.f32.xlu0 %v305_v54  ;;  %v267_v55 = vpop.xlane.xlu0 %266  ;;  %533 = vmatpush.bf16.msra.mxu2 %v6002_v23 }
 0x125   :  { %v270_v56 = vpop.xlane.xlu1 %269  ;;  %v288_v57 = vmul.f32 %v6694_v49, %v267_v55 }
 0x126   :  { %v289_v58 = vmul.f32 %v6694_v49, %v270_v56 }
 0x127   :  { %v6704_v59 = vsub.f32 %v255_v27, %v288_v57 }
 0x128   :  { %v6706_v60 = vsub.f32 %v256_v29, %v289_v58  ;;  %v6001_v29 = vld [vmem:[%s8344_s9] sm:$0xff] }
 0x129   :  { %v300_v61 = vmul.f32 %v6704_v59, %v6704_v59  ;;  %534 = vmatpush.bf16.msra.mxu2 %v6001_v29  ;;  %v6780_v58 = vld [vmem:[%s8379_s26] ss:$0 sm:$0xff] }
 0x12a   :  { %v301_v62 = vmul.f32 %v6706_v60, %v6706_v60 }
 0x12b   :  { %v308_v63 = vsel %vm247_vm2, %v300_v61, 0.0 }
 0x12c   :  { %v311_v0 = vsel %vm247_vm2, %v301_v62, 0.0  ;;  %309 = vadd.xlane.f32.xlu1 %v308_v63 }
 0x12d   :  { %312 = vadd.xlane.f32.xlu2 %v311_v0  ;;  %v273_v1 = vpop.xlane.xlu1 %272 }
 0x12e   :  { %v290_v2 = vmul.f32 %v6694_v49, %v273_v1 }
 0x130   :  { %v6715_v3 = vsub.f32 %v257_v37, %v290_v2 }
 0x132   :  { %v302_v4 = vmul.f32 %v6715_v3, %v6715_v3 }
 0x134   :  { %v276_v5 = vpop.xlane.xlu2 %275  ;;  %v314_v6 = vsel %vm247_vm2, %v302_v4, 0.0 }
 0x135   :  { %v291_v7 = vmul.f32 %v6694_v49, %v276_v5  ;;  %315 = vadd.xlane.f32.xlu0 %v314_v6  ;;  %v6789_v5 = vld [vmem:[%s8380_s27] ss:$0 sm:$0xff] }
 0x137   :  { %v6721_v8 = vsub.f32 %v258_v39, %v291_v7 }
 0x139   :  { %v303_v9 = vmul.f32 %v6721_v8, %v6721_v8 }
 0x13b   :  { %v317_v10 = vsel %vm247_vm2, %v303_v9, 0.0 }
 0x13c   :  { %v279_v11 = vpop.xlane.xlu2 %278  ;;  %318 = vadd.xlane.f32.xlu1 %v317_v10 }
 0x13d   :  { %v292_v12 = vmul.f32 %v6694_v49, %v279_v11 }
 0x13f   :  { %v6727_v13 = vsub.f32 %v259_v41, %v292_v12 }
 0x141   :  { %v304_v14 = vmul.f32 %v6727_v13, %v6727_v13 }
 0x143   :  { %v320_v15 = vsel %vm247_vm2, %v304_v14, 0.0 }
 0x144   :  { %321 = vadd.xlane.f32.xlu2 %v320_v15 }
 0x197   :  { %v307_v25 = vpop.xlane.xlu0 %306 }
 0x198   :  { %v323_v26 = vmul.f32 %v307_v25, %v6694_v49  ;;  %v6013_v25 = vld [vmem:[%s8378_s7 + $0x38] sm:$0xff] }
 0x199   :  { %812 = vmatpush.bf16.msrb.mxu2 %v6013_v25 }
 0x19a   :  { %v329_v27 = vadd.f32 1e-06, %v323_v26  ;;  %v6017_v26 = vld [vmem:[%s8344_s9 + $0x38] sm:$0xff] }
 0x19b   :  { %874 = vmatpush.bf16.msrb.mxu3 %v6017_v26 }
 0x19c   :  { %6196 = vrsqrt.f32 %v329_v27  ;;  %vm341_vm5 = vweird.f32 %v329_v27 }
 0x19d   :  { %813 = vmatpush.bf16.msrb.mxu2 %v6012_v30 }
 0x19f   :  { %v310_v31 = vpop.xlane.xlu1 %309 }
 0x1a0   :  { %v313_v32 = vpop.xlane.xlu2 %312  ;;  %v324_v33 = vmul.f32 %v310_v31, %v6694_v49  ;;  %v6016_v31 = vld [vmem:[%s8344_s9 + $0x30] sm:$0xff] }
 0x1a1   :  { %v325_v34 = vmul.f32 %v313_v32, %v6694_v49  ;;  %875 = vmatpush.bf16.msrb.mxu3 %v6016_v31 }
 0x1a2   :  { %v6197_v35 = vpop.eup %6196  ;;  %v330_v36 = vadd.f32 1e-06, %v324_v33 }
 0x1a3   :  { %v336_v37 = vmul.f32 %v6197_v35, %v329_v27  ;;  %v331_v38 = vadd.f32 1e-06, %v325_v34  ;;  %vm342_vm4 = vweird.f32 %v6197_v35 }
 0x1a4   :  { %6198 = vrsqrt.f32 %v330_v36  ;;  %vm343_vm6 = vmor %vm341_vm5, %vm342_vm4  ;;  %vm351_vm8 = vweird.f32 %v330_v36 }
 0x1a5   :  { %v337_v39 = vmul.f32 %v6197_v35, %v336_v37  ;;  %6200 = vrsqrt.f32 %v331_v38  ;;  %vm361_vm13 = vweird.f32 %v331_v38  ;;  %v6015_v37 = vld [vmem:[%s8344_s9 + $0x28] sm:$0xff] }
 0x1a6   :  { %876 = vmatpush.bf16.msrb.mxu3 %v6015_v37 }
 0x1a7   :  { %v338_v40 = vmul.f32 0.5, %v337_v39 }
 0x1a8   :  { %v316_v41 = vpop.xlane.xlu0 %315 }
 0x1a9   :  { %v339_v42 = vsub.f32 1.5, %v338_v40  ;;  %v326_v43 = vmul.f32 %v316_v41, %v6694_v49 }
 0x1aa   :  { %v6199_v44 = vpop.eup %6198 }
 0x1ab   :  { %v6772_v45 = vpop.eup %6200  ;;  %v340_v46 = vmul.f32 %v6197_v35, %v339_v42  ;;  %v346_v47 = vmul.f32 %v6199_v44, %v330_v36  ;;  %v332_v48 = vadd.f32 1e-06, %v326_v43  ;;  %vm352_vm7 = vweird.f32 %v6199_v44  ;;  %v6010_v42 = vld [vmem:[%s8378_s7 + $0x20] sm:$0xff] }
 0x1ac   :  { %v356_v50 = vmul.f32 %v6772_v45, %v331_v38  ;;  %vm353_vm9 = vmor %vm351_vm8, %vm352_vm7  ;;  %vm362_vm11 = vweird.f32 %v6772_v45  ;;  %v6014_v43 = vld [vmem:[%s8344_s9 + $0x20] sm:$0xff] }
 0x1ad   :  { %v347_v51 = vmul.f32 %v6199_v44, %v346_v47  ;;  %6202 = vrsqrt.f32 %v332_v48  ;;  %v344_v53 = vsel %vm343_vm6, %v6197_v35, %v340_v46  ;;  %vm371_vm12 = vweird.f32 %v332_v48  ;;  %vm363_vm15 = vmor %vm361_vm13, %vm362_vm11  ;;  %877 = vmatpush.bf16.msrb.mxu3 %v6014_v43 }
 0x1ae   :  { %v357_v54 = vmul.f32 %v6772_v45, %v356_v50  ;;  %v395_v61 = vmul.f32 %v344_v53, %v6697_v52 }
 0x1af   :  { %v348_v55 = vmul.f32 0.5, %v347_v51  ;;  %v319_v56 = vpop.xlane.xlu1 %318 }
 0x1b0   :  { %v327_v57 = vmul.f32 %v319_v56, %v6694_v49  ;;  %v358_v1 = vmul.f32 0.5, %v357_v54  ;;  %v404_v6 = vmul.f32 %v6780_v58, %v395_v61 }
 0x1b1   :  { %v349_v62 = vsub.f32 1.5, %v348_v55 }
 0x1b2   :  { %v6783_v63 = vadd.f32 1e-06, %v327_v57  ;;  %v359_v10 = vsub.f32 1.5, %v358_v1  ;;  %v413_v16 = vadd.f32 %v6789_v5, %v404_v6 }
 0x1b3   :  { %v6203_v0 = vpop.eup %6202  ;;  %v350_v2 = vmul.f32 %v6199_v44, %v349_v62 }
 0x1b4   :  { %v366_v4 = vmul.f32 %v6203_v0, %v332_v48  ;;  %6204 = vrsqrt.f32 %v6783_v63  ;;  %vm372_vm10 = vweird.f32 %v6203_v0  ;;  %v360_v21 = vmul.f32 %v6772_v45, %v359_v10  ;;  %v6159_v10 = vld [vmem:[%s8345_s10] ss:$0 sm:$0xff] }
 0x1b5   :  { %v354_v52 = vsel %vm353_vm9, %v6199_v44, %v350_v2  ;;  %vm373_vm14 = vmor %vm371_vm12, %vm372_vm10  ;;  %vm381_vm7 = vweird.f32 %v6783_v63  ;;  %vm617_vm9 = vcmask 130048  }
 0x1b6   :  { %v396_v7 = vmul.f32 %v354_v52, %v6704_v59  ;;  %v367_v9 = vmul.f32 %v6203_v0, %v366_v4  ;;  %v364_v27 = vsel %vm363_vm15, %v6772_v45, %v360_v21 }
 0x1b7   :  { %v322_v11 = vpop.xlane.xlu2 %321  ;;  %v397_v33 = vmul.f32 %v364_v27, %v6706_v60  ;;  %v6160_v27 = vld [vmem:[%s8347_s12] ss:$0 sm:$0xff] }
 0x1b8   :  { %v405_v12 = vmul.f32 %v6780_v58, %v396_v7  ;;  %v368_v14 = vmul.f32 0.5, %v367_v9  ;;  %v328_v15 = vmul.f32 %v322_v11, %v6694_v49 }
 0x1b9   :  { %v406_v39 = vmul.f32 %v6780_v58, %v397_v33 }
 0x1ba   :  { %v6796_v17 = vpop.eup %6204  ;;  %v414_v18 = vadd.f32 %v6789_v5, %v405_v12  ;;  %v369_v19 = vsub.f32 1.5, %v368_v14  ;;  %v334_v20 = vadd.f32 1e-06, %v328_v15 }
 0x1bb   :  { %v376_v59 = vmul.f32 %v6796_v17, %v6783_v63  ;;  %v415_v45 = vadd.f32 %v6789_v5, %v406_v39  ;;  %vm382_vm4 = vweird.f32 %v6796_v17 }
 0x1bc   :  { %v6803_v22 = vpack.c.bf16 %v414_v18, %v413_v16  ;;  %v370_v23 = vmul.f32 %v6203_v0, %v369_v19  ;;  %6206 = vrsqrt.f32 %v334_v20  ;;  %vm391_vm5 = vweird.f32 %v334_v20  ;;  %vm383_vm8 = vmor %vm381_vm7, %vm382_vm4 }
 0x1bd   :  { %v377_v28 = vmul.f32 %v6796_v17, %v376_v59 }
 0x1be   :  { %v374_v24 = vsel %vm373_vm14, %v6203_v0, %v370_v23  ;;  %4994 = vmatmul.msk.bf16.vlgmr.msra.gmra.mxu1 %vm247_vm2, %v6803_v22  ;;  %5013 = vmatmul.msk.bf16.vlgmr.msra.gmra.mxu2 %vm247_vm2, %v6803_v22 }
 0x1bf   :  { %5032 = vmatmul.msk.bf16.vlgmr.msra.gmra.mxu3 %vm247_vm2, %v6803_v22  ;;  %v398_v29 = vmul.f32 %v374_v24, %v6715_v3  ;;  %v378_v34 = vmul.f32 0.5, %v377_v28  ;;  %v6011_v3 = vld [vmem:[%s8378_s7 + $0x28] sm:$0xff] }
 0x1c0   :  { %814 = vmatpush.bf16.msrb.mxu2 %v6011_v3 }
 0x1c1   :  { %v407_v36 = vmul.f32 %v6780_v58, %v398_v29  ;;  %v379_v40 = vsub.f32 1.5, %v378_v34  ;;  %v6158_v34 = vld [vmem:[%s8343_s8] ss:$0 sm:$0xff] }
 0x1c2   :  { %v6207_v32 = vpop.eup %6206 }
 0x1c3   :  { %v386_v35 = vmul.f32 %v6207_v32, %v334_v20  ;;  %v416_v60 = vadd.f32 %v6789_v5, %v407_v36  ;;  %vm392_vm3 = vweird.f32 %v6207_v32  ;;  %v380_v46 = vmul.f32 %v6796_v17, %v379_v40  ;;  %v6020_v40 = vld [vmem:[%s8346_s11 + $0x30] sm:$0xff] }
 0x1c4   :  { %vm393_vm6 = vmor %vm391_vm5, %vm392_vm3  ;;  %815 = vmatpush.bf16.msrb.mxu2 %v6010_v42 }
 0x1c5   :  { %v387_v38 = vmul.f32 %v6207_v32, %v386_v35  ;;  %v6845_v48 = vpack.c.bf16 %v416_v60, %v415_v45  ;;  %v384_v51 = vsel %vm383_vm8, %v6796_v17, %v380_v46 }
 0x1c6   :  { %v399_v54 = vmul.f32 %v384_v51, %v6721_v8 }
 0x1c7   :  { %v388_v41 = vmul.f32 0.5, %v387_v38 }
 0x1c8   :  { %v408_v56 = vmul.f32 %v6780_v58, %v399_v54 }
 0x1c9   :  { %v389_v44 = vsub.f32 1.5, %v388_v41 }
 0x1ca   :  { %v417_v61 = vadd.f32 %v6789_v5, %v408_v56 }
 0x1cb   :  { %v390_v47 = vmul.f32 %v6207_v32, %v389_v44 }
 0x1cd   :  { %v394_v50 = vsel %vm393_vm6, %v6207_v32, %v390_v47  ;;  %v6021_v32 = vld [vmem:[%s8346_s11 + $0x38] sm:$0xff] }
 0x1ce   :  { %4995 = vmatmul.msk.bf16.gmra.mxu1 %vm247_vm2, %v6845_v48  ;;  %5014 = vmatmul.msk.bf16.gmra.mxu2 %vm247_vm2, %v6845_v48  ;;  %v400_v53 = vmul.f32 %v394_v50, %v6727_v13  ;;  %v6019_v50 = vld [vmem:[%s8346_s11 + $0x28] sm:$0xff] }
 0x1cf   :  { %5033 = vmatmul.msk.bf16.gmra.mxu3 %vm247_vm2, %v6845_v48 }
 0x1d0   :  { %v409_v55 = vmul.f32 %v6780_v58, %v400_v53  ;;  %v6018_v53 = vld [vmem:[%s8346_s11 + $0x20] sm:$0xff] }
 0x1d2   :  { %v418_v57 = vadd.f32 %v6789_v5, %v409_v55 }
 0x1d4   :  { %v6861_v62 = vpack.c.bf16 %v418_v57, %v417_v61 }
 0x1de   :  { %4996 = vmatmul.msk.bf16.gmra.mxu1 %vm247_vm2, %v6861_v62  ;;  %5015 = vmatmul.msk.bf16.gmra.mxu2 %vm247_vm2, %v6861_v62 }
 0x1df   :  { %5034 = vmatmul.msk.bf16.gmra.mxu3 %vm247_vm2, %v6861_v62 }
 0x1ee   :  { %5066 = vmatmul.msk.bf16.vlgmr.msrb.gmra.mxu2 %vm247_vm2, %v6803_v22 }
 0x1ef   :  { %5094 = vmatmul.msk.bf16.vlgmr.msrb.gmra.mxu3 %vm247_vm2, %v6803_v22 }
 0x1fe   :  { %5067 = vmatmul.msk.bf16.gmra.mxu2 %vm247_vm2, %v6845_v48 }
 0x1ff   :  { %5095 = vmatmul.msk.bf16.gmra.mxu3 %vm247_vm2, %v6845_v48 }
 0x20e   :  { %5068 = vmatmul.msk.bf16.gmra.mxu2 %vm247_vm2, %v6861_v62 }
 0x20f   :  { %5096 = vmatmul.msk.bf16.gmra.mxu3 %vm247_vm2, %v6861_v62 }
 0x23b   :  { %v476_v0 = vpop.f32.mrf.mxu1 }
 0x23c   :  { %v477_v41 = vadd.f32 %v6158_v34, %v476_v0 }
 0x241   :  { %v536_v8 = vpop.f32.mrf.mxu2 }
 0x242   :  { %v596_v13 = vpop.f32.mrf.mxu3  ;;  %v537_v26 = vadd.f32 %v6159_v10, %v536_v8  ;;  %v6162_v8 = vld [vmem:[%s8345_s10 + $0x1] ss:$0 sm:$0xff] }
 0x243   :  { %v478_v4 = vpop.f32.mrf.mxu1  ;;  %v597_v45 = vadd.f32 %v6160_v27, %v596_v13 }
 0x244   :  { %v479_v37 = vadd.f32 %v6158_v34, %v478_v4 }
 0x246   :  { %v611_v46 = vpack.c.bf16 %v479_v37, %v477_v41 }
 0x249   :  { %v538_v58 = vpop.f32.mrf.mxu2 }
 0x24a   :  { %v598_v63 = vpop.f32.mrf.mxu3  ;;  %v539_v24 = vadd.f32 %v6159_v10, %v538_v58 }
 0x24b   :  { %v6881_v52 = vpop.f32.mrf.mxu1  ;;  %v599_v60 = vadd.f32 %v6160_v27, %v598_v63 }
 0x24c   :  { %v614_v30 = vpack.c.bf16 %v539_v24, %v537_v26  ;;  %v482_v56 = vadd.f32 %v6158_v34, %v6881_v52 }
 0x24d   :  { %v729_v51 = vpack.c.bf16 %v599_v60, %v597_v45 }
 0x24e   :  { %v628_v3 = vsel %vm617_vm9, %v614_v30, 0 }
 0x251   :  { %v541_v1 = vpop.f32.mrf.mxu2 }
 0x252   :  { %v601_v2 = vpop.f32.mrf.mxu3  ;;  %v542_v20 = vadd.f32 %v6159_v10, %v541_v1 }
 0x253   :  { %v483_v11 = vpop.f32.mrf.mxu1  ;;  %v602_v38 = vadd.f32 %v6160_v27, %v601_v2 }
 0x254   :  { %v484_v55 = vadd.f32 %v6158_v34, %v483_v11  ;;  %v83_v11 = vlaneseq }
 0x256   :  { %v612_v61 = vpack.c.bf16 %v484_v55, %v482_v56 }
 0x259   :  { %v543_v5 = vpop.f32.mrf.mxu2 }
 0x25a   :  { %v603_v6 = vpop.f32.mrf.mxu3  ;;  %v544_v18 = vadd.f32 %v6159_v10, %v543_v5 }
 0x25b   :  { %v486_v23 = vpop.f32.mrf.mxu1  ;;  %v604_v35 = vadd.f32 %v6160_v27, %v603_v6 }
 0x25c   :  { %v615_v59 = vpack.c.bf16 %v544_v18, %v542_v20  ;;  %v487_v43 = vadd.f32 %v6158_v34, %v486_v23 }
 0x25d   :  { %v730_v42 = vpack.c.bf16 %v604_v35, %v602_v38 }
 0x25e   :  { %v631_v25 = vsel %vm617_vm9, %v615_v59, 0 }
 0x261   :  { %v546_v7 = vpop.f32.mrf.mxu2 }
 0x262   :  { %v606_v9 = vpop.f32.mrf.mxu3  ;;  %v547_v14 = vadd.f32 %v6159_v10, %v546_v7 }
 0x263   :  { %v607_v31 = vadd.f32 %v6160_v27, %v606_v9  ;;  %v488_v33 = vpop.f32.mrf.mxu1 }
 0x264   :  { %v489_v39 = vadd.f32 %v6158_v34, %v488_v33 }
 0x266   :  { %v613_v47 = vpack.c.bf16 %v489_v39, %v487_v43  ;;  %v6163_v39 = vld [vmem:[%s8347_s12 + $0x1] ss:$0 sm:$0xff] }
 0x269   :  { %v548_v12 = vpop.f32.mrf.mxu2 }
 0x26a   :  { %v549_v15 = vadd.f32 %v6159_v10, %v548_v12  ;;  %v608_v16 = vpop.f32.mrf.mxu3  ;;  %v84_v12 = vand.u32 127, %v83_v11 }
 0x26b   :  { %v609_v28 = vadd.f32 %v6160_v27, %v608_v16 }
 0x26c   :  { %v616_v17 = vpack.c.bf16 %v549_v15, %v547_v14  ;;  %vm104_vm10 = vcmp.lt.s32.totalorder %v84_v12, 17  ;;  %v6525_v14 = vmov -1e+09   ;;  %vm136_vm11 = vcmp.ge.s32.totalorder %v84_v12, 24 }
 0x26d   :  { %v731_v36 = vpack.c.bf16 %v609_v28, %v607_v31  ;;  %v6926_v15 = vsel %vm104_vm10, 0.0, %v6525_v14  ;;  %vm137_vm12 = vcmp.lt.s32.totalorder %v84_v12, 41 }
 0x26e   :  { %v634_v19 = vsel %vm617_vm9, %v616_v17, 0  ;;  %vm138_vm13 = vmand %vm136_vm11, %vm137_vm12 }
 0x26f   :  { %641 = vmatpush.bf16.xpose.msrb.mxu0 %v634_v19  ;;  %6149 = vmatpush.bf16.xpose.msrb.mxu1 %v634_v19  ;;  %v6932_v23 = vsel %vm138_vm13, 0.0, %v6525_v14 }
 0x272   :  { %v6887_v21 = vpop.f32.mrf.mxu3 }
 0x273   :  { %v880_v7 = vadd.f32 %v6162_v8, %v6887_v21 }
 0x277   :  { %642 = vmatpush.bf16.xpose.msrb.mxu0 %v631_v25  ;;  %6150 = vmatpush.bf16.xpose.msrb.mxu1 %v631_v25 }
 0x27a   :  { %v881_v29 = vpop.f32.mrf.mxu3 }
 0x27b   :  { %v882_v6 = vadd.f32 %v6162_v8, %v881_v29 }
 0x27d   :  { %v959_v9 = vpack.c.bf16 %v882_v6, %v880_v7 }
 0x27f   :  { %643 = vmatpush.bf16.xpose.msrb.mxu0 %v628_v3  ;;  %6151 = vmatpush.bf16.xpose.msrb.mxu1 %v628_v3  ;;  %v972_v10 = vsel %vm617_vm9, %v959_v9, 0 }
 0x282   :  { %v884_v44 = vpop.f32.mrf.mxu3 }
 0x283   :  { %v885_v4 = vadd.f32 %v6162_v8, %v884_v44 }
 0x286   :  { %5035 = vmatmul.msk.bf16.vlgmr.msrb.gmra.mxu0 %vm617_vm9, %v611_v46  ;;  %5037 = vmatmul.msk.bf16.vlgmr.msrb.gmra.mxu1 %vm617_vm9, %v613_v47 }
 0x287   :  { %746 = vmatpush.bf16.msra.mxu1 %v731_v36  ;;  %936 = vmatpush.bf16.msra.mxu0 %v6021_v32 }
 0x28a   :  { %v886_v54 = vpop.f32.mrf.mxu3 }
 0x28b   :  { %747 = vmatpush.bf16.msra.mxu1 %v730_v42  ;;  %937 = vmatpush.bf16.msra.mxu0 %v6020_v40  ;;  %v887_v1 = vadd.f32 %v6162_v8, %v886_v54 }
 0x28d   :  { %v960_v5 = vpack.c.bf16 %v887_v1, %v885_v4 }
 0x28f   :  { %748 = vmatpush.bf16.msra.mxu1 %v729_v51  ;;  %938 = vmatpush.bf16.msra.mxu0 %v6019_v50  ;;  %v975_v52 = vsel %vm617_vm9, %v960_v5, 0 }
 0x292   :  { %v889_v57 = vpop.f32.mrf.mxu3 }
 0x293   :  { %939 = vmatpush.bf16.msra.mxu0 %v6018_v53  ;;  %v890_v58 = vadd.f32 %v6162_v8, %v889_v57 }
 0x296   :  { %5036 = vmatmul.msk.bf16.gmra.mxu0 %vm617_vm9, %v612_v61 }
 0x29a   :  { %v891_v13 = vpop.f32.mrf.mxu3 }
 0x29b   :  { %v892_v63 = vadd.f32 %v6162_v8, %v891_v13 }
 0x29d   :  { %v961_v0 = vpack.c.bf16 %v892_v63, %v890_v58 }
 0x29f   :  { %v978_v2 = vsel %vm617_vm9, %v961_v0, 0 }
 0x2a0   :  { %985 = vmatpush.bf16.xpose.msrb.mxu1 %v978_v2 }
 0x2a6   :  { %5122 = vmatmul.msk.bf16.vlgmr.msra.gmra.mxu0 %vm247_vm2, %v6803_v22 }
 0x2a8   :  { %986 = vmatpush.bf16.xpose.msrb.mxu1 %v975_v52 }
 0x2b0   :  { %987 = vmatpush.bf16.xpose.msrb.mxu1 %v972_v10 }
 0x2b6   :  { %5123 = vmatmul.msk.bf16.gmra.mxu0 %vm247_vm2, %v6845_v48 }
 0x2c6   :  { %5124 = vmatmul.msk.bf16.gmra.mxu0 %vm247_vm2, %v6861_v62 }
 0x303   :  { %v645_v16 = vpop.f32.mrf.mxu0  ;;  %v655_v21 = vpop.f32.mrf.mxu1 }
 0x304   :  { %v646_v17 = vadd.f32 %v645_v16, %v6926_v15  ;;  %v656_v24 = vadd.f32 %v655_v21, %v6932_v23 }
 0x306   :  { %v660_v18 = vsel %vm193_vm0, %v646_v17, -inf  ;;  %v672_v28 = vsel %vm193_vm0, %v656_v24, -inf }
 0x307   :  { %661 = vmax.xlane.f32.xlu0 %v660_v18 }
 0x30b   :  { %v647_v19 = vpop.f32.mrf.mxu0  ;;  %v657_v29 = vpop.f32.mrf.mxu1 }
 0x30c   :  { %v648_v20 = vadd.f32 %v647_v19, %v6926_v15  ;;  %v658_v30 = vadd.f32 %v657_v29, %v6932_v23 }
 0x30e   :  { %v663_v59 = vsel %vm193_vm0, %v648_v20, -inf  ;;  %v675_v33 = vsel %vm193_vm0, %v658_v30, -inf }
 0x30f   :  { %664 = vmax.xlane.f32.xlu1 %v663_v59 }
 0x313   :  { %v650_v25 = vpop.f32.mrf.mxu0 }
 0x314   :  { %v651_v26 = vadd.f32 %v650_v25, %v6926_v15 }
 0x316   :  { %v666_v27 = vsel %vm193_vm0, %v651_v26, -inf }
 0x317   :  { %667 = vmax.xlane.f32.xlu2 %v666_v27  ;;  %673 = vmax.xlane.f32.xlu1 %v672_v28 }
 0x31b   :  { %v652_v31 = vpop.f32.mrf.mxu0 }
 0x31c   :  { %v653_v32 = vadd.f32 %v652_v31, %v6932_v23 }
 0x31e   :  { %v669_v34 = vsel %vm193_vm0, %v653_v32, -inf }
 0x31f   :  { %676 = vmax.xlane.f32.xlu2 %v675_v33  ;;  %670 = vmax.xlane.f32.xlu0 %v669_v34 }
 0x323   :  { %v941_v35 = vpop.f32.mrf.mxu0 }
 0x324   :  { %v942_v47 = vadd.f32 %v6163_v39, %v941_v35 }
 0x32b   :  { %v943_v36 = vpop.f32.mrf.mxu0 }
 0x32c   :  { %v944_v45 = vadd.f32 %v6163_v39, %v943_v36 }
 0x32e   :  { %v1073_v50 = vpack.c.bf16 %v944_v45, %v942_v47 }
 0x333   :  { %v946_v3 = vpop.f32.mrf.mxu0 }
 0x334   :  { %v947_v44 = vadd.f32 %v6163_v39, %v946_v3 }
 0x33b   :  { %v948_v37 = vpop.f32.mrf.mxu0 }
 0x33c   :  { %v949_v42 = vadd.f32 %v6163_v39, %v948_v37 }
 0x33e   :  { %v1074_v46 = vpack.c.bf16 %v949_v42, %v947_v44  ;;  %v6161_v44 = vld [vmem:[%s8343_s8 + $0x1] ss:$0 sm:$0xff] }
 0x343   :  { %v951_v38 = vpop.f32.mrf.mxu0 }
 0x344   :  { %v952_v41 = vadd.f32 %v6163_v39, %v951_v38  ;;  %v817_v38 = vpop.f32.mrf.mxu2 }
 0x345   :  { %v818_v47 = vadd.f32 %v6161_v44, %v817_v38 }
 0x34b   :  { %v953_v40 = vpop.f32.mrf.mxu0 }
 0x34c   :  { %v954_v60 = vadd.f32 %v6163_v39, %v953_v40 }
 0x34e   :  { %v1075_v43 = vpack.c.bf16 %v954_v60, %v952_v41 }
 0x350   :  { %1090 = vmatpush.bf16.msra.mxu2 %v1075_v43  ;;  %v819_v43 = vpop.f32.mrf.mxu2 }
 0x354   :  { %1091 = vmatpush.bf16.msra.mxu2 %v1074_v46  ;;  %v820_v46 = vadd.f32 %v6161_v44, %v819_v43 }
 0x358   :  { %1092 = vmatpush.bf16.msra.mxu2 %v1073_v50  ;;  %v822_v45 = vpop.f32.mrf.mxu2  ;;  %v956_v50 = vpack.c.bf16 %v820_v46, %v818_v47 }
 0x37a   :  { %v662_v51 = vpop.xlane.xlu0 %661 }
 0x37b   :  { %v678_v53 = vsub.f32 %v646_v17, %v662_v51  ;;  %v6026_v51 = vld [vmem:[%s8378_s7 + $0x58] sm:$0xff] }
 0x37d   :  { %v684_v54 = vmul.f32 1.442695, %v678_v53  ;;  %v6025_v53 = vld [vmem:[%s8378_s7 + $0x50] sm:$0xff] }
 0x37f   :  { %6208 = vpow2.f32 %v684_v54  ;;  %v824_v54 = vpop.f32.mrf.mxu2 }
 0x382   :  { %v665_v55 = vpop.xlane.xlu1 %664 }
 0x383   :  { %v679_v56 = vsub.f32 %v648_v20, %v665_v55  ;;  %v6024_v55 = vld [vmem:[%s8378_s7 + $0x48] sm:$0xff] }
 0x385   :  { %v6209_v57 = vpop.eup %6208  ;;  %v686_v61 = vmul.f32 1.442695, %v679_v56  ;;  %v6023_v56 = vld [vmem:[%s8378_s7 + $0x40] sm:$0xff] }
 0x386   :  { %v696_v8 = vsel %vm193_vm0, %v6209_v57, 0.0 }
 0x387   :  { %6210 = vpow2.f32 %v686_v61  ;;  %697 = vadd.xlane.f32.xlu0 %v696_v8  ;;  %v823_v61 = vadd.f32 %v6161_v44, %v822_v45  ;;  %v827_v8 = vpop.f32.mrf.mxu2 }
 0x38a   :  { %v668_v13 = vpop.xlane.xlu2 %667  ;;  %v674_v58 = vpop.xlane.xlu1 %673 }
 0x38b   :  { %v680_v63 = vsub.f32 %v651_v26, %v668_v13  ;;  %v682_v0 = vsub.f32 %v656_v24, %v674_v58 }
 0x38d   :  { %v6211_v1 = vpop.eup %6210  ;;  %v688_v2 = vmul.f32 1.442695, %v680_v63  ;;  %v692_v4 = vmul.f32 1.442695, %v682_v0  ;;  %v828_v0 = vadd.f32 %v6161_v44, %v827_v8 }
 0x38e   :  { %v699_v5 = vsel %vm193_vm0, %v6211_v1, 0.0 }
 0x38f   :  { %6212 = vpow2.f32 %v688_v2  ;;  %700 = vadd.xlane.f32.xlu1 %v699_v5  ;;  %v829_v58 = vpop.f32.mrf.mxu2  ;;  %v6009_v2 = vld [vmem:[%s8348_s13] sm:$0xff] }
 0x390   :  { %6214 = vpow2.f32 %v692_v4  ;;  %v830_v63 = vadd.f32 %v6161_v44, %v829_v58  ;;  %1176 = vmatpush.bf16.msrb.mxu0 %v6009_v2 }
 0x392   :  { %v677_v6 = vpop.xlane.xlu2 %676  ;;  %v671_v52 = vpop.xlane.xlu0 %670 }
 0x393   :  { %v683_v7 = vsub.f32 %v658_v30, %v677_v6  ;;  %v681_v9 = vsub.f32 %v653_v32, %v671_v52 }
 0x395   :  { %v6213_v10 = vpop.eup %6212  ;;  %v694_v11 = vmul.f32 1.442695, %v683_v7  ;;  %v690_v12 = vmul.f32 1.442695, %v681_v9 }
 0x396   :  { %v6215_v14 = vpop.eup %6214  ;;  %v702_v16 = vsel %vm193_vm0, %v6213_v10, 0.0 }
 0x397   :  { %6216 = vpow2.f32 %v694_v11  ;;  %703 = vadd.xlane.f32.xlu2 %v702_v16  ;;  %v708_v17 = vsel %vm193_vm0, %v6215_v14, 0.0 }
 0x398   :  { %6218 = vpow2.f32 %v690_v12  ;;  %709 = vadd.xlane.f32.xlu1 %v708_v17 }
 0x39d   :  { %v6217_v18 = vpop.eup %6216 }
 0x39e   :  { %v6219_v19 = vpop.eup %6218  ;;  %v711_v20 = vsel %vm193_vm0, %v6217_v18, 0.0 }
 0x39f   :  { %712 = vadd.xlane.f32.xlu2 %v711_v20  ;;  %v705_v21 = vsel %vm193_vm0, %v6219_v19, 0.0 }
 0x3a0   :  { %706 = vadd.xlane.f32.xlu0 %v705_v21 }
 0x3fa   :  { %v698_v59 = vpop.xlane.xlu0 %697 }
 0x3fb   :  { %6220 = vrcp.f32 %v698_v59 }
 0x401   :  { %v6221_v25 = vpop.eup %6220 }
 0x402   :  { %v701_v24 = vpop.xlane.xlu1 %700  ;;  %v720_v27 = vmul.f32 %v6221_v25, %v6209_v57  ;;  %v825_v57 = vadd.f32 %v6161_v44, %v824_v54 }
 0x403   :  { %6222 = vrcp.f32 %v701_v24 }
 0x404   :  { %v957_v13 = vpack.c.bf16 %v825_v57, %v823_v61 }
 0x409   :  { %v6223_v26 = vpop.eup %6222 }
 0x40a   :  { %v721_v28 = vmul.f32 %v6223_v26, %v6211_v1  ;;  %v704_v30 = vpop.xlane.xlu2 %703  ;;  %v958_v1 = vpack.c.bf16 %v830_v63, %v828_v0 }
 0x40b   :  { %6224 = vrcp.f32 %v704_v30  ;;  %v710_v37 = vpop.xlane.xlu1 %709 }
 0x40c   :  { %v726_v29 = vpack.c.bf16 %v721_v28, %v720_v27 }
 0x40e   :  { %5038 = vmatmul.msk.bf16.vlgmr.msra.gmra.mxu1 %vm193_vm0, %v726_v29 }
 0x40f   :  { %1235 = vmatpush.bf16.msra.mxu1 %v6026_v51 }
 0x411   :  { %v6225_v32 = vpop.eup %6224 }
 0x412   :  { %v722_v34 = vmul.f32 %v6225_v32, %v6213_v10  ;;  %v713_v36 = vpop.xlane.xlu2 %712 }
 0x413   :  { %v707_v31 = vpop.xlane.xlu0 %706  ;;  %1236 = vmatpush.bf16.msra.mxu1 %v6025_v53 }
 0x414   :  { %6226 = vrcp.f32 %v707_v31 }
 0x415   :  { %6228 = vrcp.f32 %v713_v36 }
 0x416   :  { %6230 = vrcp.f32 %v710_v37 }
 0x417   :  { %1237 = vmatpush.bf16.msra.mxu1 %v6024_v55 }
 0x41a   :  { %v6227_v33 = vpop.eup %6226 }
 0x41b   :  { %v723_v35 = vmul.f32 %v6227_v33, %v6219_v19  ;;  %v6229_v39 = vpop.eup %6228  ;;  %1238 = vmatpush.bf16.msra.mxu1 %v6023_v56 }
 0x41c   :  { %v6231_v40 = vpop.eup %6230  ;;  %v725_v41 = vmul.f32 %v6229_v39, %v6217_v18 }
 0x41d   :  { %v727_v3 = vpack.c.bf16 %v723_v35, %v722_v34  ;;  %v724_v60 = vmul.f32 %v6231_v40, %v6215_v14 }
 0x41f   :  { %5039 = vmatmul.msk.bf16.gmra.mxu1 %vm193_vm0, %v727_v3  ;;  %v728_v42 = vpack.c.bf16 %v725_v41, %v724_v60 }
 0x42f   :  { %5040 = vmatmul.msk.bf16.gmra.mxu1 %vm193_vm0, %v728_v42 }
 0x43f   :  { %5125 = vmatmul.msk.bf16.vlgmr.msrb.gmra.mxu1 %vm617_vm9, %v956_v50 }
 0x44f   :  { %5126 = vmatmul.msk.bf16.gmra.mxu1 %vm617_vm9, %v957_v13 }
 0x45f   :  { %5127 = vmatmul.msk.bf16.gmra.mxu1 %vm617_vm9, %v958_v1 }
 0x46f   :  { %5172 = vmatmul.msk.bf16.vlgmr.msra.gmra.mxu1 %vm247_vm2, %v6803_v22 }
 0x47f   :  { %5173 = vmatmul.msk.bf16.gmra.mxu1 %vm247_vm2, %v6845_v48 }
 0x48b   :  { %v750_v4 = vpop.f32.mrf.mxu1 }
 0x48f   :  { %5174 = vmatmul.msk.bf16.gmra.mxu1 %vm247_vm2, %v6861_v62 }
 0x493   :  { %v752_v5 = vpop.f32.mrf.mxu1 }
 0x494   :  { %v765_v6 = vpack.c.bf16 %v752_v5, %v750_v4  ;;  %v6030_v5 = vld [vmem:[%s8344_s9 + $0x58] sm:$0xff] }
 0x495   :  { %1297 = vmatpush.bf16.msrb.mxu2 %v6030_v5 }
 0x496   :  { %5144 = vmatmul.msk.bf16.vlgmr.msrb.gmra.mxu0 %vm617_vm9, %v765_v6 }
 0x49c   :  { %v755_v52 = vpop.f32.mrf.mxu1 }
 0x4a4   :  { %v757_v7 = vpop.f32.mrf.mxu1 }
 0x4a5   :  { %v766_v9 = vpack.c.bf16 %v757_v7, %v755_v52 }
 0x4a7   :  { %5145 = vmatmul.msk.bf16.gmra.mxu0 %vm617_vm9, %v766_v9 }
 0x4ac   :  { %v760_v10 = vpop.f32.mrf.mxu1 }
 0x4b4   :  { %v762_v11 = vpop.f32.mrf.mxu1 }
 0x4b5   :  { %v767_v12 = vpack.c.bf16 %v762_v11, %v760_v10 }
 0x4b7   :  { %5146 = vmatmul.msk.bf16.gmra.mxu0 %vm617_vm9, %v767_v12  ;;  %v6029_v12 = vld [vmem:[%s8344_s9 + $0x50] sm:$0xff] }
 0x4b8   :  { %1298 = vmatpush.bf16.msrb.mxu2 %v6029_v12 }
 0x4bc   :  { %v989_v14 = vpop.f32.mrf.mxu1 }
 0x4bd   :  { %v990_v16 = vadd.f32 %v989_v14, %v6926_v15  ;;  %v6028_v14 = vld [vmem:[%s8344_s9 + $0x48] sm:$0xff] }
 0x4be   :  { %1299 = vmatpush.bf16.msrb.mxu2 %v6028_v14 }
 0x4bf   :  { %v1004_v17 = vsel %vm193_vm0, %v990_v16, -inf }
 0x4c0   :  { %1005 = vmax.xlane.f32.xlu0 %v1004_v17  ;;  %v6027_v17 = vld [vmem:[%s8344_s9 + $0x40] sm:$0xff] }
 0x4c2   :  { %1300 = vmatpush.bf16.msrb.mxu2 %v6027_v17  ;;  %v6042_v17 = vld [vmem:[%s8344_s9 + $0x70] sm:$0xff] }
 0x4c4   :  { %v991_v18 = vpop.f32.mrf.mxu1 }
 0x4c5   :  { %v992_v19 = vadd.f32 %v991_v18, %v6926_v15 }
 0x4c7   :  { %v1007_v20 = vsel %vm193_vm0, %v992_v19, -inf }
 0x4c8   :  { %1008 = vmax.xlane.f32.xlu1 %v1007_v20 }
 0x4cc   :  { %v994_v21 = vpop.f32.mrf.mxu1 }
 0x4cd   :  { %v995_v59 = vadd.f32 %v994_v21, %v6926_v15 }
 0x4cf   :  { %v1010_v24 = vsel %vm193_vm0, %v995_v59, -inf }
 0x4d0   :  { %1011 = vmax.xlane.f32.xlu2 %v1010_v24 }
 0x4d4   :  { %v996_v25 = vpop.f32.mrf.mxu1 }
 0x4d5   :  { %v997_v26 = vadd.f32 %v996_v25, %v6932_v23 }
 0x4d7   :  { %v1013_v27 = vsel %vm193_vm0, %v997_v26, -inf }
 0x4d8   :  { %1014 = vmax.xlane.f32.xlu0 %v1013_v27 }
 0x4dc   :  { %v999_v28 = vpop.f32.mrf.mxu1 }
 0x4dd   :  { %v1000_v29 = vadd.f32 %v999_v28, %v6932_v23 }
 0x4df   :  { %v1016_v30 = vsel %vm193_vm0, %v1000_v29, -inf }
 0x4e0   :  { %1017 = vmax.xlane.f32.xlu1 %v1016_v30 }
 0x4e4   :  { %v1001_v31 = vpop.f32.mrf.mxu1 }
 0x4e5   :  { %v1002_v32 = vadd.f32 %v1001_v31, %v6932_v23  ;;  %v6022_v31 = vld [vmem:[%s8348_s13 + $0x8] sm:$0xff] }
 0x4e6   :  { %1137 = vmatpush.bf16.msra.mxu3 %v6022_v31 }
 0x4e7   :  { %v1019_v33 = vsel %vm193_vm0, %v1002_v32, -inf }
 0x4e8   :  { %1020 = vmax.xlane.f32.xlu2 %v1019_v33 }
 0x533   :  { %v1006_v34 = vpop.xlane.xlu0 %1005 }
 0x534   :  { %v1022_v35 = vsub.f32 %v990_v16, %v1006_v34 }
 0x536   :  { %v1028_v36 = vmul.f32 1.442695, %v1022_v35  ;;  %v6034_v35 = vld [vmem:[%s8346_s11 + $0x58] sm:$0xff] }
 0x537   :  { %1359 = vmatpush.bf16.msrb.mxu3 %v6034_v35 }
 0x538   :  { %6232 = vpow2.f32 %v1028_v36  ;;  %v6033_v36 = vld [vmem:[%s8346_s11 + $0x50] sm:$0xff] }
 0x53b   :  { %v1009_v3 = vpop.xlane.xlu1 %1008  ;;  %1360 = vmatpush.bf16.msrb.mxu3 %v6033_v36  ;;  %v7105_v36 = vpop.f32.mrf.mxu0 }
 0x53c   :  { %v1023_v37 = vsub.f32 %v992_v19, %v1009_v3 }
 0x53e   :  { %v6233_v38 = vpop.eup %6232  ;;  %v1030_v39 = vmul.f32 1.442695, %v1023_v37  ;;  %v6032_v37 = vld [vmem:[%s8346_s11 + $0x48] sm:$0xff] }
 0x53f   :  { %v1040_v40 = vsel %vm193_vm0, %v6233_v38, 0.0  ;;  %1361 = vmatpush.bf16.msrb.mxu3 %v6032_v37 }
 0x540   :  { %6234 = vpow2.f32 %v1030_v39  ;;  %1041 = vadd.xlane.f32.xlu0 %v1040_v40 }
 0x543   :  { %v1012_v41 = vpop.xlane.xlu2 %1011  ;;  %v7107_v37 = vpop.f32.mrf.mxu0 }
 0x544   :  { %v1024_v60 = vsub.f32 %v995_v59, %v1012_v41 }
 0x546   :  { %v6235_v42 = vpop.eup %6234  ;;  %v1032_v43 = vmul.f32 1.442695, %v1024_v60 }
 0x547   :  { %v1043_v44 = vsel %vm193_vm0, %v6235_v42, 0.0 }
 0x548   :  { %6236 = vpow2.f32 %v1032_v43  ;;  %1044 = vadd.xlane.f32.xlu1 %v1043_v44 }
 0x54b   :  { %v1015_v45 = vpop.xlane.xlu0 %1014 }
 0x54c   :  { %v1025_v46 = vsub.f32 %v997_v26, %v1015_v45  ;;  %v6039_v45 = vld [vmem:[%s8378_s7 + $0x78] sm:$0xff] }
 0x54e   :  { %v6237_v47 = vpop.eup %6236  ;;  %v1034_v50 = vmul.f32 1.442695, %v1025_v46  ;;  %v6038_v46 = vld [vmem:[%s8378_s7 + $0x70] sm:$0xff] }
 0x54f   :  { %v1046_v51 = vsel %vm193_vm0, %v6237_v47, 0.0 }
 0x550   :  { %6238 = vpow2.f32 %v1034_v50  ;;  %1047 = vadd.xlane.f32.xlu2 %v1046_v51  ;;  %v6037_v50 = vld [vmem:[%s8378_s7 + $0x68] sm:$0xff]  ;;  %v6036_v51 = vld [vmem:[%s8378_s7 + $0x60] sm:$0xff] }
 0x553   :  { %v1018_v53 = vpop.xlane.xlu1 %1017 }
 0x554   :  { %v1026_v54 = vsub.f32 %v1000_v29, %v1018_v53 }
 0x556   :  { %v6239_v55 = vpop.eup %6238  ;;  %v1036_v56 = vmul.f32 1.442695, %v1026_v54 }
 0x557   :  { %v1049_v57 = vsel %vm193_vm0, %v6239_v55, 0.0 }
 0x558   :  { %6240 = vpow2.f32 %v1036_v56  ;;  %1050 = vadd.xlane.f32.xlu0 %v1049_v57 }
 0x55b   :  { %v1021_v61 = vpop.xlane.xlu2 %1020 }
 0x55c   :  { %v1027_v8 = vsub.f32 %v1002_v32, %v1021_v61 }
 0x55e   :  { %v6241_v13 = vpop.eup %6240  ;;  %v1038_v58 = vmul.f32 1.442695, %v1027_v8  ;;  %v1240_v8 = vpop.f32.mrf.mxu1 }
 0x55f   :  { %v1052_v63 = vsel %vm193_vm0, %v6241_v13, 0.0 }
 0x560   :  { %6242 = vpow2.f32 %v1038_v58  ;;  %1053 = vadd.xlane.f32.xlu1 %v1052_v63 }
 0x566   :  { %v6243_v0 = vpop.eup %6242 }
 0x567   :  { %v1055_v1 = vsel %vm193_vm0, %v6243_v0, 0.0 }
 0x568   :  { %1056 = vadd.xlane.f32.xlu2 %v1055_v1 }
 0x5b3   :  { %v1042_v2 = vpop.xlane.xlu0 %1041 }
 0x5b4   :  { %6244 = vrcp.f32 %v1042_v2  ;;  %v1242_v2 = vpop.f32.mrf.mxu1 }
 0x5ba   :  { %v6245_v6 = vpop.eup %6244 }
 0x5bb   :  { %v1045_v4 = vpop.xlane.xlu1 %1044  ;;  %v1064_v7 = vmul.f32 %v6245_v6, %v6233_v38  ;;  %v6031_v38 = vld [vmem:[%s8346_s11 + $0x40] sm:$0xff] }
 0x5bc   :  { %6246 = vrcp.f32 %v1045_v4  ;;  %1362 = vmatpush.bf16.msrb.mxu3 %v6031_v38 }
 0x5c2   :  { %v6247_v52 = vpop.eup %6246 }
 0x5c3   :  { %v1065_v9 = vmul.f32 %v6247_v52, %v6235_v42  ;;  %v1048_v11 = vpop.xlane.xlu2 %1047 }
 0x5c4   :  { %6248 = vrcp.f32 %v1048_v11 }
 0x5c5   :  { %v1070_v10 = vpack.c.bf16 %v1065_v9, %v1064_v7  ;;  %v6164_v7 = vld [vmem:[%s8343_s8 + $0x2] ss:$0 sm:$0xff] }
 0x5c6   :  { %v1243_v11 = vadd.f32 %v6164_v7, %v1242_v2  ;;  %v1241_v12 = vadd.f32 %v6164_v7, %v1240_v8 }
 0x5c7   :  { %5128 = vmatmul.msk.bf16.vlgmr.msra.gmra.mxu2 %vm193_vm0, %v1070_v10  ;;  %v1245_v10 = vpop.f32.mrf.mxu1 }
 0x5c8   :  { %v1379_v14 = vpack.c.bf16 %v1243_v11, %v1241_v12 }
 0x5ca   :  { %v6249_v18 = vpop.eup %6248 }
 0x5cb   :  { %v1051_v16 = vpop.xlane.xlu0 %1050  ;;  %v1066_v20 = vmul.f32 %v6249_v18, %v6237_v47 }
 0x5cc   :  { %6250 = vrcp.f32 %v1051_v16  ;;  %v6043_v16 = vld [vmem:[%s8344_s9 + $0x78] sm:$0xff] }
 0x5cf   :  { %v1247_v18 = vpop.f32.mrf.mxu1 }
 0x5d2   :  { %v6251_v19 = vpop.eup %6250 }
 0x5d3   :  { %v1067_v21 = vmul.f32 %v6251_v19, %v6239_v55  ;;  %v1054_v24 = vpop.xlane.xlu1 %1053  ;;  %v6165_v55 = vld [vmem:[%s8345_s10 + $0x2] ss:$0 sm:$0xff]  ;;  %v6041_v19 = vld [vmem:[%s8344_s9 + $0x68] sm:$0xff] }
 0x5d4   :  { %6252 = vrcp.f32 %v1054_v24 }
 0x5d5   :  { %v1071_v59 = vpack.c.bf16 %v1067_v21, %v1066_v20  ;;  %v1248_v20 = vadd.f32 %v6164_v7, %v1247_v18  ;;  %v6040_v21 = vld [vmem:[%s8344_s9 + $0x60] sm:$0xff] }
 0x5d7   :  { %5129 = vmatmul.msk.bf16.gmra.mxu2 %vm193_vm0, %v1071_v59  ;;  %v1246_v59 = vadd.f32 %v6164_v7, %v1245_v10  ;;  %v1250_v24 = vpop.f32.mrf.mxu1 }
 0x5da   :  { %v6253_v26 = vpop.eup %6252 }
 0x5db   :  { %v1057_v25 = vpop.xlane.xlu2 %1056  ;;  %v1068_v28 = vmul.f32 %v6253_v26, %v6241_v13 }
 0x5dc   :  { %6254 = vrcp.f32 %v1057_v25  ;;  %v1380_v25 = vpack.c.bf16 %v1248_v20, %v1246_v59 }
 0x5df   :  { %v1252_v26 = vpop.f32.mrf.mxu1 }
 0x5e2   :  { %v6255_v27 = vpop.eup %6254 }
 0x5e3   :  { %v1069_v29 = vmul.f32 %v6255_v27, %v6243_v0 }
 0x5e5   :  { %v1072_v30 = vpack.c.bf16 %v1069_v29, %v1068_v28  ;;  %v1253_v28 = vadd.f32 %v6164_v7, %v1252_v26  ;;  %v1251_v29 = vadd.f32 %v6164_v7, %v1250_v24  ;;  %v6168_v24 = vld [vmem:[%s8345_s10 + $0x3] ss:$0 sm:$0xff] }
 0x5e7   :  { %5130 = vmatmul.msk.bf16.gmra.mxu2 %vm193_vm0, %v1072_v30  ;;  %v1381_v30 = vpack.c.bf16 %v1253_v28, %v1251_v29 }
 0x5f7   :  { %5200 = vmatmul.msk.bf16.vlgmr.msrb.gmra.mxu2 %vm247_vm2, %v6803_v22 }
 0x607   :  { %5201 = vmatmul.msk.bf16.gmra.mxu2 %vm247_vm2, %v6845_v48 }
 0x617   :  { %5202 = vmatmul.msk.bf16.gmra.mxu2 %vm247_vm2, %v6861_v62 }
 0x64a   :  { %v1094_v32 = vpop.f32.mrf.mxu2 }
 0x652   :  { %v1096_v33 = vpop.f32.mrf.mxu2 }
 0x653   :  { %v1109_v34 = vpack.c.bf16 %v1096_v33, %v1094_v32 }
 0x655   :  { %5137 = vmatmul.msk.bf16.vlgmr.msra.gmra.mxu3 %vm617_vm9, %v1109_v34 }
 0x656   :  { %1625 = vmatpush.bf16.msra.mxu3 %v6039_v45 }
 0x65a   :  { %v1099_v3 = vpop.f32.mrf.mxu2  ;;  %1626 = vmatpush.bf16.msra.mxu3 %v6038_v46 }
 0x65e   :  { %1627 = vmatpush.bf16.msra.mxu3 %v6037_v50 }
 0x662   :  { %v1101_v39 = vpop.f32.mrf.mxu2  ;;  %1628 = vmatpush.bf16.msra.mxu3 %v6036_v51 }
 0x663   :  { %v1110_v40 = vpack.c.bf16 %v1101_v39, %v1099_v3  ;;  %v7111_v39 = vpop.f32.mrf.mxu0 }
 0x665   :  { %5138 = vmatmul.msk.bf16.gmra.mxu3 %vm617_vm9, %v1110_v40 }
 0x66a   :  { %v1104_v41 = vpop.f32.mrf.mxu2 }
 0x672   :  { %v1106_v60 = vpop.f32.mrf.mxu2 }
 0x673   :  { %v1111_v42 = vpack.c.bf16 %v1106_v60, %v1104_v41  ;;  %v7113_v41 = vpop.f32.mrf.mxu0 }
 0x675   :  { %5139 = vmatmul.msk.bf16.gmra.mxu3 %vm617_vm9, %v1111_v42 }
 0x67a   :  { %v1302_v43 = vpop.f32.mrf.mxu2 }
 0x67b   :  { %v1303_v6 = vadd.f32 %v6165_v55, %v1302_v43  ;;  %v7115_v43 = vpop.f32.mrf.mxu0 }
 0x682   :  { %v1304_v44 = vpop.f32.mrf.mxu2 }
 0x683   :  { %v1305_v4 = vadd.f32 %v6165_v55, %v1304_v44  ;;  %v6166_v44 = vld [vmem:[%s8347_s12 + $0x2] ss:$0 sm:$0xff] }
 0x685   :  { %5228 = vmatmul.msk.bf16.vlgmr.msrb.gmra.mxu3 %vm247_vm2, %v6803_v22  ;;  %v1382_v52 = vpack.c.bf16 %v1305_v4, %v1303_v6 }
 0x687   :  { %v1395_v9 = vsel %vm617_vm9, %v1382_v52, 0 }
 0x68a   :  { %v1307_v47 = vpop.f32.mrf.mxu2 }
 0x68b   :  { %v1308_v0 = vadd.f32 %v6165_v55, %v1307_v47 }
 0x692   :  { %v1309_v53 = vpop.f32.mrf.mxu2 }
 0x693   :  { %v1310_v58 = vadd.f32 %v6165_v55, %v1309_v53  ;;  %v7120_v53 = vpop.f32.mrf.mxu0 }
 0x695   :  { %5229 = vmatmul.msk.bf16.gmra.mxu3 %vm247_vm2, %v6845_v48  ;;  %v1383_v1 = vpack.c.bf16 %v1310_v58, %v1308_v0 }
 0x697   :  { %v1398_v5 = vsel %vm617_vm9, %v1383_v1, 0 }
 0x69a   :  { %v1312_v54 = vpop.f32.mrf.mxu2 }
 0x69b   :  { %v1313_v57 = vadd.f32 %v6165_v55, %v1312_v54 }
 0x6a2   :  { %v1314_v56 = vpop.f32.mrf.mxu2 }
 0x6a3   :  { %v1315_v61 = vadd.f32 %v6165_v55, %v1314_v56 }
 0x6a5   :  { %v1384_v13 = vpack.c.bf16 %v1315_v61, %v1313_v57  ;;  %5230 = vmatmul.msk.bf16.gmra.mxu3 %vm247_vm2, %v6861_v62 }
 0x6a7   :  { %v1401_v63 = vsel %vm617_vm9, %v1384_v13, 0 }
 0x6a8   :  { %1408 = vmatpush.bf16.xpose.msra.mxu0 %v1401_v63 }
 0x6b0   :  { %1409 = vmatpush.bf16.xpose.msra.mxu0 %v1398_v5 }
 0x6b5   :  { %5271 = vmatmul.msk.bf16.vlgmr.msra.gmra.mxu3 %vm247_vm2, %v6803_v22 }
 0x6b8   :  { %1410 = vmatpush.bf16.xpose.msra.mxu0 %v1395_v9 }
 0x6bf   :  { %5231 = vmatmul.msk.bf16.vlgmr.msra.gmra.mxu0 %vm617_vm9, %v1379_v14 }
 0x6c0   :  { %1687 = vmatpush.bf16.msrb.mxu0 %v6043_v16 }
 0x6c4   :  { %1688 = vmatpush.bf16.msrb.mxu0 %v6042_v17 }
 0x6c5   :  { %5272 = vmatmul.msk.bf16.gmra.mxu3 %vm247_vm2, %v6845_v48 }
 0x6c8   :  { %1689 = vmatpush.bf16.msrb.mxu0 %v6041_v19  ;;  %v6035_v19 = vld [vmem:[%s8348_s13 + $0x10] sm:$0xff] }
 0x6c9   :  { %1560 = vmatpush.bf16.msra.mxu2 %v6035_v19 }
 0x6cc   :  { %1690 = vmatpush.bf16.msrb.mxu0 %v6040_v21 }
 0x6cf   :  { %5232 = vmatmul.msk.bf16.gmra.mxu0 %vm617_vm9, %v1380_v25 }
 0x6d5   :  { %5273 = vmatmul.msk.bf16.gmra.mxu3 %vm247_vm2, %v6861_v62 }
 0x6d8   :  { %v7088_v27 = vpop.f32.mrf.mxu3 }
 0x6df   :  { %5233 = vmatmul.msk.bf16.gmra.mxu0 %vm617_vm9, %v1381_v30 }
 0x6e0   :  { %v7091_v31 = vpop.f32.mrf.mxu3 }
 0x6e8   :  { %v7093_v32 = vpop.f32.mrf.mxu3 }
 0x6ef   :  { %5299 = vmatmul.msk.bf16.vlgmr.msrb.gmra.mxu0 %vm247_vm2, %v6803_v22 }
 0x6f0   :  { %v7097_v33 = vpop.f32.mrf.mxu3 }
 0x6f8   :  { %v7099_v34 = vpop.f32.mrf.mxu3 }
 0x6ff   :  { %5300 = vmatmul.msk.bf16.gmra.mxu0 %vm247_vm2, %v6845_v48 }
 0x700   :  { %v7103_v35 = vpop.f32.mrf.mxu3 }
 0x708   :  { %v1364_v3 = vpop.f32.mrf.mxu3 }
 0x709   :  { %v1365_v57 = vadd.f32 %v6166_v44, %v1364_v3 }
 0x70f   :  { %5301 = vmatmul.msk.bf16.gmra.mxu0 %vm247_vm2, %v6861_v62 }
 0x710   :  { %v1366_v38 = vpop.f32.mrf.mxu3 }
 0x711   :  { %v1367_v55 = vadd.f32 %v6166_v44, %v1366_v38 }
 0x713   :  { %v1496_v61 = vpack.c.bf16 %v1367_v55, %v1365_v57 }
 0x718   :  { %v1369_v40 = vpop.f32.mrf.mxu3 }
 0x719   :  { %v1370_v54 = vadd.f32 %v6166_v44, %v1369_v40 }
 0x720   :  { %v1371_v60 = vpop.f32.mrf.mxu3 }
 0x721   :  { %v1372_v50 = vadd.f32 %v6166_v44, %v1371_v60 }
 0x723   :  { %v1497_v56 = vpack.c.bf16 %v1372_v50, %v1370_v54 }
 0x728   :  { %v1374_v42 = vpop.f32.mrf.mxu3 }
 0x729   :  { %v1375_v46 = vadd.f32 %v6166_v44, %v1374_v42 }
 0x730   :  { %v1376_v45 = vpop.f32.mrf.mxu3 }
 0x731   :  { %v1377_v47 = vadd.f32 %v6166_v44, %v1376_v45 }
 0x733   :  { %v1498_v51 = vpack.c.bf16 %v1377_v47, %v1375_v46 }
 0x735   :  { %1513 = vmatpush.bf16.msrb.mxu1 %v1498_v51 }
 0x739   :  { %1514 = vmatpush.bf16.msrb.mxu1 %v1497_v56 }
 0x73c   :  { %v1412_v8 = vpop.f32.mrf.mxu0 }
 0x73d   :  { %v1413_v13 = vadd.f32 %v1412_v8, %v6926_v15  ;;  %1515 = vmatpush.bf16.msrb.mxu1 %v1496_v61 }
 0x73f   :  { %v1427_v58 = vsel %vm193_vm0, %v1413_v13, -inf }
 0x740   :  { %1428 = vmax.xlane.f32.xlu0 %v1427_v58 }
 0x744   :  { %v1414_v63 = vpop.f32.mrf.mxu0 }
 0x745   :  { %v1415_v0 = vadd.f32 %v1414_v63, %v6926_v15 }
 0x747   :  { %v1430_v1 = vsel %vm193_vm0, %v1415_v0, -inf }
 0x748   :  { %1431 = vmax.xlane.f32.xlu1 %v1430_v1 }
 0x74c   :  { %v1417_v2 = vpop.f32.mrf.mxu0 }
 0x74d   :  { %v1418_v4 = vadd.f32 %v1417_v2, %v6926_v15 }
 0x74f   :  { %v1433_v5 = vsel %vm193_vm0, %v1418_v4, -inf }
 0x750   :  { %1434 = vmax.xlane.f32.xlu2 %v1433_v5 }
 0x754   :  { %v1419_v6 = vpop.f32.mrf.mxu0 }
 0x755   :  { %v1420_v52 = vadd.f32 %v1419_v6, %v6932_v23 }
 0x757   :  { %v1436_v7 = vsel %vm193_vm0, %v1420_v52, -inf }
 0x758   :  { %1437 = vmax.xlane.f32.xlu0 %v1436_v7 }
 0x75c   :  { %v1422_v9 = vpop.f32.mrf.mxu0 }
 0x75d   :  { %v1423_v10 = vadd.f32 %v1422_v9, %v6932_v23 }
 0x75f   :  { %v1439_v11 = vsel %vm193_vm0, %v1423_v10, -inf }
 0x760   :  { %1440 = vmax.xlane.f32.xlu1 %v1439_v11 }
 0x764   :  { %v1424_v12 = vpop.f32.mrf.mxu0 }
 0x765   :  { %v1425_v14 = vadd.f32 %v1424_v12, %v6932_v23 }
 0x767   :  { %v1442_v16 = vsel %vm193_vm0, %v1425_v14, -inf }
 0x768   :  { %1443 = vmax.xlane.f32.xlu2 %v1442_v16 }
 0x76c   :  { %v1692_v17 = vpop.f32.mrf.mxu0 }
 0x76d   :  { %v1693_v44 = vadd.f32 %v6168_v24, %v1692_v17 }
 0x774   :  { %v1694_v18 = vpop.f32.mrf.mxu0 }
 0x775   :  { %v1695_v60 = vadd.f32 %v6168_v24, %v1694_v18 }
 0x777   :  { %v1772_v45 = vpack.c.bf16 %v1695_v60, %v1693_v44  ;;  %v6045_v60 = vld [vmem:[%s8346_s11 + $0x68] sm:$0xff]  ;;  %v6044_v44 = vld [vmem:[%s8346_s11 + $0x60] sm:$0xff] }
 0x779   :  { %v1785_v46 = vsel %vm617_vm9, %v1772_v45, 0 }
 0x77c   :  { %v1697_v20 = vpop.f32.mrf.mxu0 }
 0x77d   :  { %v1698_v38 = vadd.f32 %v6168_v24, %v1697_v20 }
 0x784   :  { %v1699_v21 = vpop.f32.mrf.mxu0 }
 0x785   :  { %v1700_v30 = vadd.f32 %v6168_v24, %v1699_v21 }
 0x787   :  { %v1773_v40 = vpack.c.bf16 %v1700_v30, %v1698_v38  ;;  %v6046_v38 = vld [vmem:[%s8346_s11 + $0x70] sm:$0xff] }
 0x789   :  { %v1788_v42 = vsel %vm617_vm9, %v1773_v40, 0 }
 0x78c   :  { %v1702_v59 = vpop.f32.mrf.mxu0 }
 0x78d   :  { %v1703_v26 = vadd.f32 %v6168_v24, %v1702_v59 }
 0x794   :  { %v1704_v25 = vpop.f32.mrf.mxu0 }
 0x795   :  { %v1705_v28 = vadd.f32 %v6168_v24, %v1704_v25 }
 0x797   :  { %v1774_v29 = vpack.c.bf16 %v1705_v28, %v1703_v26 }
 0x799   :  { %v1791_v3 = vsel %vm617_vm9, %v1774_v29, 0 }
 0x79a   :  { %1798 = vmatpush.bf16.xpose.msrb.mxu2 %v1791_v3 }
 0x7a2   :  { %1799 = vmatpush.bf16.xpose.msrb.mxu2 %v1788_v42 }
 0x7aa   :  { %1800 = vmatpush.bf16.xpose.msrb.mxu2 %v1785_v46 }
 0x7b3   :  { %v1429_v47 = vpop.xlane.xlu0 %1428 }
 0x7b4   :  { %v1445_v50 = vsub.f32 %v1413_v13, %v1429_v47 }
 0x7b6   :  { %v1451_v51 = vmul.f32 1.442695, %v1445_v50 }
 0x7b8   :  { %6256 = vpow2.f32 %v1451_v51 }
 0x7bb   :  { %v1432_v54 = vpop.xlane.xlu1 %1431 }
 0x7bc   :  { %v1446_v55 = vsub.f32 %v1415_v0, %v1432_v54 }
 0x7be   :  { %v6257_v56 = vpop.eup %6256  ;;  %v1453_v57 = vmul.f32 1.442695, %v1446_v55 }
 0x7bf   :  { %v1463_v61 = vsel %vm193_vm0, %v6257_v56, 0.0 }
 0x7c0   :  { %6258 = vpow2.f32 %v1453_v57  ;;  %1464 = vadd.xlane.f32.xlu0 %v1463_v61 }
 0x7c3   :  { %v1435_v8 = vpop.xlane.xlu2 %1434 }
 0x7c4   :  { %v1447_v58 = vsub.f32 %v1418_v4, %v1435_v8 }
 0x7c6   :  { %v6259_v63 = vpop.eup %6258  ;;  %v1455_v1 = vmul.f32 1.442695, %v1447_v58 }
 0x7c7   :  { %v1466_v2 = vsel %vm193_vm0, %v6259_v63, 0.0 }
 0x7c8   :  { %6260 = vpow2.f32 %v1455_v1  ;;  %1467 = vadd.xlane.f32.xlu1 %v1466_v2 }
 0x7cb   :  { %v1438_v5 = vpop.xlane.xlu0 %1437 }
 0x7cc   :  { %v1448_v13 = vsub.f32 %v1420_v52, %v1438_v5 }
 0x7ce   :  { %v6261_v6 = vpop.eup %6260  ;;  %v1457_v7 = vmul.f32 1.442695, %v1448_v13 }
 0x7cf   :  { %v1469_v0 = vsel %vm193_vm0, %v6261_v6, 0.0 }
 0x7d0   :  { %6262 = vpow2.f32 %v1457_v7  ;;  %1470 = vadd.xlane.f32.xlu2 %v1469_v0 }
 0x7d3   :  { %v1441_v9 = vpop.xlane.xlu1 %1440 }
 0x7d4   :  { %v1449_v11 = vsub.f32 %v1423_v10, %v1441_v9 }
 0x7d6   :  { %v6263_v12 = vpop.eup %6262  ;;  %v1459_v16 = vmul.f32 1.442695, %v1449_v11 }
 0x7d7   :  { %v1472_v4 = vsel %vm193_vm0, %v6263_v12, 0.0 }
 0x7d8   :  { %6264 = vpow2.f32 %v1459_v16  ;;  %1473 = vadd.xlane.f32.xlu0 %v1472_v4 }
 0x7db   :  { %v1444_v17 = vpop.xlane.xlu2 %1443 }
 0x7dc   :  { %v1450_v18 = vsub.f32 %v1425_v14, %v1444_v17  ;;  %v6047_v14 = vld [vmem:[%s8346_s11 + $0x78] sm:$0xff] }
 0x7dd   :  { %1749 = vmatpush.bf16.msra.mxu1 %v6047_v14 }
 0x7de   :  { %v6265_v19 = vpop.eup %6264  ;;  %v1461_v20 = vmul.f32 1.442695, %v1450_v18 }
 0x7df   :  { %v1475_v52 = vsel %vm193_vm0, %v6265_v19, 0.0 }
 0x7e0   :  { %6266 = vpow2.f32 %v1461_v20  ;;  %1476 = vadd.xlane.f32.xlu1 %v1475_v52 }
 0x7e1   :  { %1750 = vmatpush.bf16.msra.mxu1 %v6046_v38 }
 0x7e5   :  { %1751 = vmatpush.bf16.msra.mxu1 %v6045_v60 }
 0x7e6   :  { %v6267_v21 = vpop.eup %6266 }
 0x7e7   :  { %v1478_v59 = vsel %vm193_vm0, %v6267_v21, 0.0 }
 0x7e8   :  { %1479 = vadd.xlane.f32.xlu2 %v1478_v59 }
 0x7e9   :  { %1752 = vmatpush.bf16.msra.mxu1 %v6044_v44 }
 0x833   :  { %v1465_v24 = vpop.xlane.xlu0 %1464 }
 0x834   :  { %6268 = vrcp.f32 %v1465_v24 }
 0x83a   :  { %v6269_v25 = vpop.eup %6268 }
 0x83b   :  { %v1468_v10 = vpop.xlane.xlu1 %1467  ;;  %v1487_v28 = vmul.f32 %v6269_v25, %v6257_v56 }
 0x83c   :  { %6270 = vrcp.f32 %v1468_v10 }
 0x842   :  { %v6271_v26 = vpop.eup %6270 }
 0x843   :  { %v1488_v29 = vmul.f32 %v6271_v26, %v6259_v63  ;;  %v1471_v3 = vpop.xlane.xlu2 %1470 }
 0x844   :  { %6272 = vrcp.f32 %v1471_v3 }
 0x845   :  { %v1493_v30 = vpack.c.bf16 %v1488_v29, %v1487_v28  ;;  %v6169_v29 = vld [vmem:[%s8347_s12 + $0x3] ss:$0 sm:$0xff] }
 0x847   :  { %5234 = vmatmul.msk.bf16.vlgmr.msrb.gmra.mxu1 %vm193_vm0, %v1493_v30 }
 0x84a   :  { %v6273_v42 = vpop.eup %6272 }
 0x84b   :  { %v1474_v40 = vpop.xlane.xlu0 %1473  ;;  %v1489_v46 = vmul.f32 %v6273_v42, %v6261_v6  ;;  %v1630_v6 = vpop.f32.mrf.mxu3 }
 0x84c   :  { %6274 = vrcp.f32 %v1474_v40 }
 0x852   :  { %v6275_v45 = vpop.eup %6274 }
 0x853   :  { %v1490_v47 = vmul.f32 %v6275_v45, %v6263_v12  ;;  %v1477_v51 = vpop.xlane.xlu1 %1476  ;;  %v1632_v9 = vpop.f32.mrf.mxu3 }
 0x854   :  { %6276 = vrcp.f32 %v1477_v51 }
 0x855   :  { %v1494_v50 = vpack.c.bf16 %v1490_v47, %v1489_v46 }
 0x857   :  { %5235 = vmatmul.msk.bf16.gmra.mxu1 %vm193_vm0, %v1494_v50  ;;  %v1179_v50 = vadd.f32 %v7105_v36, %v7088_v27 }
 0x85a   :  { %v6277_v55 = vpop.eup %6276 }
 0x85b   :  { %v1480_v54 = vpop.xlane.xlu2 %1479  ;;  %v1491_v57 = vmul.f32 %v6277_v55, %v6265_v19  ;;  %v1635_v11 = vpop.f32.mrf.mxu3 }
 0x85c   :  { %6278 = vrcp.f32 %v1480_v54 }
 0x862   :  { %v6279_v56 = vpop.eup %6278 }
 0x863   :  { %v1492_v61 = vmul.f32 %v6279_v56, %v6267_v21  ;;  %v1637_v18 = vpop.f32.mrf.mxu3  ;;  %v1184_v56 = vadd.f32 %v7111_v39, %v7093_v32 }
 0x865   :  { %v1495_v8 = vpack.c.bf16 %v1492_v61, %v1491_v57 }
 0x867   :  { %5236 = vmatmul.msk.bf16.gmra.mxu1 %vm193_vm0, %v1495_v8 }
 0x86b   :  { %v1640_v21 = vpop.f32.mrf.mxu3 }
 0x873   :  { %v1642_v25 = vpop.f32.mrf.mxu3 }
 0x877   :  { %5327 = vmatmul.msk.bf16.vlgmr.msra.gmra.mxu1 %vm247_vm2, %v6803_v22 }
 0x887   :  { %5328 = vmatmul.msk.bf16.gmra.mxu1 %vm247_vm2, %v6845_v48 }
 0x897   :  { %5329 = vmatmul.msk.bf16.gmra.mxu1 %vm247_vm2, %v6861_v62  ;;  %v6167_v62 = vld [vmem:[%s8343_s8 + $0x3] ss:$0 sm:$0xff] }
 0x898   :  { %v1633_v12 = vadd.f32 %v6167_v62, %v1632_v9  ;;  %v1631_v16 = vadd.f32 %v6167_v62, %v1630_v6  ;;  %v1638_v20 = vadd.f32 %v6167_v62, %v1637_v18  ;;  %v1636_v52 = vadd.f32 %v6167_v62, %v1635_v11 }
 0x899   :  { %v1643_v26 = vadd.f32 %v6167_v62, %v1642_v25  ;;  %v1641_v28 = vadd.f32 %v6167_v62, %v1640_v21 }
 0x89a   :  { %v1769_v17 = vpack.c.bf16 %v1633_v12, %v1631_v16  ;;  %v1770_v24 = vpack.c.bf16 %v1638_v20, %v1636_v52 }
 0x89b   :  { %v1771_v14 = vpack.c.bf16 %v1643_v26, %v1641_v28 }
 0x8c4   :  { %v1517_v58 = vpop.f32.mrf.mxu1 }
 0x8cc   :  { %v1519_v63 = vpop.f32.mrf.mxu1 }
 0x8cd   :  { %v1532_v1 = vpack.c.bf16 %v1519_v63, %v1517_v58  ;;  %v1189_v58 = vadd.f32 %v7115_v43, %v7099_v34 }
 0x8cf   :  { %5243 = vmatmul.msk.bf16.vlgmr.msra.gmra.mxu2 %vm617_vm9, %v1532_v1 }
 0x8d4   :  { %v1522_v2 = vpop.f32.mrf.mxu1 }
 0x8dc   :  { %v1524_v5 = vpop.f32.mrf.mxu1 }
 0x8dd   :  { %v1533_v13 = vpack.c.bf16 %v1524_v5, %v1522_v2 }
 0x8df   :  { %5244 = vmatmul.msk.bf16.gmra.mxu2 %vm617_vm9, %v1533_v13 }
 0x8e4   :  { %v1527_v7 = vpop.f32.mrf.mxu1 }
 0x8ec   :  { %v1529_v0 = vpop.f32.mrf.mxu1 }
 0x8ed   :  { %v1534_v22 = vpack.c.bf16 %v1529_v0, %v1527_v7 }
 0x8ef   :  { %5245 = vmatmul.msk.bf16.gmra.mxu2 %vm617_vm9, %v1534_v22 }
 0x8f4   :  { %v1754_v48 = vpop.f32.mrf.mxu1 }
 0x8f5   :  { %v1755_v46 = vadd.f32 %v6169_v29, %v1754_v48 }
 0x8fc   :  { %v1756_v4 = vpop.f32.mrf.mxu1 }
 0x8fd   :  { %v1757_v44 = vadd.f32 %v6169_v29, %v1756_v4 }
 0x8ff   :  { %5330 = vmatmul.msk.bf16.vlgmr.msrb.gmra.mxu2 %vm617_vm9, %v1769_v17  ;;  %v1886_v47 = vpack.c.bf16 %v1757_v44, %v1755_v46 }
 0x904   :  { %v1759_v19 = vpop.f32.mrf.mxu1 }
 0x905   :  { %v1760_v42 = vadd.f32 %v6169_v29, %v1759_v19 }
 0x90c   :  { %v1761_v59 = vpop.f32.mrf.mxu1 }
 0x90d   :  { %v1762_v40 = vadd.f32 %v6169_v29, %v1761_v59 }
 0x90f   :  { %5331 = vmatmul.msk.bf16.gmra.mxu2 %vm617_vm9, %v1770_v24  ;;  %v1887_v45 = vpack.c.bf16 %v1762_v40, %v1760_v42 }
 0x914   :  { %v1764_v10 = vpop.f32.mrf.mxu1 }
 0x915   :  { %v1765_v3 = vadd.f32 %v6169_v29, %v1764_v10 }
 0x91c   :  { %v1766_v30 = vpop.f32.mrf.mxu1 }
 0x91d   :  { %v1767_v38 = vadd.f32 %v6169_v29, %v1766_v30 }
 0x91f   :  { %v1888_v60 = vpack.c.bf16 %v1767_v38, %v1765_v3  ;;  %5332 = vmatmul.msk.bf16.gmra.mxu2 %vm617_vm9, %v1771_v14 }
 0x921   :  { %1903 = vmatpush.bf16.msrb.mxu3 %v1888_v60 }
 0x925   :  { %1904 = vmatpush.bf16.msrb.mxu3 %v1887_v45 }
 0x929   :  { %1905 = vmatpush.bf16.msrb.mxu3 %v1886_v47 }
 0x952   :  { %v1562_v51 = vpop.f32.mrf.mxu2 }
 0x953   :  { %v7184_v54 = vadd.f32 %v1562_v51, %v1179_v50 }
 0x95a   :  { %v7186_v55 = vpop.f32.mrf.mxu2 }
 0x962   :  { %v1567_v57 = vpop.f32.mrf.mxu2 }
 0x963   :  { %v7190_v61 = vadd.f32 %v1567_v57, %v1184_v56 }
 0x96a   :  { %v7192_v8 = vpop.f32.mrf.mxu2 }
 0x972   :  { %v1572_v63 = vpop.f32.mrf.mxu2 }
 0x973   :  { %v7196_v1 = vadd.f32 %v1572_v63, %v1189_v58 }
 0x97a   :  { %v7198_v27 = vpop.f32.mrf.mxu2 }
 0x982   :  { %v1802_v36 = vpop.f32.mrf.mxu2 }
 0x983   :  { %v1803_v2 = vadd.f32 %v1802_v36, %v6926_v15 }
 0x985   :  { %v1817_v5 = vsel %vm193_vm0, %v1803_v2, -inf }
 0x986   :  { %1818 = vmax.xlane.f32.xlu0 %v1817_v5 }
 0x98a   :  { %v1804_v32 = vpop.f32.mrf.mxu2 }
 0x98b   :  { %v1805_v39 = vadd.f32 %v1804_v32, %v6926_v15 }
 0x98d   :  { %v1820_v13 = vsel %vm193_vm0, %v1805_v39, -inf }
 0x98e   :  { %1821 = vmax.xlane.f32.xlu1 %v1820_v13 }
 0x992   :  { %v1807_v6 = vpop.f32.mrf.mxu2 }
 0x993   :  { %v1808_v34 = vadd.f32 %v1807_v6, %v6926_v15 }
 0x995   :  { %v1823_v43 = vsel %vm193_vm0, %v1808_v34, -inf }
 0x996   :  { %1824 = vmax.xlane.f32.xlu2 %v1823_v43 }
 0x99a   :  { %v1809_v7 = vpop.f32.mrf.mxu2 }
 0x99b   :  { %v1810_v0 = vadd.f32 %v1809_v7, %v6932_v23 }
 0x99d   :  { %v1826_v22 = vsel %vm193_vm0, %v1810_v0, -inf }
 0x99e   :  { %1827 = vmax.xlane.f32.xlu0 %v1826_v22 }
 0x9a2   :  { %v1812_v9 = vpop.f32.mrf.mxu2 }
 0x9a3   :  { %v1813_v48 = vadd.f32 %v1812_v9, %v6932_v23 }
 0x9a5   :  { %v1829_v62 = vsel %vm193_vm0, %v1813_v48, -inf }
 0x9a6   :  { %1830 = vmax.xlane.f32.xlu1 %v1829_v62 }
 0x9aa   :  { %v1814_v11 = vpop.f32.mrf.mxu2 }
 0x9ab   :  { %v1815_v12 = vadd.f32 %v1814_v11, %v6932_v23 }
 0x9ad   :  { %v1832_v16 = vsel %vm193_vm0, %v1815_v12, -inf }
 0x9ae   :  { %1833 = vmax.xlane.f32.xlu2 %v1832_v16 }
 0x9f9   :  { %v1819_v4 = vpop.xlane.xlu0 %1818 }
 0x9fa   :  { %v1835_v17 = vsub.f32 %v1803_v2, %v1819_v4 }
 0x9fc   :  { %v1841_v18 = vmul.f32 1.442695, %v1835_v17 }
 0x9fe   :  { %6280 = vpow2.f32 %v1841_v18 }
 0xa01   :  { %v1822_v19 = vpop.xlane.xlu1 %1821 }
 0xa02   :  { %v1836_v20 = vsub.f32 %v1805_v39, %v1822_v19 }
 0xa04   :  { %v6281_v52 = vpop.eup %6280  ;;  %v1843_v21 = vmul.f32 1.442695, %v1836_v20 }
 0xa05   :  { %v1853_v59 = vsel %vm193_vm0, %v6281_v52, 0.0 }
 0xa06   :  { %6282 = vpow2.f32 %v1843_v21  ;;  %1854 = vadd.xlane.f32.xlu0 %v1853_v59 }
 0xa09   :  { %v1825_v24 = vpop.xlane.xlu2 %1824 }
 0xa0a   :  { %v1837_v10 = vsub.f32 %v1808_v34, %v1825_v24  ;;  %v6048_v34 = vld [vmem:[%s8348_s13 + $0x18] sm:$0xff] }
 0xa0b   :  { %1950 = vmatpush.bf16.msra.mxu0 %v6048_v34 }
 0xa0c   :  { %v6283_v25 = vpop.eup %6282  ;;  %v1845_v26 = vmul.f32 1.442695, %v1837_v10 }
 0xa0d   :  { %v1856_v28 = vsel %vm193_vm0, %v6283_v25, 0.0 }
 0xa0e   :  { %6284 = vpow2.f32 %v1845_v26  ;;  %1857 = vadd.xlane.f32.xlu1 %v1856_v28 }
 0xa11   :  { %v1828_v29 = vpop.xlane.xlu0 %1827 }
 0xa12   :  { %v1838_v30 = vsub.f32 %v1810_v0, %v1828_v29 }
 0xa14   :  { %v6285_v14 = vpop.eup %6284  ;;  %v1847_v3 = vmul.f32 1.442695, %v1838_v30  ;;  %v6170_v30 = vld [vmem:[%s8349_s14] ss:$0 sm:$0xff] }
 0xa15   :  { %v1859_v38 = vsel %vm193_vm0, %v6285_v14, 0.0 }
 0xa16   :  { %6286 = vpow2.f32 %v1847_v3  ;;  %1860 = vadd.xlane.f32.xlu2 %v1859_v38  ;;  %v1181_v38 = vadd.f32 %v7107_v37, %v7091_v31  ;;  %v6488_v37 = vld [vmem:[#allocation2 + $0x10] sm:$0xff] }
 0xa19   :  { %v1831_v40 = vpop.xlane.xlu1 %1830 }
 0xa1a   :  { %v1839_v60 = vsub.f32 %v1813_v48, %v1831_v40 }
 0xa1c   :  { %v6287_v42 = vpop.eup %6286  ;;  %v1849_v44 = vmul.f32 1.442695, %v1839_v60  ;;  %v1578_v60 = vadd.f32 %v7186_v55, %v1181_v38 }
 0xa1d   :  { %v1862_v45 = vsel %vm193_vm0, %v6287_v42, 0.0 }
 0xa1e   :  { %6288 = vpow2.f32 %v1849_v44  ;;  %1863 = vadd.xlane.f32.xlu0 %v1862_v45  ;;  %v6487_v45 = vld [vmem:[#allocation2 + $0x8] sm:$0xff] }
 0xa21   :  { %v1834_v46 = vpop.xlane.xlu2 %1833 }
 0xa22   :  { %v1840_v47 = vsub.f32 %v1815_v12, %v1834_v46 }
 0xa24   :  { %v6289_v50 = vpop.eup %6288  ;;  %v1851_v51 = vmul.f32 1.442695, %v1840_v47 }
 0xa25   :  { %v1865_v56 = vsel %vm193_vm0, %v6289_v50, 0.0 }
 0xa26   :  { %6290 = vpow2.f32 %v1851_v51  ;;  %1866 = vadd.xlane.f32.xlu1 %v1865_v56  ;;  %v1186_v56 = vadd.f32 %v7113_v41, %v7097_v33 }
 0xa2c   :  { %v6291_v57 = vpop.eup %6290 }
 0xa2d   :  { %v1868_v58 = vsel %vm193_vm0, %v6291_v57, 0.0 }
 0xa2e   :  { %1869 = vadd.xlane.f32.xlu2 %v1868_v58 }
 0xa79   :  { %v1855_v63 = vpop.xlane.xlu0 %1854 }
 0xa7a   :  { %6292 = vrcp.f32 %v1855_v63  ;;  %v1580_v63 = vadd.f32 %v7192_v8, %v1186_v56  ;;  %v5371_v56 = vld [vmem:[%s8352_s17 + $0x30] sm:$0xf] }
 0xa80   :  { %v6293_v2 = vpop.eup %6292 }
 0xa81   :  { %v1858_v36 = vpop.xlane.xlu1 %1857  ;;  %v1877_v32 = vmul.f32 %v6293_v2, %v6281_v52 }
 0xa82   :  { %6294 = vrcp.f32 %v1858_v36 }
 0xa88   :  { %v6295_v5 = vpop.eup %6294 }
 0xa89   :  { %v1878_v39 = vmul.f32 %v6295_v5, %v6283_v25  ;;  %v1861_v6 = vpop.xlane.xlu2 %1860 }
 0xa8a   :  { %6296 = vrcp.f32 %v1861_v6  ;;  %v6490_v6 = vld [vmem:[#allocation2 + $0x20] sm:$0xff] }
 0xa8b   :  { %v1883_v13 = vpack.c.bf16 %v1878_v39, %v1877_v32  ;;  %v6489_v32 = vld [vmem:[#allocation2 + $0x18] sm:$0xff] }
 0xa8d   :  { %5333 = vmatmul.msk.bf16.vlgmr.msrb.gmra.mxu3 %vm193_vm0, %v1883_v13 }
 0xa90   :  { %v6297_v7 = vpop.eup %6296 }
 0xa91   :  { %v1864_v43 = vpop.xlane.xlu0 %1863  ;;  %v1879_v22 = vmul.f32 %v6297_v7, %v6285_v14  ;;  %v6486_v14 = vld [vmem:[#allocation2] sm:$0xff] }
 0xa92   :  { %6298 = vrcp.f32 %v1864_v43  ;;  %v1191_v43 = vadd.f32 %v7120_v53, %v7103_v35 }
 0xa98   :  { %v6299_v0 = vpop.eup %6298 }
 0xa99   :  { %v1880_v9 = vmul.f32 %v6299_v0, %v6287_v42  ;;  %v1867_v62 = vpop.xlane.xlu1 %1866 }
 0xa9a   :  { %6300 = vrcp.f32 %v1867_v62 }
 0xa9b   :  { %v1884_v48 = vpack.c.bf16 %v1880_v9, %v1879_v22  ;;  %v1582_v22 = vadd.f32 %v7198_v27, %v1191_v43  ;;  %v6051_v43 = vld [vmem:[%s8352_s17 + $0x14] sm:$0xf] }
 0xa9d   :  { %5334 = vmatmul.msk.bf16.gmra.mxu3 %vm193_vm0, %v1884_v48 }
 0xaa0   :  { %v6301_v12 = vpop.eup %6300 }
 0xaa1   :  { %v1870_v11 = vpop.xlane.xlu2 %1869  ;;  %v1881_v4 = vmul.f32 %v6301_v12, %v6289_v50 }
 0xaa2   :  { %6302 = vrcp.f32 %v1870_v11  ;;  %v6491_v11 = vld [vmem:[#allocation2 + $0x28] sm:$0xff] }
 0xaa8   :  { %v6303_v16 = vpop.eup %6302 }
 0xaa9   :  { %v1882_v17 = vmul.f32 %v6303_v16, %v6291_v57 }
 0xaab   :  { %v1885_v18 = vpack.c.bf16 %v1882_v17, %v1881_v4 }
 0xaad   :  { %5335 = vmatmul.msk.bf16.gmra.mxu3 %vm193_vm0, %v1885_v18 }
 0xb10   :  { %v1907_v19 = vpop.f32.mrf.mxu3 }
 0xb18   :  { %v1909_v20 = vpop.f32.mrf.mxu3 }
 0xb19   :  { %v1922_v52 = vpack.c.bf16 %v1909_v20, %v1907_v19 }
 0xb1b   :  { %5342 = vmatmul.msk.bf16.vlgmr.msra.gmra.mxu0 %vm617_vm9, %v1922_v52 }
 0xb20   :  { %v1912_v21 = vpop.f32.mrf.mxu3 }
 0xb28   :  { %v1914_v59 = vpop.f32.mrf.mxu3 }
 0xb29   :  { %v1923_v24 = vpack.c.bf16 %v1914_v59, %v1912_v21 }
 0xb2b   :  { %5343 = vmatmul.msk.bf16.gmra.mxu0 %vm617_vm9, %v1923_v24 }
 0xb30   :  { %v1917_v10 = vpop.f32.mrf.mxu3 }
 0xb38   :  { %v1919_v25 = vpop.f32.mrf.mxu3 }
 0xb39   :  { %v1924_v26 = vpack.c.bf16 %v1919_v25, %v1917_v10 }
 0xb3b   :  { %5344 = vmatmul.msk.bf16.gmra.mxu0 %vm617_vm9, %v1924_v26 }
 0xb98   :  { %v1952_v28 = vpop.f32.mrf.mxu0 }
 0xb99   :  { %v1967_v29 = vadd.f32 %v1952_v28, %v7184_v54 }
 0xb9b   :  { %v1973_v3 = vadd.f32 %v6486_v14, %v1967_v29 }
 0xb9d   :  { %v1983_v40 = vadd.f32 %v6170_v30, %v1973_v3 }
 0xb9f   :  { %1989 = vst.msk [vmem:[#allocation2] sm:$0xff] %vm247_vm2, %v1983_v40 }
 0xba0   :  { %v1954_v42 = vpop.f32.mrf.mxu0 }
 0xba1   :  { %v1968_v44 = vadd.f32 %v1954_v42, %v1578_v60 }
 0xba3   :  { %v1974_v46 = vadd.f32 %v6487_v45, %v1968_v44 }
 0xba5   :  { %v1984_v47 = vadd.f32 %v6170_v30, %v1974_v46 }
 0xba6   :  { %v7235_v54 = vld [vmem:[#allocation2] sm:$0xff] }
 0xba7   :  { %1990 = vst.msk [vmem:[#allocation2 + $0x8] sm:$0xff] %vm247_vm2, %v1984_v47  ;;  %v2003_v50 = vsel %vm247_vm2, %v7235_v54, 0.0 }
 0xba8   :  { %2004 = vadd.xlane.f32.xlu0 %v2003_v50  ;;  %v1957_v51 = vpop.f32.mrf.mxu0 }
 0xba9   :  { %v1969_v31 = vadd.f32 %v1957_v51, %v7190_v61 }
 0xbab   :  { %v1975_v55 = vadd.f32 %v6488_v37, %v1969_v31 }
 0xbad   :  { %v1985_v57 = vadd.f32 %v6170_v30, %v1975_v55 }
 0xbae   :  { %v7243_v58 = vld [vmem:[#allocation2 + $0x8] sm:$0xff] }
 0xbaf   :  { %1991 = vst.msk [vmem:[#allocation2 + $0x10] sm:$0xff] %vm247_vm2, %v1985_v57  ;;  %v2006_v36 = vsel %vm247_vm2, %v7243_v58, 0.0  ;;  %v6056_v57 = vld [vmem:[%s8352_s17 + $0x34] sm:$0xf0] }
 0xbb0   :  { %2007 = vadd.xlane.f32.xlu1 %v2006_v36  ;;  %v1959_v2 = vpop.f32.mrf.mxu0  ;;  %v5372_v36 = vor.u32 %v6056_v57, %v5371_v56 }
 0xbb1   :  { %v1970_v5 = vadd.f32 %v1959_v2, %v1580_v63  ;;  %v6055_v63 = vld [vmem:[%s8352_s17 + $0x34] sm:$0xf]  ;;  %v5373_v2 = vld [vmem:[%s8352_s17 + $0x38] sm:$0xf0] }
 0xbb2   :  { %2223 = vmatpush.bf16.msrb.mxu1 %v5372_v36 }
 0xbb3   :  { %v1976_v61 = vadd.f32 %v6489_v32, %v1970_v5  ;;  %v5376_v5 = vor.u32 %v6055_v63, %v5373_v2  ;;  %v5363_v32 = vld [vmem:[%s8352_s17 + $0x20] sm:$0xf] }
 0xbb5   :  { %v1986_v39 = vadd.f32 %v6170_v30, %v1976_v61  ;;  %2247 = vmatpush.bf16.msra.mxu2 %v5376_v5  ;;  %v6054_v61 = vld [vmem:[%s8352_s17 + $0x24] sm:$0xf0] }
 0xbb6   :  { %v7249_v13 = vld [vmem:[#allocation2 + $0x10] sm:$0xff] }
 0xbb7   :  { %1992 = vst.msk [vmem:[#allocation2 + $0x18] sm:$0xff] %vm247_vm2, %v1986_v39  ;;  %v2009_v33 = vsel %vm247_vm2, %v7249_v13, 0.0  ;;  %v6053_v39 = vld [vmem:[%s8352_s17 + $0x24] sm:$0xf] }
 0xbb8   :  { %2010 = vadd.xlane.f32.xlu2 %v2009_v33  ;;  %v1962_v41 = vpop.f32.mrf.mxu0  ;;  %v5364_v33 = vor.u32 %v6054_v61, %v5363_v32  ;;  %v7375_v32 = vld [vmem:[%s8351_s16] ss:$0 sm:$0xff] }
 0xbb9   :  { %v1971_v8 = vadd.f32 %v1962_v41, %v7196_v1  ;;  %v5365_v41 = vld [vmem:[%s8352_s17 + $0x28] sm:$0xf0] }
 0xbba   :  { %2224 = vmatpush.bf16.msrb.mxu1 %v5364_v33 }
 0xbbb   :  { %v1977_v34 = vadd.f32 %v6490_v6, %v1971_v8  ;;  %v5368_v8 = vor.u32 %v6053_v39, %v5365_v41  ;;  %v5355_v6 = vld [vmem:[%s8352_s17 + $0x10] sm:$0xf] }
 0xbbd   :  { %v1987_v7 = vadd.f32 %v6170_v30, %v1977_v34  ;;  %2248 = vmatpush.bf16.msra.mxu2 %v5368_v8  ;;  %v6052_v34 = vld [vmem:[%s8352_s17 + $0x14] sm:$0xf0] }
 0xbbe   :  { %v7257_v0 = vld [vmem:[#allocation2 + $0x18] sm:$0xff] }
 0xbbf   :  { %1993 = vst.msk [vmem:[#allocation2 + $0x20] sm:$0xff] %vm247_vm2, %v1987_v7  ;;  %v2012_v9 = vsel %vm247_vm2, %v7257_v0, 0.0  ;;  %v5356_v7 = vor.u32 %v6052_v34, %v5355_v6 }
 0xbc0   :  { %2013 = vadd.xlane.f32.xlu0 %v2012_v9  ;;  %v1964_v48 = vpop.f32.mrf.mxu0 }
 0xbc1   :  { %v1972_v62 = vadd.f32 %v1964_v48, %v1582_v22  ;;  %v5357_v22 = vld [vmem:[%s8352_s17 + $0x18] sm:$0xf0]  ;;  %2225 = vmatpush.bf16.msrb.mxu1 %v5356_v7 }
 0xbc2   :  { %v5360_v9 = vor.u32 %v6051_v43, %v5357_v22 }
 0xbc3   :  { %v1978_v1 = vadd.f32 %v6491_v11, %v1972_v62  ;;  %v5347_v11 = vld [vmem:[%s8352_s17] sm:$0xf] }
 0xbc4   :  { %2249 = vmatpush.bf16.msra.mxu2 %v5360_v9 }
 0xbc5   :  { %v1988_v12 = vadd.f32 %v6170_v30, %v1978_v1  ;;  %v6050_v1 = vld [vmem:[%s8352_s17 + $0x4] sm:$0xf0] }
 0xbc6   :  { %v7263_v16 = vld [vmem:[#allocation2 + $0x20] sm:$0xff] }
 0xbc7   :  { %1994 = vst.msk [vmem:[#allocation2 + $0x28] sm:$0xff] %vm247_vm2, %v1988_v12  ;;  %v2015_v35 = vsel %vm247_vm2, %v7263_v16, 0.0  ;;  %v6049_v12 = vld [vmem:[%s8352_s17 + $0x4] sm:$0xf] }
 0xbc8   :  { %2016 = vadd.xlane.f32.xlu1 %v2015_v35  ;;  %v5348_v35 = vor.u32 %v6050_v1, %v5347_v11 }
 0xbca   :  { %2226 = vmatpush.bf16.msrb.mxu1 %v5348_v35 }
 0xbce   :  { %v7268_v53 = vld [vmem:[#allocation2 + $0x28] sm:$0xff] }
 0xbcf   :  { %v2018_v27 = vsel %vm247_vm2, %v7268_v53, 0.0 }
 0xbd0   :  { %2019 = vadd.xlane.f32.xlu2 %v2018_v27  ;;  %v5349_v27 = vld [vmem:[%s8352_s17 + $0x8] sm:$0xf0] }
 0xc1b   :  { %v2005_v4 = vpop.xlane.xlu0 %2004 }
 0xc1c   :  { %v2021_v17 = vmul.f32 %v2005_v4, %v6694_v49 }
 0xc1e   :  { %v7274_v18 = vsub.f32 %v7235_v54, %v2021_v17  ;;  %v5352_v17 = vor.u32 %v6049_v12, %v5349_v27 }
 0xc20   :  { %v2033_v19 = vmul.f32 %v7274_v18, %v7274_v18  ;;  %2250 = vmatpush.bf16.msra.mxu2 %v5352_v17 }
 0xc22   :  { %v2039_v20 = vsel %vm247_vm2, %v2033_v19, 0.0 }
 0xc23   :  { %v2008_v52 = vpop.xlane.xlu1 %2007  ;;  %2040 = vadd.xlane.f32.xlu0 %v2039_v20 }
 0xc24   :  { %v2022_v21 = vmul.f32 %v2008_v52, %v6694_v49 }
 0xc26   :  { %v7281_v59 = vsub.f32 %v7243_v58, %v2022_v21 }
 0xc28   :  { %v2034_v24 = vmul.f32 %v7281_v59, %v7281_v59 }
 0xc2a   :  { %v2042_v10 = vsel %vm247_vm2, %v2034_v24, 0.0 }
 0xc2b   :  { %v2011_v25 = vpop.xlane.xlu2 %2010  ;;  %2043 = vadd.xlane.f32.xlu1 %v2042_v10 }
 0xc2c   :  { %v2023_v26 = vmul.f32 %v2011_v25, %v6694_v49 }
 0xc2e   :  { %v7288_v28 = vsub.f32 %v7249_v13, %v2023_v26 }
 0xc30   :  { %v2035_v29 = vmul.f32 %v7288_v28, %v7288_v28 }
 0xc32   :  { %v2045_v30 = vsel %vm247_vm2, %v2035_v29, 0.0 }
 0xc33   :  { %v2014_v14 = vpop.xlane.xlu0 %2013  ;;  %2046 = vadd.xlane.f32.xlu2 %v2045_v30 }
 0xc34   :  { %v2024_v3 = vmul.f32 %v2014_v14, %v6694_v49 }
 0xc36   :  { %v7295_v38 = vsub.f32 %v7257_v0, %v2024_v3 }
 0xc38   :  { %v2036_v40 = vmul.f32 %v7295_v38, %v7295_v38 }
 0xc3a   :  { %v2048_v60 = vsel %vm247_vm2, %v2036_v40, 0.0 }
 0xc3b   :  { %2049 = vadd.xlane.f32.xlu0 %v2048_v60  ;;  %v2017_v42 = vpop.xlane.xlu1 %2016 }
 0xc3c   :  { %v2025_v44 = vmul.f32 %v2017_v42, %v6694_v49 }
 0xc3e   :  { %v7302_v45 = vsub.f32 %v7263_v16, %v2025_v44 }
 0xc40   :  { %v2037_v46 = vmul.f32 %v7302_v45, %v7302_v45 }
 0xc42   :  { %v2051_v47 = vsel %vm247_vm2, %v2037_v46, 0.0 }
 0xc43   :  { %v2020_v50 = vpop.xlane.xlu2 %2019  ;;  %2052 = vadd.xlane.f32.xlu1 %v2051_v47 }
 0xc44   :  { %v2026_v51 = vmul.f32 %v2020_v50, %v6694_v49 }
 0xc46   :  { %v7309_v31 = vsub.f32 %v7268_v53, %v2026_v51 }
 0xc48   :  { %v2038_v37 = vmul.f32 %v7309_v31, %v7309_v31 }
 0xc4a   :  { %v2054_v55 = vsel %vm247_vm2, %v2038_v37, 0.0 }
 0xc4b   :  { %2055 = vadd.xlane.f32.xlu2 %v2054_v55  ;;  %v7369_v55 = vld [vmem:[%s8350_s15] ss:$0 sm:$0xff] }
 0xc96   :  { %v2041_v48 = vpop.xlane.xlu0 %2040 }
 0xc97   :  { %v2057_v62 = vmul.f32 %v2041_v48, %v6694_v49 }
 0xc99   :  { %v2063_v4 = vadd.f32 1e-06, %v2057_v62 }
 0xc9b   :  { %6304 = vrsqrt.f32 %v2063_v4  ;;  %vm2075_vm15 = vweird.f32 %v2063_v4 }
 0xc9e   :  { %v2044_v19 = vpop.xlane.xlu1 %2043 }
 0xc9f   :  { %v2058_v20 = vmul.f32 %v2044_v19, %v6694_v49 }
 0xca1   :  { %v6305_v52 = vpop.eup %6304  ;;  %v2064_v21 = vadd.f32 1e-06, %v2058_v20 }
 0xca2   :  { %v2070_v24 = vmul.f32 %v6305_v52, %v2063_v4  ;;  %vm2076_vm14 = vweird.f32 %v6305_v52 }
 0xca3   :  { %6306 = vrsqrt.f32 %v2064_v21  ;;  %vm2077_vm3 = vmor %vm2075_vm15, %vm2076_vm14  ;;  %vm2085_vm5 = vweird.f32 %v2064_v21 }
 0xca4   :  { %v2071_v10 = vmul.f32 %v6305_v52, %v2070_v24 }
 0xca6   :  { %v2072_v25 = vmul.f32 0.5, %v2071_v10  ;;  %v2047_v26 = vpop.xlane.xlu2 %2046 }
 0xca7   :  { %v2059_v29 = vmul.f32 %v2047_v26, %v6694_v49 }
 0xca8   :  { %v2073_v30 = vsub.f32 1.5, %v2072_v25 }
 0xca9   :  { %v6307_v14 = vpop.eup %6306  ;;  %v2065_v3 = vadd.f32 1e-06, %v2059_v29 }
 0xcaa   :  { %v2074_v40 = vmul.f32 %v6305_v52, %v2073_v30  ;;  %v2080_v60 = vmul.f32 %v6307_v14, %v2064_v21  ;;  %vm2086_vm4 = vweird.f32 %v6307_v14 }
 0xcab   :  { %6308 = vrsqrt.f32 %v2065_v3  ;;  %vm2087_vm6 = vmor %vm2085_vm5, %vm2086_vm4  ;;  %vm2095_vm8 = vweird.f32 %v2065_v3 }
 0xcac   :  { %v2081_v42 = vmul.f32 %v6307_v14, %v2080_v60  ;;  %v2078_v44 = vsel %vm2077_vm3, %v6305_v52, %v2074_v40 }
 0xcad   :  { %v2129_v56 = vmul.f32 %v2078_v44, %v7274_v18 }
 0xcae   :  { %v2082_v46 = vmul.f32 0.5, %v2081_v42  ;;  %v2050_v47 = vpop.xlane.xlu0 %2049 }
 0xcaf   :  { %v2060_v50 = vmul.f32 %v2050_v47, %v6694_v49  ;;  %v2138_v61 = vmul.f32 %v7369_v55, %v2129_v56 }
 0xcb0   :  { %v2083_v51 = vsub.f32 1.5, %v2082_v46 }
 0xcb1   :  { %v6309_v37 = vpop.eup %6308  ;;  %v2066_v57 = vadd.f32 1e-06, %v2060_v50  ;;  %v2147_v43 = vadd.f32 %v7375_v32, %v2138_v61  ;;  %v6071_v61 = vld [vmem:[%s8354_s19 + $0x70] sm:$0xff] }
 0xcb2   :  { %v2084_v63 = vmul.f32 %v6307_v14, %v2083_v51  ;;  %v2090_v36 = vmul.f32 %v6309_v37, %v2065_v3  ;;  %vm2096_vm7 = vweird.f32 %v6309_v37 }
 0xcb3   :  { %6310 = vrsqrt.f32 %v2066_v57  ;;  %vm2097_vm10 = vmor %vm2095_vm8, %vm2096_vm7  ;;  %vm2105_vm12 = vweird.f32 %v2066_v57 }
 0xcb4   :  { %v2088_v2 = vsel %vm2087_vm6, %v6307_v14, %v2084_v63  ;;  %v2091_v5 = vmul.f32 %v6309_v37, %v2090_v36 }
 0xcb5   :  { %v2130_v39 = vmul.f32 %v2088_v2, %v7281_v59 }
 0xcb6   :  { %v2092_v33 = vmul.f32 0.5, %v2091_v5  ;;  %v2053_v41 = vpop.xlane.xlu1 %2052 }
 0xcb7   :  { %v2139_v18 = vmul.f32 %v7369_v55, %v2130_v39  ;;  %v2061_v8 = vmul.f32 %v2053_v41, %v6694_v49  ;;  %v6061_v39 = vld [vmem:[%s8354_s19 + $0x20] sm:$0xff]  ;;  %v6060_v41 = vld [vmem:[%s8354_s19 + $0x18] sm:$0xff] }
 0xcb8   :  { %v2093_v6 = vsub.f32 1.5, %v2092_v33  ;;  %v6070_v33 = vld [vmem:[%s8354_s19 + $0x68] sm:$0xff] }
 0xcb9   :  { %v6311_v34 = vpop.eup %6310  ;;  %v2148_v7 = vadd.f32 %v7375_v32, %v2139_v18  ;;  %v2067_v22 = vadd.f32 1e-06, %v2061_v8  ;;  %v6069_v18 = vld [vmem:[%s8354_s19 + $0x60] sm:$0xff]  ;;  %v6059_v8 = vld [vmem:[%s8354_s19 + $0x10] sm:$0xff] }
 0xcba   :  { %v2094_v9 = vmul.f32 %v6309_v37, %v2093_v6  ;;  %v2100_v48 = vmul.f32 %v6311_v34, %v2066_v57  ;;  %vm2106_vm11 = vweird.f32 %v6311_v34  ;;  %v6068_v6 = vld [vmem:[%s8354_s19 + $0x58] sm:$0xff] }
 0xcbb   :  { %v2153_v62 = vpack.c.bf16 %v2148_v7, %v2147_v43  ;;  %6312 = vrsqrt.f32 %v2067_v22  ;;  %vm2107_vm13 = vmor %vm2105_vm12, %vm2106_vm11  ;;  %vm2115_vm15 = vweird.f32 %v2067_v22  ;;  %v6058_v43 = vld [vmem:[%s8354_s19 + $0x8] sm:$0xff]  ;;  %v6067_v7 = vld [vmem:[%s8354_s19 + $0x50] sm:$0xff] }
 0xcbc   :  { %v2101_v59 = vmul.f32 %v6311_v34, %v2100_v48  ;;  %v2098_v11 = vsel %vm2097_vm10, %v6309_v37, %v2094_v9  ;;  %v6057_v9 = vld [vmem:[%s8354_s19] sm:$0xff] }
 0xcbd   :  { %5377 = vmatmul.msk.bf16.vlgmr.msrb.gmra.mxu1 %vm247_vm2, %v2153_v62  ;;  %5380 = vmatmul.msk.bf16.vlgmr.msra.gmra.mxu2 %vm247_vm2, %v2153_v62  ;;  %v2131_v17 = vmul.f32 %v2098_v11, %v7288_v28  ;;  %v6066_v62 = vld [vmem:[%s8354_s19 + $0x48] sm:$0xff] }
 0xcbe   :  { %v2102_v1 = vmul.f32 0.5, %v2101_v59  ;;  %v2056_v12 = vpop.xlane.xlu2 %2055 }
 0xcbf   :  { %v2062_v35 = vmul.f32 %v2056_v12, %v6694_v49  ;;  %v2140_v25 = vmul.f32 %v7369_v55, %v2131_v17  ;;  %v6065_v12 = vld [vmem:[%s8354_s19 + $0x40] sm:$0xff] }
 0xcc0   :  { %v2103_v27 = vsub.f32 1.5, %v2102_v1 }
 0xcc1   :  { %v6313_v4 = vpop.eup %6312  ;;  %v2068_v19 = vadd.f32 1e-06, %v2062_v35  ;;  %v2149_v3 = vadd.f32 %v7375_v32, %v2140_v25 }
 0xcc2   :  { %v2104_v20 = vmul.f32 %v6311_v34, %v2103_v27  ;;  %v2110_v52 = vmul.f32 %v6313_v4, %v2067_v22  ;;  %vm2116_vm14 = vweird.f32 %v6313_v4 }
 0xcc3   :  { %6314 = vrsqrt.f32 %v2068_v19  ;;  %vm2117_vm3 = vmor %vm2115_vm15, %vm2116_vm14  ;;  %vm2125_vm5 = vweird.f32 %v2068_v19 }
 0xcc4   :  { %v2108_v21 = vsel %vm2107_vm13, %v6311_v34, %v2104_v20  ;;  %v2111_v24 = vmul.f32 %v6313_v4, %v2110_v52  ;;  %v2164_v34 = vld [vmem:[%s8353_s18] sm:$0x3] }
 0xcc5   :  { %v2132_v10 = vmul.f32 %v2108_v21, %v7295_v38  ;;  %v7444_v22 = vperm.slane %v2164_v34, 0  ;;  %v7453_v1 = vperm.slane %v2164_v34, 1 }
 0xcc6   :  { %v2112_v26 = vmul.f32 0.5, %v2111_v24 }
 0xcc7   :  { %v2141_v29 = vmul.f32 %v7369_v55, %v2132_v10 }
 0xcc8   :  { %v2113_v30 = vsub.f32 1.5, %v2112_v26 }
 0xcc9   :  { %v6315_v14 = vpop.eup %6314  ;;  %v2150_v28 = vadd.f32 %v7375_v32, %v2141_v29 }
 0xcca   :  { %v2114_v40 = vmul.f32 %v6313_v4, %v2113_v30  ;;  %v2120_v60 = vmul.f32 %v6315_v14, %v2068_v19  ;;  %vm2126_vm4 = vweird.f32 %v6315_v14 }
 0xccb   :  { %v2154_v42 = vpack.c.bf16 %v2150_v28, %v2149_v3  ;;  %vm2127_vm6 = vmor %vm2125_vm5, %vm2126_vm4 }
 0xccc   :  { %v2121_v44 = vmul.f32 %v6315_v14, %v2120_v60  ;;  %v2118_v38 = vsel %vm2117_vm3, %v6313_v4, %v2114_v40 }
 0xccd   :  { %5378 = vmatmul.msk.bf16.gmra.mxu1 %vm247_vm2, %v2154_v42  ;;  %5381 = vmatmul.msk.bf16.gmra.mxu2 %vm247_vm2, %v2154_v42  ;;  %v2133_v50 = vmul.f32 %v2118_v38, %v7302_v45  ;;  %v6064_v45 = vld [vmem:[%s8354_s19 + $0x38] sm:$0xff] }
 0xcce   :  { %v2122_v46 = vmul.f32 0.5, %v2121_v44  ;;  %2513 = vmatpush.bf16.msra.mxu3 %v6064_v45 }
 0xccf   :  { %v2142_v57 = vmul.f32 %v7369_v55, %v2133_v50 }
 0xcd0   :  { %v2123_v47 = vsub.f32 1.5, %v2122_v46 }
 0xcd1   :  { %v2151_v36 = vadd.f32 %v7375_v32, %v2142_v57 }
 0xcd2   :  { %v2124_v51 = vmul.f32 %v6315_v14, %v2123_v47 }
 0xcd4   :  { %v2128_v37 = vsel %vm2127_vm6, %v6315_v14, %v2124_v51 }
 0xcd5   :  { %v2134_v56 = vmul.f32 %v2128_v37, %v7309_v31  ;;  %v6063_v31 = vld [vmem:[%s8354_s19 + $0x30] sm:$0xff] }
 0xcd6   :  { %2514 = vmatpush.bf16.msra.mxu3 %v6063_v31 }
 0xcd7   :  { %v2143_v63 = vmul.f32 %v7369_v55, %v2134_v56  ;;  %v6072_v55 = vld [vmem:[%s8354_s19 + $0x78] sm:$0xff] }
 0xcd8   :  { %2537 = vmatpush.bf16.msrb.mxu0 %v6072_v55 }
 0xcd9   :  { %v2152_v2 = vadd.f32 %v7375_v32, %v2143_v63  ;;  %v6062_v32 = vld [vmem:[%s8354_s19 + $0x28] sm:$0xff] }
 0xcda   :  { %2515 = vmatpush.bf16.msra.mxu3 %v6062_v32 }
 0xcdb   :  { %v2155_v5 = vpack.c.bf16 %v2152_v2, %v2151_v36 }
 0xcdc   :  { %2538 = vmatpush.bf16.msrb.mxu0 %v6071_v61 }
 0xcdd   :  { %5379 = vmatmul.msk.bf16.gmra.mxu1 %vm247_vm2, %v2155_v5  ;;  %5382 = vmatmul.msk.bf16.gmra.mxu2 %vm247_vm2, %v2155_v5 }
 0xcde   :  { %2516 = vmatpush.bf16.msra.mxu3 %v6061_v39 }
 0xce0   :  { %2539 = vmatpush.bf16.msrb.mxu0 %v6070_v33 }
 0xce2   :  { %2517 = vmatpush.bf16.msra.mxu3 %v6060_v41 }
 0xce4   :  { %2540 = vmatpush.bf16.msrb.mxu0 %v6069_v18 }
 0xce6   :  { %2518 = vmatpush.bf16.msra.mxu3 %v6059_v8 }
 0xce8   :  { %2541 = vmatpush.bf16.msrb.mxu0 %v6068_v6 }
 0xcea   :  { %2519 = vmatpush.bf16.msra.mxu3 %v6058_v43 }
 0xcec   :  { %2542 = vmatpush.bf16.msrb.mxu0 %v6067_v7 }
 0xcee   :  { %2520 = vmatpush.bf16.msra.mxu3 %v6057_v9 }
 0xcf0   :  { %2543 = vmatpush.bf16.msrb.mxu0 %v6066_v62 }
 0xcf4   :  { %2544 = vmatpush.bf16.msrb.mxu0 %v6065_v12 }
 0xd3a   :  { %v2228_v48 = vpop.f32.mrf.mxu1 }
 0xd3b   :  { %v2229_v59 = vadd.f32 %v2228_v48, %v7444_v22 }
 0xd3d   :  { %v2279_v11 = vmul.f32 0.044715, %v2229_v59  ;;  %v2267_v18 = vmul.f32 0.5, %v2229_v59 }
 0xd3f   :  { %v2291_v35 = vmul.f32 %v2279_v11, %v2229_v59 }
 0xd40   :  { %v2252_v27 = vpop.f32.mrf.mxu2 }
 0xd41   :  { %v2303_v4 = vmul.f32 %v2291_v35, %v2229_v59  ;;  %v2253_v17 = vadd.f32 %v2252_v27, %v7453_v1 }
 0xd42   :  { %v2230_v19 = vpop.f32.mrf.mxu1 }
 0xd43   :  { %v2315_v20 = vadd.f32 %v2303_v4, %v2229_v59  ;;  %v2280_v52 = vmul.f32 0.044715, %v2253_v17  ;;  %v2231_v21 = vadd.f32 %v2230_v19, %v7444_v22 }
 0xd45   :  { %v2292_v24 = vmul.f32 %v2280_v52, %v2253_v17  ;;  %v2281_v10 = vmul.f32 0.044715, %v2231_v21  ;;  %v2327_v25 = vmul.f32 0.7978846, %v2315_v20  ;;  %v2269_v8 = vmul.f32 0.5, %v2231_v21 }
 0xd47   :  { %v2304_v26 = vmul.f32 %v2292_v24, %v2253_v17  ;;  %v2293_v29 = vmul.f32 %v2281_v10, %v2231_v21  ;;  %6316 = vtanh.f32 %v2327_v25  ;;  %v2268_v10 = vmul.f32 0.5, %v2253_v17 }
 0xd48   :  { %v2254_v30 = vpop.f32.mrf.mxu2 }
 0xd49   :  { %v2316_v14 = vadd.f32 %v2304_v26, %v2253_v17  ;;  %v2305_v3 = vmul.f32 %v2293_v29, %v2231_v21  ;;  %v2255_v28 = vadd.f32 %v2254_v30, %v7453_v1 }
 0xd4a   :  { %v2233_v40 = vpop.f32.mrf.mxu1 }
 0xd4b   :  { %v2317_v60 = vadd.f32 %v2305_v3, %v2231_v21  ;;  %v2282_v42 = vmul.f32 0.044715, %v2255_v28  ;;  %v7462_v44 = vadd.f32 %v2233_v40, %v7444_v22  ;;  %v2328_v38 = vmul.f32 0.7978846, %v2316_v14 }
 0xd4c   :  { %v2270_v25 = vmul.f32 0.5, %v2255_v28 }
 0xd4d   :  { %v2329_v46 = vmul.f32 0.7978846, %v2317_v60  ;;  %v2294_v47 = vmul.f32 %v2282_v42, %v2255_v28  ;;  %v2283_v50 = vmul.f32 0.044715, %v7462_v44  ;;  %v6317_v57 = vpop.eup %6316 }
 0xd4e   :  { %v2351_v32 = vadd.f32 1.0, %v6317_v57 }
 0xd4f   :  { %6318 = vtanh.f32 %v2329_v46  ;;  %v2306_v51 = vmul.f32 %v2294_v47, %v2255_v28  ;;  %v2295_v37 = vmul.f32 %v2283_v50, %v7462_v44 }
 0xd50   :  { %v2257_v56 = vpop.f32.mrf.mxu2  ;;  %6320 = vtanh.f32 %v2328_v38  ;;  %v2363_v62 = vmul.f32 %v2351_v32, %v2267_v18 }
 0xd51   :  { %v2318_v63 = vadd.f32 %v2306_v51, %v2255_v28  ;;  %v7467_v36 = vadd.f32 %v2257_v56, %v7453_v1  ;;  %v2307_v5 = vmul.f32 %v2295_v37, %v7462_v44 }
 0xd52   :  { %v2235_v2 = vpop.f32.mrf.mxu1 }
 0xd53   :  { %v2330_v45 = vmul.f32 0.7978846, %v2318_v63  ;;  %v2284_v31 = vmul.f32 0.044715, %v7467_v36  ;;  %v2236_v55 = vadd.f32 %v2235_v2, %v7444_v22  ;;  %v2319_v61 = vadd.f32 %v2307_v5, %v7462_v44 }
 0xd55   :  { %v6319_v39 = vpop.eup %6318  ;;  %6322 = vtanh.f32 %v2330_v45  ;;  %v2296_v33 = vmul.f32 %v2284_v31, %v7467_v36  ;;  %v2285_v41 = vmul.f32 0.044715, %v2236_v55  ;;  %v2331_v7 = vmul.f32 0.7978846, %v2319_v61 }
 0xd56   :  { %v2353_v6 = vadd.f32 1.0, %v6319_v39  ;;  %v6321_v34 = vpop.eup %6320  ;;  %v2271_v61 = vmul.f32 0.5, %v7462_v44  ;;  %v2273_v39 = vmul.f32 0.5, %v2236_v55 }
 0xd57   :  { %v2297_v43 = vmul.f32 %v2285_v41, %v2236_v55  ;;  %v2308_v9 = vmul.f32 %v2296_v33, %v7467_v36  ;;  %v2352_v4 = vadd.f32 1.0, %v6321_v34  ;;  %6324 = vtanh.f32 %v2331_v7 }
 0xd58   :  { %v2259_v48 = vpop.f32.mrf.mxu2  ;;  %v2365_v11 = vmul.f32 %v2353_v6, %v2269_v8 }
 0xd59   :  { %v2260_v12 = vadd.f32 %v2259_v48, %v7453_v1  ;;  %v2309_v35 = vmul.f32 %v2297_v43, %v2236_v55  ;;  %v2320_v27 = vadd.f32 %v2308_v9, %v7467_v36  ;;  %v2364_v40 = vmul.f32 %v2352_v4, %v2268_v10 }
 0xd5a   :  { %v2238_v19 = vpop.f32.mrf.mxu1  ;;  %v2375_v20 = vpack.c.bf16 %v2365_v11, %v2363_v62 }
 0xd5b   :  { %v6323_v52 = vpop.eup %6322  ;;  %v2286_v59 = vmul.f32 0.044715, %v2260_v12  ;;  %v7478_v21 = vadd.f32 %v2238_v19, %v7444_v22  ;;  %v2321_v24 = vadd.f32 %v2309_v35, %v2236_v55  ;;  %v2332_v3 = vmul.f32 0.7978846, %v2320_v27 }
 0xd5c   :  { %2521 = vmatmul.bf16.vlgmr.msra.gmra.mxu3 %v2375_v20  ;;  %v2354_v26 = vadd.f32 1.0, %v6323_v52  ;;  %v2272_v55 = vmul.f32 0.5, %v7467_v36  ;;  %v2274_v4 = vmul.f32 0.5, %v2260_v12 }
 0xd5d   :  { %v2298_v29 = vmul.f32 %v2286_v59, %v2260_v12  ;;  %v2287_v30 = vmul.f32 0.044715, %v7478_v21  ;;  %v2333_v14 = vmul.f32 0.7978846, %v2321_v24  ;;  %v6325_v50 = vpop.eup %6324  ;;  %v2275_v36 = vmul.f32 0.5, %v7478_v21 }
 0xd5e   :  { %v2366_v60 = vmul.f32 %v2354_v26, %v2270_v25  ;;  %v2355_v5 = vadd.f32 1.0, %v6325_v50 }
 0xd5f   :  { %v2299_v42 = vmul.f32 %v2287_v30, %v7478_v21  ;;  %6326 = vtanh.f32 %v2333_v14  ;;  %v2310_v38 = vmul.f32 %v2298_v29, %v2260_v12 }
 0xd60   :  { %v2262_v46 = vpop.f32.mrf.mxu2  ;;  %v2376_v47 = vpack.c.bf16 %v2366_v60, %v2364_v40  ;;  %6328 = vtanh.f32 %v2332_v3 }
 0xd61   :  { %v7483_v51 = vadd.f32 %v2262_v46, %v7453_v1  ;;  %v2322_v17 = vadd.f32 %v2310_v38, %v2260_v12  ;;  %v2311_v28 = vmul.f32 %v2299_v42, %v7478_v21 }
 0xd62   :  { %v2240_v37 = vpop.f32.mrf.mxu1  ;;  %2545 = vmatmul.bf16.vlgmr.msrb.gmra.mxu0 %v2376_v47 }
 0xd63   :  { %v2288_v56 = vmul.f32 0.044715, %v7483_v51  ;;  %v2241_v57 = vadd.f32 %v2240_v37, %v7444_v22  ;;  %v2334_v63 = vmul.f32 0.7978846, %v2322_v17  ;;  %v2323_v2 = vadd.f32 %v2311_v28, %v7478_v21  ;;  %v6173_v21 = vld [vmem:[%s8355_s20] ss:$0 sm:$0xff] }
 0xd64   :  { %v2367_v22 = vmul.f32 %v2355_v5, %v2271_v61  ;;  %v2276_v17 = vmul.f32 0.5, %v7483_v51 }
 0xd65   :  { %v6327_v45 = vpop.eup %6326  ;;  %v2300_v31 = vmul.f32 %v2288_v56, %v7483_v51  ;;  %v2289_v32 = vmul.f32 0.044715, %v2241_v57  ;;  %6330 = vtanh.f32 %v2334_v63  ;;  %v2335_v8 = vmul.f32 0.7978846, %v2323_v2 }
 0xd66   :  { %v2357_v33 = vadd.f32 1.0, %v6327_v45  ;;  %v6329_v41 = vpop.eup %6328  ;;  %v2277_v12 = vmul.f32 0.5, %v2241_v57 }
 0xd67   :  { %v2301_v18 = vmul.f32 %v2289_v32, %v2241_v57  ;;  %v2312_v6 = vmul.f32 %v2300_v31, %v7483_v51  ;;  %v2356_v11 = vadd.f32 1.0, %v6329_v41  ;;  %6332 = vtanh.f32 %v2335_v8 }
 0xd68   :  { %v2264_v34 = vpop.f32.mrf.mxu2  ;;  %v2369_v43 = vmul.f32 %v2357_v33, %v2273_v39 }
 0xd69   :  { %v2265_v7 = vadd.f32 %v2264_v34, %v7453_v1  ;;  %v2313_v9 = vmul.f32 %v2301_v18, %v2241_v57  ;;  %v2324_v48 = vadd.f32 %v2312_v6, %v7483_v51  ;;  %v2368_v24 = vmul.f32 %v2356_v11, %v2272_v55 }
 0xd6a   :  { %v2377_v62 = vpack.c.bf16 %v2369_v43, %v2367_v22 }
 0xd6b   :  { %v6331_v35 = vpop.eup %6330  ;;  %v2290_v27 = vmul.f32 0.044715, %v2265_v7  ;;  %v2325_v44 = vadd.f32 %v2313_v9, %v2241_v57  ;;  %v2336_v59 = vmul.f32 0.7978846, %v2324_v48  ;;  %v2278_v28 = vmul.f32 0.5, %v2265_v7 }
 0xd6c   :  { %2526 = vmatmul.bf16.gmra.mxu3 %v2377_v62  ;;  %v2358_v19 = vadd.f32 1.0, %v6331_v35 }
 0xd6d   :  { %v2302_v20 = vmul.f32 %v2290_v27, %v2265_v7  ;;  %v2337_v52 = vmul.f32 0.7978846, %v2325_v44  ;;  %v6333_v26 = vpop.eup %6332 }
 0xd6e   :  { %v2370_v10 = vmul.f32 %v2358_v19, %v2274_v4  ;;  %v2359_v14 = vadd.f32 1.0, %v6333_v26 }
 0xd6f   :  { %6334 = vtanh.f32 %v2337_v52  ;;  %v2314_v1 = vmul.f32 %v2302_v20, %v2265_v7 }
 0xd70   :  { %v2378_v25 = vpack.c.bf16 %v2370_v10, %v2368_v24  ;;  %6336 = vtanh.f32 %v2336_v59  ;;  %v2371_v42 = vmul.f32 %v2359_v14, %v2275_v36 }
 0xd71   :  { %v2326_v29 = vadd.f32 %v2314_v1, %v2265_v7 }
 0xd72   :  { %2550 = vmatmul.bf16.gmra.mxu0 %v2378_v25 }
 0xd73   :  { %v2338_v30 = vmul.f32 0.7978846, %v2326_v29 }
 0xd75   :  { %v6335_v3 = vpop.eup %6334  ;;  %6338 = vtanh.f32 %v2338_v30 }
 0xd76   :  { %v2361_v40 = vadd.f32 1.0, %v6335_v3  ;;  %v6337_v60 = vpop.eup %6336 }
 0xd77   :  { %v2360_v47 = vadd.f32 1.0, %v6337_v60 }
 0xd78   :  { %v2373_v38 = vmul.f32 %v2361_v40, %v2277_v12 }
 0xd79   :  { %v2372_v56 = vmul.f32 %v2360_v47, %v2276_v17 }
 0xd7a   :  { %v2379_v46 = vpack.c.bf16 %v2373_v38, %v2371_v42 }
 0xd7b   :  { %v6339_v50 = vpop.eup %6338 }
 0xd7c   :  { %2531 = vmatmul.bf16.gmra.mxu3 %v2379_v46  ;;  %v2362_v37 = vadd.f32 1.0, %v6339_v50 }
 0xd7e   :  { %v2374_v63 = vmul.f32 %v2362_v37, %v2278_v28 }
 0xd80   :  { %v2380_v2 = vpack.c.bf16 %v2374_v63, %v2372_v56 }
 0xd82   :  { %2555 = vmatmul.bf16.gmra.mxu0 %v2380_v2 }
 0xddf   :  { %v2522_v57 = vpop.f32.mrf.mxu3  ;;  %v2546_v5 = vpop.f32.mrf.mxu0 }
 0xde0   :  { %v2523_v45 = vadd.f32 %v6173_v21, %v2522_v57 }
 0xde2   :  { %v2547_v31 = vadd.f32 %v2546_v5, %v2523_v45 }
 0xde4   :  { %v2561_v32 = vadd.f32 %v2547_v31, %v7235_v54 }
 0xde6   :  { %2567 = vst.msk [vmem:[#allocation2] sm:$0xff] %vm247_vm2, %v2561_v32 }
 0xde7   :  { %v2524_v61 = vpop.f32.mrf.mxu3  ;;  %v2548_v51 = vpop.f32.mrf.mxu0 }
 0xde8   :  { %v2525_v39 = vadd.f32 %v6173_v21, %v2524_v61 }
 0xdea   :  { %v2549_v33 = vadd.f32 %v2548_v51, %v2525_v39 }
 0xdec   :  { %v2562_v41 = vadd.f32 %v2549_v33, %v7243_v58 }
 0xded   :  { %v2573_v18 = vld [vmem:[#allocation2] sm:$0xff] }
 0xdee   :  { %2568 = vst.msk [vmem:[#allocation2 + $0x8] sm:$0xff] %vm247_vm2, %v2562_v41  ;;  %v2583_v8 = vsel %vm247_vm2, %v2573_v18, 0.0 }
 0xdef   :  { %v2527_v6 = vpop.f32.mrf.mxu3  ;;  %v2551_v34 = vpop.f32.mrf.mxu0  ;;  %2584 = vadd.xlane.f32.xlu0 %v2583_v8  ;;  %v6080_v8 = vld [vmem:[%s8344_s9 + $0x98] sm:$0xff] }
 0xdf0   :  { %v2528_v22 = vadd.f32 %v6173_v21, %v2527_v6  ;;  %v6076_v6 = vld [vmem:[%s8378_s7 + $0x98] sm:$0xff]  ;;  %2849 = vmatpush.bf16.msrb.mxu2 %v6080_v8 }
 0xdf1   :  { %2787 = vmatpush.bf16.msra.mxu1 %v6076_v6 }
 0xdf2   :  { %v2552_v43 = vadd.f32 %v2551_v34, %v2528_v22  ;;  %v6084_v34 = vld [vmem:[%s8346_s11 + $0x98] sm:$0xff]  ;;  %v6075_v22 = vld [vmem:[%s8378_s7 + $0x90] sm:$0xff] }
 0xdf3   :  { %2911 = vmatpush.bf16.msrb.mxu3 %v6084_v34 }
 0xdf4   :  { %v2563_v54 = vadd.f32 %v2552_v43, %v7249_v13  ;;  %v6079_v43 = vld [vmem:[%s8344_s9 + $0x90] sm:$0xff] }
 0xdf5   :  { %v2574_v7 = vld [vmem:[#allocation2 + $0x8] sm:$0xff]  ;;  %2788 = vmatpush.bf16.msra.mxu1 %v6075_v22  ;;  %2850 = vmatpush.bf16.msrb.mxu2 %v6079_v43  ;;  %v6089_v22 = vld [vmem:[%s8378_s7 + $0xb8] sm:$0xff] }
 0xdf6   :  { %2569 = vst.msk [vmem:[#allocation2 + $0x10] sm:$0xff] %vm247_vm2, %v2563_v54  ;;  %v2586_v9 = vsel %vm247_vm2, %v2574_v7, 0.0  ;;  %v6083_v54 = vld [vmem:[%s8346_s11 + $0x90] sm:$0xff]  ;;  %v6093_v43 = vld [vmem:[%s8344_s9 + $0xb8] sm:$0xff] }
 0xdf7   :  { %v2529_v48 = vpop.f32.mrf.mxu3  ;;  %v2553_v62 = vpop.f32.mrf.mxu0  ;;  %2587 = vadd.xlane.f32.xlu1 %v2586_v9  ;;  %2912 = vmatpush.bf16.msrb.mxu3 %v6083_v54  ;;  %v6078_v9 = vld [vmem:[%s8344_s9 + $0x88] sm:$0xff] }
 0xdf8   :  { %v2530_v58 = vadd.f32 %v6173_v21, %v2529_v48  ;;  %v6082_v48 = vld [vmem:[%s8346_s11 + $0x88] sm:$0xff] }
 0xdf9   :  { %2851 = vmatpush.bf16.msrb.mxu2 %v6078_v9 }
 0xdfa   :  { %v2554_v11 = vadd.f32 %v2553_v62, %v2530_v58 }
 0xdfb   :  { %2913 = vmatpush.bf16.msrb.mxu3 %v6082_v48 }
 0xdfc   :  { %v2564_v35 = vadd.f32 %v2554_v11, %v7257_v0 }
 0xdfd   :  { %v2575_v27 = vld [vmem:[#allocation2 + $0x10] sm:$0xff] }
 0xdfe   :  { %2570 = vst.msk [vmem:[#allocation2 + $0x18] sm:$0xff] %vm247_vm2, %v2564_v35  ;;  %v2589_v44 = vsel %vm247_vm2, %v2575_v27, 0.0  ;;  %v6073_v35 = vld [vmem:[%s8378_s7 + $0x80] sm:$0xff] }
 0xdff   :  { %2590 = vadd.xlane.f32.xlu2 %v2589_v44  ;;  %v2532_v55 = vpop.f32.mrf.mxu3  ;;  %v2556_v13 = vpop.f32.mrf.mxu0  ;;  %v6081_v44 = vld [vmem:[%s8346_s11 + $0x80] sm:$0xff] }
 0xe00   :  { %v2533_v4 = vadd.f32 %v6173_v21, %v2532_v55  ;;  %2914 = vmatpush.bf16.msrb.mxu3 %v6081_v44 }
 0xe02   :  { %v2557_v19 = vadd.f32 %v2556_v13, %v2533_v4 }
 0xe04   :  { %v2565_v20 = vadd.f32 %v2557_v19, %v7263_v16  ;;  %3194 = vmatpush.bf16.msra.mxu3 %v6093_v43 }
 0xe05   :  { %v2576_v52 = vld [vmem:[#allocation2 + $0x18] sm:$0xff] }
 0xe06   :  { %2571 = vst.msk [vmem:[#allocation2 + $0x20] sm:$0xff] %vm247_vm2, %v2565_v20  ;;  %v2592_v59 = vsel %vm247_vm2, %v2576_v52, 0.0 }
 0xe07   :  { %2593 = vadd.xlane.f32.xlu0 %v2592_v59  ;;  %v2534_v24 = vpop.f32.mrf.mxu3  ;;  %v2558_v10 = vpop.f32.mrf.mxu0 }
 0xe08   :  { %v2535_v0 = vadd.f32 %v6173_v21, %v2534_v24 }
 0xe0a   :  { %v2559_v1 = vadd.f32 %v2558_v10, %v2535_v0 }
 0xe0c   :  { %v2566_v25 = vadd.f32 %v2559_v1, %v7268_v53 }
 0xe0d   :  { %v2577_v26 = vld [vmem:[#allocation2 + $0x20] sm:$0xff] }
 0xe0e   :  { %2572 = vst.msk [vmem:[#allocation2 + $0x28] sm:$0xff] %vm247_vm2, %v2566_v25  ;;  %v2595_v29 = vsel %vm247_vm2, %v2577_v26, 0.0 }
 0xe0f   :  { %2596 = vadd.xlane.f32.xlu1 %v2595_v29 }
 0xe15   :  { %v2578_v30 = vld [vmem:[#allocation2 + $0x28] sm:$0xff] }
 0xe16   :  { %v2598_v16 = vsel %vm247_vm2, %v2578_v30, 0.0 }
 0xe17   :  { %2599 = vadd.xlane.f32.xlu2 %v2598_v16 }
 0xe62   :  { %v2585_v14 = vpop.xlane.xlu0 %2584 }
 0xe63   :  { %v2601_v3 = vmul.f32 %v2585_v14, %v6694_v49 }
 0xe65   :  { %v7519_v36 = vsub.f32 %v2573_v18, %v2601_v3 }
 0xe67   :  { %v2613_v12 = vmul.f32 %v7519_v36, %v7519_v36 }
 0xe69   :  { %v2619_v53 = vsel %vm247_vm2, %v2613_v12, 0.0 }
 0xe6a   :  { %2620 = vadd.xlane.f32.xlu0 %v2619_v53  ;;  %v2588_v40 = vpop.xlane.xlu1 %2587 }
 0xe6b   :  { %v2602_v60 = vmul.f32 %v2588_v40, %v6694_v49 }
 0xe6d   :  { %v7525_v42 = vsub.f32 %v2574_v7, %v2602_v60  ;;  %v6074_v7 = vld [vmem:[%s8378_s7 + $0x88] sm:$0xff]  ;;  %v7597_v60 = vld [vmem:[%s8379_s26 + $0x1] ss:$0 sm:$0xff]  ;;  %s4945_s26 = sshll.u32 %s6526_s29, 4  ;;  %s4946_s26 = int_to_ptr.vmem [resolvable:$true] %s4945_s26 }
 0xe6e   :  { %2789 = vmatpush.bf16.msra.mxu1 %v6074_v7 }
 0xe6f   :  { %v2614_v38 = vmul.f32 %v7525_v42, %v7525_v42 }
 0xe71   :  { %v2622_v46 = vsel %vm247_vm2, %v2614_v38, 0.0 }
 0xe72   :  { %v2591_v47 = vpop.xlane.xlu2 %2590  ;;  %2623 = vadd.xlane.f32.xlu1 %v2622_v46  ;;  %2790 = vmatpush.bf16.msra.mxu1 %v6073_v35 }
 0xe73   :  { %v2603_v50 = vmul.f32 %v2591_v47, %v6694_v49 }
 0xe75   :  { %v7531_v17 = vsub.f32 %v2575_v27, %v2603_v50  ;;  %v6077_v27 = vld [vmem:[%s8344_s9 + $0x80] sm:$0xff] }
 0xe76   :  { %2852 = vmatpush.bf16.msrb.mxu2 %v6077_v27 }
 0xe77   :  { %v2615_v28 = vmul.f32 %v7531_v17, %v7531_v17 }
 0xe79   :  { %v2625_v37 = vsel %vm247_vm2, %v2615_v28, 0.0 }
 0xe7a   :  { %v2594_v56 = vpop.xlane.xlu0 %2593  ;;  %2626 = vadd.xlane.f32.xlu2 %v2625_v37  ;;  %3132 = vmatpush.bf16.msra.mxu2 %v6089_v22 }
 0xe7b   :  { %v2604_v63 = vmul.f32 %v2594_v56, %v6694_v49  ;;  %v7603_v56 = vld [vmem:[%s8380_s27 + $0x1] ss:$0 sm:$0xff] }
 0xe7d   :  { %v7537_v2 = vsub.f32 %v2576_v52, %v2604_v63 }
 0xe7f   :  { %v2616_v21 = vmul.f32 %v7537_v2, %v7537_v2 }
 0xe81   :  { %v2628_v57 = vsel %vm247_vm2, %v2616_v21, 0.0 }
 0xe82   :  { %2629 = vadd.xlane.f32.xlu0 %v2628_v57  ;;  %v2597_v5 = vpop.xlane.xlu1 %2596 }
 0xe83   :  { %v2605_v45 = vmul.f32 %v2597_v5, %v6694_v49 }
 0xe85   :  { %v7543_v31 = vsub.f32 %v2577_v26, %v2605_v45 }
 0xe87   :  { %v2617_v32 = vmul.f32 %v7543_v31, %v7543_v31 }
 0xe89   :  { %v2631_v61 = vsel %vm247_vm2, %v2617_v32, 0.0 }
 0xe8a   :  { %v2600_v51 = vpop.xlane.xlu2 %2599  ;;  %2632 = vadd.xlane.f32.xlu1 %v2631_v61 }
 0xe8b   :  { %v2606_v39 = vmul.f32 %v2600_v51, %v6694_v49 }
 0xe8d   :  { %v7549_v33 = vsub.f32 %v2578_v30, %v2606_v39 }
 0xe8f   :  { %v2618_v41 = vmul.f32 %v7549_v33, %v7549_v33 }
 0xe91   :  { %v2634_v18 = vsel %vm247_vm2, %v2618_v41, 0.0 }
 0xe92   :  { %2635 = vadd.xlane.f32.xlu2 %v2634_v18 }
 0xedd   :  { %v2621_v62 = vpop.xlane.xlu0 %2620 }
 0xede   :  { %v2637_v58 = vmul.f32 %v2621_v62, %v6694_v49  ;;  %v6088_v62 = vld [vmem:[%s8378_s7 + $0xb0] sm:$0xff] }
 0xedf   :  { %3133 = vmatpush.bf16.msra.mxu2 %v6088_v62 }
 0xee0   :  { %v2643_v11 = vadd.f32 1e-06, %v2637_v58  ;;  %v6092_v58 = vld [vmem:[%s8344_s9 + $0xb0] sm:$0xff] }
 0xee1   :  { %3195 = vmatpush.bf16.msra.mxu3 %v6092_v58 }
 0xee2   :  { %6340 = vrsqrt.f32 %v2643_v11  ;;  %vm2655_vm8 = vweird.f32 %v2643_v11 }
 0xee5   :  { %v2624_v55 = vpop.xlane.xlu1 %2623 }
 0xee6   :  { %v2638_v13 = vmul.f32 %v2624_v55, %v6694_v49 }
 0xee8   :  { %v6341_v4 = vpop.eup %6340  ;;  %v2644_v19 = vadd.f32 1e-06, %v2638_v13 }
 0xee9   :  { %v2650_v20 = vmul.f32 %v6341_v4, %v2643_v11  ;;  %vm2656_vm7 = vweird.f32 %v6341_v4 }
 0xeea   :  { %6342 = vrsqrt.f32 %v2644_v19  ;;  %vm2657_vm10 = vmor %vm2655_vm8, %vm2656_vm7  ;;  %vm2665_vm12 = vweird.f32 %v2644_v19 }
 0xeeb   :  { %v2651_v52 = vmul.f32 %v6341_v4, %v2650_v20 }
 0xeed   :  { %v2652_v59 = vmul.f32 0.5, %v2651_v52  ;;  %v2627_v24 = vpop.xlane.xlu2 %2626 }
 0xeee   :  { %v2639_v0 = vmul.f32 %v2627_v24, %v6694_v49 }
 0xeef   :  { %v2653_v10 = vsub.f32 1.5, %v2652_v59 }
 0xef0   :  { %v6343_v1 = vpop.eup %6342  ;;  %v2645_v25 = vadd.f32 1e-06, %v2639_v0 }
 0xef1   :  { %v2654_v26 = vmul.f32 %v6341_v4, %v2653_v10  ;;  %v2660_v29 = vmul.f32 %v6343_v1, %v2644_v19  ;;  %vm2666_vm11 = vweird.f32 %v6343_v1  ;;  %v6091_v19 = vld [vmem:[%s8344_s9 + $0xa8] sm:$0xff]  ;;  %v6086_v10 = vld [vmem:[%s8378_s7 + $0xa0] sm:$0xff] }
 0xef2   :  { %6344 = vrsqrt.f32 %v2645_v25  ;;  %vm2667_vm13 = vmor %vm2665_vm12, %vm2666_vm11  ;;  %vm2675_vm15 = vweird.f32 %v2645_v25  ;;  %3196 = vmatpush.bf16.msra.mxu3 %v6091_v19 }
 0xef3   :  { %v2661_v30 = vmul.f32 %v6343_v1, %v2660_v29  ;;  %v2658_v16 = vsel %vm2657_vm10, %v6341_v4, %v2654_v26  ;;  %v6087_v4 = vld [vmem:[%s8378_s7 + $0xa8] sm:$0xff] }
 0xef4   :  { %v2709_v38 = vmul.f32 %v2658_v16, %v7519_v36  ;;  %3134 = vmatpush.bf16.msra.mxu2 %v6087_v4 }
 0xef5   :  { %v2662_v14 = vmul.f32 0.5, %v2661_v30  ;;  %v2630_v3 = vpop.xlane.xlu0 %2629 }
 0xef6   :  { %v2640_v12 = vmul.f32 %v2630_v3, %v6694_v49  ;;  %v2718_v63 = vmul.f32 %v7597_v60, %v2709_v38 }
 0xef7   :  { %v2663_v53 = vsub.f32 1.5, %v2662_v14 }
 0xef8   :  { %v6345_v40 = vpop.eup %6344  ;;  %v2646_v46 = vadd.f32 1e-06, %v2640_v12  ;;  %v2727_v51 = vadd.f32 %v7603_v56, %v2718_v63  ;;  %3135 = vmatpush.bf16.msra.mxu2 %v6086_v10  ;;  %v6176_v10 = vld [vmem:[%s8343_s8 + $0x4] ss:$0 sm:$0xff] }
 0xef9   :  { %v2664_v47 = vmul.f32 %v6343_v1, %v2663_v53  ;;  %v2670_v50 = vmul.f32 %v6345_v40, %v2645_v25  ;;  %vm2676_vm14 = vweird.f32 %v6345_v40 }
 0xefa   :  { %6346 = vrsqrt.f32 %v2646_v46  ;;  %vm7613_vm3 = vmor %vm2675_vm15, %vm2676_vm14  ;;  %vm2685_vm5 = vweird.f32 %v2646_v46 }
 0xefb   :  { %v2668_v28 = vsel %vm2667_vm13, %v6343_v1, %v2664_v47  ;;  %v2671_v37 = vmul.f32 %v6345_v40, %v2670_v50  ;;  %v6090_v1 = vld [vmem:[%s8344_s9 + $0xa0] sm:$0xff] }
 0xefc   :  { %v2710_v21 = vmul.f32 %v2668_v28, %v7525_v42  ;;  %3197 = vmatpush.bf16.msra.mxu3 %v6090_v1 }
 0xefd   :  { %v2672_v57 = vmul.f32 0.5, %v2671_v37  ;;  %v2633_v5 = vpop.xlane.xlu1 %2632 }
 0xefe   :  { %v2719_v36 = vmul.f32 %v7597_v60, %v2710_v21  ;;  %v2641_v45 = vmul.f32 %v2633_v5, %v6694_v49 }
 0xeff   :  { %v2673_v32 = vsub.f32 1.5, %v2672_v57 }
 0xf00   :  { %v6347_v61 = vpop.eup %6346  ;;  %v2728_v39 = vadd.f32 %v7603_v56, %v2719_v36  ;;  %v2647_v41 = vadd.f32 1e-06, %v2641_v45 }
 0xf01   :  { %v2674_v18 = vmul.f32 %v6345_v40, %v2673_v32  ;;  %v2680_v8 = vmul.f32 %v6347_v61, %v2646_v46  ;;  %vm2686_vm4 = vweird.f32 %v6347_v61 }
 0xf02   :  { %v7611_v6 = vpack.c.bf16 %v2728_v39, %v2727_v51  ;;  %6348 = vrsqrt.f32 %v2647_v41  ;;  %vm2687_vm6 = vmor %vm2685_vm5, %vm2686_vm4  ;;  %vm2695_vm8 = vweird.f32 %v2647_v41  ;;  %v6177_v39 = vld [vmem:[%s8345_s10 + $0x4] ss:$0 sm:$0xff] }
 0xf03   :  { %v2681_v42 = vmul.f32 %v6347_v61, %v2680_v8  ;;  %v2678_v54 = vsel %vm7613_vm3, %v6345_v40, %v2674_v18 }
 0xf04   :  { %5474 = vmatmul.msk.bf16.vlgmr.msra.gmra.mxu1 %vm247_vm2, %v7611_v6  ;;  %5502 = vmatmul.msk.bf16.vlgmr.msrb.gmra.mxu2 %vm247_vm2, %v7611_v6  ;;  %v2711_v27 = vmul.f32 %v2678_v54, %v7531_v17 }
 0xf05   :  { %v2682_v7 = vmul.f32 0.5, %v2681_v42  ;;  %5530 = vmatmul.msk.bf16.vlgmr.msrb.gmra.mxu3 %vm247_vm2, %v7611_v6  ;;  %v2636_v9 = vpop.xlane.xlu2 %2635 }
 0xf06   :  { %v2642_v48 = vmul.f32 %v2636_v9, %v6694_v49  ;;  %v2720_v17 = vmul.f32 %v7597_v60, %v2711_v27 }
 0xf07   :  { %v2683_v11 = vsub.f32 1.5, %v2682_v7 }
 0xf08   :  { %v6349_v35 = vpop.eup %6348  ;;  %v2648_v44 = vadd.f32 1e-06, %v2642_v48  ;;  %v2729_v29 = vadd.f32 %v7603_v56, %v2720_v17 }
 0xf09   :  { %v2684_v55 = vmul.f32 %v6347_v61, %v2683_v11  ;;  %v2690_v13 = vmul.f32 %v6349_v35, %v2647_v41  ;;  %vm2696_vm7 = vweird.f32 %v6349_v35  ;;  %v6178_v41 = vld [vmem:[%s8347_s12 + $0x4] ss:$0 sm:$0xff] }
 0xf0a   :  { %6350 = vrsqrt.f32 %v2648_v44  ;;  %vm2697_vm10 = vmor %vm2695_vm8, %vm2696_vm7  ;;  %vm2705_vm12 = vweird.f32 %v2648_v44 }
 0xf0b   :  { %v2688_v20 = vsel %vm2687_vm6, %v6347_v61, %v2684_v55  ;;  %v2691_v52 = vmul.f32 %v6349_v35, %v2690_v13 }
 0xf0c   :  { %v2712_v59 = vmul.f32 %v2688_v20, %v7537_v2 }
 0xf0d   :  { %v2692_v24 = vmul.f32 0.5, %v2691_v52 }
 0xf0e   :  { %v2721_v0 = vmul.f32 %v7597_v60, %v2712_v59 }
 0xf0f   :  { %v2693_v25 = vsub.f32 1.5, %v2692_v24 }
 0xf10   :  { %v6351_v26 = vpop.eup %6350  ;;  %v2730_v30 = vadd.f32 %v7603_v56, %v2721_v0 }
 0xf11   :  { %v2694_v2 = vmul.f32 %v6349_v35, %v2693_v25  ;;  %v2700_v16 = vmul.f32 %v6351_v26, %v2648_v44  ;;  %vm2706_vm11 = vweird.f32 %v6351_v26 }
 0xf12   :  { %v7656_v14 = vpack.c.bf16 %v2730_v30, %v2729_v29  ;;  %vm2707_vm13 = vmor %vm2705_vm12, %vm2706_vm11 }
 0xf13   :  { %v2701_v3 = vmul.f32 %v6351_v26, %v2700_v16  ;;  %v2698_v12 = vsel %vm2697_vm10, %v6349_v35, %v2694_v2  ;;  %v6097_v16 = vld [vmem:[%s8346_s11 + $0xb8] sm:$0xff] }
 0xf14   :  { %5475 = vmatmul.msk.bf16.gmra.mxu1 %vm247_vm2, %v7656_v14  ;;  %5503 = vmatmul.msk.bf16.gmra.mxu2 %vm247_vm2, %v7656_v14  ;;  %v2713_v38 = vmul.f32 %v2698_v12, %v7543_v31 }
 0xf15   :  { %v2702_v53 = vmul.f32 0.5, %v2701_v3  ;;  %5531 = vmatmul.msk.bf16.gmra.mxu3 %vm247_vm2, %v7656_v14  ;;  %v6096_v3 = vld [vmem:[%s8346_s11 + $0xb0] sm:$0xff] }
 0xf16   :  { %v2722_v50 = vmul.f32 %v7597_v60, %v2713_v38 }
 0xf17   :  { %v2703_v40 = vsub.f32 1.5, %v2702_v53 }
 0xf18   :  { %v2731_v63 = vadd.f32 %v7603_v56, %v2722_v50 }
 0xf19   :  { %v2704_v46 = vmul.f32 %v6351_v26, %v2703_v40  ;;  %v6095_v40 = vld [vmem:[%s8346_s11 + $0xa8] sm:$0xff] }
 0xf1b   :  { %v2708_v47 = vsel %vm2707_vm13, %v6351_v26, %v2704_v46  ;;  %v6094_v46 = vld [vmem:[%s8346_s11 + $0xa0] sm:$0xff] }
 0xf1c   :  { %v2714_v28 = vmul.f32 %v2708_v47, %v7549_v33 }
 0xf1e   :  { %v2723_v37 = vmul.f32 %v7597_v60, %v2714_v28 }
 0xf20   :  { %v2732_v21 = vadd.f32 %v7603_v56, %v2723_v37 }
 0xf22   :  { %v7670_v57 = vpack.c.bf16 %v2732_v21, %v2731_v63  ;;  %v6180_v63 = vld [vmem:[%s8345_s10 + $0x5] ss:$0 sm:$0xff] }
 0xf24   :  { %5476 = vmatmul.msk.bf16.gmra.mxu1 %vm247_vm2, %v7670_v57  ;;  %5504 = vmatmul.msk.bf16.gmra.mxu2 %vm247_vm2, %v7670_v57 }
 0xf25   :  { %5532 = vmatmul.msk.bf16.gmra.mxu3 %vm247_vm2, %v7670_v57 }
 0xf34   :  { %5566 = vmatmul.msk.bf16.vlgmr.msra.gmra.mxu2 %vm247_vm2, %v7611_v6 }
 0xf35   :  { %5594 = vmatmul.msk.bf16.vlgmr.msra.gmra.mxu3 %vm247_vm2, %v7611_v6 }
 0xf44   :  { %5567 = vmatmul.msk.bf16.gmra.mxu2 %vm247_vm2, %v7656_v14 }
 0xf45   :  { %5595 = vmatmul.msk.bf16.gmra.mxu3 %vm247_vm2, %v7656_v14 }
 0xf54   :  { %5568 = vmatmul.msk.bf16.gmra.mxu2 %vm247_vm2, %v7670_v57 }
 0xf55   :  { %5596 = vmatmul.msk.bf16.gmra.mxu3 %vm247_vm2, %v7670_v57 }
 0xf81   :  { %v2792_v22 = vpop.f32.mrf.mxu1 }
 0xf82   :  { %v2793_v29 = vadd.f32 %v6176_v10, %v2792_v22 }
 0xf87   :  { %v2854_v31 = vpop.f32.mrf.mxu2 }
 0xf88   :  { %v2916_v33 = vpop.f32.mrf.mxu3  ;;  %v2855_v59 = vadd.f32 %v6177_v39, %v2854_v31 }
 0xf89   :  { %v2917_v4 = vadd.f32 %v6178_v41, %v2916_v33  ;;  %v2794_v19 = vpop.f32.mrf.mxu1 }
 0xf8a   :  { %v2795_v26 = vadd.f32 %v6176_v10, %v2794_v19 }
 0xf8c   :  { %v2931_v2 = vpack.c.bf16 %v2795_v26, %v2793_v29 }
 0xf8f   :  { %v2856_v60 = vpop.f32.mrf.mxu2 }
 0xf90   :  { %v2918_v56 = vpop.f32.mrf.mxu3  ;;  %v2857_v52 = vadd.f32 %v6177_v39, %v2856_v60 }
 0xf91   :  { %v2919_v27 = vadd.f32 %v6178_v41, %v2918_v56  ;;  %v2797_v25 = vpop.f32.mrf.mxu1 }
 0xf92   :  { %v2934_v0 = vpack.c.bf16 %v2857_v52, %v2855_v59  ;;  %v2798_v47 = vadd.f32 %v6176_v10, %v2797_v25 }
 0xf93   :  { %v3048_v20 = vpack.c.bf16 %v2919_v27, %v2917_v4 }
 0xf94   :  { %v2947_v1 = vsel %vm617_vm9, %v2934_v0, 0 }
 0xf97   :  { %v2859_v5 = vpop.f32.mrf.mxu2 }
 0xf98   :  { %v2921_v36 = vpop.f32.mrf.mxu3  ;;  %v2860_v35 = vadd.f32 %v6177_v39, %v2859_v5 }
 0xf99   :  { %v2922_v11 = vadd.f32 %v6178_v41, %v2921_v36  ;;  %v2799_v12 = vpop.f32.mrf.mxu1 }
 0xf9a   :  { %v2800_v38 = vadd.f32 %v6176_v10, %v2799_v12 }
 0xf9c   :  { %v2932_v37 = vpack.c.bf16 %v2800_v38, %v2798_v47 }
 0xf9f   :  { %v2861_v45 = vpop.f32.mrf.mxu2 }
 0xfa0   :  { %v2923_v32 = vpop.f32.mrf.mxu3  ;;  %v2862_v62 = vadd.f32 %v6177_v39, %v2861_v45 }
 0xfa1   :  { %v2924_v9 = vadd.f32 %v6178_v41, %v2923_v32  ;;  %v2802_v28 = vpop.f32.mrf.mxu1 }
 0xfa2   :  { %v2935_v13 = vpack.c.bf16 %v2862_v62, %v2860_v35 }
 0xfa3   :  { %v3049_v44 = vpack.c.bf16 %v2924_v9, %v2922_v11 }
 0xfa4   :  { %v2950_v17 = vsel %vm617_vm9, %v2935_v13, 0 }
 0xfa7   :  { %v2864_v61 = vpop.f32.mrf.mxu2 }
 0xfa8   :  { %v2926_v51 = vpop.f32.mrf.mxu3  ;;  %v2865_v8 = vadd.f32 %v6177_v39, %v2864_v61  ;;  %v2803_v61 = vadd.f32 %v6176_v10, %v2802_v28 }
 0xfa9   :  { %v2927_v43 = vadd.f32 %v6178_v41, %v2926_v51  ;;  %v2804_v60 = vpop.f32.mrf.mxu1 }
 0xfaa   :  { %v2805_v45 = vadd.f32 %v6176_v10, %v2804_v60 }
 0xfaf   :  { %v2866_v18 = vpop.f32.mrf.mxu2 }
 0xfb0   :  { %v2867_v42 = vadd.f32 %v6177_v39, %v2866_v18  ;;  %v2928_v34 = vpop.f32.mrf.mxu3  ;;  %v2933_v39 = vpack.c.bf16 %v2805_v45, %v2803_v61 }
 0xfb1   :  { %v2929_v54 = vadd.f32 %v6178_v41, %v2928_v34 }
 0xfb2   :  { %v2936_v7 = vpack.c.bf16 %v2867_v42, %v2865_v8 }
 0xfb3   :  { %v3050_v48 = vpack.c.bf16 %v2929_v54, %v2927_v43 }
 0xfb4   :  { %v2953_v58 = vsel %vm617_vm9, %v2936_v7, 0 }
 0xfb5   :  { %3065 = vmatpush.bf16.msrb.mxu1 %v3050_v48  ;;  %2960 = vmatpush.bf16.xpose.msra.mxu0 %v2953_v58 }
 0xfb8   :  { %v3199_v55 = vpop.f32.mrf.mxu3 }
 0xfb9   :  { %3066 = vmatpush.bf16.msrb.mxu1 %v3049_v44  ;;  %v3200_v8 = vadd.f32 %v6180_v63, %v3199_v55 }
 0xfbd   :  { %3067 = vmatpush.bf16.msrb.mxu1 %v3048_v20  ;;  %2961 = vmatpush.bf16.xpose.msra.mxu0 %v2950_v17 }
 0xfc0   :  { %v3201_v24 = vpop.f32.mrf.mxu3 }
 0xfc1   :  { %v3202_v41 = vadd.f32 %v6180_v63, %v3201_v24 }
 0xfc3   :  { %v3279_v42 = vpack.c.bf16 %v3202_v41, %v3200_v8 }
 0xfc5   :  { %2962 = vmatpush.bf16.xpose.msra.mxu0 %v2947_v1  ;;  %v3292_v34 = vsel %vm617_vm9, %v3279_v42, 0  ;;  %v6181_v1 = vld [vmem:[%s8347_s12 + $0x5] ss:$0 sm:$0xff] }
 0xfc8   :  { %v3204_v30 = vpop.f32.mrf.mxu3 }
 0xfc9   :  { %v3205_v32 = vadd.f32 %v6180_v63, %v3204_v30 }
 0xfcc   :  { %5533 = vmatmul.msk.bf16.vlgmr.msra.gmra.mxu0 %vm617_vm9, %v2931_v2 }
 0xfcd   :  { %3256 = vmatpush.bf16.msrb.mxu0 %v6097_v16 }
 0xfd0   :  { %v3206_v53 = vpop.f32.mrf.mxu3 }
 0xfd1   :  { %3257 = vmatpush.bf16.msrb.mxu0 %v6096_v3  ;;  %v3207_v5 = vadd.f32 %v6180_v63, %v3206_v53 }
 0xfd3   :  { %v3280_v51 = vpack.c.bf16 %v3207_v5, %v3205_v32 }
 0xfd5   :  { %3258 = vmatpush.bf16.msrb.mxu0 %v6095_v40  ;;  %v3295_v18 = vsel %vm617_vm9, %v3280_v51, 0 }
 0xfd8   :  { %v3209_v50 = vpop.f32.mrf.mxu3 }
 0xfd9   :  { %3259 = vmatpush.bf16.msrb.mxu0 %v6094_v46  ;;  %v3210_v31 = vadd.f32 %v6180_v63, %v3209_v50 }
 0xfdc   :  { %5534 = vmatmul.msk.bf16.gmra.mxu0 %vm617_vm9, %v2932_v37 }
 0xfe0   :  { %v3211_v21 = vpop.f32.mrf.mxu3 }
 0xfe1   :  { %v3212_v33 = vadd.f32 %v6180_v63, %v3211_v21 }
 0xfe3   :  { %v3281_v56 = vpack.c.bf16 %v3212_v33, %v3210_v31 }
 0xfe5   :  { %v3298_v36 = vsel %vm617_vm9, %v3281_v56, 0 }
 0xfe6   :  { %3305 = vmatpush.bf16.xpose.msra.mxu1 %v3298_v36 }
 0xfec   :  { %5535 = vmatmul.msk.bf16.gmra.mxu0 %vm617_vm9, %v2933_v39 }
 0xfee   :  { %3306 = vmatpush.bf16.xpose.msra.mxu1 %v3295_v18 }
 0xff6   :  { %3307 = vmatpush.bf16.xpose.msra.mxu1 %v3292_v34 }
 0xffc   :  { %5622 = vmatmul.msk.bf16.vlgmr.msrb.gmra.mxu0 %vm247_vm2, %v7611_v6 }
0x100c   :  { %5623 = vmatmul.msk.bf16.gmra.mxu0 %vm247_vm2, %v7656_v14 }
0x101c   :  { %5624 = vmatmul.msk.bf16.gmra.mxu0 %vm247_vm2, %v7670_v57 }
0x1049   :  { %v2964_v22 = vpop.f32.mrf.mxu0 }
0x104a   :  { %v2965_v43 = vadd.f32 %v2964_v22, %v6926_v15 }
0x104c   :  { %v2979_v54 = vsel %vm193_vm0, %v2965_v43, -inf }
0x104d   :  { %2980 = vmax.xlane.f32.xlu0 %v2979_v54 }
0x1051   :  { %v2966_v7 = vpop.f32.mrf.mxu0 }
0x1052   :  { %v2967_v9 = vadd.f32 %v2966_v7, %v6926_v15 }
0x1054   :  { %v2982_v48 = vsel %vm193_vm0, %v2967_v9, -inf }
0x1055   :  { %2983 = vmax.xlane.f32.xlu1 %v2982_v48 }
0x1059   :  { %v2969_v62 = vpop.f32.mrf.mxu0 }
0x105a   :  { %v2970_v58 = vadd.f32 %v2969_v62, %v6926_v15 }
0x105c   :  { %v2985_v11 = vsel %vm193_vm0, %v2970_v58, -inf }
0x105d   :  { %2986 = vmax.xlane.f32.xlu2 %v2985_v11 }
0x1061   :  { %v2971_v35 = vpop.f32.mrf.mxu0 }
0x1062   :  { %v2972_v27 = vadd.f32 %v2971_v35, %v6932_v23 }
0x1064   :  { %v2988_v44 = vsel %vm193_vm0, %v2972_v27, -inf }
0x1065   :  { %2989 = vmax.xlane.f32.xlu0 %v2988_v44 }
0x1069   :  { %v2974_v55 = vpop.f32.mrf.mxu0 }
0x106a   :  { %v2975_v13 = vadd.f32 %v2974_v55, %v6932_v23 }
0x106c   :  { %v2991_v4 = vsel %vm193_vm0, %v2975_v13, -inf }
0x106d   :  { %2992 = vmax.xlane.f32.xlu1 %v2991_v4 }
0x1071   :  { %v2976_v19 = vpop.f32.mrf.mxu0 }
0x1072   :  { %v2977_v20 = vadd.f32 %v2976_v19, %v6932_v23 }
0x1074   :  { %v2994_v52 = vsel %vm193_vm0, %v2977_v20, -inf }
0x1075   :  { %2995 = vmax.xlane.f32.xlu2 %v2994_v52 }
0x1079   :  { %v3261_v17 = vpop.f32.mrf.mxu0 }
0x107a   :  { %v3262_v53 = vadd.f32 %v6181_v1, %v3261_v17 }
0x1081   :  { %v3263_v59 = vpop.f32.mrf.mxu0 }
0x1082   :  { %v3264_v3 = vadd.f32 %v6181_v1, %v3263_v59 }
0x1084   :  { %v3393_v40 = vpack.c.bf16 %v3264_v3, %v3262_v53 }
0x1089   :  { %v3266_v24 = vpop.f32.mrf.mxu0 }
0x108a   :  { %v3267_v16 = vadd.f32 %v6181_v1, %v3266_v24 }
0x1091   :  { %v3268_v0 = vpop.f32.mrf.mxu0 }
0x1092   :  { %v3269_v30 = vadd.f32 %v6181_v1, %v3268_v0 }
0x1094   :  { %v3394_v12 = vpack.c.bf16 %v3269_v30, %v3267_v16  ;;  %v6179_v16 = vld [vmem:[%s8343_s8 + $0x5] ss:$0 sm:$0xff] }
0x1099   :  { %v3271_v10 = vpop.f32.mrf.mxu0 }
0x109a   :  { %v3272_v26 = vadd.f32 %v6181_v1, %v3271_v10  ;;  %v3137_v10 = vpop.f32.mrf.mxu2 }
0x109b   :  { %v3138_v53 = vadd.f32 %v6179_v16, %v3137_v10 }
0x10a1   :  { %v3273_v25 = vpop.f32.mrf.mxu0 }
0x10a2   :  { %v3274_v29 = vadd.f32 %v6181_v1, %v3273_v25 }
0x10a4   :  { %v3395_v2 = vpack.c.bf16 %v3274_v29, %v3272_v26 }
0x10a6   :  { %3410 = vmatpush.bf16.msrb.mxu2 %v3395_v2  ;;  %v3139_v2 = vpop.f32.mrf.mxu2 }
0x10aa   :  { %3411 = vmatpush.bf16.msrb.mxu2 %v3394_v12  ;;  %v3140_v12 = vadd.f32 %v6179_v16, %v3139_v2 }
0x10ae   :  { %3412 = vmatpush.bf16.msrb.mxu2 %v3393_v40  ;;  %v3142_v3 = vpop.f32.mrf.mxu2  ;;  %v3276_v40 = vpack.c.bf16 %v3140_v12, %v3138_v53 }
0x10c0   :  { %v2981_v38 = vpop.xlane.xlu0 %2980 }
0x10c1   :  { %v2997_v46 = vsub.f32 %v2965_v43, %v2981_v38  ;;  %v6102_v38 = vld [vmem:[%s8378_s7 + $0xd8] sm:$0xff] }
0x10c3   :  { %v3003_v47 = vmul.f32 1.442695, %v2997_v46  ;;  %v6101_v46 = vld [vmem:[%s8378_s7 + $0xd0] sm:$0xff] }
0x10c5   :  { %6352 = vpow2.f32 %v3003_v47  ;;  %v3144_v47 = vpop.f32.mrf.mxu2 }
0x10c8   :  { %v2984_v50 = vpop.xlane.xlu1 %2983 }
0x10c9   :  { %v2998_v28 = vsub.f32 %v2967_v9, %v2984_v50  ;;  %v6100_v50 = vld [vmem:[%s8378_s7 + $0xc8] sm:$0xff] }
0x10cb   :  { %v6353_v37 = vpop.eup %6352  ;;  %v3005_v63 = vmul.f32 1.442695, %v2998_v28  ;;  %v3145_v28 = vadd.f32 %v6179_v16, %v3144_v47 }
0x10cc   :  { %v3015_v21 = vsel %vm193_vm0, %v6353_v37, 0.0 }
0x10cd   :  { %6354 = vpow2.f32 %v3005_v63  ;;  %3016 = vadd.xlane.f32.xlu0 %v3015_v21  ;;  %v3143_v63 = vadd.f32 %v6179_v16, %v3142_v3  ;;  %v3147_v21 = vpop.f32.mrf.mxu2 }
0x10d0   :  { %v2987_v31 = vpop.xlane.xlu2 %2986 }
0x10d1   :  { %v2999_v33 = vsub.f32 %v2970_v58, %v2987_v31  ;;  %v3277_v31 = vpack.c.bf16 %v3145_v28, %v3143_v63 }
0x10d3   :  { %v6355_v60 = vpop.eup %6354  ;;  %v3007_v56 = vmul.f32 1.442695, %v2999_v33 }
0x10d4   :  { %v3018_v5 = vsel %vm193_vm0, %v6355_v60, 0.0 }
0x10d5   :  { %6356 = vpow2.f32 %v3007_v56  ;;  %3019 = vadd.xlane.f32.xlu1 %v3018_v5  ;;  %v3149_v33 = vpop.f32.mrf.mxu2  ;;  %v3148_v56 = vadd.f32 %v6179_v16, %v3147_v21 }
0x10d8   :  { %v2990_v36 = vpop.xlane.xlu0 %2989 }
0x10d9   :  { %v3000_v45 = vsub.f32 %v2972_v27, %v2990_v36  ;;  %v6085_v36 = vld [vmem:[%s8348_s13 + $0x20] sm:$0xff] }
0x10da   :  { %3496 = vmatpush.bf16.msra.mxu0 %v6085_v36 }
0x10db   :  { %v6357_v32 = vpop.eup %6356  ;;  %v3009_v61 = vmul.f32 1.442695, %v3000_v45 }
0x10dc   :  { %v3021_v51 = vsel %vm193_vm0, %v6357_v32, 0.0 }
0x10dd   :  { %6358 = vpow2.f32 %v3009_v61  ;;  %3022 = vadd.xlane.f32.xlu2 %v3021_v51 }
0x10e0   :  { %v2993_v39 = vpop.xlane.xlu1 %2992 }
0x10e1   :  { %v3001_v41 = vsub.f32 %v2975_v13, %v2993_v39 }
0x10e3   :  { %v6359_v18 = vpop.eup %6358  ;;  %v3011_v8 = vmul.f32 1.442695, %v3001_v41 }
0x10e4   :  { %v3024_v42 = vsel %vm193_vm0, %v6359_v18, 0.0 }
0x10e5   :  { %6360 = vpow2.f32 %v3011_v8  ;;  %3025 = vadd.xlane.f32.xlu0 %v3024_v42 }
0x10e8   :  { %v2996_v34 = vpop.xlane.xlu2 %2995 }
0x10e9   :  { %v3002_v22 = vsub.f32 %v2977_v20, %v2996_v34 }
0x10eb   :  { %v6361_v43 = vpop.eup %6360  ;;  %v3013_v54 = vmul.f32 1.442695, %v3002_v22 }
0x10ec   :  { %v3027_v7 = vsel %vm193_vm0, %v6361_v43, 0.0 }
0x10ed   :  { %6362 = vpow2.f32 %v3013_v54  ;;  %3028 = vadd.xlane.f32.xlu1 %v3027_v7 }
0x10f3   :  { %v6363_v9 = vpop.eup %6362 }
0x10f4   :  { %v3030_v48 = vsel %vm193_vm0, %v6363_v9, 0.0 }
0x10f5   :  { %3031 = vadd.xlane.f32.xlu2 %v3030_v48 }
0x1140   :  { %v3017_v62 = vpop.xlane.xlu0 %3016 }
0x1141   :  { %6364 = vrcp.f32 %v3017_v62 }
0x1147   :  { %v6365_v11 = vpop.eup %6364 }
0x1148   :  { %v3020_v58 = vpop.xlane.xlu1 %3019  ;;  %v3039_v27 = vmul.f32 %v6365_v11, %v6353_v37  ;;  %v6099_v37 = vld [vmem:[%s8378_s7 + $0xc0] sm:$0xff] }
0x1149   :  { %6366 = vrcp.f32 %v3020_v58 }
0x114f   :  { %v6367_v35 = vpop.eup %6366 }
0x1150   :  { %v3040_v44 = vmul.f32 %v6367_v35, %v6355_v60  ;;  %v3023_v13 = vpop.xlane.xlu2 %3022  ;;  %v3150_v60 = vadd.f32 %v6179_v16, %v3149_v33 }
0x1151   :  { %6368 = vrcp.f32 %v3023_v13 }
0x1152   :  { %v3045_v55 = vpack.c.bf16 %v3040_v44, %v3039_v27  ;;  %v3278_v5 = vpack.c.bf16 %v3150_v60, %v3148_v56 }
0x1154   :  { %5536 = vmatmul.msk.bf16.vlgmr.msrb.gmra.mxu1 %vm193_vm0, %v3045_v55 }
0x1155   :  { %3555 = vmatpush.bf16.msrb.mxu1 %v6102_v38 }
0x1157   :  { %v6369_v19 = vpop.eup %6368 }
0x1158   :  { %v3026_v4 = vpop.xlane.xlu0 %3025  ;;  %v3041_v52 = vmul.f32 %v6369_v19, %v6357_v32 }
0x1159   :  { %6370 = vrcp.f32 %v3026_v4  ;;  %3556 = vmatpush.bf16.msrb.mxu1 %v6101_v46 }
0x115d   :  { %3557 = vmatpush.bf16.msrb.mxu1 %v6100_v50 }
0x115f   :  { %v6371_v20 = vpop.eup %6370 }
0x1160   :  { %v3042_v17 = vmul.f32 %v6371_v20, %v6359_v18  ;;  %v3029_v24 = vpop.xlane.xlu1 %3028 }
0x1161   :  { %6372 = vrcp.f32 %v3029_v24  ;;  %3558 = vmatpush.bf16.msrb.mxu1 %v6099_v37 }
0x1162   :  { %v3046_v59 = vpack.c.bf16 %v3042_v17, %v3041_v52 }
0x1164   :  { %5537 = vmatmul.msk.bf16.gmra.mxu1 %vm193_vm0, %v3046_v59 }
0x1167   :  { %v6373_v1 = vpop.eup %6372 }
0x1168   :  { %v3032_v0 = vpop.xlane.xlu2 %3031  ;;  %v3043_v26 = vmul.f32 %v6373_v1, %v6361_v43 }
0x1169   :  { %6374 = vrcp.f32 %v3032_v0 }
0x116f   :  { %v6375_v25 = vpop.eup %6374 }
0x1170   :  { %v3044_v29 = vmul.f32 %v6375_v25, %v6363_v9 }
0x1172   :  { %v3047_v30 = vpack.c.bf16 %v3044_v29, %v3043_v26 }
0x1174   :  { %5538 = vmatmul.msk.bf16.gmra.mxu1 %vm193_vm0, %v3047_v30 }
0x1184   :  { %5625 = vmatmul.msk.bf16.vlgmr.msra.gmra.mxu1 %vm617_vm9, %v3276_v40 }
0x1194   :  { %5626 = vmatmul.msk.bf16.gmra.mxu1 %vm617_vm9, %v3277_v31 }
0x11a4   :  { %5627 = vmatmul.msk.bf16.gmra.mxu1 %vm617_vm9, %v3278_v5 }
0x11b4   :  { %5672 = vmatmul.msk.bf16.vlgmr.msrb.gmra.mxu1 %vm247_vm2, %v7611_v6 }
0x11c4   :  { %5673 = vmatmul.msk.bf16.gmra.mxu1 %vm247_vm2, %v7656_v14 }
0x11d1   :  { %v3069_v45 = vpop.f32.mrf.mxu1 }
0x11d4   :  { %5674 = vmatmul.msk.bf16.gmra.mxu1 %vm247_vm2, %v7670_v57 }
0x11d9   :  { %v3071_v32 = vpop.f32.mrf.mxu1 }
0x11da   :  { %v3084_v61 = vpack.c.bf16 %v3071_v32, %v3069_v45 }
0x11dc   :  { %5644 = vmatmul.msk.bf16.vlgmr.msra.gmra.mxu0 %vm617_vm9, %v3084_v61 }
0x11e1   :  { %v3074_v51 = vpop.f32.mrf.mxu1 }
0x11e9   :  { %v3076_v39 = vpop.f32.mrf.mxu1 }
0x11ea   :  { %v3085_v41 = vpack.c.bf16 %v3076_v39, %v3074_v51 }
0x11ec   :  { %5645 = vmatmul.msk.bf16.gmra.mxu0 %vm617_vm9, %v3085_v41  ;;  %v6106_v41 = vld [vmem:[%s8344_s9 + $0xd8] sm:$0xff] }
0x11ed   :  { %3617 = vmatpush.bf16.msra.mxu2 %v6106_v41 }
0x11f1   :  { %v3079_v18 = vpop.f32.mrf.mxu1 }
0x11f9   :  { %v3081_v8 = vpop.f32.mrf.mxu1 }
0x11fa   :  { %v3086_v42 = vpack.c.bf16 %v3081_v8, %v3079_v18 }
0x11fc   :  { %5646 = vmatmul.msk.bf16.gmra.mxu0 %vm617_vm9, %v3086_v42  ;;  %v6105_v42 = vld [vmem:[%s8344_s9 + $0xd0] sm:$0xff] }
0x11fd   :  { %3618 = vmatpush.bf16.msra.mxu2 %v6105_v42 }
0x1201   :  { %v3309_v34 = vpop.f32.mrf.mxu1 }
0x1202   :  { %v3310_v22 = vadd.f32 %v3309_v34, %v6926_v15  ;;  %v6104_v34 = vld [vmem:[%s8344_s9 + $0xc8] sm:$0xff] }
0x1203   :  { %3619 = vmatpush.bf16.msra.mxu2 %v6104_v34 }
0x1204   :  { %v3324_v43 = vsel %vm193_vm0, %v3310_v22, -inf }
0x1205   :  { %3325 = vmax.xlane.f32.xlu0 %v3324_v43  ;;  %v6103_v43 = vld [vmem:[%s8344_s9 + $0xc0] sm:$0xff] }
0x1207   :  { %3620 = vmatpush.bf16.msra.mxu2 %v6103_v43  ;;  %v6118_v43 = vld [vmem:[%s8344_s9 + $0xf0] sm:$0xff] }
0x1209   :  { %v3311_v54 = vpop.f32.mrf.mxu1 }
0x120a   :  { %v3312_v7 = vadd.f32 %v3311_v54, %v6926_v15 }
0x120c   :  { %v3327_v9 = vsel %vm193_vm0, %v3312_v7, -inf }
0x120d   :  { %3328 = vmax.xlane.f32.xlu1 %v3327_v9 }
0x1211   :  { %v3314_v48 = vpop.f32.mrf.mxu1 }
0x1212   :  { %v3315_v62 = vadd.f32 %v3314_v48, %v6926_v15 }
0x1214   :  { %v3330_v58 = vsel %vm193_vm0, %v3315_v62, -inf }
0x1215   :  { %3331 = vmax.xlane.f32.xlu2 %v3330_v58 }
0x1219   :  { %v3316_v11 = vpop.f32.mrf.mxu1 }
0x121a   :  { %v3317_v35 = vadd.f32 %v3316_v11, %v6932_v23 }
0x121c   :  { %v3333_v27 = vsel %vm193_vm0, %v3317_v35, -inf }
0x121d   :  { %3334 = vmax.xlane.f32.xlu0 %v3333_v27 }
0x1221   :  { %v3319_v44 = vpop.f32.mrf.mxu1 }
0x1222   :  { %v3320_v55 = vadd.f32 %v3319_v44, %v6932_v23 }
0x1224   :  { %v3336_v13 = vsel %vm193_vm0, %v3320_v55, -inf }
0x1225   :  { %3337 = vmax.xlane.f32.xlu1 %v3336_v13 }
0x1229   :  { %v3321_v4 = vpop.f32.mrf.mxu1 }
0x122a   :  { %v3322_v19 = vadd.f32 %v3321_v4, %v6932_v23  ;;  %v6098_v4 = vld [vmem:[%s8348_s13 + $0x28] sm:$0xff] }
0x122b   :  { %3457 = vmatpush.bf16.msrb.mxu3 %v6098_v4 }
0x122c   :  { %v3339_v20 = vsel %vm193_vm0, %v3322_v19, -inf }
0x122d   :  { %3340 = vmax.xlane.f32.xlu2 %v3339_v20 }
0x1278   :  { %v3326_v52 = vpop.xlane.xlu0 %3325 }
0x1279   :  { %v3342_v17 = vsub.f32 %v3310_v22, %v3326_v52 }
0x127b   :  { %v3348_v59 = vmul.f32 1.442695, %v3342_v17  ;;  %v6110_v17 = vld [vmem:[%s8346_s11 + $0xd8] sm:$0xff] }
0x127c   :  { %3679 = vmatpush.bf16.msra.mxu3 %v6110_v17 }
0x127d   :  { %6376 = vpow2.f32 %v3348_v59  ;;  %v6109_v59 = vld [vmem:[%s8346_s11 + $0xd0] sm:$0xff] }
0x1280   :  { %v3329_v24 = vpop.xlane.xlu1 %3328  ;;  %3680 = vmatpush.bf16.msra.mxu3 %v6109_v59  ;;  %v7904_v59 = vpop.f32.mrf.mxu0 }
0x1281   :  { %v3343_v0 = vsub.f32 %v3312_v7, %v3329_v24 }
0x1283   :  { %v6377_v10 = vpop.eup %6376  ;;  %v3350_v1 = vmul.f32 1.442695, %v3343_v0  ;;  %v6108_v0 = vld [vmem:[%s8346_s11 + $0xc8] sm:$0xff] }
0x1284   :  { %v3360_v25 = vsel %vm193_vm0, %v6377_v10, 0.0  ;;  %3681 = vmatpush.bf16.msra.mxu3 %v6108_v0 }
0x1285   :  { %6378 = vpow2.f32 %v3350_v1  ;;  %3361 = vadd.xlane.f32.xlu0 %v3360_v25 }
0x1288   :  { %v3332_v26 = vpop.xlane.xlu2 %3331  ;;  %v7906_v0 = vpop.f32.mrf.mxu0 }
0x1289   :  { %v3344_v29 = vsub.f32 %v3315_v62, %v3332_v26 }
0x128b   :  { %v6379_v30 = vpop.eup %6378  ;;  %v3352_v2 = vmul.f32 1.442695, %v3344_v29 }
0x128c   :  { %v3363_v16 = vsel %vm193_vm0, %v6379_v30, 0.0 }
0x128d   :  { %6380 = vpow2.f32 %v3352_v2  ;;  %3364 = vadd.xlane.f32.xlu1 %v3363_v16 }
0x1290   :  { %v3335_v3 = vpop.xlane.xlu0 %3334 }
0x1291   :  { %v3345_v12 = vsub.f32 %v3317_v35, %v3335_v3  ;;  %v6115_v3 = vld [vmem:[%s8378_s7 + $0xf8] sm:$0xff] }
0x1293   :  { %v6381_v53 = vpop.eup %6380  ;;  %v3354_v40 = vmul.f32 1.442695, %v3345_v12  ;;  %v6114_v12 = vld [vmem:[%s8378_s7 + $0xf0] sm:$0xff] }
0x1294   :  { %v3366_v38 = vsel %vm193_vm0, %v6381_v53, 0.0 }
0x1295   :  { %6382 = vpow2.f32 %v3354_v40  ;;  %3367 = vadd.xlane.f32.xlu2 %v3366_v38  ;;  %v6113_v40 = vld [vmem:[%s8378_s7 + $0xe8] sm:$0xff]  ;;  %v6112_v38 = vld [vmem:[%s8378_s7 + $0xe0] sm:$0xff] }
0x1298   :  { %v3338_v46 = vpop.xlane.xlu1 %3337 }
0x1299   :  { %v3346_v47 = vsub.f32 %v3320_v55, %v3338_v46 }
0x129b   :  { %v6383_v50 = vpop.eup %6382  ;;  %v3356_v28 = vmul.f32 1.442695, %v3346_v47 }
0x129c   :  { %v3369_v37 = vsel %vm193_vm0, %v6383_v50, 0.0 }
0x129d   :  { %6384 = vpow2.f32 %v3356_v28  ;;  %3370 = vadd.xlane.f32.xlu0 %v3369_v37 }
0x12a0   :  { %v3341_v63 = vpop.xlane.xlu2 %3340 }
0x12a1   :  { %v3347_v21 = vsub.f32 %v3322_v19, %v3341_v63 }
0x12a3   :  { %v6385_v31 = vpop.eup %6384  ;;  %v3358_v33 = vmul.f32 1.442695, %v3347_v21  ;;  %v3560_v21 = vpop.f32.mrf.mxu1 }
0x12a4   :  { %v3372_v60 = vsel %vm193_vm0, %v6385_v31, 0.0 }
0x12a5   :  { %6386 = vpow2.f32 %v3358_v33  ;;  %3373 = vadd.xlane.f32.xlu1 %v3372_v60 }
0x12ab   :  { %v6387_v56 = vpop.eup %6386 }
0x12ac   :  { %v3375_v5 = vsel %vm193_vm0, %v6387_v56, 0.0 }
0x12ad   :  { %3376 = vadd.xlane.f32.xlu2 %v3375_v5 }
0x12f8   :  { %v3362_v36 = vpop.xlane.xlu0 %3361 }
0x12f9   :  { %6388 = vrcp.f32 %v3362_v36  ;;  %v3562_v36 = vpop.f32.mrf.mxu1 }
0x12ff   :  { %v6389_v32 = vpop.eup %6388 }
0x1300   :  { %v3365_v45 = vpop.xlane.xlu1 %3364  ;;  %v3384_v51 = vmul.f32 %v6389_v32, %v6377_v10  ;;  %v6107_v10 = vld [vmem:[%s8346_s11 + $0xc0] sm:$0xff] }
0x1301   :  { %6390 = vrcp.f32 %v3365_v45  ;;  %3682 = vmatpush.bf16.msra.mxu3 %v6107_v10 }
0x1307   :  { %v6391_v61 = vpop.eup %6390 }
0x1308   :  { %v3385_v39 = vmul.f32 %v6391_v61, %v6379_v30  ;;  %v3368_v8 = vpop.xlane.xlu2 %3367 }
0x1309   :  { %6392 = vrcp.f32 %v3368_v8 }
0x130a   :  { %v3390_v18 = vpack.c.bf16 %v3385_v39, %v3384_v51  ;;  %v6182_v39 = vld [vmem:[%s8343_s8 + $0x6] ss:$0 sm:$0xff] }
0x130b   :  { %v3563_v8 = vadd.f32 %v6182_v39, %v3562_v36  ;;  %v3561_v42 = vadd.f32 %v6182_v39, %v3560_v21 }
0x130c   :  { %5628 = vmatmul.msk.bf16.vlgmr.msrb.gmra.mxu2 %vm193_vm0, %v3390_v18  ;;  %v3565_v18 = vpop.f32.mrf.mxu1 }
0x130d   :  { %v3699_v34 = vpack.c.bf16 %v3563_v8, %v3561_v42 }
0x130f   :  { %v6393_v54 = vpop.eup %6392 }
0x1310   :  { %v3371_v22 = vpop.xlane.xlu0 %3370  ;;  %v3386_v9 = vmul.f32 %v6393_v54, %v6381_v53 }
0x1311   :  { %6394 = vrcp.f32 %v3371_v22  ;;  %v6119_v22 = vld [vmem:[%s8344_s9 + $0xf8] sm:$0xff] }
0x1314   :  { %v3567_v54 = vpop.f32.mrf.mxu1 }
0x1317   :  { %v6395_v7 = vpop.eup %6394 }
0x1318   :  { %v3387_v48 = vmul.f32 %v6395_v7, %v6383_v50  ;;  %v3374_v58 = vpop.xlane.xlu1 %3373  ;;  %v6183_v50 = vld [vmem:[%s8345_s10 + $0x6] ss:$0 sm:$0xff]  ;;  %v6117_v7 = vld [vmem:[%s8344_s9 + $0xe8] sm:$0xff] }
0x1319   :  { %6396 = vrcp.f32 %v3374_v58 }
0x131a   :  { %v3391_v62 = vpack.c.bf16 %v3387_v48, %v3386_v9  ;;  %v3568_v9 = vadd.f32 %v6182_v39, %v3567_v54  ;;  %v6116_v48 = vld [vmem:[%s8344_s9 + $0xe0] sm:$0xff] }
0x131c   :  { %5629 = vmatmul.msk.bf16.gmra.mxu2 %vm193_vm0, %v3391_v62  ;;  %v3566_v62 = vadd.f32 %v6182_v39, %v3565_v18  ;;  %v3570_v58 = vpop.f32.mrf.mxu1 }
0x131f   :  { %v6397_v35 = vpop.eup %6396 }
0x1320   :  { %v3377_v11 = vpop.xlane.xlu2 %3376  ;;  %v3388_v44 = vmul.f32 %v6397_v35, %v6385_v31 }
0x1321   :  { %6398 = vrcp.f32 %v3377_v11  ;;  %v3700_v11 = vpack.c.bf16 %v3568_v9, %v3566_v62 }
0x1324   :  { %v3572_v35 = vpop.f32.mrf.mxu1 }
0x1327   :  { %v6399_v27 = vpop.eup %6398 }
0x1328   :  { %v3389_v55 = vmul.f32 %v6399_v27, %v6387_v56 }
0x132a   :  { %v3392_v13 = vpack.c.bf16 %v3389_v55, %v3388_v44  ;;  %v3573_v44 = vadd.f32 %v6182_v39, %v3572_v35  ;;  %v3571_v55 = vadd.f32 %v6182_v39, %v3570_v58  ;;  %v6186_v58 = vld [vmem:[%s8345_s10 + $0x7] ss:$0 sm:$0xff] }
0x132c   :  { %5630 = vmatmul.msk.bf16.gmra.mxu2 %vm193_vm0, %v3392_v13  ;;  %v3701_v13 = vpack.c.bf16 %v3573_v44, %v3571_v55 }
0x133c   :  { %5700 = vmatmul.msk.bf16.vlgmr.msra.gmra.mxu2 %vm247_vm2, %v7611_v6 }
0x134c   :  { %5701 = vmatmul.msk.bf16.gmra.mxu2 %vm247_vm2, %v7656_v14 }
0x135c   :  { %5702 = vmatmul.msk.bf16.gmra.mxu2 %vm247_vm2, %v7670_v57 }
0x138f   :  { %v3414_v19 = vpop.f32.mrf.mxu2 }
0x1397   :  { %v3416_v20 = vpop.f32.mrf.mxu2 }
0x1398   :  { %v3429_v52 = vpack.c.bf16 %v3416_v20, %v3414_v19 }
0x139a   :  { %5637 = vmatmul.msk.bf16.vlgmr.msrb.gmra.mxu3 %vm617_vm9, %v3429_v52 }
0x139b   :  { %3945 = vmatpush.bf16.msrb.mxu3 %v6115_v3 }
0x139f   :  { %v3419_v24 = vpop.f32.mrf.mxu2  ;;  %3946 = vmatpush.bf16.msrb.mxu3 %v6114_v12 }
0x13a3   :  { %3947 = vmatpush.bf16.msrb.mxu3 %v6113_v40 }
0x13a7   :  { %v3421_v1 = vpop.f32.mrf.mxu2  ;;  %3948 = vmatpush.bf16.msrb.mxu3 %v6112_v38 }
0x13a8   :  { %v3430_v25 = vpack.c.bf16 %v3421_v1, %v3419_v24  ;;  %v7910_v1 = vpop.f32.mrf.mxu0 }
0x13aa   :  { %5638 = vmatmul.msk.bf16.gmra.mxu3 %vm617_vm9, %v3430_v25 }
0x13af   :  { %v3424_v26 = vpop.f32.mrf.mxu2 }
0x13b7   :  { %v3426_v29 = vpop.f32.mrf.mxu2 }
0x13b8   :  { %v3431_v30 = vpack.c.bf16 %v3426_v29, %v3424_v26  ;;  %v7912_v26 = vpop.f32.mrf.mxu0 }
0x13ba   :  { %5639 = vmatmul.msk.bf16.gmra.mxu3 %vm617_vm9, %v3431_v30 }
0x13bf   :  { %v3622_v2 = vpop.f32.mrf.mxu2 }
0x13c0   :  { %v3623_v61 = vadd.f32 %v6183_v50, %v3622_v2  ;;  %v7914_v2 = vpop.f32.mrf.mxu0 }
0x13c7   :  { %v3624_v16 = vpop.f32.mrf.mxu2 }
0x13c8   :  { %v3625_v45 = vadd.f32 %v6183_v50, %v3624_v16  ;;  %v6184_v16 = vld [vmem:[%s8347_s12 + $0x6] ss:$0 sm:$0xff] }
0x13ca   :  { %5728 = vmatmul.msk.bf16.vlgmr.msra.gmra.mxu3 %vm247_vm2, %v7611_v6  ;;  %v3702_v51 = vpack.c.bf16 %v3625_v45, %v3623_v61 }
0x13cc   :  { %v3715_v41 = vsel %vm617_vm9, %v3702_v51, 0 }
0x13cf   :  { %v3627_v53 = vpop.f32.mrf.mxu2 }
0x13d0   :  { %v3628_v56 = vadd.f32 %v6183_v50, %v3627_v53 }
0x13d7   :  { %v3629_v46 = vpop.f32.mrf.mxu2 }
0x13d8   :  { %v3630_v33 = vadd.f32 %v6183_v50, %v3629_v46  ;;  %v7919_v46 = vpop.f32.mrf.mxu0 }
0x13da   :  { %5729 = vmatmul.msk.bf16.gmra.mxu3 %vm247_vm2, %v7656_v14  ;;  %v3703_v5 = vpack.c.bf16 %v3630_v33, %v3628_v56 }
0x13dc   :  { %v3718_v32 = vsel %vm617_vm9, %v3703_v5, 0 }
0x13df   :  { %v3632_v47 = vpop.f32.mrf.mxu2 }
0x13e0   :  { %v3633_v37 = vadd.f32 %v6183_v50, %v3632_v47 }
0x13e7   :  { %v3634_v28 = vpop.f32.mrf.mxu2 }
0x13e8   :  { %v3635_v63 = vadd.f32 %v6183_v50, %v3634_v28 }
0x13ea   :  { %v3704_v31 = vpack.c.bf16 %v3635_v63, %v3633_v37  ;;  %5730 = vmatmul.msk.bf16.gmra.mxu3 %vm247_vm2, %v7670_v57 }
0x13ec   :  { %v3721_v60 = vsel %vm617_vm9, %v3704_v31, 0 }
0x13ed   :  { %3728 = vmatpush.bf16.xpose.msrb.mxu0 %v3721_v60 }
0x13f5   :  { %3729 = vmatpush.bf16.xpose.msrb.mxu0 %v3718_v32 }
0x13fa   :  { %5771 = vmatmul.msk.bf16.vlgmr.msrb.gmra.mxu3 %vm247_vm2, %v7611_v6 }
0x13fd   :  { %3730 = vmatpush.bf16.xpose.msrb.mxu0 %v3715_v41 }
0x1404   :  { %5731 = vmatmul.msk.bf16.vlgmr.msrb.gmra.mxu0 %vm617_vm9, %v3699_v34 }
0x1405   :  { %4007 = vmatpush.bf16.msra.mxu0 %v6119_v22 }
0x1409   :  { %4008 = vmatpush.bf16.msra.mxu0 %v6118_v43 }
0x140a   :  { %5772 = vmatmul.msk.bf16.gmra.mxu3 %vm247_vm2, %v7656_v14 }
0x140d   :  { %4009 = vmatpush.bf16.msra.mxu0 %v6117_v7  ;;  %v6111_v7 = vld [vmem:[%s8348_s13 + $0x30] sm:$0xff] }
0x140e   :  { %3880 = vmatpush.bf16.msrb.mxu2 %v6111_v7 }
0x1411   :  { %4010 = vmatpush.bf16.msra.mxu0 %v6116_v48 }
0x1414   :  { %5732 = vmatmul.msk.bf16.gmra.mxu0 %vm617_vm9, %v3700_v11 }
0x141a   :  { %5773 = vmatmul.msk.bf16.gmra.mxu3 %vm247_vm2, %v7670_v57 }
0x141d   :  { %v7887_v27 = vpop.f32.mrf.mxu3 }
0x1424   :  { %5733 = vmatmul.msk.bf16.gmra.mxu0 %vm617_vm9, %v3701_v13 }
0x1425   :  { %v7890_v4 = vpop.f32.mrf.mxu3 }
0x142d   :  { %v7892_v19 = vpop.f32.mrf.mxu3 }
0x1434   :  { %5799 = vmatmul.msk.bf16.vlgmr.msra.gmra.mxu0 %vm247_vm2, %v7611_v6 }
0x1435   :  { %v7896_v20 = vpop.f32.mrf.mxu3 }
0x143d   :  { %v7898_v52 = vpop.f32.mrf.mxu3 }
0x1444   :  { %5800 = vmatmul.msk.bf16.gmra.mxu0 %vm247_vm2, %v7656_v14 }
0x1445   :  { %v7902_v17 = vpop.f32.mrf.mxu3 }
0x144d   :  { %v3684_v24 = vpop.f32.mrf.mxu3 }
0x144e   :  { %v3685_v37 = vadd.f32 %v6184_v16, %v3684_v24 }
0x1454   :  { %5801 = vmatmul.msk.bf16.gmra.mxu0 %vm247_vm2, %v7670_v57 }
0x1455   :  { %v3686_v10 = vpop.f32.mrf.mxu3 }
0x1456   :  { %v3687_v50 = vadd.f32 %v6184_v16, %v3686_v10 }
0x1458   :  { %v3816_v63 = vpack.c.bf16 %v3687_v50, %v3685_v37 }
0x145d   :  { %v3689_v25 = vpop.f32.mrf.mxu3 }
0x145e   :  { %v3690_v47 = vadd.f32 %v6184_v16, %v3689_v25 }
0x1465   :  { %v3691_v29 = vpop.f32.mrf.mxu3 }
0x1466   :  { %v3692_v40 = vadd.f32 %v6184_v16, %v3691_v29 }
0x1468   :  { %v3817_v28 = vpack.c.bf16 %v3692_v40, %v3690_v47 }
0x146d   :  { %v3694_v30 = vpop.f32.mrf.mxu3 }
0x146e   :  { %v3695_v12 = vadd.f32 %v6184_v16, %v3694_v30 }
0x1475   :  { %v3696_v3 = vpop.f32.mrf.mxu3 }
0x1476   :  { %v3697_v53 = vadd.f32 %v6184_v16, %v3696_v3 }
0x1478   :  { %v3818_v38 = vpack.c.bf16 %v3697_v53, %v3695_v12 }
0x147a   :  { %3833 = vmatpush.bf16.msra.mxu1 %v3818_v38 }
0x147e   :  { %3834 = vmatpush.bf16.msra.mxu1 %v3817_v28 }
0x1481   :  { %v3732_v21 = vpop.f32.mrf.mxu0 }
0x1482   :  { %v3733_v31 = vadd.f32 %v3732_v21, %v6926_v15  ;;  %3835 = vmatpush.bf16.msra.mxu1 %v3816_v63 }
0x1484   :  { %v3747_v33 = vsel %vm193_vm0, %v3733_v31, -inf }
0x1485   :  { %3748 = vmax.xlane.f32.xlu0 %v3747_v33 }
0x1489   :  { %v3734_v60 = vpop.f32.mrf.mxu0 }
0x148a   :  { %v3735_v56 = vadd.f32 %v3734_v60, %v6926_v15 }
0x148c   :  { %v3750_v5 = vsel %vm193_vm0, %v3735_v56, -inf }
0x148d   :  { %3751 = vmax.xlane.f32.xlu1 %v3750_v5 }
0x1491   :  { %v3737_v36 = vpop.f32.mrf.mxu0 }
0x1492   :  { %v3738_v45 = vadd.f32 %v3737_v36, %v6926_v15 }
0x1494   :  { %v3753_v32 = vsel %vm193_vm0, %v3738_v45, -inf }
0x1495   :  { %3754 = vmax.xlane.f32.xlu2 %v3753_v32 }
0x1499   :  { %v3739_v61 = vpop.f32.mrf.mxu0 }
0x149a   :  { %v3740_v51 = vadd.f32 %v3739_v61, %v6932_v23 }
0x149c   :  { %v3756_v39 = vsel %vm193_vm0, %v3740_v51, -inf }
0x149d   :  { %3757 = vmax.xlane.f32.xlu0 %v3756_v39 }
0x14a1   :  { %v3742_v41 = vpop.f32.mrf.mxu0 }
0x14a2   :  { %v3743_v18 = vadd.f32 %v3742_v41, %v6932_v23 }
0x14a4   :  { %v3759_v8 = vsel %vm193_vm0, %v3743_v18, -inf }
0x14a5   :  { %3760 = vmax.xlane.f32.xlu1 %v3759_v8 }
0x14a9   :  { %v3744_v42 = vpop.f32.mrf.mxu0 }
0x14aa   :  { %v3745_v34 = vadd.f32 %v3744_v42, %v6932_v23 }
0x14ac   :  { %v3762_v22 = vsel %vm193_vm0, %v3745_v34, -inf }
0x14ad   :  { %3763 = vmax.xlane.f32.xlu2 %v3762_v22 }
0x14b1   :  { %v4012_v43 = vpop.f32.mrf.mxu0 }
0x14b2   :  { %v4013_v16 = vadd.f32 %v6186_v58, %v4012_v43 }
0x14b9   :  { %v4014_v54 = vpop.f32.mrf.mxu0 }
0x14ba   :  { %v4015_v29 = vadd.f32 %v6186_v58, %v4014_v54 }
0x14bc   :  { %v4092_v3 = vpack.c.bf16 %v4015_v29, %v4013_v16  ;;  %v6121_v29 = vld [vmem:[%s8346_s11 + $0xe8] sm:$0xff]  ;;  %v6120_v16 = vld [vmem:[%s8346_s11 + $0xe0] sm:$0xff] }
0x14be   :  { %v4105_v12 = vsel %vm617_vm9, %v4092_v3, 0 }
0x14c1   :  { %v4017_v9 = vpop.f32.mrf.mxu0 }
0x14c2   :  { %v4018_v10 = vadd.f32 %v6186_v58, %v4017_v9 }
0x14c9   :  { %v4019_v48 = vpop.f32.mrf.mxu0 }
0x14ca   :  { %v4020_v13 = vadd.f32 %v6186_v58, %v4019_v48 }
0x14cc   :  { %v4093_v25 = vpack.c.bf16 %v4020_v13, %v4018_v10  ;;  %v6122_v10 = vld [vmem:[%s8346_s11 + $0xf0] sm:$0xff] }
0x14ce   :  { %v4108_v30 = vsel %vm617_vm9, %v4093_v25, 0 }
0x14d1   :  { %v4022_v62 = vpop.f32.mrf.mxu0 }
0x14d2   :  { %v4023_v35 = vadd.f32 %v6186_v58, %v4022_v62 }
0x14d9   :  { %v4024_v11 = vpop.f32.mrf.mxu0 }
0x14da   :  { %v4025_v44 = vadd.f32 %v6186_v58, %v4024_v11 }
0x14dc   :  { %v4094_v55 = vpack.c.bf16 %v4025_v44, %v4023_v35 }
0x14de   :  { %v4111_v24 = vsel %vm617_vm9, %v4094_v55, 0 }
0x14df   :  { %4118 = vmatpush.bf16.xpose.msra.mxu2 %v4111_v24  ;;  %v6123_v24 = vld [vmem:[%s8346_s11 + $0xf8] sm:$0xff] }
0x14e0   :  { %4069 = vmatpush.bf16.msrb.mxu1 %v6123_v24 }
0x14e4   :  { %4070 = vmatpush.bf16.msrb.mxu1 %v6122_v10 }
0x14e7   :  { %4119 = vmatpush.bf16.xpose.msra.mxu2 %v4108_v30 }
0x14e8   :  { %4071 = vmatpush.bf16.msrb.mxu1 %v6121_v29 }
0x14ec   :  { %4072 = vmatpush.bf16.msrb.mxu1 %v6120_v16 }
0x14ef   :  { %4120 = vmatpush.bf16.xpose.msra.mxu2 %v4105_v12 }
0x14f8   :  { %v3749_v53 = vpop.xlane.xlu0 %3748 }
0x14f9   :  { %v3765_v40 = vsub.f32 %v3733_v31, %v3749_v53 }
0x14fb   :  { %v3771_v38 = vmul.f32 1.442695, %v3765_v40 }
0x14fd   :  { %6400 = vpow2.f32 %v3771_v38 }
0x1500   :  { %v3752_v47 = vpop.xlane.xlu1 %3751 }
0x1501   :  { %v3766_v50 = vsub.f32 %v3735_v56, %v3752_v47 }
0x1503   :  { %v6401_v28 = vpop.eup %6400  ;;  %v3773_v37 = vmul.f32 1.442695, %v3766_v50 }
0x1504   :  { %v3783_v63 = vsel %vm193_vm0, %v6401_v28, 0.0 }
0x1505   :  { %6402 = vpow2.f32 %v3773_v37  ;;  %3784 = vadd.xlane.f32.xlu0 %v3783_v63 }
0x1508   :  { %v3755_v21 = vpop.xlane.xlu2 %3754 }
0x1509   :  { %v3767_v33 = vsub.f32 %v3738_v45, %v3755_v21 }
0x150b   :  { %v6403_v60 = vpop.eup %6402  ;;  %v3775_v5 = vmul.f32 1.442695, %v3767_v33 }
0x150c   :  { %v3786_v36 = vsel %vm193_vm0, %v6403_v60, 0.0 }
0x150d   :  { %6404 = vpow2.f32 %v3775_v5  ;;  %3787 = vadd.xlane.f32.xlu1 %v3786_v36 }
0x1510   :  { %v3758_v32 = vpop.xlane.xlu0 %3757 }
0x1511   :  { %v3768_v31 = vsub.f32 %v3740_v51, %v3758_v32 }
0x1513   :  { %v6405_v61 = vpop.eup %6404  ;;  %v3777_v39 = vmul.f32 1.442695, %v3768_v31 }
0x1514   :  { %v3789_v56 = vsel %vm193_vm0, %v6405_v61, 0.0 }
0x1515   :  { %6406 = vpow2.f32 %v3777_v39  ;;  %3790 = vadd.xlane.f32.xlu2 %v3789_v56 }
0x1518   :  { %v3761_v41 = vpop.xlane.xlu1 %3760 }
0x1519   :  { %v3769_v8 = vsub.f32 %v3743_v18, %v3761_v41 }
0x151b   :  { %v6407_v42 = vpop.eup %6406  ;;  %v3779_v22 = vmul.f32 1.442695, %v3769_v8 }
0x151c   :  { %v3792_v45 = vsel %vm193_vm0, %v6407_v42, 0.0 }
0x151d   :  { %6408 = vpow2.f32 %v3779_v22  ;;  %3793 = vadd.xlane.f32.xlu0 %v3792_v45 }
0x1520   :  { %v3764_v43 = vpop.xlane.xlu2 %3763 }
0x1521   :  { %v3770_v54 = vsub.f32 %v3745_v34, %v3764_v43 }
0x1523   :  { %v6409_v7 = vpop.eup %6408  ;;  %v3781_v9 = vmul.f32 1.442695, %v3770_v54 }
0x1524   :  { %v3795_v51 = vsel %vm193_vm0, %v6409_v7, 0.0 }
0x1525   :  { %6410 = vpow2.f32 %v3781_v9  ;;  %3796 = vadd.xlane.f32.xlu1 %v3795_v51 }
0x152b   :  { %v6411_v48 = vpop.eup %6410 }
0x152c   :  { %v3798_v62 = vsel %vm193_vm0, %v6411_v48, 0.0 }
0x152d   :  { %3799 = vadd.xlane.f32.xlu2 %v3798_v62 }
0x1578   :  { %v3785_v58 = vpop.xlane.xlu0 %3784 }
0x1579   :  { %6412 = vrcp.f32 %v3785_v58 }
0x157f   :  { %v6413_v11 = vpop.eup %6412 }
0x1580   :  { %v3788_v18 = vpop.xlane.xlu1 %3787  ;;  %v3807_v44 = vmul.f32 %v6413_v11, %v6401_v28 }
0x1581   :  { %6414 = vrcp.f32 %v3788_v18 }
0x1587   :  { %v6415_v35 = vpop.eup %6414 }
0x1588   :  { %v3808_v55 = vmul.f32 %v6415_v35, %v6403_v60  ;;  %v3791_v34 = vpop.xlane.xlu2 %3790 }
0x1589   :  { %6416 = vrcp.f32 %v3791_v34 }
0x158a   :  { %v3813_v13 = vpack.c.bf16 %v3808_v55, %v3807_v44  ;;  %v6187_v55 = vld [vmem:[%s8347_s12 + $0x7] ss:$0 sm:$0xff] }
0x158c   :  { %5734 = vmatmul.msk.bf16.vlgmr.msra.gmra.mxu1 %vm193_vm0, %v3813_v13 }
0x158f   :  { %v6417_v30 = vpop.eup %6416 }
0x1590   :  { %v3794_v25 = vpop.xlane.xlu0 %3793  ;;  %v3809_v12 = vmul.f32 %v6417_v30, %v6405_v61  ;;  %v3950_v61 = vpop.f32.mrf.mxu3 }
0x1591   :  { %6418 = vrcp.f32 %v3794_v25 }
0x1597   :  { %v6419_v3 = vpop.eup %6418 }
0x1598   :  { %v3810_v53 = vmul.f32 %v6419_v3, %v6407_v42  ;;  %v3797_v38 = vpop.xlane.xlu1 %3796  ;;  %v3952_v41 = vpop.f32.mrf.mxu3 }
0x1599   :  { %6420 = vrcp.f32 %v3797_v38 }
0x159a   :  { %v3814_v40 = vpack.c.bf16 %v3810_v53, %v3809_v12 }
0x159c   :  { %5735 = vmatmul.msk.bf16.gmra.mxu1 %vm193_vm0, %v3814_v40  ;;  %v3499_v40 = vadd.f32 %v7904_v59, %v7887_v27 }
0x159f   :  { %v6421_v50 = vpop.eup %6420 }
0x15a0   :  { %v3800_v47 = vpop.xlane.xlu2 %3799  ;;  %v3811_v37 = vmul.f32 %v6421_v50, %v6409_v7  ;;  %v3955_v8 = vpop.f32.mrf.mxu3 }
0x15a1   :  { %6422 = vrcp.f32 %v3800_v47 }
0x15a7   :  { %v6423_v28 = vpop.eup %6422 }
0x15a8   :  { %v3812_v63 = vmul.f32 %v6423_v28, %v6411_v48  ;;  %v3957_v54 = vpop.f32.mrf.mxu3  ;;  %v3504_v28 = vadd.f32 %v7910_v1, %v7892_v19 }
0x15aa   :  { %v3815_v21 = vpack.c.bf16 %v3812_v63, %v3811_v37 }
0x15ac   :  { %5736 = vmatmul.msk.bf16.gmra.mxu1 %vm193_vm0, %v3815_v21 }
0x15b0   :  { %v3960_v48 = vpop.f32.mrf.mxu3 }
0x15b8   :  { %v3962_v11 = vpop.f32.mrf.mxu3 }
0x15bc   :  { %5827 = vmatmul.msk.bf16.vlgmr.msrb.gmra.mxu1 %vm247_vm2, %v7611_v6 }
0x15cc   :  { %5828 = vmatmul.msk.bf16.gmra.mxu1 %vm247_vm2, %v7656_v14 }
0x15dc   :  { %5829 = vmatmul.msk.bf16.gmra.mxu1 %vm247_vm2, %v7670_v57  ;;  %v6185_v57 = vld [vmem:[%s8343_s8 + $0x7] ss:$0 sm:$0xff] }
0x15dd   :  { %v3953_v42 = vadd.f32 %v6185_v57, %v3952_v41  ;;  %v3951_v22 = vadd.f32 %v6185_v57, %v3950_v61  ;;  %v3958_v9 = vadd.f32 %v6185_v57, %v3957_v54  ;;  %v3956_v51 = vadd.f32 %v6185_v57, %v3955_v8 }
0x15de   :  { %v3963_v35 = vadd.f32 %v6185_v57, %v3962_v11  ;;  %v3961_v44 = vadd.f32 %v6185_v57, %v3960_v48 }
0x15df   :  { %v4089_v43 = vpack.c.bf16 %v3953_v42, %v3951_v22  ;;  %v4090_v58 = vpack.c.bf16 %v3958_v9, %v3956_v51 }
0x15e0   :  { %v4091_v34 = vpack.c.bf16 %v3963_v35, %v3961_v44 }
0x1609   :  { %v3837_v33 = vpop.f32.mrf.mxu1 }
0x1611   :  { %v3839_v60 = vpop.f32.mrf.mxu1 }
0x1612   :  { %v3852_v5 = vpack.c.bf16 %v3839_v60, %v3837_v33  ;;  %v3509_v33 = vadd.f32 %v7914_v2, %v7898_v52 }
0x1614   :  { %5743 = vmatmul.msk.bf16.vlgmr.msrb.gmra.mxu2 %vm617_vm9, %v3852_v5 }
0x1619   :  { %v3842_v36 = vpop.f32.mrf.mxu1 }
0x1621   :  { %v3844_v32 = vpop.f32.mrf.mxu1 }
0x1622   :  { %v3853_v31 = vpack.c.bf16 %v3844_v32, %v3842_v36 }
0x1624   :  { %5744 = vmatmul.msk.bf16.gmra.mxu2 %vm617_vm9, %v3853_v31 }
0x1629   :  { %v3847_v39 = vpop.f32.mrf.mxu1 }
0x1631   :  { %v3849_v56 = vpop.f32.mrf.mxu1 }
0x1632   :  { %v3854_v6 = vpack.c.bf16 %v3849_v56, %v3847_v39 }
0x1634   :  { %5745 = vmatmul.msk.bf16.gmra.mxu2 %vm617_vm9, %v3854_v6 }
0x1639   :  { %v4074_v14 = vpop.f32.mrf.mxu1 }
0x163a   :  { %v4075_v12 = vadd.f32 %v6187_v55, %v4074_v14 }
0x1641   :  { %v4076_v45 = vpop.f32.mrf.mxu1 }
0x1642   :  { %v4077_v16 = vadd.f32 %v6187_v55, %v4076_v45 }
0x1644   :  { %5830 = vmatmul.msk.bf16.vlgmr.msra.gmra.mxu2 %vm617_vm9, %v4089_v43  ;;  %v4206_v53 = vpack.c.bf16 %v4077_v16, %v4075_v12 }
0x1649   :  { %v4079_v7 = vpop.f32.mrf.mxu1 }
0x164a   :  { %v4080_v30 = vadd.f32 %v6187_v55, %v4079_v7 }
0x1651   :  { %v4081_v62 = vpop.f32.mrf.mxu1 }
0x1652   :  { %v4082_v25 = vadd.f32 %v6187_v55, %v4081_v62 }
0x1654   :  { %5831 = vmatmul.msk.bf16.gmra.mxu2 %vm617_vm9, %v4090_v58  ;;  %v4207_v3 = vpack.c.bf16 %v4082_v25, %v4080_v30  ;;  %v6124_v30 = vld [vmem:[%s8348_s13 + $0x38] sm:$0xff] }
0x1655   :  { %4270 = vmatpush.bf16.msrb.mxu0 %v6124_v30 }
0x1659   :  { %v4084_v18 = vpop.f32.mrf.mxu1 }
0x165a   :  { %v4085_v24 = vadd.f32 %v6187_v55, %v4084_v18 }
0x1661   :  { %v4086_v13 = vpop.f32.mrf.mxu1 }
0x1662   :  { %v4087_v10 = vadd.f32 %v6187_v55, %v4086_v13 }
0x1664   :  { %v4208_v29 = vpack.c.bf16 %v4087_v10, %v4085_v24  ;;  %5832 = vmatmul.msk.bf16.gmra.mxu2 %vm617_vm9, %v4091_v34 }
0x1666   :  { %4223 = vmatpush.bf16.msra.mxu3 %v4208_v29 }
0x166a   :  { %4224 = vmatpush.bf16.msra.mxu3 %v4207_v3 }
0x166e   :  { %4225 = vmatpush.bf16.msra.mxu3 %v4206_v53 }
0x1697   :  { %v3882_v38 = vpop.f32.mrf.mxu2 }
0x1698   :  { %v7983_v47 = vadd.f32 %v3882_v38, %v3499_v40 }
0x169f   :  { %v7985_v50 = vpop.f32.mrf.mxu2 }
0x16a7   :  { %v3887_v37 = vpop.f32.mrf.mxu2 }
0x16a8   :  { %v7989_v63 = vadd.f32 %v3887_v37, %v3504_v28 }
0x16af   :  { %v7991_v21 = vpop.f32.mrf.mxu2 }
0x16b7   :  { %v3892_v60 = vpop.f32.mrf.mxu2 }
0x16b8   :  { %v7995_v5 = vadd.f32 %v3892_v60, %v3509_v33 }
0x16bf   :  { %v7997_v27 = vpop.f32.mrf.mxu2 }
0x16c7   :  { %v4122_v59 = vpop.f32.mrf.mxu2 }
0x16c8   :  { %v4123_v36 = vadd.f32 %v4122_v59, %v6926_v15 }
0x16ca   :  { %v4137_v32 = vsel %vm193_vm0, %v4123_v36, -inf }
0x16cb   :  { %4138 = vmax.xlane.f32.xlu0 %v4137_v32 }
0x16cf   :  { %v4124_v19 = vpop.f32.mrf.mxu2 }
0x16d0   :  { %v4125_v1 = vadd.f32 %v4124_v19, %v6926_v15 }
0x16d2   :  { %v4140_v31 = vsel %vm193_vm0, %v4125_v1, -inf }
0x16d3   :  { %4141 = vmax.xlane.f32.xlu1 %v4140_v31 }
0x16d7   :  { %v4127_v61 = vpop.f32.mrf.mxu2 }
0x16d8   :  { %v4128_v52 = vadd.f32 %v4127_v61, %v6926_v15 }
0x16da   :  { %v4143_v2 = vsel %vm193_vm0, %v4128_v52, -inf }
0x16db   :  { %4144 = vmax.xlane.f32.xlu2 %v4143_v2 }
0x16df   :  { %v4129_v39 = vpop.f32.mrf.mxu2 }
0x16e0   :  { %v4130_v56 = vadd.f32 %v4129_v39, %v6932_v23 }
0x16e2   :  { %v4146_v6 = vsel %vm193_vm0, %v4130_v56, -inf }
0x16e3   :  { %4147 = vmax.xlane.f32.xlu0 %v4146_v6 }
0x16e7   :  { %v4132_v9 = vpop.f32.mrf.mxu2 }
0x16e8   :  { %v4133_v62 = vadd.f32 %v4132_v9, %v6932_v23 }
0x16ea   :  { %v4149_v44 = vsel %vm193_vm0, %v4133_v62, -inf }
0x16ef   :  { %v4134_v13 = vpop.f32.mrf.mxu2 }
0x16f0   :  { %v4135_v34 = vadd.f32 %v4134_v13, %v6932_v23 }
0x16f2   :  { %v4152_v10 = vsel %vm193_vm0, %v4135_v34, -inf }
0x173e   :  { %v4139_v41 = vpop.xlane.xlu0 %4138 }
0x173f   :  { %v4155_v14 = vsub.f32 %v4123_v36, %v4139_v41 }
0x1741   :  { %v4161_v57 = vmul.f32 1.442695, %v4155_v14 }
0x1743   :  { %6424 = vpow2.f32 %v4161_v57 }
0x1746   :  { %v4142_v8 = vpop.xlane.xlu1 %4141 }
0x1747   :  { %v4156_v42 = vsub.f32 %v4125_v1, %v4142_v8 }
0x1749   :  { %v6425_v22 = vpop.eup %6424  ;;  %v4163_v45 = vmul.f32 1.442695, %v4156_v42 }
0x174a   :  { %v4173_v43 = vsel %vm193_vm0, %v6425_v22, 0.0 }
0x174b   :  { %6426 = vpow2.f32 %v4163_v45  ;;  %4174 = vadd.xlane.f32.xlu1 %v4173_v43 }
0x174e   :  { %v4145_v15 = vpop.xlane.xlu2 %4144 }
0x174f   :  { %v4157_v54 = vsub.f32 %v4128_v52, %v4145_v15 }
0x1751   :  { %v6427_v7 = vpop.eup %6426  ;;  %v4165_v51 = vmul.f32 1.442695, %v4157_v54 }
0x1752   :  { %v4176_v48 = vsel %vm193_vm0, %v6427_v7, 0.0 }
0x1753   :  { %6428 = vpow2.f32 %v4165_v51  ;;  %4177 = vadd.xlane.f32.xlu2 %v4176_v48 }
0x1756   :  { %v4148_v58 = vpop.xlane.xlu0 %4147 }
0x1757   :  { %v4158_v18 = vsub.f32 %v4130_v56, %v4148_v58  ;;  %v8029_v58 = vld [vmem:[%s8349_s14 + $0x1] ss:$0 sm:$0xff] }
0x1759   :  { %v6429_v11 = vpop.eup %6428  ;;  %v4167_v35 = vmul.f32 1.442695, %v4158_v18  ;;  %v6492_v18 = vld [vmem:[#allocation2] sm:$0xff] }
0x175a   :  { %v4179_v55 = vsel %vm193_vm0, %v6429_v11, 0.0 }
0x175b   :  { %6430 = vpow2.f32 %v4167_v35  ;;  %4150 = vmax.xlane.f32.xlu2 %v4149_v44  ;;  %4180 = vadd.xlane.f32.xlu0 %v4179_v55  ;;  %v3501_v35 = vadd.f32 %v7906_v0, %v7890_v4 }
0x175d   :  { %v3898_v55 = vadd.f32 %v7985_v50, %v3501_v35 }
0x1761   :  { %v6431_v24 = vpop.eup %6430 }
0x1762   :  { %v4182_v25 = vsel %vm193_vm0, %v6431_v24, 0.0 }
0x1763   :  { %4153 = vmax.xlane.f32.xlu0 %v4152_v10  ;;  %4183 = vadd.xlane.f32.xlu1 %v4182_v25 }
0x17be   :  { %v4175_v29 = vpop.xlane.xlu1 %4174 }
0x17bf   :  { %6432 = vrcp.f32 %v4175_v29 }
0x17c5   :  { %v6433_v3 = vpop.eup %6432 }
0x17c6   :  { %v4178_v16 = vpop.xlane.xlu2 %4177  ;;  %v4197_v53 = vmul.f32 %v6433_v3, %v6425_v22  ;;  %v6494_v3 = vld [vmem:[#allocation2 + $0x10] sm:$0xff] }
0x17c7   :  { %6434 = vrcp.f32 %v4178_v16 }
0x17cd   :  { %v6435_v12 = vpop.eup %6434 }
0x17ce   :  { %v4198_v23 = vmul.f32 %v6435_v12, %v6427_v7  ;;  %v4151_v40 = vpop.xlane.xlu2 %4150  ;;  %v4181_v38 = vpop.xlane.xlu0 %4180 }
0x17cf   :  { %v4159_v28 = vsub.f32 %v4133_v62, %v4151_v40 }
0x17d0   :  { %v4203_v37 = vpack.c.bf16 %v4198_v23, %v4197_v53  ;;  %v3506_v53 = vadd.f32 %v7912_v26, %v7896_v20 }
0x17d1   :  { %v4169_v33 = vmul.f32 1.442695, %v4159_v28 }
0x17d2   :  { %5833 = vmatmul.msk.bf16.vlgmr.msra.gmra.mxu3 %vm193_vm0, %v4203_v37 }
0x17d3   :  { %6436 = vpow2.f32 %v4169_v33  ;;  %v6495_v33 = vld [vmem:[#allocation2 + $0x18] sm:$0xff] }
0x17d4   :  { %6438 = vrcp.f32 %v4181_v38  ;;  %v3900_v38 = vadd.f32 %v7991_v21, %v3506_v53  ;;  %v5867_v53 = vld [vmem:[%s8352_s17 + $0x50] sm:$0xf] }
0x17d6   :  { %v4184_v60 = vpop.xlane.xlu1 %4183  ;;  %v4154_v59 = vpop.xlane.xlu0 %4153 }
0x17d7   :  { %6440 = vrcp.f32 %v4184_v60  ;;  %v4160_v36 = vsub.f32 %v4135_v34, %v4154_v59 }
0x17d9   :  { %v6437_v32 = vpop.eup %6436  ;;  %v4171_v19 = vmul.f32 1.442695, %v4160_v36 }
0x17da   :  { %v4185_v1 = vsel %vm193_vm0, %v6437_v32, 0.0  ;;  %v6439_v31 = vpop.eup %6438 }
0x17db   :  { %6442 = vpow2.f32 %v4171_v19  ;;  %4186 = vadd.xlane.f32.xlu1 %v4185_v1  ;;  %v4199_v52 = vmul.f32 %v6439_v31, %v6429_v11 }
0x17dd   :  { %v6441_v61 = vpop.eup %6440 }
0x17de   :  { %v4200_v2 = vmul.f32 %v6441_v61, %v6431_v24 }
0x17e0   :  { %v4204_v39 = vpack.c.bf16 %v4200_v2, %v4199_v52 }
0x17e1   :  { %v6443_v56 = vpop.eup %6442 }
0x17e2   :  { %5834 = vmatmul.msk.bf16.gmra.mxu3 %vm193_vm0, %v4204_v39  ;;  %v4188_v6 = vsel %vm193_vm0, %v6443_v56, 0.0 }
0x17e3   :  { %4189 = vadd.xlane.f32.xlu2 %v4188_v6 }
0x184e   :  { %v4187_v41 = vpop.xlane.xlu1 %4186 }
0x184f   :  { %6444 = vrcp.f32 %v4187_v41 }
0x1855   :  { %v4227_v14 = vpop.f32.mrf.mxu3  ;;  %v6445_v8 = vpop.eup %6444 }
0x1856   :  { %v4190_v57 = vpop.xlane.xlu2 %4189  ;;  %v4201_v45 = vmul.f32 %v6445_v8, %v6437_v32 }
0x1857   :  { %6446 = vrcp.f32 %v4190_v57  ;;  %v6496_v57 = vld [vmem:[#allocation2 + $0x20] sm:$0xff] }
0x185d   :  { %v6447_v42 = vpop.eup %6446  ;;  %v4229_v22 = vpop.f32.mrf.mxu3 }
0x185e   :  { %v4202_v43 = vmul.f32 %v6447_v42, %v6443_v56  ;;  %v4242_v15 = vpack.c.bf16 %v4229_v22, %v4227_v14 }
0x1860   :  { %5842 = vmatmul.msk.bf16.vlgmr.msrb.gmra.mxu0 %vm617_vm9, %v4242_v15  ;;  %v4205_v54 = vpack.c.bf16 %v4202_v43, %v4201_v45  ;;  %v3511_v45 = vadd.f32 %v7919_v46, %v7902_v17 }
0x1862   :  { %5835 = vmatmul.msk.bf16.gmra.mxu3 %vm193_vm0, %v4205_v54  ;;  %v3902_v54 = vadd.f32 %v7997_v27, %v3511_v45 }
0x1865   :  { %v4232_v7 = vpop.f32.mrf.mxu3 }
0x186d   :  { %v4234_v9 = vpop.f32.mrf.mxu3 }
0x186e   :  { %v4243_v51 = vpack.c.bf16 %v4234_v9, %v4232_v7 }
0x1870   :  { %5843 = vmatmul.msk.bf16.gmra.mxu0 %vm617_vm9, %v4243_v51 }
0x18dd   :  { %v4272_v48 = vpop.f32.mrf.mxu0 }
0x18de   :  { %v4287_v62 = vadd.f32 %v4272_v48, %v7983_v47  ;;  %v6493_v47 = vld [vmem:[#allocation2 + $0x8] sm:$0xff] }
0x18df   :  { %v6497_v48 = vld [vmem:[#allocation2 + $0x28] sm:$0xff] }
0x18e0   :  { %v4293_v11 = vadd.f32 %v6492_v18, %v4287_v62 }
0x18e2   :  { %v4304_v44 = vadd.f32 %v8029_v58, %v4293_v11 }
0x18e4   :  { %4310 = vst.msk [vmem:[#allocation2] sm:$0xff] %vm247_vm2, %v4304_v44 }
0x18e5   :  { %v4237_v13 = vpop.f32.mrf.mxu3  ;;  %v4274_v34 = vpop.f32.mrf.mxu0 }
0x18e6   :  { %v4288_v24 = vadd.f32 %v4274_v34, %v3898_v55  ;;  %v5883_v34 = vld [vmem:[%s8352_s17 + $0x70] sm:$0xf] }
0x18e8   :  { %v4294_v10 = vadd.f32 %v6493_v47, %v4288_v24  ;;  %v6132_v24 = vld [vmem:[%s8352_s17 + $0x74] sm:$0xf0]  ;;  %v6131_v47 = vld [vmem:[%s8352_s17 + $0x74] sm:$0xf] }
0x18ea   :  { %v4305_v25 = vadd.f32 %v8029_v58, %v4294_v10  ;;  %v5884_v10 = vor.u32 %v6132_v24, %v5883_v34 }
0x18eb   :  { %v8037_v29 = vld [vmem:[#allocation2] sm:$0xff] }
0x18ec   :  { %4311 = vst.msk [vmem:[#allocation2 + $0x8] sm:$0xff] %vm247_vm2, %v4305_v25  ;;  %v4326_v4 = vsel %vm247_vm2, %v8037_v29, 0.0  ;;  %v5885_v25 = vld [vmem:[%s8352_s17 + $0x78] sm:$0xf0]  ;;  %4548 = vmatpush.bf16.msra.mxu1 %v5884_v10 }
0x18ed   :  { %4327 = vadd.xlane.f32.xlu0 %v4326_v4  ;;  %v4239_v0 = vpop.f32.mrf.mxu3  ;;  %v4277_v30 = vpop.f32.mrf.mxu0  ;;  %v5888_v4 = vor.u32 %v6131_v47, %v5885_v25 }
0x18ee   :  { %v4244_v50 = vpack.c.bf16 %v4239_v0, %v4237_v13  ;;  %v4289_v16 = vadd.f32 %v4277_v30, %v7989_v63  ;;  %v5875_v0 = vld [vmem:[%s8352_s17 + $0x60] sm:$0xf]  ;;  %v6130_v30 = vld [vmem:[%s8352_s17 + $0x64] sm:$0xf0] }
0x18ef   :  { %4572 = vmatpush.bf16.msrb.mxu2 %v5888_v4 }
0x18f0   :  { %v4295_v12 = vadd.f32 %v6494_v3, %v4289_v16  ;;  %5844 = vmatmul.msk.bf16.gmra.mxu0 %vm617_vm9, %v4244_v50  ;;  %v6129_v50 = vld [vmem:[%s8352_s17 + $0x64] sm:$0xf]  ;;  %v5876_v16 = vor.u32 %v6130_v30, %v5875_v0  ;;  %v5877_v3 = vld [vmem:[%s8352_s17 + $0x68] sm:$0xf0] }
0x18f2   :  { %v4306_v23 = vadd.f32 %v8029_v58, %v4295_v12  ;;  %v5880_v12 = vor.u32 %v6129_v50, %v5877_v3  ;;  %4549 = vmatpush.bf16.msra.mxu1 %v5876_v16  ;;  %v8176_v16 = vld [vmem:[%s8351_s16 + $0x1] ss:$0 sm:$0xff] }
0x18f3   :  { %v8047_v40 = vld [vmem:[#allocation2 + $0x8] sm:$0xff] }
0x18f4   :  { %4312 = vst.msk [vmem:[#allocation2 + $0x10] sm:$0xff] %vm247_vm2, %v4306_v23  ;;  %v4329_v28 = vsel %vm247_vm2, %v8047_v40, 0.0  ;;  %4573 = vmatpush.bf16.msrb.mxu2 %v5880_v12  ;;  %v6128_v23 = vld [vmem:[%s8352_s17 + $0x54] sm:$0xf0] }
0x18f5   :  { %4330 = vadd.xlane.f32.xlu1 %v4329_v28  ;;  %v4279_v63 = vpop.f32.mrf.mxu0  ;;  %v5868_v28 = vor.u32 %v6128_v23, %v5867_v53 }
0x18f6   :  { %v4290_v37 = vadd.f32 %v4279_v63, %v3900_v38  ;;  %v6127_v38 = vld [vmem:[%s8352_s17 + $0x54] sm:$0xf]  ;;  %v5869_v63 = vld [vmem:[%s8352_s17 + $0x58] sm:$0xf0] }
0x18f7   :  { %4550 = vmatpush.bf16.msra.mxu1 %v5868_v28 }
0x18f8   :  { %v4296_v60 = vadd.f32 %v6495_v33, %v4290_v37  ;;  %v5872_v33 = vor.u32 %v6127_v38, %v5869_v63 }
0x18fa   :  { %v4307_v59 = vadd.f32 %v8029_v58, %v4296_v60  ;;  %4574 = vmatpush.bf16.msrb.mxu2 %v5872_v33 }
0x18fb   :  { %v8054_v36 = vld [vmem:[#allocation2 + $0x10] sm:$0xff] }
0x18fc   :  { %4313 = vst.msk [vmem:[#allocation2 + $0x18] sm:$0xff] %vm247_vm2, %v4307_v59  ;;  %v4332_v20 = vsel %vm247_vm2, %v8054_v36, 0.0  ;;  %v5859_v59 = vld [vmem:[%s8352_s17 + $0x40] sm:$0xf] }
0x18fd   :  { %4333 = vadd.xlane.f32.xlu2 %v4332_v20  ;;  %v6126_v20 = vld [vmem:[%s8352_s17 + $0x44] sm:$0xf0] }
0x1903   :  { %v8059_v26 = vld [vmem:[#allocation2 + $0x18] sm:$0xff] }
0x1904   :  { %v4335_v21 = vsel %vm247_vm2, %v8059_v26, 0.0 }
0x1905   :  { %4336 = vadd.xlane.f32.xlu0 %v4335_v21  ;;  %v6125_v21 = vld [vmem:[%s8352_s17 + $0x44] sm:$0xf] }
0x1960   :  { %v4328_v32 = vpop.xlane.xlu0 %4327 }
0x1961   :  { %v4344_v19 = vmul.f32 %v4328_v32, %v6694_v49 }
0x1963   :  { %v8065_v1 = vsub.f32 %v8037_v29, %v4344_v19  ;;  %v5860_v19 = vor.u32 %v6126_v20, %v5859_v59 }
0x1965   :  { %v4356_v31 = vmul.f32 %v8065_v1, %v8065_v1  ;;  %4551 = vmatpush.bf16.msra.mxu1 %v5860_v19 }
0x1967   :  { %v4362_v61 = vsel %vm247_vm2, %v4356_v31, 0.0  ;;  %v5861_v31 = vld [vmem:[%s8352_s17 + $0x48] sm:$0xf0] }
0x1968   :  { %v4331_v52 = vpop.xlane.xlu1 %4330  ;;  %4363 = vadd.xlane.f32.xlu1 %v4362_v61  ;;  %v5864_v61 = vor.u32 %v6125_v21, %v5861_v31 }
0x1969   :  { %v4345_v2 = vmul.f32 %v4331_v52, %v6694_v49 }
0x196a   :  { %4575 = vmatpush.bf16.msrb.mxu2 %v5864_v61 }
0x196b   :  { %v8072_v39 = vsub.f32 %v8047_v40, %v4345_v2 }
0x196d   :  { %v4282_v56 = vpop.f32.mrf.mxu0  ;;  %v4357_v6 = vmul.f32 %v8072_v39, %v8072_v39 }
0x196e   :  { %v4291_v41 = vadd.f32 %v4282_v56, %v7995_v5 }
0x196f   :  { %v4365_v14 = vsel %vm247_vm2, %v4357_v6, 0.0 }
0x1970   :  { %v4297_v8 = vadd.f32 %v6496_v57, %v4291_v41  ;;  %4366 = vadd.xlane.f32.xlu2 %v4365_v14  ;;  %v4334_v42 = vpop.xlane.xlu2 %4333 }
0x1971   :  { %v4346_v22 = vmul.f32 %v4334_v42, %v6694_v49 }
0x1972   :  { %v4308_v43 = vadd.f32 %v8029_v58, %v4297_v8 }
0x1973   :  { %v8083_v15 = vsub.f32 %v8054_v36, %v4346_v22 }
0x1974   :  { %4314 = vst.msk [vmem:[#allocation2 + $0x20] sm:$0xff] %vm247_vm2, %v4308_v43 }
0x1975   :  { %v4284_v5 = vpop.f32.mrf.mxu0  ;;  %v4358_v7 = vmul.f32 %v8083_v15, %v8083_v15 }
0x1976   :  { %v4292_v9 = vadd.f32 %v4284_v5, %v3902_v54 }
0x1977   :  { %v4368_v51 = vsel %vm247_vm2, %v4358_v7, 0.0 }
0x1978   :  { %v4298_v62 = vadd.f32 %v6497_v48, %v4292_v9  ;;  %4369 = vadd.xlane.f32.xlu0 %v4368_v51  ;;  %v4337_v17 = vpop.xlane.xlu0 %4336 }
0x1979   :  { %v4347_v46 = vmul.f32 %v4337_v17, %v6694_v49 }
0x197a   :  { %v4309_v18 = vadd.f32 %v8029_v58, %v4298_v62 }
0x197b   :  { %v8093_v11 = vsub.f32 %v8059_v26, %v4347_v46  ;;  %v8095_v27 = vld [vmem:[#allocation2 + $0x20] sm:$0xff] }
0x197c   :  { %4315 = vst.msk [vmem:[#allocation2 + $0x28] sm:$0xff] %vm247_vm2, %v4309_v18  ;;  %v4338_v35 = vsel %vm247_vm2, %v8095_v27, 0.0 }
0x197d   :  { %4339 = vadd.xlane.f32.xlu2 %v4338_v35  ;;  %v4359_v44 = vmul.f32 %v8093_v11, %v8093_v11 }
0x197f   :  { %v4371_v55 = vsel %vm247_vm2, %v4359_v44, 0.0 }
0x1980   :  { %4372 = vadd.xlane.f32.xlu1 %v4371_v55 }
0x1983   :  { %v8103_v13 = vld [vmem:[#allocation2 + $0x28] sm:$0xff] }
0x1984   :  { %v4341_v58 = vsel %vm247_vm2, %v8103_v13, 0.0 }
0x1985   :  { %4342 = vadd.xlane.f32.xlu0 %v4341_v58  ;;  %v8168_v58 = vld [vmem:[%s8350_s15 + $0x1] ss:$0 sm:$0xff] }
0x19db   :  { %v4364_v37 = vpop.xlane.xlu1 %4363 }
0x19dc   :  { %v4380_v60 = vmul.f32 %v4364_v37, %v6694_v49 }
0x19de   :  { %v4386_v32 = vadd.f32 1e-06, %v4380_v60 }
0x19e0   :  { %6448 = vrsqrt.f32 %v4386_v32  ;;  %vm4398_vm9 = vweird.f32 %v4386_v32 }
0x19e3   :  { %v4367_v52 = vpop.xlane.xlu2 %4366 }
0x19e4   :  { %v4381_v2 = vmul.f32 %v4367_v52, %v6694_v49 }
0x19e6   :  { %v6449_v56 = vpop.eup %6448  ;;  %v4387_v6 = vadd.f32 1e-06, %v4381_v2 }
0x19e7   :  { %v4393_v41 = vmul.f32 %v6449_v56, %v4386_v32  ;;  %vm4399_vm0 = vweird.f32 %v6449_v56 }
0x19e8   :  { %6450 = vrsqrt.f32 %v4387_v6  ;;  %vm4400_vm14 = vmor %vm4398_vm9, %vm4399_vm0  ;;  %vm4408_vm3 = vweird.f32 %v4387_v6 }
0x19e9   :  { %v4394_v14 = vmul.f32 %v6449_v56, %v4393_v41 }
0x19eb   :  { %v4395_v57 = vmul.f32 0.5, %v4394_v14  ;;  %v4370_v8 = vpop.xlane.xlu0 %4369 }
0x19ec   :  { %v4382_v42 = vmul.f32 %v4370_v8, %v6694_v49 }
0x19ed   :  { %v4396_v22 = vsub.f32 1.5, %v4395_v57 }
0x19ee   :  { %v6451_v45 = vpop.eup %6450  ;;  %v4388_v43 = vadd.f32 1e-06, %v4382_v42  ;;  %v6148_v42 = vld [vmem:[%s8354_s19 + $0xf8] sm:$0xff] }
0x19ef   :  { %v4397_v54 = vmul.f32 %v6449_v56, %v4396_v22  ;;  %v4403_v5 = vmul.f32 %v6451_v45, %v4387_v6  ;;  %vm4409_vm15 = vweird.f32 %v6451_v45  ;;  %4864 = vmatpush.bf16.msra.mxu0 %v6148_v42  ;;  %v6138_v22 = vld [vmem:[%s8354_s19 + $0xa8] sm:$0xff] }
0x19f0   :  { %6452 = vrsqrt.f32 %v4388_v43  ;;  %v4340_v7 = vpop.xlane.xlu2 %4339  ;;  %vm4410_vm4 = vmor %vm4408_vm3, %vm4409_vm15  ;;  %vm4418_vm6 = vweird.f32 %v4388_v43  ;;  %vm4908_vm3 = vcmask 517120  }
0x19f1   :  { %v4404_v9 = vmul.f32 %v6451_v45, %v4403_v5  ;;  %v4348_v51 = vmul.f32 %v4340_v7, %v6694_v49  ;;  %v4401_v48 = vsel %vm4400_vm14, %v6449_v56, %v4397_v54  ;;  %v6137_v5 = vld [vmem:[%s8354_s19 + $0xa0] sm:$0xff] }
0x19f2   :  { %v4452_v34 = vmul.f32 %v4401_v48, %v8065_v1 }
0x19f3   :  { %v4405_v62 = vmul.f32 0.5, %v4404_v9  ;;  %v8160_v17 = vsub.f32 %v8095_v27, %v4348_v51  ;;  %v4373_v46 = vpop.xlane.xlu1 %4372  ;;  %v6146_v9 = vld [vmem:[%s8354_s19 + $0xe8] sm:$0xff]  ;;  %v6136_v51 = vld [vmem:[%s8354_s19 + $0x98] sm:$0xff] }
0x19f4   :  { %v4383_v18 = vmul.f32 %v4373_v46, %v6694_v49  ;;  %v4461_v1 = vmul.f32 %v8168_v58, %v4452_v34  ;;  %v6144_v34 = vld [vmem:[%s8354_s19 + $0xd8] sm:$0xff] }
0x19f5   :  { %v4406_v35 = vsub.f32 1.5, %v4405_v62  ;;  %v4360_v44 = vmul.f32 %v8160_v17, %v8160_v17  ;;  %v6145_v62 = vld [vmem:[%s8354_s19 + $0xe0] sm:$0xff] }
0x19f6   :  { %v6453_v55 = vpop.eup %6452  ;;  %v4389_v24 = vadd.f32 1e-06, %v4383_v18  ;;  %v4470_v37 = vadd.f32 %v8176_v16, %v4461_v1  ;;  %v6135_v18 = vld [vmem:[%s8354_s19 + $0x90] sm:$0xff] }
0x19f7   :  { %v4407_v47 = vmul.f32 %v6451_v45, %v4406_v35  ;;  %v4413_v10 = vmul.f32 %v6453_v55, %v4388_v43  ;;  %v4374_v25 = vsel %vm247_vm2, %v4360_v44, 0.0  ;;  %vm4419_vm5 = vweird.f32 %v6453_v55  ;;  %v6147_v43 = vld [vmem:[%s8354_s19 + $0xf0] sm:$0xff] }
0x19f8   :  { %6454 = vrsqrt.f32 %v4389_v24  ;;  %v4343_v4 = vpop.xlane.xlu0 %4342  ;;  %4375 = vadd.xlane.f32.xlu1 %v4374_v25  ;;  %vm4420_vm7 = vmor %vm4418_vm6, %vm4419_vm5  ;;  %vm4428_vm10 = vweird.f32 %v4389_v24  ;;  %4865 = vmatpush.bf16.msra.mxu0 %v6147_v43 }
0x19f9   :  { %v4411_v0 = vsel %vm4410_vm4, %v6451_v45, %v4407_v47  ;;  %v4414_v30 = vmul.f32 %v6453_v55, %v4413_v10  ;;  %v4349_v50 = vmul.f32 %v4343_v4, %v6694_v49  ;;  %v5856_v47 = vld [vmem:[%s8353_s18 + $0x2] sm:$0x3]  ;;  %v6134_v10 = vld [vmem:[%s8354_s19 + $0x88] sm:$0xff]  ;;  %v6143_v4 = vld [vmem:[%s8354_s19 + $0xd0] sm:$0xff] }
0x19fa   :  { %v4453_v3 = vmul.f32 %v4411_v0, %v8072_v39  ;;  %v8243_v0 = vperm.slane %v5856_v47, 0 }
0x19fb   :  { %v4415_v12 = vmul.f32 0.5, %v4414_v30  ;;  %v8181_v53 = vsub.f32 %v8103_v13, %v4349_v50  ;;  %v6133_v50 = vld [vmem:[%s8354_s19 + $0x80] sm:$0xff] }
0x19fc   :  { %v4462_v23 = vmul.f32 %v8168_v58, %v4453_v3  ;;  %4866 = vmatpush.bf16.msra.mxu0 %v6146_v9 }
0x19fd   :  { %v4416_v38 = vsub.f32 1.5, %v4415_v12  ;;  %v4361_v28 = vmul.f32 %v8181_v53, %v8181_v53 }
0x19fe   :  { %v6455_v63 = vpop.eup %6454  ;;  %v4471_v33 = vadd.f32 %v8176_v16, %v4462_v23  ;;  %v6142_v23 = vld [vmem:[%s8354_s19 + $0xc8] sm:$0xff] }
0x19ff   :  { %v4417_v60 = vmul.f32 %v6453_v55, %v4416_v38  ;;  %v4423_v59 = vmul.f32 %v6455_v63, %v4389_v24  ;;  %v4377_v39 = vsel %vm247_vm2, %v4361_v28, 0.0  ;;  %vm4429_vm8 = vweird.f32 %v6455_v63 }
0x1a00   :  { %v4476_v20 = vpack.c.bf16 %v4471_v33, %v4470_v37  ;;  %4378 = vadd.xlane.f32.xlu2 %v4377_v39  ;;  %vm4430_vm11 = vmor %vm4428_vm10, %vm4429_vm8  ;;  %4867 = vmatpush.bf16.msra.mxu0 %v6145_v62  ;;  %v8255_v33 = vperm.slane %v5856_v47, 1 }
0x1a01   :  { %v4424_v21 = vmul.f32 %v6455_v63, %v4423_v59  ;;  %v4421_v32 = vsel %vm4420_vm7, %v6453_v55, %v4417_v60  ;;  %v6141_v60 = vld [vmem:[%s8354_s19 + $0xc0] sm:$0xff] }
0x1a02   :  { %5889 = vmatmul.msk.bf16.vlgmr.msra.gmra.mxu1 %vm247_vm2, %v4476_v20  ;;  %5892 = vmatmul.msk.bf16.vlgmr.msrb.gmra.mxu2 %vm247_vm2, %v4476_v20  ;;  %v4454_v61 = vmul.f32 %v4421_v32, %v8083_v15  ;;  %v6140_v15 = vld [vmem:[%s8354_s19 + $0xb8] sm:$0xff] }
0x1a03   :  { %v4425_v19 = vmul.f32 0.5, %v4424_v21  ;;  %4840 = vmatpush.bf16.msrb.mxu3 %v6140_v15 }
0x1a04   :  { %v4463_v6 = vmul.f32 %v8168_v58, %v4454_v61  ;;  %4868 = vmatpush.bf16.msra.mxu0 %v6144_v34 }
0x1a05   :  { %v4426_v31 = vsub.f32 1.5, %v4425_v19 }
0x1a06   :  { %v4472_v14 = vadd.f32 %v8176_v16, %v4463_v6 }
0x1a07   :  { %v4427_v52 = vmul.f32 %v6455_v63, %v4426_v31 }
0x1a08   :  { %4869 = vmatpush.bf16.msra.mxu0 %v6143_v4 }
0x1a09   :  { %v4431_v2 = vsel %vm4430_vm11, %v6455_v63, %v4427_v52 }
0x1a0a   :  { %v4455_v56 = vmul.f32 %v4431_v2, %v8093_v11  ;;  %v6139_v11 = vld [vmem:[%s8354_s19 + $0xb0] sm:$0xff] }
0x1a0b   :  { %4841 = vmatpush.bf16.msrb.mxu3 %v6139_v11 }
0x1a0c   :  { %v4464_v41 = vmul.f32 %v8168_v58, %v4455_v56  ;;  %4870 = vmatpush.bf16.msra.mxu0 %v6142_v23 }
0x1a0e   :  { %v4473_v57 = vadd.f32 %v8176_v16, %v4464_v41 }
0x1a0f   :  { %4842 = vmatpush.bf16.msrb.mxu3 %v6138_v22 }
0x1a10   :  { %v4477_v8 = vpack.c.bf16 %v4473_v57, %v4472_v14  ;;  %4871 = vmatpush.bf16.msra.mxu0 %v6141_v60 }
0x1a12   :  { %5890 = vmatmul.msk.bf16.gmra.mxu1 %vm247_vm2, %v4477_v8  ;;  %5893 = vmatmul.msk.bf16.gmra.mxu2 %vm247_vm2, %v4477_v8 }
0x1a13   :  { %4843 = vmatpush.bf16.msrb.mxu3 %v6137_v5 }
0x1a17   :  { %4844 = vmatpush.bf16.msrb.mxu3 %v6136_v51 }
0x1a1b   :  { %4845 = vmatpush.bf16.msrb.mxu3 %v6135_v18 }
0x1a1f   :  { %4846 = vmatpush.bf16.msrb.mxu3 %v6134_v10 }
0x1a23   :  { %4847 = vmatpush.bf16.msrb.mxu3 %v6133_v50 }
0x1a6b   :  { %v4376_v45 = vpop.xlane.xlu1 %4375 }
0x1a6c   :  { %v4384_v54 = vmul.f32 %v4376_v45, %v6694_v49 }
0x1a6e   :  { %v4390_v7 = vadd.f32 1e-06, %v4384_v54 }
0x1a70   :  { %6456 = vrsqrt.f32 %v4390_v7  ;;  %vm4438_vm13 = vweird.f32 %v4390_v7 }
0x1a73   :  { %v4379_v48 = vpop.xlane.xlu2 %4378 }
0x1a74   :  { %v4385_v46 = vmul.f32 %v4379_v48, %v6694_v49 }
0x1a76   :  { %v6457_v35 = vpop.eup %6456  ;;  %v4391_v44 = vadd.f32 1e-06, %v4385_v46 }
0x1a77   :  { %v4433_v55 = vmul.f32 %v6457_v35, %v4390_v7  ;;  %vm4439_vm12 = vweird.f32 %v6457_v35 }
0x1a78   :  { %6458 = vrsqrt.f32 %v4391_v44  ;;  %vm4440_vm0 = vmor %vm4438_vm13, %vm4439_vm12  ;;  %vm4448_vm14 = vweird.f32 %v4391_v44 }
0x1a79   :  { %v4434_v24 = vmul.f32 %v6457_v35, %v4433_v55 }
0x1a7b   :  { %v4435_v25 = vmul.f32 0.5, %v4434_v24 }
0x1a7d   :  { %v4436_v30 = vsub.f32 1.5, %v4435_v25 }
0x1a7e   :  { %v6459_v1 = vpop.eup %6458 }
0x1a7f   :  { %v4443_v3 = vmul.f32 %v6459_v1, %v4391_v44  ;;  %v4553_v12 = vpop.f32.mrf.mxu1  ;;  %v4437_v38 = vmul.f32 %v6457_v35, %v4436_v30  ;;  %vm4449_vm9 = vweird.f32 %v6459_v1 }
0x1a80   :  { %v8252_v28 = vadd.f32 %v4553_v12, %v8243_v0  ;;  %vm4450_vm15 = vmor %vm4448_vm14, %vm4449_vm9 }
0x1a81   :  { %v4444_v63 = vmul.f32 %v6459_v1, %v4443_v3  ;;  %v4441_v39 = vsel %vm4440_vm0, %v6457_v35, %v4437_v38 }
0x1a82   :  { %v4604_v37 = vmul.f32 0.044715, %v8252_v28  ;;  %v4456_v61 = vmul.f32 %v4441_v39, %v8160_v17  ;;  %v4592_v60 = vmul.f32 0.5, %v8252_v28 }
0x1a83   :  { %v4445_v59 = vmul.f32 0.5, %v4444_v63 }
0x1a84   :  { %v4616_v20 = vmul.f32 %v4604_v37, %v8252_v28  ;;  %v4465_v11 = vmul.f32 %v8168_v58, %v4456_v61 }
0x1a85   :  { %v4446_v21 = vsub.f32 1.5, %v4445_v59  ;;  %v4577_v32 = vpop.f32.mrf.mxu2 }
0x1a86   :  { %v4628_v19 = vmul.f32 %v4616_v20, %v8252_v28  ;;  %v8263_v31 = vadd.f32 %v4577_v32, %v8255_v33  ;;  %v4474_v51 = vadd.f32 %v8176_v16, %v4465_v11 }
0x1a87   :  { %v4447_v52 = vmul.f32 %v6459_v1, %v4446_v21  ;;  %v4555_v2 = vpop.f32.mrf.mxu1 }
0x1a88   :  { %v4640_v56 = vadd.f32 %v4628_v19, %v8252_v28  ;;  %v4605_v6 = vmul.f32 0.044715, %v8263_v31  ;;  %v4556_v41 = vadd.f32 %v4555_v2, %v8243_v0  ;;  %v4593_v28 = vmul.f32 0.5, %v8263_v31 }
0x1a89   :  { %v4451_v14 = vsel %vm4450_vm15, %v6459_v1, %v4447_v52 }
0x1a8a   :  { %v4457_v57 = vmul.f32 %v4451_v14, %v8181_v53  ;;  %v4617_v8 = vmul.f32 %v4605_v6, %v8263_v31  ;;  %v4606_v15 = vmul.f32 0.044715, %v4556_v41  ;;  %v4652_v42 = vmul.f32 0.7978846, %v4640_v56 }
0x1a8b   :  { %v4594_v59 = vmul.f32 0.5, %v4556_v41 }
0x1a8c   :  { %v4629_v17 = vmul.f32 %v4617_v8, %v8263_v31  ;;  %v4466_v22 = vmul.f32 %v8168_v58, %v4457_v57  ;;  %v4618_v45 = vmul.f32 %v4606_v15, %v4556_v41  ;;  %6460 = vtanh.f32 %v4652_v42 }
0x1a8d   :  { %v4579_v43 = vpop.f32.mrf.mxu2 }
0x1a8e   :  { %v4641_v54 = vadd.f32 %v4629_v17, %v8263_v31  ;;  %v4580_v5 = vadd.f32 %v4579_v43, %v8255_v33  ;;  %v4475_v7 = vadd.f32 %v8176_v16, %v4466_v22  ;;  %v4630_v9 = vmul.f32 %v4618_v45, %v4556_v41 }
0x1a8f   :  { %v4558_v53 = vpop.f32.mrf.mxu1 }
0x1a90   :  { %v4607_v48 = vmul.f32 0.044715, %v4580_v5  ;;  %v8279_v62 = vadd.f32 %v4558_v53, %v8243_v0  ;;  %v4642_v46 = vadd.f32 %v4630_v9, %v4556_v41  ;;  %v4478_v18 = vpack.c.bf16 %v4475_v7, %v4474_v51 }
0x1a91   :  { %v4653_v58 = vmul.f32 0.7978846, %v4641_v54  ;;  %v4595_v41 = vmul.f32 0.5, %v4580_v5 }
0x1a92   :  { %v4619_v35 = vmul.f32 %v4607_v48, %v4580_v5  ;;  %v4608_v44 = vmul.f32 0.044715, %v8279_v62  ;;  %v4654_v55 = vmul.f32 0.7978846, %v4642_v46  ;;  %5891 = vmatmul.msk.bf16.gmra.mxu1 %vm247_vm2, %v4478_v18  ;;  %5894 = vmatmul.msk.bf16.gmra.mxu2 %vm247_vm2, %v4478_v18  ;;  %v6461_v47 = vpop.eup %6460  ;;  %v4596_v31 = vmul.f32 0.5, %v8279_v62 }
0x1a93   :  { %v4676_v23 = vadd.f32 1.0, %v6461_v47 }
0x1a94   :  { %v4631_v34 = vmul.f32 %v4619_v35, %v4580_v5  ;;  %v4620_v24 = vmul.f32 %v4608_v44, %v8279_v62  ;;  %6462 = vtanh.f32 %v4654_v55 }
0x1a95   :  { %v4582_v16 = vpop.f32.mrf.mxu2  ;;  %6464 = vtanh.f32 %v4653_v58  ;;  %v4688_v52 = vmul.f32 %v4676_v23, %v4592_v60 }
0x1a96   :  { %v4643_v10 = vadd.f32 %v4631_v34, %v4580_v5  ;;  %v4583_v25 = vadd.f32 %v4582_v16, %v8255_v33  ;;  %v4632_v4 = vmul.f32 %v4620_v24, %v8279_v62 }
0x1a97   :  { %v4560_v30 = vpop.f32.mrf.mxu1 }
0x1a98   :  { %v4655_v50 = vmul.f32 0.7978846, %v4643_v10  ;;  %v4609_v1 = vmul.f32 0.044715, %v4583_v25  ;;  %v4561_v3 = vadd.f32 %v4560_v30, %v8243_v0  ;;  %v4644_v12 = vadd.f32 %v4632_v4, %v8279_v62 }
0x1a99   :  { %v4597_v10 = vmul.f32 0.5, %v4583_v25 }
0x1a9a   :  { %6466 = vtanh.f32 %v4655_v50  ;;  %v4621_v38 = vmul.f32 %v4609_v1, %v4583_v25  ;;  %v4610_v63 = vmul.f32 0.044715, %v4561_v3  ;;  %v6463_v37 = vpop.eup %6462  ;;  %v4656_v32 = vmul.f32 0.7978846, %v4644_v12 }
0x1a9b   :  { %v6465_v39 = vpop.eup %6464  ;;  %v4678_v20 = vadd.f32 1.0, %v6463_v37  ;;  %v4598_v5 = vmul.f32 0.5, %v4561_v3 }
0x1a9c   :  { %v4622_v21 = vmul.f32 %v4610_v63, %v4561_v3  ;;  %v4633_v19 = vmul.f32 %v4621_v38, %v4583_v25  ;;  %v4677_v57 = vadd.f32 1.0, %v6465_v39  ;;  %6468 = vtanh.f32 %v4656_v32 }
0x1a9d   :  { %v4584_v61 = vpop.f32.mrf.mxu2  ;;  %v4690_v56 = vmul.f32 %v4678_v20, %v4594_v59 }
0x1a9e   :  { %v4585_v2 = vadd.f32 %v4584_v61, %v8255_v33  ;;  %v4634_v6 = vmul.f32 %v4622_v21, %v4561_v3  ;;  %v4645_v14 = vadd.f32 %v4633_v19, %v4583_v25  ;;  %v4689_v54 = vmul.f32 %v4677_v57, %v4593_v28 }
0x1a9f   :  { %v4700_v11 = vpack.c.bf16 %v4690_v56, %v4688_v52 }
0x1aa0   :  { %v6467_v8 = vpop.eup %6466  ;;  %v4611_v15 = vmul.f32 0.044715, %v4585_v2  ;;  %v4646_v42 = vadd.f32 %v4634_v6, %v4561_v3  ;;  %v4657_v43 = vmul.f32 0.7978846, %v4645_v14  ;;  %v4599_v4 = vmul.f32 0.5, %v4585_v2 }
0x1aa1   :  { %v4679_v17 = vadd.f32 1.0, %v6467_v8  ;;  %4848 = vmatmul.bf16.vlgmr.msrb.gmra.mxu3 %v4700_v11 }
0x1aa2   :  { %v4623_v22 = vmul.f32 %v4611_v15, %v4585_v2  ;;  %v4658_v45 = vmul.f32 0.7978846, %v4646_v42  ;;  %v6469_v51 = vpop.eup %6468  ;;  %v8300_v15 = vld [vmem:[%s8355_s20 + $0x1] ss:$0 sm:$0xff] }
0x1aa3   :  { %v4691_v7 = vmul.f32 %v4679_v17, %v4595_v41  ;;  %v4680_v18 = vadd.f32 1.0, %v6469_v51 }
0x1aa4   :  { %6470 = vtanh.f32 %v4658_v45  ;;  %v4635_v9 = vmul.f32 %v4623_v22, %v4585_v2 }
0x1aa5   :  { %v4701_v53 = vpack.c.bf16 %v4691_v7, %v4689_v54  ;;  %6472 = vtanh.f32 %v4657_v43  ;;  %v4692_v55 = vmul.f32 %v4680_v18, %v4596_v31 }
0x1aa6   :  { %v4647_v48 = vadd.f32 %v4635_v9, %v4585_v2 }
0x1aa7   :  { %4872 = vmatmul.bf16.vlgmr.msra.gmra.mxu0 %v4701_v53 }
0x1aa8   :  { %v4659_v46 = vmul.f32 0.7978846, %v4647_v48 }
0x1aaa   :  { %v6471_v58 = vpop.eup %6470  ;;  %6474 = vtanh.f32 %v4659_v46 }
0x1aab   :  { %v4682_v35 = vadd.f32 1.0, %v6471_v58  ;;  %v6473_v44 = vpop.eup %6472 }
0x1aac   :  { %v4681_v16 = vadd.f32 1.0, %v6473_v44 }
0x1aad   :  { %v4694_v34 = vmul.f32 %v4682_v35, %v4598_v5 }
0x1aae   :  { %v4693_v50 = vmul.f32 %v4681_v16, %v4597_v10 }
0x1aaf   :  { %v4702_v24 = vpack.c.bf16 %v4694_v34, %v4692_v55 }
0x1ab0   :  { %v6475_v47 = vpop.eup %6474 }
0x1ab1   :  { %v4683_v30 = vadd.f32 1.0, %v6475_v47  ;;  %4853 = vmatmul.bf16.gmra.mxu3 %v4702_v24 }
0x1ab3   :  { %v4695_v1 = vmul.f32 %v4683_v30, %v4599_v4 }
0x1ab5   :  { %v4703_v12 = vpack.c.bf16 %v4695_v1, %v4693_v50 }
0x1ab7   :  { %4877 = vmatmul.bf16.gmra.mxu0 %v4703_v12 }
0x1b0f   :  { %v4563_v23 = vpop.f32.mrf.mxu1 }
0x1b10   :  { %v4564_v38 = vadd.f32 %v4563_v23, %v8243_v0 }
0x1b12   :  { %v4612_v62 = vmul.f32 0.044715, %v4564_v38  ;;  %v4600_v48 = vmul.f32 0.5, %v4564_v38 }
0x1b14   :  { %v4624_v3 = vmul.f32 %v4612_v62, %v4564_v38 }
0x1b15   :  { %v4587_v63 = vpop.f32.mrf.mxu2 }
0x1b16   :  { %v4588_v37 = vadd.f32 %v4587_v63, %v8255_v33  ;;  %v4636_v60 = vmul.f32 %v4624_v3, %v4564_v38 }
0x1b17   :  { %v4565_v59 = vpop.f32.mrf.mxu1 }
0x1b18   :  { %v4613_v39 = vmul.f32 0.044715, %v4588_v37  ;;  %v4566_v25 = vadd.f32 %v4565_v59, %v8243_v0  ;;  %v4648_v20 = vadd.f32 %v4636_v60, %v4564_v38  ;;  %v4601_v47 = vmul.f32 0.5, %v4588_v37 }
0x1b1a   :  { %v4625_v21 = vmul.f32 %v4613_v39, %v4588_v37  ;;  %v4614_v32 = vmul.f32 0.044715, %v4566_v25  ;;  %v4660_v61 = vmul.f32 0.7978846, %v4648_v20  ;;  %v4602_v46 = vmul.f32 0.5, %v4566_v25 }
0x1b1c   :  { %v4626_v19 = vmul.f32 %v4614_v32, %v4566_v25  ;;  %v4637_v52 = vmul.f32 %v4625_v21, %v4588_v37  ;;  %6476 = vtanh.f32 %v4660_v61 }
0x1b1d   :  { %v4589_v2 = vpop.f32.mrf.mxu2 }
0x1b1e   :  { %v4590_v56 = vadd.f32 %v4589_v2, %v8255_v33  ;;  %v4638_v6 = vmul.f32 %v4626_v19, %v4566_v25  ;;  %v4649_v14 = vadd.f32 %v4637_v52, %v4588_v37 }
0x1b20   :  { %v4615_v57 = vmul.f32 0.044715, %v4590_v56  ;;  %v4650_v8 = vadd.f32 %v4638_v6, %v4566_v25  ;;  %v4661_v42 = vmul.f32 0.7978846, %v4649_v14  ;;  %v4603_v10 = vmul.f32 0.5, %v4590_v56 }
0x1b22   :  { %v4627_v0 = vmul.f32 %v4615_v57, %v4590_v56  ;;  %v4662_v11 = vmul.f32 0.7978846, %v4650_v8  ;;  %v6477_v33 = vpop.eup %6476 }
0x1b23   :  { %v4684_v9 = vadd.f32 1.0, %v6477_v33 }
0x1b24   :  { %v4873_v28 = vpop.f32.mrf.mxu0  ;;  %v4849_v41 = vpop.f32.mrf.mxu3  ;;  %6478 = vtanh.f32 %v4662_v11  ;;  %v4639_v17 = vmul.f32 %v4627_v0, %v4590_v56 }
0x1b25   :  { %v4850_v22 = vadd.f32 %v8300_v15, %v4849_v41  ;;  %6480 = vtanh.f32 %v4661_v42  ;;  %v4696_v35 = vmul.f32 %v4684_v9, %v4600_v48 }
0x1b26   :  { %v4651_v45 = vadd.f32 %v4639_v17, %v4590_v56 }
0x1b27   :  { %v4874_v43 = vadd.f32 %v4873_v28, %v4850_v22 }
0x1b28   :  { %v4663_v54 = vmul.f32 0.7978846, %v4651_v45 }
0x1b29   :  { %v4888_v7 = vadd.f32 %v4874_v43, %v8037_v29 }
0x1b2a   :  { %v6479_v53 = vpop.eup %6478  ;;  %6482 = vtanh.f32 %v4663_v54  ;;  %v6192_v54 = vld [vmem:[%s8356_s21] ss:$0 sm:$0xff] }
0x1b2b   :  { %4894 = vst.msk [vmem:[#allocation2] sm:$0xff] %vm247_vm2, %v4888_v7  ;;  %v4686_v18 = vadd.f32 1.0, %v6479_v53  ;;  %v6481_v58 = vpop.eup %6480 }
0x1b2c   :  { %v4875_v51 = vpop.f32.mrf.mxu0  ;;  %v4851_v31 = vpop.f32.mrf.mxu3  ;;  %v4685_v24 = vadd.f32 1.0, %v6481_v58 }
0x1b2d   :  { %v4852_v5 = vadd.f32 %v8300_v15, %v4851_v31  ;;  %v4698_v44 = vmul.f32 %v4686_v18, %v4602_v46 }
0x1b2e   :  { %v4697_v30 = vmul.f32 %v4685_v24, %v4601_v47 }
0x1b2f   :  { %v4876_v55 = vadd.f32 %v4875_v51, %v4852_v5  ;;  %v4704_v34 = vpack.c.bf16 %v4698_v44, %v4696_v35 }
0x1b30   :  { %v6483_v16 = vpop.eup %6482 }
0x1b31   :  { %v4889_v29 = vadd.f32 %v4876_v55, %v8047_v40  ;;  %4858 = vmatmul.bf16.gmra.mxu3 %v4704_v34  ;;  %v4687_v4 = vadd.f32 1.0, %v6483_v16 }
0x1b32   :  { %v4900_v20 = vld [vmem:[#allocation2] sm:$0x1] }
0x1b33   :  { %4895 = vst.msk [vmem:[#allocation2 + $0x8] sm:$0xff] %vm247_vm2, %v4889_v29  ;;  %v4699_v50 = vmul.f32 %v4687_v4, %v4603_v10 }
0x1b34   :  { %v4854_v1 = vpop.f32.mrf.mxu3  ;;  %v4878_v12 = vpop.f32.mrf.mxu0 }
0x1b35   :  { %v4855_v23 = vadd.f32 %v8300_v15, %v4854_v1  ;;  %v4705_v38 = vpack.c.bf16 %v4699_v50, %v4697_v30 }
0x1b37   :  { %v4879_v62 = vadd.f32 %v4878_v12, %v4855_v23  ;;  %4882 = vmatmul.bf16.gmra.mxu0 %v4705_v38 }
0x1b39   :  { %v4890_v3 = vadd.f32 %v4879_v62, %v8054_v36 }
0x1b3b   :  { %4896 = vst.msk [vmem:[#allocation2 + $0x10] sm:$0xff] %vm247_vm2, %v4890_v3 }
0x1b3c   :  { %v4856_v40 = vpop.f32.mrf.mxu3  ;;  %v4880_v37 = vpop.f32.mrf.mxu0 }
0x1b3d   :  { %v4857_v63 = vadd.f32 %v8300_v15, %v4856_v40 }
0x1b3f   :  { %v4881_v60 = vadd.f32 %v4880_v37, %v4857_v63 }
0x1b41   :  { %v4891_v59 = vadd.f32 %v4881_v60, %v8059_v26 }
0x1b43   :  { %4897 = vst.msk [vmem:[#allocation2 + $0x18] sm:$0xff] %vm247_vm2, %v4891_v59 }
0x1b4a   :  { %v4901_v39 = vld [vmem:[#allocation2 + $0x18] sm:$0x1] }
0x1b4b   :  { %v4903_v25 = vrot.slane %v4901_v39, 7 }
0x1b4d   :  { %v4905_v21 = vsel %vm228_vm1, %v4900_v20, %v4903_v25 }
0x1b4e   :  { %v4909_v32 = vsel %vm4908_vm3, %v4905_v21, 0.0 }
0x1b4f   :  { %4910 = vadd.xlane.f32.xlu0 %v4909_v32 }
0x1bb4   :  { %v4859_v36 = vpop.f32.mrf.mxu3  ;;  %v4883_v19 = vpop.f32.mrf.mxu0 }
0x1bb5   :  { %v4860_v61 = vadd.f32 %v8300_v15, %v4859_v36 }
0x1bb7   :  { %v4884_v52 = vadd.f32 %v4883_v19, %v4860_v61 }
0x1bb9   :  { %v4892_v2 = vadd.f32 %v4884_v52, %v8095_v27 }
0x1bbb   :  { %4898 = vst.msk [vmem:[#allocation2 + $0x20] sm:$0xff] %vm247_vm2, %v4892_v2 }
0x1bbc   :  { %v4861_v26 = vpop.f32.mrf.mxu3  ;;  %v4885_v6 = vpop.f32.mrf.mxu0 }
0x1bbd   :  { %v4862_v56 = vadd.f32 %v8300_v15, %v4861_v26 }
0x1bbf   :  { %v4886_v14 = vadd.f32 %v4885_v6, %v4862_v56 }
0x1bc1   :  { %v4893_v57 = vadd.f32 %v4886_v14, %v8103_v13 }
0x1bc2   :  { %v4911_v8 = vpop.xlane.xlu0 %4910 }
0x1bc3   :  { %4899 = vst.msk [vmem:[#allocation2 + $0x28] sm:$0xff] %vm247_vm2, %v4893_v57  ;;  %v4912_v0 = vmul.f32 %v4911_v8, %v6694_v49 }
0x1bc5   :  { %v4913_v11 = vsub.f32 %v4905_v21, %v4912_v0 }
0x1bc7   :  { %v4914_v42 = vmul.f32 %v4913_v11, %v4913_v11 }
0x1bc9   :  { %v4915_v28 = vsel %vm4908_vm3, %v4914_v42, 0.0 }
0x1bca   :  { %4916 = vadd.xlane.f32.xlu1 %v4915_v28 }
0x1c3d   :  { %v4917_v27 = vpop.xlane.xlu1 %4916 }
0x1c3e   :  { %v4918_v41 = vmul.f32 %v4917_v27, %v6694_v49  ;;  %v6193_v49 = vld [vmem:[%s8357_s22] ss:$0 sm:$0xff] }
0x1c40   :  { %v4919_v17 = vadd.f32 1e-06, %v4918_v41 }
0x1c42   :  { %6484 = vrsqrt.f32 %v4919_v17  ;;  %vm4926_vm2 = vweird.f32 %v4919_v17 }
0x1c48   :  { %v6485_v15 = vpop.eup %6484 }
0x1c49   :  { %v4921_v22 = vmul.f32 %v6485_v15, %v4919_v17  ;;  %vm4927_vm1 = vweird.f32 %v6485_v15 }
0x1c4a   :  { %vm4928_vm4 = vmor %vm4926_vm2, %vm4927_vm1 }
0x1c4b   :  { %v4922_v33 = vmul.f32 %v6485_v15, %v4921_v22 }
0x1c4d   :  { %v4923_v45 = vmul.f32 0.5, %v4922_v33 }
0x1c4f   :  { %v4924_v13 = vsub.f32 1.5, %v4923_v45 }
0x1c51   :  { %v4925_v43 = vmul.f32 %v6485_v15, %v4924_v13 }
0x1c53   :  { %v4929_v7 = vsel %vm4928_vm4, %v6485_v15, %v4925_v43 }
0x1c54   :  { %v4930_v9 = vmul.f32 %v4929_v7, %v4913_v11 }
0x1c56   :  { %v4934_v53 = vmul.f32 %v6192_v54, %v4930_v9 }
0x1c58   :  { %v4938_v51 = vadd.f32 %v6193_v49, %v4934_v53 }
0x1c5a   :  { %4939 = vst.msk [vmem:[#allocation3] sm:$0x3] %vm4908_vm3, %v4938_v51 }
0x1c5b   :  { %4950 = dma.vmem_to_hbm [thread:$0]  %s4946_s26, 32, %s4948_s0, [#allocation4]  }
0x1c5c   :  { %6522 = dma.done.wait [#allocation4], 32  }
0x1c5d   :  { %6523 = vsyncadd [#allocation4], 4294967264 }
0x1c5e   :  { %4955 = vsyncpa [#allocation4], 1 }

</bundles_post_ra>
